<compile_context>
chip_gen: v7x
topology: tpu7x:2x2x1
jax: 0.10.0
libtpu: 0.0.40
codegen_flags: <defaults>
</compile_context>

<pallas_src>
import jax
import jax.numpy as jnp
from jax.experimental import pallas as pl
from jax.experimental.pallas import tpu as pltpu


def _round_up(x, m):
    return ((x + m - 1) // m) * m


def fc_head_kernel(x_ref, w_ref, b_ref, o_ref):
    # x_ref: (TN, C*HW)   w_ref: (C*HW, KP)   b_ref: (1, KP)   o_ref: (TN, KP)
    acc = jnp.dot(x_ref[...], w_ref[...], preferred_element_type=jnp.float32)
    o_ref[...] = (acc + b_ref[...].astype(jnp.float32)).astype(o_ref.dtype)


def fc_head_forward(x_nchw, weight, bias, *, tile_n=128):
    """x_nchw: (N, C, H, W); weight: (K, C) [PyTorch Linear layout]; bias: (K,)."""
    N, C, H, W = x_nchw.shape
    K = weight.shape[0]
    HW = H * W
    CHW = C * HW
    dtype = x_nchw.dtype
    dsize = jnp.dtype(dtype).itemsize

    # --- fold avg-pool into the FC weight: W_big[c*HW + s, k] = weight[k, c] / HW ---
    w_big = jnp.repeat(weight.T, HW, axis=0) / jnp.asarray(HW, dtype=weight.dtype)  # (CHW, K)

    # --- pad num_classes up to a full lane width (128) ---
    KP = _round_up(max(K, 128), 128)
    w_big = jnp.pad(w_big, ((0, 0), (0, KP - K))).astype(dtype)
    b_pad = jnp.pad(bias, (0, KP - K)).astype(jnp.float32).reshape(1, KP)

    # --- tile + pad the batch/ROI axis (sublane multiple of 8, grid divides evenly) ---
    TN = min(tile_n, _round_up(N, 8))
    NP = _round_up(N, TN)
    x_flat = x_nchw.reshape(N, CHW)                  # free reshape for contiguous NCHW
    if NP != N:
        x_flat = jnp.pad(x_flat, ((0, NP - N), (0, 0)))

    grid = (NP // TN,)

    # VMEM budget: double-buffered x tile + (resident but 2x-allocated) weight + outputs.
    vmem_bytes = (2 * TN * CHW * dsize          # x tiles
                  + 2 * CHW * KP * dsize        # weight
                  + 2 * TN * KP * dsize         # output tiles
                  + 2 * KP * 4                  # bias
                  + (2 << 20))                  # margin
    vmem_limit = int(min(max(vmem_bytes, 32 << 20), 64 << 20))

    cost = pl.CostEstimate(
        flops=2 * NP * CHW * KP,
        transcendentals=0,
        bytes_accessed=NP * CHW * dsize + CHW * KP * dsize + NP * KP * dsize,
    )

    out = pl.pallas_call(
        fc_head_kernel,
        out_shape=jax.ShapeDtypeStruct((NP, KP), dtype),
        grid_spec=pltpu.PrefetchScalarGridSpec(
            num_scalar_prefetch=0,
            grid=grid,
            in_specs=[
                pl.BlockSpec((TN, CHW), lambda i: (i, 0)),   # x: streamed over N
                pl.BlockSpec((CHW, KP), lambda i: (0, 0)),   # weight: VMEM-resident
                pl.BlockSpec((1, KP), lambda i: (0, 0)),     # bias: VMEM-resident
            ],
            out_specs=pl.BlockSpec((TN, KP), lambda i: (i, 0)),
        ),
        compiler_params=pltpu.CompilerParams(
            dimension_semantics=("parallel",),
            vmem_limit_bytes=vmem_limit,
        ),
        cost_estimate=cost,
    )(x_flat, w_big, b_pad)

    return out[:N, :K]


if __name__ == "__main__":
    # Small, module-consistent shapes (dim=2, with_avg_pool=True, dropout=None).
    N, C, H, W = 2, 256, 8, 8
    NUM_CLASSES = 10

    key = jax.random.PRNGKey(0)
    kx, kw = jax.random.split(key)

    x = jax.random.normal(kx, (N, C, H, W), dtype=jnp.float32)

    # init_weights(): weight ~ N(0, 0.01), bias = 0 (deterministic, in-script).
    weight = 0.01 * jax.random.normal(kw, (NUM_CLASSES, C), dtype=jnp.float32)
    bias = jnp.zeros((NUM_CLASSES,), dtype=jnp.float32)

    cls_score = fc_head_forward(x, weight, bias)
    cls_score = jax.block_until_ready(cls_score)

    # Reference (plain JAX) — same math as the PyTorch forward.
    pooled_ref = jnp.mean(x, axis=(2, 3))            # (N, C)
    ref = pooled_ref @ weight.T + bias               # (N, NUM_CLASSES)

    assert cls_score.shape == (N, NUM_CLASSES)
    assert jnp.allclose(cls_score, ref, atol=1e-3, rtol=1e-3), (
        float(jnp.max(jnp.abs(cls_score - ref))))

    # TODO(synk): dropout (config=None here) and loss()/init_weights() are training-time
    # utilities, not part of this inference forward pass.
    print("KERNEL_OK")
</pallas_src>

<mosaic_0001>
module attributes {stable_mosaic.version = 11 : i64} {
  func.func @fc_head_kernel(%arg0: i32, %arg1: memref<8x16384xf32, #tpu.memory_space<vmem>>, %arg2: memref<16384x128xf32, #tpu.memory_space<vmem>>, %arg3: memref<1x128xf32, #tpu.memory_space<vmem>>, %arg4: memref<8x128xf32, #tpu.memory_space<vmem>>) attributes {dimension_semantics = [#tpu.dimension_semantics<parallel>], iteration_bounds = array<i64: 1>, scalar_prefetch = 0 : i64, scratch_operands = 0 : i64, tpu.core_type = #tpu.core_type<tc>, window_params = [{transform_indices = @transform_0, window_bounds = array<i64: 8, 16384>}, {pipeline_mode = #tpu.pipeline_mode<synchronous>, transform_indices = @transform_1, window_bounds = array<i64: 16384, 128>}, {pipeline_mode = #tpu.pipeline_mode<synchronous>, transform_indices = @transform_2, window_bounds = array<i64: 1, 128>}, {transform_indices = @transform_3, window_bounds = array<i64: 8, 128>}]} {
    %c0 = arith.constant 0 : index
    %c0_0 = arith.constant 0 : index
    %0 = vector.load %arg1[%c0, %c0_0] : memref<8x16384xf32, #tpu.memory_space<vmem>>, vector<8x16384xf32>
    %c0_1 = arith.constant 0 : index
    %c0_2 = arith.constant 0 : index
    %1 = vector.load %arg2[%c0_1, %c0_2] : memref<16384x128xf32, #tpu.memory_space<vmem>>, vector<16384x128xf32>
    %cst = arith.constant dense<0.000000e+00> : vector<8x128xf32>
    %2 = tpu.matmul %0, %1, %cst {dimension_numbers = #tpu.dot_dimension_numbers<[1], [0], [0], [1], [0, 0, 1, 1], [], []>} : vector<8x16384xf32>, vector<16384x128xf32>, vector<8x128xf32> -> vector<8x128xf32>
    %c0_3 = arith.constant 0 : index
    %c0_4 = arith.constant 0 : index
    %3 = vector.load %arg3[%c0_3, %c0_4] : memref<1x128xf32, #tpu.memory_space<vmem>>, vector<1x128xf32>
    %4 = vector.broadcast %3 : vector<1x128xf32> to vector<8x128xf32>
    %5 = arith.addf %2, %4 : vector<8x128xf32>
    %c0_5 = arith.constant 0 : index
    %c0_6 = arith.constant 0 : index
    %6 = vector.load %arg4[%c0_5, %c0_6] : memref<8x128xf32, #tpu.memory_space<vmem>>, vector<8x128xf32>
    tpu.vector_store %arg4[%c0_5, %c0_6], %5 {strides = array<i32>} : memref<8x128xf32, #tpu.memory_space<vmem>>, vector<8x128xf32>,
    return
  }
  func.func @transform_0(%arg0: i32) -> (i32, i32) {
    %c0_i32 = arith.constant 0 : i32
    %c0_i32_0 = arith.constant 0 : i32
    return %arg0, %c0_i32 : i32, i32
  }
  func.func @transform_1(%arg0: i32) -> (i32, i32) {
    %c0_i32 = arith.constant 0 : i32
    %c0_i32_0 = arith.constant 0 : i32
    %c0_i32_1 = arith.constant 0 : i32
    return %c0_i32, %c0_i32_0 : i32, i32
  }
  func.func @transform_2(%arg0: i32) -> (i32, i32) {
    %c0_i32 = arith.constant 0 : i32
    %c0_i32_0 = arith.constant 0 : i32
    %c0_i32_1 = arith.constant 0 : i32
    return %c0_i32, %c0_i32_0 : i32, i32
  }
  func.func @transform_3(%arg0: i32) -> (i32, i32) {
    %c0_i32 = arith.constant 0 : i32
    %c0_i32_0 = arith.constant 0 : i32
    return %arg0, %c0_i32 : i32, i32
  }
}

</mosaic_0001>

<bundles_post_ra>
// kernel: tpu_custom_call.1
= control target key start
LH: loop header
LB: loop body
LE: loop exit
PB: predicated region body
PF: predicated region fallthrough
CT: control target
= control target key end

     0   :  { %8 = vsyncpa [#allocation3], 0  ;;  %s11267_s0 = inlined_call_operand.hbm [shape: f32[8,16384], index: 0, kind: input, shape index: {}]   ;;  %s11268_s1 = inlined_call_operand.hbm [shape: f32[16384,128], index: 1, kind: input, shape index: {}]   ;;  %s11269_s2 = inlined_call_operand.hbm [shape: f32[1,128], index: 2, kind: input, shape index: {}]   ;;  %s11270_s3 = inlined_call_operand.hbm [shape: f32[8,128], index: 3, kind: output, shape index: {}]  }
   0x1   :  { %9 = vsyncpa [#allocation6], 0 }
   0x2   :  { %10 = vsyncpa [#allocation4], 0  ;;  %s11121_s12 = smov [#allocation5]   ;;  %s11027_s16 = scalar_lea.hbm %s11268_s1, 262144 }
   0x3   :  { %s26_s13 = sshll.u32 %s11121_s12, 4  ;;  %p11028_p0 = scmp.ne.s32.totalorder %s11268_s1, %s11027_s16  ;;  %s27_s13 = int_to_ptr.vmem [resolvable:$true] %s26_s13 }
   0x4   :  { %p11031_p1 = scmp.lt.u32.totalorder %s11027_s16, %s11268_s1 }
   0x6   :  { %p11033_p2 = pnand %p11031_p1, %p11028_p0 }
   0x8   :  { %11036 = shalt.err (!%p11033_p2)
}
   0x9   :  { %s11037_s21 = scalar_lea.vmem %s27_s13, 262144  ;;  %p11042_p4 = scmp.lt.s32.totalorder %s27_s13, %s27_s13 }
   0xa   :  { %p11038_p3 = scmp.ne.s32.totalorder %s27_s13, %s11037_s21  ;;  %p11043_p5 = scmp.lt.s32.totalorder %s11037_s21, %s11037_s21 }
   0xc   :  { %p11044_p6 = por %p11043_p5, %p11042_p4 }
   0xe   :  { %p11045_p7 = pnand %p11044_p6, %p11038_p3 }
  0x10   :  { %11048 = shalt.err (!%p11045_p7)
}
  0x11   :  { %s11122_s22 = smov 128   ;;  %s11123_s23 = smov 8  }
  0x12   :  { %32 = dma.hbm_to_vmem [thread:$0]  %s11268_s1, 262144, %s27_s13, [#allocation6], %s11122_s22, %s11122_s22, %s11123_s23  }
  0x13   :  { %s11124_s26 = smov [#allocation2]   ;;  %s11125_s28 = smov [#allocation7]  }
  0x14   :  { %s17_s27 = sshll.u32 %s11124_s26, 4  ;;  %s39_s29 = sshll.u32 %s11125_s28, 4  ;;  %s18_s27 = int_to_ptr.vmem [resolvable:$true] %s17_s27  ;;  %s40_s29 = int_to_ptr.vmem [resolvable:$true] %s39_s29 }
  0x15   :  { %s11049_s5 = scalar_lea.hbm %s11267_s0, 16384 }
  0x16   :  { %p11050_p8 = scmp.ne.s32.totalorder %s11267_s0, %s11049_s5  ;;  %p11053_p9 = scmp.lt.u32.totalorder %s11049_s5, %s11267_s0 }
  0x18   :  { %p11055_p10 = pnand %p11053_p9, %p11050_p8 }
  0x1a   :  { %11058 = shalt.err (!%p11055_p10)
}
  0x1b   :  { %s11059_s1 = scalar_lea.vmem %s18_s27, 16384  ;;  %p11064_p12 = scmp.lt.s32.totalorder %s18_s27, %s18_s27 }
  0x1c   :  { %p11060_p11 = scmp.ne.s32.totalorder %s18_s27, %s11059_s1  ;;  %p11065_p13 = scmp.lt.s32.totalorder %s11059_s1, %s11059_s1 }
  0x1e   :  { %p11066_p0 = por %p11065_p13, %p11064_p12 }
  0x20   :  { %p11067_p1 = pnand %p11066_p0, %p11060_p11 }
  0x22   :  { %11070 = shalt.err (!%p11067_p1)
}
  0x23   :  { %20 = dma.hbm_to_vmem [thread:$0]  %s11267_s0, 16384, %s18_s27, [#allocation3]  }
  0x24   :  { %s11071_s14 = scalar_lea.hbm %s11269_s2, 16 }
  0x25   :  { %p11072_p2 = scmp.ne.s32.totalorder %s11269_s2, %s11071_s14  ;;  %p11075_p3 = scmp.lt.u32.totalorder %s11071_s14, %s11269_s2 }
  0x27   :  { %p11077_p4 = pnand %p11075_p3, %p11072_p2 }
  0x29   :  { %11080 = shalt.err (!%p11077_p4)
}
  0x2a   :  { %s11081_s19 = scalar_lea.vmem %s40_s29, 16  ;;  %s11085_s20 = scalar_lea.vmem %s40_s29, 32 }
  0x2b   :  { %p11082_p5 = scmp.ne.s32.totalorder %s40_s29, %s11081_s19  ;;  %p11086_p6 = scmp.lt.s32.totalorder %s40_s29, %s40_s29 }
  0x2c   :  { %p11087_p7 = scmp.lt.s32.totalorder %s11085_s20, %s11081_s19 }
  0x2e   :  { %p11088_p8 = por %p11087_p7, %p11086_p6 }
  0x30   :  { %p11089_p9 = pnand %p11088_p8, %p11082_p5 }
  0x32   :  { %11092 = shalt.err (!%p11089_p9)
}
  0x33   :  { %42 = dma.hbm_to_vmem [thread:$0]  %s11269_s2, 16, %s40_s29, [#allocation6]  }
  0x34   :  { %11115 = dma.done.wait [#allocation3], 16384  }
  0x35   :  { %11116 = vsyncadd [#allocation3], 4294950912 }
  0x36   :  { %11117 = dma.done.wait [#allocation6], 262160  }
  0x37   :  { %11118 = vsyncadd [#allocation6], 4294705136  ;;  %v196_v0 = vld [vmem:[#allocation5 + $0x80] sm:$0xff]  ;;  %v197_v1 = vld [vmem:[#allocation5 + $0x88] sm:$0xff]  ;;  %s11126_s2 = smov [#allocation8]  }
  0x38   :  { %v180_v2 = vld [vmem:[#allocation5] sm:$0xff]  ;;  %v8973_v3 = vpack.c.bf16 %v197_v1, %v196_v0  ;;  %v181_v4 = vld [vmem:[#allocation5 + $0x8] sm:$0xff]  ;;  %v198_v11 = vld [vmem:[#allocation5 + $0x90] sm:$0xff]  ;;  %s6722_s22 = sshll.u32 %s11126_s2, 4  ;;  %s6723_s22 = int_to_ptr.vmem [resolvable:$true] %s6722_s22 }
  0x39   :  { %v228_v5 = vld [vmem:[#allocation5 + $0x180] sm:$0xff]  ;;  %v229_v6 = vld [vmem:[#allocation5 + $0x188] sm:$0xff]  ;;  %v8975_v7 = vpack.c.bf16 %v181_v4, %v180_v2  ;;  %v199_v13 = vld [vmem:[#allocation5 + $0x98] sm:$0xff]  ;;  %s11093_s23 = scalar_lea.vmem %s6723_s22, 128  ;;  %p11098_p11 = scmp.lt.s32.totalorder %s6723_s22, %s6723_s22 }
  0x3a   :  { %v9005_v8 = vpack.c.bf16 %v229_v6, %v228_v5  ;;  %v212_v9 = vld [vmem:[#allocation5 + $0x100] sm:$0xff]  ;;  %v213_v10 = vld [vmem:[#allocation5 + $0x108] sm:$0xff]  ;;  %8974 = vmatprep.subr.bf16.mxu0 %v8973_v3  ;;  %v182_v14 = vld [vmem:[#allocation5 + $0x10] sm:$0xff]  ;;  %v8977_v16 = vpack.c.bf16 %v199_v13, %v198_v11  ;;  %p11094_p10 = scmp.ne.s32.totalorder %s6723_s22, %s11093_s23  ;;  %p11099_p12 = scmp.lt.s32.totalorder %s11093_s23, %s11093_s23 }
  0x3b   :  { %v9007_v12 = vpack.c.bf16 %v213_v10, %v212_v9  ;;  %v183_v15 = vld [vmem:[#allocation5 + $0x18] sm:$0xff]  ;;  %8976 = vmatpush3.bf16.msra.mxu0 %v8975_v7  ;;  %v230_v18 = vld [vmem:[#allocation5 + $0x190] sm:$0xff]  ;;  %v200_v23 = vld [vmem:[#allocation5 + $0xa0] sm:$0xff] }
  0x3c   :  { %9006 = vmatprep.subr.bf16.mxu1 %v9005_v8  ;;  %v8979_v17 = vpack.c.bf16 %v183_v15, %v182_v14  ;;  %v231_v19 = vld [vmem:[#allocation5 + $0x198] sm:$0xff]  ;;  %v214_v20 = vld [vmem:[#allocation5 + $0x110] sm:$0xff]  ;;  %v201_v24 = vld [vmem:[#allocation5 + $0xa8] sm:$0xff]  ;;  %8978 = vmatprep.subr.bf16.mxu0 %v8977_v16  ;;  %p11100_p13 = por %p11099_p12, %p11098_p11 }
  0x3d   :  { %9008 = vmatpush3.bf16.msra.mxu1 %v9007_v12  ;;  %v9009_v21 = vpack.c.bf16 %v231_v19, %v230_v18  ;;  %v215_v22 = vld [vmem:[#allocation5 + $0x118] sm:$0xff]  ;;  %v8981_v26 = vpack.c.bf16 %v201_v24, %v200_v23  ;;  %v184_v27 = vld [vmem:[#allocation5 + $0x20] sm:$0xff]  ;;  %v185_v28 = vld [vmem:[#allocation5 + $0x28] sm:$0xff] }
  0x3e   :  { %v9011_v25 = vpack.c.bf16 %v215_v22, %v214_v20  ;;  %v232_v29 = vld [vmem:[#allocation5 + $0x1a0] sm:$0xff]  ;;  %v233_v30 = vld [vmem:[#allocation5 + $0x1a8] sm:$0xff]  ;;  %v8983_v33 = vpack.c.bf16 %v185_v28, %v184_v27  ;;  %v202_v35 = vld [vmem:[#allocation5 + $0xb0] sm:$0xff]  ;;  %p11101_p0 = pnand %p11100_p13, %p11094_p10 }
  0x3f   :  { %9010 = vmatprep.subr.bf16.mxu1 %v9009_v21  ;;  %v216_v31 = vld [vmem:[#allocation5 + $0x120] sm:$0xff]  ;;  %v217_v32 = vld [vmem:[#allocation5 + $0x128] sm:$0xff]  ;;  %8980 = vmatpush3.bf16.msra.mxu0 %v8979_v17  ;;  %v9013_v34 = vpack.c.bf16 %v233_v30, %v232_v29  ;;  %v203_v36 = vld [vmem:[#allocation5 + $0xb8] sm:$0xff] }
  0x40   :  { %v186_v37 = vld [vmem:[#allocation5 + $0x30] sm:$0xff]  ;;  %8982 = vmatprep.subr.bf16.mxu0 %v8981_v26  ;;  %v9015_v38 = vpack.c.bf16 %v217_v32, %v216_v31  ;;  %v8985_v39 = vpack.c.bf16 %v203_v36, %v202_v35  ;;  %v187_v40 = vld [vmem:[#allocation5 + $0x38] sm:$0xff]  ;;  %v204_v46 = vld [vmem:[#allocation5 + $0xc0] sm:$0xff] }
  0x41   :  { %9012 = vmatpush3.bf16.msra.mxu1 %v9011_v25  ;;  %v234_v41 = vld [vmem:[#allocation5 + $0x1b0] sm:$0xff]  ;;  %v235_v42 = vld [vmem:[#allocation5 + $0x1b8] sm:$0xff]  ;;  %v205_v47 = vld [vmem:[#allocation5 + $0xc8] sm:$0xff]  ;;  %v8987_v48 = vpack.c.bf16 %v187_v40, %v186_v37 }
  0x42   :  { %9014 = vmatprep.subr.bf16.mxu1 %v9013_v34  ;;  %v9017_v43 = vpack.c.bf16 %v235_v42, %v234_v41  ;;  %v218_v44 = vld [vmem:[#allocation5 + $0x130] sm:$0xff]  ;;  %v219_v45 = vld [vmem:[#allocation5 + $0x138] sm:$0xff]  ;;  %v236_v49 = vld [vmem:[#allocation5 + $0x1c0] sm:$0xff]  ;;  %v8989_v52 = vpack.c.bf16 %v205_v47, %v204_v46 }
  0x43   :  { %8984 = vmatpush3.bf16.msra.mxu0 %v8983_v33  ;;  %v237_v50 = vld [vmem:[#allocation5 + $0x1c8] sm:$0xff]  ;;  %v9019_v51 = vpack.c.bf16 %v219_v45, %v218_v44  ;;  %v188_v53 = vld [vmem:[#allocation5 + $0x40] sm:$0xff]  ;;  %v206_v58 = vld [vmem:[#allocation5 + $0xd0] sm:$0xff] }
  0x44   :  { %8986 = vmatprep.subr.bf16.mxu0 %v8985_v39  ;;  %v189_v54 = vld [vmem:[#allocation5 + $0x48] sm:$0xff]  ;;  %v220_v55 = vld [vmem:[#allocation5 + $0x140] sm:$0xff]  ;;  %v9021_v56 = vpack.c.bf16 %v237_v50, %v236_v49  ;;  %v207_v59 = vld [vmem:[#allocation5 + $0xd8] sm:$0xff] }
  0x45   :  { %9016 = vmatpush3.bf16.msra.mxu1 %v9015_v38  ;;  %v221_v57 = vld [vmem:[#allocation5 + $0x148] sm:$0xff]  ;;  %v238_v60 = vld [vmem:[#allocation5 + $0x1d0] sm:$0xff]  ;;  %v239_v61 = vld [vmem:[#allocation5 + $0x1d8] sm:$0xff]  ;;  %v8991_v62 = vpack.c.bf16 %v189_v54, %v188_v53  ;;  %v8993_v0 = vpack.c.bf16 %v207_v59, %v206_v58 }
  0x46   :  { %9018 = vmatprep.subr.bf16.mxu1 %v9017_v43  ;;  %v9023_v63 = vpack.c.bf16 %v221_v57, %v220_v55  ;;  %v190_v1 = vld [vmem:[#allocation5 + $0x50] sm:$0xff]  ;;  %v191_v2 = vld [vmem:[#allocation5 + $0x58] sm:$0xff]  ;;  %v9025_v4 = vpack.c.bf16 %v239_v61, %v238_v60  ;;  %v208_v6 = vld [vmem:[#allocation5 + $0xe0] sm:$0xff] }
  0x47   :  { %8988 = vmatpush3.bf16.msra.mxu0 %v8987_v48  ;;  %v222_v3 = vld [vmem:[#allocation5 + $0x150] sm:$0xff]  ;;  %v223_v5 = vld [vmem:[#allocation5 + $0x158] sm:$0xff]  ;;  %v209_v7 = vld [vmem:[#allocation5 + $0xe8] sm:$0xff]  ;;  %v8995_v10 = vpack.c.bf16 %v191_v2, %v190_v1 }
  0x48   :  { %8990 = vmatprep.subr.bf16.mxu0 %v8989_v52  ;;  %v240_v8 = vld [vmem:[#allocation5 + $0x1e0] sm:$0xff]  ;;  %v241_v9 = vld [vmem:[#allocation5 + $0x1e8] sm:$0xff]  ;;  %v9027_v13 = vpack.c.bf16 %v223_v5, %v222_v3  ;;  %v8997_v14 = vpack.c.bf16 %v209_v7, %v208_v6  ;;  %v210_v19 = vld [vmem:[#allocation5 + $0xf0] sm:$0xff] }
  0x49   :  { %9020 = vmatpush3.bf16.msra.mxu1 %v9019_v51  ;;  %v192_v11 = vld [vmem:[#allocation5 + $0x60] sm:$0xff]  ;;  %v193_v12 = vld [vmem:[#allocation5 + $0x68] sm:$0xff]  ;;  %v9029_v18 = vpack.c.bf16 %v241_v9, %v240_v8  ;;  %v211_v20 = vld [vmem:[#allocation5 + $0xf8] sm:$0xff] }
  0x4a   :  { %9022 = vmatprep.subr.bf16.mxu1 %v9021_v56  ;;  %v224_v15 = vld [vmem:[#allocation5 + $0x160] sm:$0xff]  ;;  %v225_v16 = vld [vmem:[#allocation5 + $0x168] sm:$0xff]  ;;  %v55_v21 = vld [vmem:[#allocation2 + $0x18] sm:$0xff]  ;;  %v8999_v24 = vpack.c.bf16 %v193_v12, %v192_v11  ;;  %v9001_v26 = vpack.c.bf16 %v211_v20, %v210_v19 }
  0x4b   :  { %8992 = vmatpush3.bf16.msra.mxu0 %v8991_v62  ;;  %v53_v17 = vld [vmem:[#allocation2 + $0x8] sm:$0xff]  ;;  %v242_v22 = vld [vmem:[#allocation5 + $0x1f0] sm:$0xff]  ;;  %v243_v23 = vld [vmem:[#allocation5 + $0x1f8] sm:$0xff]  ;;  %2369 = vmatprep.mubr.f32.mxu1 %v55_v21  ;;  %v9031_v25 = vpack.c.bf16 %v225_v16, %v224_v15 }
  0x4c   :  { %8994 = vmatprep.subr.bf16.mxu0 %v8993_v0  ;;  %2299 = vmatprep.mubr.f32.mxu0 %v53_v17  ;;  %v194_v27 = vld [vmem:[#allocation5 + $0x70] sm:$0xff]  ;;  %v195_v28 = vld [vmem:[#allocation5 + $0x78] sm:$0xff]  ;;  %v9033_v30 = vpack.c.bf16 %v243_v23, %v242_v22  ;;  %v260_v32 = vld [vmem:[#allocation5 + $0x280] sm:$0xff] }
  0x4d   :  { %9024 = vmatpush3.bf16.msra.mxu1 %v9023_v63  ;;  %v226_v29 = vld [vmem:[#allocation5 + $0x170] sm:$0xff]  ;;  %v227_v31 = vld [vmem:[#allocation5 + $0x178] sm:$0xff]  ;;  %v261_v33 = vld [vmem:[#allocation5 + $0x288] sm:$0xff]  ;;  %v9003_v36 = vpack.c.bf16 %v195_v28, %v194_v27 }
  0x4e   :  { %9026 = vmatprep.subr.bf16.mxu1 %v9025_v4  ;;  %v292_v34 = vld [vmem:[#allocation5 + $0x380] sm:$0xff]  ;;  %v293_v35 = vld [vmem:[#allocation5 + $0x388] sm:$0xff]  ;;  %v9035_v37 = vpack.c.bf16 %v227_v31, %v226_v29  ;;  %v9037_v38 = vpack.c.bf16 %v261_v33, %v260_v32  ;;  %v262_v44 = vld [vmem:[#allocation5 + $0x290] sm:$0xff] }
  0x4f   :  { %8996 = vmatpush3.bf16.msra.mxu0 %v8995_v10  ;;  %v244_v39 = vld [vmem:[#allocation5 + $0x200] sm:$0xff]  ;;  %v245_v40 = vld [vmem:[#allocation5 + $0x208] sm:$0xff]  ;;  %v9069_v42 = vpack.c.bf16 %v293_v35, %v292_v34  ;;  %v263_v45 = vld [vmem:[#allocation5 + $0x298] sm:$0xff] }
  0x50   :  { %8998 = vmatprep.subr.bf16.mxu0 %v8997_v14  ;;  %v276_v41 = vld [vmem:[#allocation5 + $0x300] sm:$0xff]  ;;  %v277_v43 = vld [vmem:[#allocation5 + $0x308] sm:$0xff]  ;;  %v294_v46 = vld [vmem:[#allocation5 + $0x390] sm:$0xff]  ;;  %v9039_v49 = vpack.c.bf16 %v245_v40, %v244_v39  ;;  %v9041_v52 = vpack.c.bf16 %v263_v45, %v262_v44 }
  0x51   :  { %9028 = vmatpush3.bf16.msra.mxu1 %v9027_v13  ;;  %v295_v47 = vld [vmem:[#allocation5 + $0x398] sm:$0xff]  ;;  %v52_v48 = vld [vmem:[#allocation2] sm:$0xff]  ;;  %v54_v50 = vld [vmem:[#allocation2 + $0x10] sm:$0xff]  ;;  %v9071_v51 = vpack.c.bf16 %v277_v43, %v276_v41 }
  0x52   :  { %9030 = vmatprep.subr.bf16.mxu1 %v9029_v18  ;;  %v246_v53 = vld [vmem:[#allocation5 + $0x210] sm:$0xff]  ;;  %v247_v54 = vld [vmem:[#allocation5 + $0x218] sm:$0xff]  ;;  %v9073_v56 = vpack.c.bf16 %v295_v47, %v294_v46  ;;  %v264_v58 = vld [vmem:[#allocation5 + $0x2a0] sm:$0xff] }
  0x53   :  { %9000 = vmatpush3.bf16.msra.mxu0 %v8999_v24  ;;  %v278_v55 = vld [vmem:[#allocation5 + $0x310] sm:$0xff]  ;;  %v279_v57 = vld [vmem:[#allocation5 + $0x318] sm:$0xff]  ;;  %v265_v59 = vld [vmem:[#allocation5 + $0x2a8] sm:$0xff]  ;;  %v9043_v62 = vpack.c.bf16 %v247_v54, %v246_v53 }
  0x54   :  { %9002 = vmatprep.subr.bf16.mxu0 %v9001_v26  ;;  %v296_v60 = vld [vmem:[#allocation5 + $0x3a0] sm:$0xff]  ;;  %v297_v61 = vld [vmem:[#allocation5 + $0x3a8] sm:$0xff]  ;;  %v9075_v63 = vpack.c.bf16 %v279_v57, %v278_v55  ;;  %v9045_v0 = vpack.c.bf16 %v265_v59, %v264_v58  ;;  %v266_v6 = vld [vmem:[#allocation5 + $0x2b0] sm:$0xff] }
  0x55   :  { %9032 = vmatpush3.bf16.msra.mxu1 %v9031_v25  ;;  %v248_v1 = vld [vmem:[#allocation5 + $0x220] sm:$0xff]  ;;  %v249_v2 = vld [vmem:[#allocation5 + $0x228] sm:$0xff]  ;;  %v9077_v4 = vpack.c.bf16 %v297_v61, %v296_v60  ;;  %v267_v7 = vld [vmem:[#allocation5 + $0x2b8] sm:$0xff] }
  0x56   :  { %9034 = vmatprep.subr.bf16.mxu1 %v9033_v30  ;;  %v280_v3 = vld [vmem:[#allocation5 + $0x320] sm:$0xff]  ;;  %v281_v5 = vld [vmem:[#allocation5 + $0x328] sm:$0xff]  ;;  %v298_v8 = vld [vmem:[#allocation5 + $0x3b0] sm:$0xff]  ;;  %v9047_v10 = vpack.c.bf16 %v249_v2, %v248_v1  ;;  %v9049_v12 = vpack.c.bf16 %v267_v7, %v266_v6 }
  0x57   :  { %9004 = vmatpush3.bf16.msra.mxu0 %v9003_v36  ;;  %v299_v9 = vld [vmem:[#allocation5 + $0x3b8] sm:$0xff]  ;;  %v9079_v11 = vpack.c.bf16 %v281_v5, %v280_v3  ;;  %v250_v13 = vld [vmem:[#allocation5 + $0x230] sm:$0xff]  ;;  %v268_v18 = vld [vmem:[#allocation5 + $0x2c0] sm:$0xff] }
  0x58   :  { %9038 = vmatprep.subr.bf16.mxu0 %v9037_v38  ;;  %v251_v14 = vld [vmem:[#allocation5 + $0x238] sm:$0xff]  ;;  %v282_v15 = vld [vmem:[#allocation5 + $0x330] sm:$0xff]  ;;  %v9081_v16 = vpack.c.bf16 %v299_v9, %v298_v8  ;;  %v269_v19 = vld [vmem:[#allocation5 + $0x2c8] sm:$0xff] }
  0x59   :  { %9036 = vmatpush3.bf16.msra.mxu1 %v9035_v37  ;;  %v283_v17 = vld [vmem:[#allocation5 + $0x338] sm:$0xff]  ;;  %v300_v20 = vld [vmem:[#allocation5 + $0x3c0] sm:$0xff]  ;;  %v301_v21 = vld [vmem:[#allocation5 + $0x3c8] sm:$0xff]  ;;  %v9051_v22 = vpack.c.bf16 %v251_v14, %v250_v13  ;;  %v9053_v26 = vpack.c.bf16 %v269_v19, %v268_v18 }
  0x5a   :  { %9070 = vmatprep.subr.bf16.mxu1 %v9069_v42  ;;  %2300 = vmatmul.mubr.f32.vlgmr.msra.gmra.mrb[0].mxu0 %v52_v48  ;;  %v252_v23 = vld [vmem:[#allocation5 + $0x240] sm:$0xff]  ;;  %v57_v24 = vld [vmem:[#allocation2 + $0x28] sm:$0xff]  ;;  %v9083_v25 = vpack.c.bf16 %v283_v17, %v282_v15  ;;  %v59_v29 = vld [vmem:[#allocation2 + $0x38] sm:$0xff]  ;;  %v9085_v30 = vpack.c.bf16 %v301_v21, %v300_v20 }
  0x5b   :  { %9040 = vmatpush3.bf16.msra.mxu0 %v9039_v49  ;;  %v253_v27 = vld [vmem:[#allocation5 + $0x248] sm:$0xff]  ;;  %v284_v28 = vld [vmem:[#allocation5 + $0x340] sm:$0xff]  ;;  %v270_v32 = vld [vmem:[#allocation5 + $0x2d0] sm:$0xff]  ;;  %2439 = vmatprep.mubr.f32.mxu0 %v57_v24 }
  0x5c   :  { %2370 = vmatmul.mubr.f32.vlgmr.msra.gmra.mrb[0].mxu1 %v54_v50  ;;  %9042 = vmatprep.subr.bf16.mxu0 %v9041_v52  ;;  %v285_v31 = vld [vmem:[#allocation5 + $0x348] sm:$0xff]  ;;  %v271_v33 = vld [vmem:[#allocation5 + $0x2d8] sm:$0xff]  ;;  %v302_v34 = vld [vmem:[#allocation5 + $0x3d0] sm:$0xff]  ;;  %v9055_v36 = vpack.c.bf16 %v253_v27, %v252_v23 }
  0x5d   :  { %9072 = vmatpush3.bf16.msra.mxu1 %v9071_v51  ;;  %v303_v35 = vld [vmem:[#allocation5 + $0x3d8] sm:$0xff]  ;;  %2509 = vmatprep.mubr.f32.mxu1 %v59_v29  ;;  %v9087_v37 = vpack.c.bf16 %v285_v31, %v284_v28  ;;  %v9057_v38 = vpack.c.bf16 %v271_v33, %v270_v32  ;;  %v254_v39 = vld [vmem:[#allocation5 + $0x250] sm:$0xff]  ;;  %v272_v44 = vld [vmem:[#allocation5 + $0x2e0] sm:$0xff] }
  0x5e   :  { %9074 = vmatprep.subr.bf16.mxu1 %v9073_v56  ;;  %v255_v40 = vld [vmem:[#allocation5 + $0x258] sm:$0xff]  ;;  %v286_v41 = vld [vmem:[#allocation5 + $0x350] sm:$0xff]  ;;  %v9089_v42 = vpack.c.bf16 %v303_v35, %v302_v34  ;;  %v273_v45 = vld [vmem:[#allocation5 + $0x2e8] sm:$0xff] }
  0x5f   :  { %9044 = vmatpush3.bf16.msra.mxu0 %v9043_v62  ;;  %v287_v43 = vld [vmem:[#allocation5 + $0x358] sm:$0xff]  ;;  %v304_v46 = vld [vmem:[#allocation5 + $0x3e0] sm:$0xff]  ;;  %v305_v47 = vld [vmem:[#allocation5 + $0x3e8] sm:$0xff]  ;;  %v9059_v48 = vpack.c.bf16 %v255_v40, %v254_v39  ;;  %v9061_v50 = vpack.c.bf16 %v273_v45, %v272_v44 }
  0x60   :  { %9046 = vmatprep.subr.bf16.mxu0 %v9045_v0  ;;  %v9091_v49 = vpack.c.bf16 %v287_v43, %v286_v41  ;;  %v256_v51 = vld [vmem:[#allocation5 + $0x260] sm:$0xff]  ;;  %v257_v52 = vld [vmem:[#allocation5 + $0x268] sm:$0xff]  ;;  %v9093_v54 = vpack.c.bf16 %v305_v47, %v304_v46  ;;  %v274_v56 = vld [vmem:[#allocation5 + $0x2f0] sm:$0xff] }
  0x61   :  { %9076 = vmatpush3.bf16.msra.mxu1 %v9075_v63  ;;  %v288_v53 = vld [vmem:[#allocation5 + $0x360] sm:$0xff]  ;;  %v289_v55 = vld [vmem:[#allocation5 + $0x368] sm:$0xff]  ;;  %v275_v57 = vld [vmem:[#allocation5 + $0x2f8] sm:$0xff]  ;;  %v9063_v60 = vpack.c.bf16 %v257_v52, %v256_v51 }
  0x62   :  { %9078 = vmatprep.subr.bf16.mxu1 %v9077_v4  ;;  %v306_v58 = vld [vmem:[#allocation5 + $0x3f0] sm:$0xff]  ;;  %v307_v59 = vld [vmem:[#allocation5 + $0x3f8] sm:$0xff]  ;;  %v9095_v61 = vpack.c.bf16 %v289_v55, %v288_v53  ;;  %v9065_v62 = vpack.c.bf16 %v275_v57, %v274_v56  ;;  %v324_v4 = vld [vmem:[#allocation5 + $0x480] sm:$0xff] }
  0x63   :  { %9048 = vmatpush3.bf16.msra.mxu0 %v9047_v10  ;;  %v258_v63 = vld [vmem:[#allocation5 + $0x270] sm:$0xff]  ;;  %v259_v0 = vld [vmem:[#allocation5 + $0x278] sm:$0xff]  ;;  %v9097_v2 = vpack.c.bf16 %v307_v59, %v306_v58  ;;  %v325_v5 = vld [vmem:[#allocation5 + $0x488] sm:$0xff] }
  0x64   :  { %9050 = vmatprep.subr.bf16.mxu0 %v9049_v12  ;;  %v290_v1 = vld [vmem:[#allocation5 + $0x370] sm:$0xff]  ;;  %v291_v3 = vld [vmem:[#allocation5 + $0x378] sm:$0xff]  ;;  %v356_v6 = vld [vmem:[#allocation5 + $0x580] sm:$0xff]  ;;  %v9067_v8 = vpack.c.bf16 %v259_v0, %v258_v63  ;;  %v9101_v10 = vpack.c.bf16 %v325_v5, %v324_v4 }
  0x65   :  { %9080 = vmatpush3.bf16.msra.mxu1 %v9079_v11  ;;  %v357_v7 = vld [vmem:[#allocation5 + $0x588] sm:$0xff]  ;;  %v9099_v9 = vpack.c.bf16 %v291_v3, %v290_v1  ;;  %v308_v11 = vld [vmem:[#allocation5 + $0x400] sm:$0xff]  ;;  %v327_v17 = vld [vmem:[#allocation5 + $0x498] sm:$0xff] }
  0x66   :  { %9082 = vmatprep.subr.bf16.mxu1 %v9081_v16  ;;  %v309_v12 = vld [vmem:[#allocation5 + $0x408] sm:$0xff]  ;;  %v340_v13 = vld [vmem:[#allocation5 + $0x500] sm:$0xff]  ;;  %v9133_v14 = vpack.c.bf16 %v357_v7, %v356_v6  ;;  %v326_v16 = vld [vmem:[#allocation5 + $0x490] sm:$0xff] }
  0x67   :  { %9052 = vmatpush3.bf16.msra.mxu0 %v9051_v22  ;;  %v341_v15 = vld [vmem:[#allocation5 + $0x508] sm:$0xff]  ;;  %v358_v18 = vld [vmem:[#allocation5 + $0x590] sm:$0xff]  ;;  %v359_v19 = vld [vmem:[#allocation5 + $0x598] sm:$0xff]  ;;  %v9103_v21 = vpack.c.bf16 %v309_v12, %v308_v11  ;;  %v9105_v24 = vpack.c.bf16 %v327_v17, %v326_v16 }
  0x68   :  { %9054 = vmatprep.subr.bf16.mxu0 %v9053_v26  ;;  %v56_v20 = vld [vmem:[#allocation2 + $0x20] sm:$0xff]  ;;  %v58_v22 = vld [vmem:[#allocation2 + $0x30] sm:$0xff]  ;;  %v9135_v23 = vpack.c.bf16 %v341_v15, %v340_v13  ;;  %v311_v26 = vld [vmem:[#allocation5 + $0x418] sm:$0xff]  ;;  %v9137_v28 = vpack.c.bf16 %v359_v19, %v358_v18 }
  0x69   :  { %9084 = vmatpush3.bf16.msra.mxu1 %v9083_v25  ;;  %v310_v25 = vld [vmem:[#allocation5 + $0x410] sm:$0xff]  ;;  %v343_v29 = vld [vmem:[#allocation5 + $0x518] sm:$0xff]  ;;  %v329_v31 = vld [vmem:[#allocation5 + $0x4a8] sm:$0xff] }
  0x6a   :  { %9086 = vmatprep.subr.bf16.mxu1 %v9085_v30  ;;  %v342_v27 = vld [vmem:[#allocation5 + $0x510] sm:$0xff]  ;;  %v328_v30 = vld [vmem:[#allocation5 + $0x4a0] sm:$0xff]  ;;  %v361_v33 = vld [vmem:[#allocation5 + $0x5a8] sm:$0xff]  ;;  %v9107_v35 = vpack.c.bf16 %v311_v26, %v310_v25 }
  0x6b   :  { %9056 = vmatpush3.bf16.msra.mxu0 %v9055_v36  ;;  %v360_v32 = vld [vmem:[#allocation5 + $0x5a0] sm:$0xff]  ;;  %v61_v34 = vld [vmem:[#allocation2 + $0x48] sm:$0xff]  ;;  %v63_v36 = vld [vmem:[#allocation2 + $0x58] sm:$0xff] }
  0x6c   :  { %9058 = vmatprep.subr.bf16.mxu0 %v9057_v38  ;;  %v9109_v38 = vpack.c.bf16 %v329_v31, %v328_v30  ;;  %v312_v39 = vld [vmem:[#allocation5 + $0x420] sm:$0xff]  ;;  %v313_v40 = vld [vmem:[#allocation5 + $0x428] sm:$0xff]  ;;  %v330_v44 = vld [vmem:[#allocation5 + $0x4b0] sm:$0xff] }
  0x6d   :  { %9088 = vmatpush3.bf16.msra.mxu1 %v9087_v37  ;;  %v9139_v37 = vpack.c.bf16 %v343_v29, %v342_v27  ;;  %v344_v41 = vld [vmem:[#allocation5 + $0x520] sm:$0xff]  ;;  %v345_v43 = vld [vmem:[#allocation5 + $0x528] sm:$0xff]  ;;  %v331_v45 = vld [vmem:[#allocation5 + $0x4b8] sm:$0xff] }
  0x6e   :  { %9090 = vmatprep.subr.bf16.mxu1 %v9089_v42  ;;  %v9141_v42 = vpack.c.bf16 %v361_v33, %v360_v32  ;;  %v362_v46 = vld [vmem:[#allocation5 + $0x5b0] sm:$0xff]  ;;  %v363_v47 = vld [vmem:[#allocation5 + $0x5b8] sm:$0xff]  ;;  %v332_v56 = vld [vmem:[#allocation5 + $0x4c0] sm:$0xff] }
  0x6f   :  { %9060 = vmatpush3.bf16.msra.mxu0 %v9059_v48  ;;  %v9111_v48 = vpack.c.bf16 %v313_v40, %v312_v39  ;;  %v314_v51 = vld [vmem:[#allocation5 + $0x430] sm:$0xff]  ;;  %v315_v52 = vld [vmem:[#allocation5 + $0x438] sm:$0xff]  ;;  %v333_v57 = vld [vmem:[#allocation5 + $0x4c8] sm:$0xff] }
  0x70   :  { %9062 = vmatprep.subr.bf16.mxu0 %v9061_v50  ;;  %v9113_v50 = vpack.c.bf16 %v331_v45, %v330_v44  ;;  %v346_v53 = vld [vmem:[#allocation5 + $0x530] sm:$0xff]  ;;  %v347_v55 = vld [vmem:[#allocation5 + $0x538] sm:$0xff]  ;;  %v364_v58 = vld [vmem:[#allocation5 + $0x5c0] sm:$0xff] }
  0x71   :  { %9092 = vmatpush3.bf16.msra.mxu1 %v9091_v49  ;;  %v9143_v49 = vpack.c.bf16 %v345_v43, %v344_v41  ;;  %v365_v59 = vld [vmem:[#allocation5 + $0x5c8] sm:$0xff]  ;;  %v316_v63 = vld [vmem:[#allocation5 + $0x440] sm:$0xff]  ;;  %v334_v4 = vld [vmem:[#allocation5 + $0x4d0] sm:$0xff] }
  0x72   :  { %9094 = vmatprep.subr.bf16.mxu1 %v9093_v54  ;;  %v9145_v54 = vpack.c.bf16 %v363_v47, %v362_v46  ;;  %v317_v0 = vld [vmem:[#allocation5 + $0x448] sm:$0xff]  ;;  %v348_v1 = vld [vmem:[#allocation5 + $0x540] sm:$0xff]  ;;  %v335_v5 = vld [vmem:[#allocation5 + $0x4d8] sm:$0xff] }
  0x73   :  { %9064 = vmatpush3.bf16.msra.mxu0 %v9063_v60  ;;  %v9115_v60 = vpack.c.bf16 %v315_v52, %v314_v51  ;;  %v349_v3 = vld [vmem:[#allocation5 + $0x548] sm:$0xff]  ;;  %v366_v6 = vld [vmem:[#allocation5 + $0x5d0] sm:$0xff]  ;;  %v367_v7 = vld [vmem:[#allocation5 + $0x5d8] sm:$0xff] }
  0x74   :  { %9066 = vmatprep.subr.bf16.mxu0 %v9065_v62  ;;  %v9117_v62 = vpack.c.bf16 %v333_v57, %v332_v56  ;;  %v318_v11 = vld [vmem:[#allocation5 + $0x450] sm:$0xff]  ;;  %v319_v12 = vld [vmem:[#allocation5 + $0x458] sm:$0xff]  ;;  %v336_v16 = vld [vmem:[#allocation5 + $0x4e0] sm:$0xff] }
  0x75   :  { %9096 = vmatpush3.bf16.msra.mxu1 %v9095_v61  ;;  %v9147_v61 = vpack.c.bf16 %v347_v55, %v346_v53  ;;  %v350_v13 = vld [vmem:[#allocation5 + $0x550] sm:$0xff]  ;;  %v351_v15 = vld [vmem:[#allocation5 + $0x558] sm:$0xff]  ;;  %v337_v17 = vld [vmem:[#allocation5 + $0x4e8] sm:$0xff] }
  0x76   :  { %9098 = vmatprep.subr.bf16.mxu1 %v9097_v2  ;;  %v9149_v2 = vpack.c.bf16 %v365_v59, %v364_v58  ;;  %v368_v18 = vld [vmem:[#allocation5 + $0x5e0] sm:$0xff]  ;;  %v369_v19 = vld [vmem:[#allocation5 + $0x5e8] sm:$0xff]  ;;  %v339_v29 = vld [vmem:[#allocation5 + $0x4f8] sm:$0xff] }
  0x77   :  { %9068 = vmatpush3.bf16.msra.mxu0 %v9067_v8  ;;  %v9119_v8 = vpack.c.bf16 %v317_v0, %v316_v63  ;;  %v352_v25 = vld [vmem:[#allocation5 + $0x560] sm:$0xff]  ;;  %v9157_v26 = vpack.c.bf16 %v369_v19, %v368_v18  ;;  %v353_v27 = vld [vmem:[#allocation5 + $0x568] sm:$0xff]  ;;  %v370_v30 = vld [vmem:[#allocation5 + $0x5f0] sm:$0xff] }
  0x78   :  { %9102 = vmatprep.subr.bf16.mxu0 %v9101_v10  ;;  %v9121_v10 = vpack.c.bf16 %v335_v5, %v334_v4  ;;  %v371_v31 = vld [vmem:[#allocation5 + $0x5f8] sm:$0xff]  ;;  %v9159_v33 = vpack.c.bf16 %v353_v27, %v352_v25  ;;  %v388_v40 = vld [vmem:[#allocation5 + $0x680] sm:$0xff]  ;;  %v389_v41 = vld [vmem:[#allocation5 + $0x688] sm:$0xff] }
  0x79   :  { %9100 = vmatpush3.bf16.msra.mxu1 %v9099_v9  ;;  %v9151_v9 = vpack.c.bf16 %v349_v3, %v348_v1  ;;  %v355_v39 = vld [vmem:[#allocation5 + $0x578] sm:$0xff]  ;;  %v421_v43 = vld [vmem:[#allocation5 + $0x788] sm:$0xff]  ;;  %v9165_v46 = vpack.c.bf16 %v389_v41, %v388_v40  ;;  %v372_v47 = vld [vmem:[#allocation5 + $0x600] sm:$0xff] }
  0x7a   :  { %9134 = vmatprep.subr.bf16.mxu1 %v9133_v14  ;;  %2440 = vmatmul.mubr.f32.vlgmr.msra.gmra.mrb[2].mxu0 %v56_v20  ;;  %v9153_v14 = vpack.c.bf16 %v367_v7, %v366_v6  ;;  %v9123_v20 = vpack.c.bf16 %v319_v12, %v318_v11  ;;  %v405_v51 = vld [vmem:[#allocation5 + $0x708] sm:$0xff]  ;;  %v390_v52 = vld [vmem:[#allocation5 + $0x690] sm:$0xff]  ;;  %v391_v53 = vld [vmem:[#allocation5 + $0x698] sm:$0xff] }
  0x7b   :  { %9104 = vmatpush3.bf16.msra.mxu0 %v9103_v21  ;;  %2579 = vmatprep.mubr.f32.mxu0 %v61_v34  ;;  %v9155_v21 = vpack.c.bf16 %v351_v15, %v350_v13  ;;  %v423_v55 = vld [vmem:[#allocation5 + $0x798] sm:$0xff]  ;;  %v60_v56 = vld [vmem:[#allocation2 + $0x40] sm:$0xff]  ;;  %v62_v58 = vld [vmem:[#allocation2 + $0x50] sm:$0xff] }
  0x7c   :  { %2510 = vmatmul.mubr.f32.vlgmr.msra.gmra.mrb[2].mxu1 %v58_v22  ;;  %9106 = vmatprep.subr.bf16.mxu0 %v9105_v24  ;;  %v9125_v22 = vpack.c.bf16 %v337_v17, %v336_v16  ;;  %v321_v24 = vld [vmem:[#allocation5 + $0x468] sm:$0xff]  ;;  %v406_v63 = vld [vmem:[#allocation5 + $0x710] sm:$0xff]  ;;  %v407_v1 = vld [vmem:[#allocation5 + $0x718] sm:$0xff] }
  0x7d   :  { %9136 = vmatpush3.bf16.msra.mxu1 %v9135_v23  ;;  %2649 = vmatprep.mubr.f32.mxu1 %v63_v36  ;;  %v320_v23 = vld [vmem:[#allocation5 + $0x460] sm:$0xff]  ;;  %v323_v36 = vld [vmem:[#allocation5 + $0x478] sm:$0xff]  ;;  %v393_v3 = vld [vmem:[#allocation5 + $0x6a8] sm:$0xff] }
  0x7e   :  { %9138 = vmatprep.subr.bf16.mxu1 %v9137_v28  ;;  %v338_v28 = vld [vmem:[#allocation5 + $0x4f0] sm:$0xff]  ;;  %v9127_v32 = vpack.c.bf16 %v321_v24, %v320_v23  ;;  %v424_v4 = vld [vmem:[#allocation5 + $0x7a0] sm:$0xff]  ;;  %v425_v5 = vld [vmem:[#allocation5 + $0x7a8] sm:$0xff] }
  0x7f   :  { %9108 = vmatpush3.bf16.msra.mxu0 %v9107_v35  ;;  %v9129_v34 = vpack.c.bf16 %v339_v29, %v338_v28  ;;  %v322_v35 = vld [vmem:[#allocation5 + $0x470] sm:$0xff]  ;;  %v65_v6 = vld [vmem:[#allocation2 + $0x68] sm:$0xff]  ;;  %v376_v11 = vld [vmem:[#allocation5 + $0x620] sm:$0xff] }
  0x80   :  { %9110 = vmatprep.subr.bf16.mxu0 %v9109_v38  ;;  %v9161_v38 = vpack.c.bf16 %v371_v31, %v370_v30  ;;  %v9131_v44 = vpack.c.bf16 %v323_v36, %v322_v35  ;;  %v377_v12 = vld [vmem:[#allocation5 + $0x628] sm:$0xff]  ;;  %v408_v13 = vld [vmem:[#allocation5 + $0x720] sm:$0xff]  ;;  %v394_v16 = vld [vmem:[#allocation5 + $0x6b0] sm:$0xff] }
  0x81   :  { %9140 = vmatpush3.bf16.msra.mxu1 %v9139_v37  ;;  %v354_v37 = vld [vmem:[#allocation5 + $0x570] sm:$0xff]  ;;  %v409_v15 = vld [vmem:[#allocation5 + $0x728] sm:$0xff]  ;;  %v395_v17 = vld [vmem:[#allocation5 + $0x6b8] sm:$0xff] }
  0x82   :  { %9142 = vmatprep.subr.bf16.mxu1 %v9141_v42  ;;  %v420_v42 = vld [vmem:[#allocation5 + $0x780] sm:$0xff]  ;;  %v9163_v45 = vpack.c.bf16 %v355_v39, %v354_v37  ;;  %v426_v18 = vld [vmem:[#allocation5 + $0x7b0] sm:$0xff]  ;;  %v427_v19 = vld [vmem:[#allocation5 + $0x7b8] sm:$0xff] }
  0x83   :  { %9112 = vmatpush3.bf16.msra.mxu0 %v9111_v48  ;;  %v373_v48 = vld [vmem:[#allocation5 + $0x608] sm:$0xff]  ;;  %v378_v23 = vld [vmem:[#allocation5 + $0x630] sm:$0xff]  ;;  %v379_v24 = vld [vmem:[#allocation5 + $0x638] sm:$0xff] }
  0x84   :  { %9114 = vmatprep.subr.bf16.mxu0 %v9113_v50  ;;  %v9197_v50 = vpack.c.bf16 %v421_v43, %v420_v42  ;;  %v9167_v57 = vpack.c.bf16 %v373_v48, %v372_v47  ;;  %v410_v25 = vld [vmem:[#allocation5 + $0x730] sm:$0xff]  ;;  %v411_v27 = vld [vmem:[#allocation5 + $0x738] sm:$0xff]  ;;  %v396_v28 = vld [vmem:[#allocation5 + $0x6c0] sm:$0xff] }
  0x85   :  { %9144 = vmatpush3.bf16.msra.mxu1 %v9143_v49  ;;  %v404_v49 = vld [vmem:[#allocation5 + $0x700] sm:$0xff]  ;;  %v397_v29 = vld [vmem:[#allocation5 + $0x6c8] sm:$0xff]  ;;  %v398_v40 = vld [vmem:[#allocation5 + $0x6d0] sm:$0xff] }
  0x86   :  { %9146 = vmatprep.subr.bf16.mxu1 %v9145_v54  ;;  %v422_v54 = vld [vmem:[#allocation5 + $0x790] sm:$0xff]  ;;  %v9199_v59 = vpack.c.bf16 %v405_v51, %v404_v49  ;;  %v428_v30 = vld [vmem:[#allocation5 + $0x7c0] sm:$0xff]  ;;  %v429_v31 = vld [vmem:[#allocation5 + $0x7c8] sm:$0xff] }
  0x87   :  { %9116 = vmatpush3.bf16.msra.mxu0 %v9115_v60  ;;  %v9169_v60 = vpack.c.bf16 %v391_v53, %v390_v52  ;;  %v9201_v0 = vpack.c.bf16 %v423_v55, %v422_v54  ;;  %v380_v35 = vld [vmem:[#allocation5 + $0x640] sm:$0xff]  ;;  %v381_v36 = vld [vmem:[#allocation5 + $0x648] sm:$0xff]  ;;  %v399_v41 = vld [vmem:[#allocation5 + $0x6d8] sm:$0xff] }
  0x88   :  { %9118 = vmatprep.subr.bf16.mxu0 %v9117_v62  ;;  %v375_v62 = vld [vmem:[#allocation5 + $0x618] sm:$0xff]  ;;  %v412_v37 = vld [vmem:[#allocation5 + $0x740] sm:$0xff]  ;;  %v413_v39 = vld [vmem:[#allocation5 + $0x748] sm:$0xff] }
  0x89   :  { %9148 = vmatpush3.bf16.msra.mxu1 %v9147_v61  ;;  %v374_v61 = vld [vmem:[#allocation5 + $0x610] sm:$0xff]  ;;  %v431_v43 = vld [vmem:[#allocation5 + $0x7d8] sm:$0xff]  ;;  %v400_v52 = vld [vmem:[#allocation5 + $0x6e0] sm:$0xff] }
  0x8a   :  { %9150 = vmatprep.subr.bf16.mxu1 %v9149_v2  ;;  %v392_v2 = vld [vmem:[#allocation5 + $0x6a0] sm:$0xff]  ;;  %v9171_v7 = vpack.c.bf16 %v375_v62, %v374_v61  ;;  %v430_v42 = vld [vmem:[#allocation5 + $0x7d0] sm:$0xff]  ;;  %v383_v48 = vld [vmem:[#allocation5 + $0x658] sm:$0xff] }
  0x8b   :  { %9120 = vmatpush3.bf16.msra.mxu0 %v9119_v8  ;;  %v67_v8 = vld [vmem:[#allocation2 + $0x78] sm:$0xff]  ;;  %v382_v47 = vld [vmem:[#allocation5 + $0x650] sm:$0xff]  ;;  %v401_v53 = vld [vmem:[#allocation5 + $0x6e8] sm:$0xff] }
  0x8c   :  { %9122 = vmatprep.subr.bf16.mxu0 %v9121_v10  ;;  %v9173_v10 = vpack.c.bf16 %v393_v3, %v392_v2  ;;  %v414_v49 = vld [vmem:[#allocation5 + $0x750] sm:$0xff]  ;;  %v415_v51 = vld [vmem:[#allocation5 + $0x758] sm:$0xff]  ;;  %v432_v54 = vld [vmem:[#allocation5 + $0x7e0] sm:$0xff] }
  0x8d   :  { %9152 = vmatpush3.bf16.msra.mxu1 %v9151_v9  ;;  %v9203_v9 = vpack.c.bf16 %v407_v1, %v406_v63  ;;  %v433_v55 = vld [vmem:[#allocation5 + $0x7e8] sm:$0xff]  ;;  %v416_v61 = vld [vmem:[#allocation5 + $0x760] sm:$0xff]  ;;  %v403_v1 = vld [vmem:[#allocation5 + $0x6f8] sm:$0xff] }
  0x8e   :  { %9154 = vmatprep.subr.bf16.mxu1 %v9153_v14  ;;  %v9205_v14 = vpack.c.bf16 %v425_v5, %v424_v4  ;;  %v9221_v62 = vpack.c.bf16 %v433_v55, %v432_v54  ;;  %v417_v63 = vld [vmem:[#allocation5 + $0x768] sm:$0xff]  ;;  %v434_v2 = vld [vmem:[#allocation5 + $0x7f0] sm:$0xff]  ;;  %v435_v3 = vld [vmem:[#allocation5 + $0x7f8] sm:$0xff] }
  0x8f   :  { %9124 = vmatpush3.bf16.msra.mxu0 %v9123_v20  ;;  %v9175_v20 = vpack.c.bf16 %v377_v12, %v376_v11  ;;  %v9223_v5 = vpack.c.bf16 %v417_v63, %v416_v61  ;;  %v419_v11 = vld [vmem:[#allocation5 + $0x778] sm:$0xff]  ;;  %v452_v12 = vld [vmem:[#allocation5 + $0x880] sm:$0xff]  ;;  %v490_v54 = vld [vmem:[#allocation5 + $0x9b0] sm:$0xff] }
  0x90   :  { %9126 = vmatprep.subr.bf16.mxu0 %v9125_v22  ;;  %v9177_v22 = vpack.c.bf16 %v395_v17, %v394_v16  ;;  %v491_v55 = vld [vmem:[#allocation5 + $0x9b8] sm:$0xff]  ;;  %v474_v61 = vld [vmem:[#allocation5 + $0x930] sm:$0xff] }
  0x91   :  { %9156 = vmatpush3.bf16.msra.mxu1 %v9155_v21  ;;  %v9207_v21 = vpack.c.bf16 %v409_v15, %v408_v13  ;;  %v453_v13 = vld [vmem:[#allocation5 + $0x888] sm:$0xff]  ;;  %v475_v63 = vld [vmem:[#allocation5 + $0x938] sm:$0xff] }
  0x92   :  { %9158 = vmatprep.subr.bf16.mxu1 %v9157_v26  ;;  %v9209_v26 = vpack.c.bf16 %v427_v19, %v426_v18  ;;  %v485_v15 = vld [vmem:[#allocation5 + $0x988] sm:$0xff]  ;;  %v9229_v18 = vpack.c.bf16 %v453_v13, %v452_v12  ;;  %v436_v19 = vld [vmem:[#allocation5 + $0x800] sm:$0xff]  ;;  %v462_v12 = vld [vmem:[#allocation5 + $0x8d0] sm:$0xff] }
  0x93   :  { %9128 = vmatpush3.bf16.msra.mxu0 %v9127_v32  ;;  %v9179_v32 = vpack.c.bf16 %v379_v24, %v378_v23  ;;  %v469_v23 = vld [vmem:[#allocation5 + $0x908] sm:$0xff]  ;;  %v454_v24 = vld [vmem:[#allocation5 + $0x890] sm:$0xff]  ;;  %v463_v13 = vld [vmem:[#allocation5 + $0x8d8] sm:$0xff] }
  0x94   :  { %9130 = vmatprep.subr.bf16.mxu0 %v9129_v34  ;;  %v9181_v34 = vpack.c.bf16 %v397_v29, %v396_v28  ;;  %v64_v28 = vld [vmem:[#allocation2 + $0x60] sm:$0xff] }
  0x95   :  { %9160 = vmatpush3.bf16.msra.mxu1 %v9159_v33  ;;  %v9211_v33 = vpack.c.bf16 %v411_v27, %v410_v25  ;;  %v455_v25 = vld [vmem:[#allocation5 + $0x898] sm:$0xff] }
  0x96   :  { %9162 = vmatprep.subr.bf16.mxu1 %v9161_v38  ;;  %v9213_v38 = vpack.c.bf16 %v429_v31, %v428_v30  ;;  %v487_v27 = vld [vmem:[#allocation5 + $0x998] sm:$0xff]  ;;  %v66_v30 = vld [vmem:[#allocation2 + $0x70] sm:$0xff] }
  0x97   :  { %9132 = vmatpush3.bf16.msra.mxu0 %v9131_v44  ;;  %v9183_v44 = vpack.c.bf16 %v381_v36, %v380_v35  ;;  %v470_v35 = vld [vmem:[#allocation5 + $0x910] sm:$0xff] }
  0x98   :  { %9166 = vmatprep.subr.bf16.mxu0 %v9165_v46  ;;  %v9185_v46 = vpack.c.bf16 %v399_v41, %v398_v40  ;;  %v488_v40 = vld [vmem:[#allocation5 + $0x9a0] sm:$0xff]  ;;  %v489_v41 = vld [vmem:[#allocation5 + $0x9a8] sm:$0xff] }
  0x99   :  { %9164 = vmatpush3.bf16.msra.mxu1 %v9163_v45  ;;  %v9215_v45 = vpack.c.bf16 %v413_v39, %v412_v37  ;;  %v471_v37 = vld [vmem:[#allocation5 + $0x918] sm:$0xff]  ;;  %v457_v39 = vld [vmem:[#allocation5 + $0x8a8] sm:$0xff] }
  0x9a   :  { %9198 = vmatprep.subr.bf16.mxu1 %v9197_v50  ;;  %2580 = vmatmul.mubr.f32.vlgmr.msra.gmra.mrb[4].mxu0 %v60_v56  ;;  %v9217_v50 = vpack.c.bf16 %v431_v43, %v430_v42  ;;  %v9187_v56 = vpack.c.bf16 %v383_v48, %v382_v47  ;;  %v69_v42 = vld [vmem:[#allocation2 + $0x88] sm:$0xff]  ;;  %v440_v47 = vld [vmem:[#allocation5 + $0x820] sm:$0xff] }
  0x9b   :  { %9168 = vmatpush3.bf16.msra.mxu0 %v9167_v57  ;;  %2719 = vmatprep.mubr.f32.mxu0 %v65_v6  ;;  %v9219_v57 = vpack.c.bf16 %v415_v51, %v414_v49  ;;  %v441_v48 = vld [vmem:[#allocation5 + $0x828] sm:$0xff]  ;;  %v472_v49 = vld [vmem:[#allocation5 + $0x920] sm:$0xff] }
  0x9c   :  { %2650 = vmatmul.mubr.f32.vlgmr.msra.gmra.mrb[4].mxu1 %v62_v58  ;;  %9170 = vmatprep.subr.bf16.mxu0 %v9169_v60  ;;  %v9189_v58 = vpack.c.bf16 %v401_v53, %v400_v52  ;;  %v385_v60 = vld [vmem:[#allocation5 + $0x668] sm:$0xff]  ;;  %v458_v52 = vld [vmem:[#allocation5 + $0x8b0] sm:$0xff]  ;;  %v459_v53 = vld [vmem:[#allocation5 + $0x8b8] sm:$0xff] }
  0x9d   :  { %9200 = vmatpush3.bf16.msra.mxu1 %v9199_v59  ;;  %2789 = vmatprep.mubr.f32.mxu1 %v67_v8  ;;  %v384_v59 = vld [vmem:[#allocation5 + $0x660] sm:$0xff]  ;;  %v387_v8 = vld [vmem:[#allocation5 + $0x678] sm:$0xff]  ;;  %v473_v51 = vld [vmem:[#allocation5 + $0x928] sm:$0xff] }
  0x9e   :  { %9202 = vmatprep.subr.bf16.mxu1 %v9201_v0  ;;  %v402_v0 = vld [vmem:[#allocation5 + $0x6f0] sm:$0xff]  ;;  %v9191_v4 = vpack.c.bf16 %v385_v60, %v384_v59  ;;  %v443_v60 = vld [vmem:[#allocation5 + $0x838] sm:$0xff] }
  0x9f   :  { %9172 = vmatpush3.bf16.msra.mxu0 %v9171_v7  ;;  %v9193_v6 = vpack.c.bf16 %v403_v1, %v402_v0  ;;  %v386_v7 = vld [vmem:[#allocation5 + $0x670] sm:$0xff]  ;;  %v460_v0 = vld [vmem:[#allocation5 + $0x8c0] sm:$0xff]  ;;  %v461_v1 = vld [vmem:[#allocation5 + $0x8c8] sm:$0xff] }
  0xa0   :  { %9174 = vmatprep.subr.bf16.mxu0 %v9173_v10  ;;  %v9225_v10 = vpack.c.bf16 %v435_v3, %v434_v2  ;;  %v9195_v16 = vpack.c.bf16 %v387_v8, %v386_v7  ;;  %v442_v59 = vld [vmem:[#allocation5 + $0x830] sm:$0xff]  ;;  %v492_v2 = vld [vmem:[#allocation5 + $0x9c0] sm:$0xff]  ;;  %v493_v3 = vld [vmem:[#allocation5 + $0x9c8] sm:$0xff] }
  0xa1   :  { %9204 = vmatpush3.bf16.msra.mxu1 %v9203_v9  ;;  %v418_v9 = vld [vmem:[#allocation5 + $0x770] sm:$0xff]  ;;  %v444_v7 = vld [vmem:[#allocation5 + $0x840] sm:$0xff]  ;;  %v445_v8 = vld [vmem:[#allocation5 + $0x848] sm:$0xff] }
  0xa2   :  { %9206 = vmatprep.subr.bf16.mxu1 %v9205_v14  ;;  %v484_v14 = vld [vmem:[#allocation5 + $0x980] sm:$0xff]  ;;  %v9227_v17 = vpack.c.bf16 %v419_v11, %v418_v9  ;;  %v477_v11 = vld [vmem:[#allocation5 + $0x948] sm:$0xff] }
  0xa3   :  { %9176 = vmatpush3.bf16.msra.mxu0 %v9175_v20  ;;  %v437_v20 = vld [vmem:[#allocation5 + $0x808] sm:$0xff]  ;;  %v476_v9 = vld [vmem:[#allocation5 + $0x940] sm:$0xff] }
  0xa4   :  { %9178 = vmatprep.subr.bf16.mxu0 %v9177_v22  ;;  %v9261_v22 = vpack.c.bf16 %v485_v15, %v484_v14  ;;  %v9231_v29 = vpack.c.bf16 %v437_v20, %v436_v19  ;;  %v494_v14 = vld [vmem:[#allocation5 + $0x9d0] sm:$0xff]  ;;  %v495_v15 = vld [vmem:[#allocation5 + $0x9d8] sm:$0xff] }
  0xa5   :  { %9208 = vmatpush3.bf16.msra.mxu1 %v9207_v21  ;;  %v468_v21 = vld [vmem:[#allocation5 + $0x900] sm:$0xff]  ;;  %v446_v19 = vld [vmem:[#allocation5 + $0x850] sm:$0xff]  ;;  %v447_v20 = vld [vmem:[#allocation5 + $0x858] sm:$0xff] }
  0xa6   :  { %9210 = vmatprep.subr.bf16.mxu1 %v9209_v26  ;;  %v486_v26 = vld [vmem:[#allocation5 + $0x990] sm:$0xff]  ;;  %v9263_v31 = vpack.c.bf16 %v469_v23, %v468_v21  ;;  %v479_v23 = vld [vmem:[#allocation5 + $0x958] sm:$0xff] }
  0xa7   :  { %9180 = vmatpush3.bf16.msra.mxu0 %v9179_v32  ;;  %v9233_v32 = vpack.c.bf16 %v455_v25, %v454_v24  ;;  %v9265_v36 = vpack.c.bf16 %v487_v27, %v486_v26  ;;  %v478_v21 = vld [vmem:[#allocation5 + $0x950] sm:$0xff]  ;;  %v464_v24 = vld [vmem:[#allocation5 + $0x8e0] sm:$0xff]  ;;  %v465_v25 = vld [vmem:[#allocation5 + $0x8e8] sm:$0xff] }
  0xa8   :  { %9182 = vmatprep.subr.bf16.mxu0 %v9181_v34  ;;  %v439_v34 = vld [vmem:[#allocation5 + $0x818] sm:$0xff]  ;;  %v496_v26 = vld [vmem:[#allocation5 + $0x9e0] sm:$0xff]  ;;  %v497_v27 = vld [vmem:[#allocation5 + $0x9e8] sm:$0xff] }
  0xa9   :  { %9212 = vmatpush3.bf16.msra.mxu1 %v9211_v33  ;;  %v438_v33 = vld [vmem:[#allocation5 + $0x810] sm:$0xff] }
  0xaa   :  { %9214 = vmatprep.subr.bf16.mxu1 %v9213_v38  ;;  %v456_v38 = vld [vmem:[#allocation5 + $0x8a0] sm:$0xff]  ;;  %v9235_v43 = vpack.c.bf16 %v439_v34, %v438_v33  ;;  %v9285_v34 = vpack.c.bf16 %v497_v27, %v496_v26  ;;  %v554_v26 = vld [vmem:[#allocation5 + $0xbb0] sm:$0xff]  ;;  %v555_v27 = vld [vmem:[#allocation5 + $0xbb8] sm:$0xff] }
  0xab   :  { %9184 = vmatpush3.bf16.msra.mxu0 %v9183_v44  ;;  %v71_v44 = vld [vmem:[#allocation2 + $0x98] sm:$0xff]  ;;  %v480_v33 = vld [vmem:[#allocation5 + $0x960] sm:$0xff] }
  0xac   :  { %9186 = vmatprep.subr.bf16.mxu0 %v9185_v46  ;;  %v9237_v46 = vpack.c.bf16 %v457_v39, %v456_v38  ;;  %v498_v38 = vld [vmem:[#allocation5 + $0x9f0] sm:$0xff]  ;;  %v499_v39 = vld [vmem:[#allocation5 + $0x9f8] sm:$0xff] }
  0xad   :  { %9216 = vmatpush3.bf16.msra.mxu1 %v9215_v45  ;;  %v9267_v45 = vpack.c.bf16 %v471_v37, %v470_v35  ;;  %v481_v35 = vld [vmem:[#allocation5 + $0x968] sm:$0xff]  ;;  %v467_v37 = vld [vmem:[#allocation5 + $0x8f8] sm:$0xff] }
  0xae   :  { %9218 = vmatprep.subr.bf16.mxu1 %v9217_v50  ;;  %v9269_v50 = vpack.c.bf16 %v489_v41, %v488_v40  ;;  %v9287_v41 = vpack.c.bf16 %v481_v35, %v480_v33  ;;  %v538_v33 = vld [vmem:[#allocation5 + $0xb30] sm:$0xff]  ;;  %v539_v35 = vld [vmem:[#allocation5 + $0xb38] sm:$0xff] }
  0xaf   :  { %9188 = vmatpush3.bf16.msra.mxu0 %v9187_v56  ;;  %v9239_v56 = vpack.c.bf16 %v441_v48, %v440_v47  ;;  %v483_v47 = vld [vmem:[#allocation5 + $0x978] sm:$0xff]  ;;  %v516_v48 = vld [vmem:[#allocation5 + $0xa80] sm:$0xff] }
  0xb0   :  { %9190 = vmatprep.subr.bf16.mxu0 %v9189_v58  ;;  %v9241_v58 = vpack.c.bf16 %v459_v53, %v458_v52 }
  0xb1   :  { %9220 = vmatpush3.bf16.msra.mxu1 %v9219_v57  ;;  %v9271_v57 = vpack.c.bf16 %v473_v51, %v472_v49  ;;  %v517_v49 = vld [vmem:[#allocation5 + $0xa88] sm:$0xff] }
  0xb2   :  { %9222 = vmatprep.subr.bf16.mxu1 %v9221_v62  ;;  %v9273_v62 = vpack.c.bf16 %v491_v55, %v490_v54  ;;  %v549_v51 = vld [vmem:[#allocation5 + $0xb88] sm:$0xff]  ;;  %v9293_v54 = vpack.c.bf16 %v517_v49, %v516_v48  ;;  %v500_v55 = vld [vmem:[#allocation5 + $0xa00] sm:$0xff]  ;;  %v526_v48 = vld [vmem:[#allocation5 + $0xad0] sm:$0xff] }
  0xb3   :  { %9192 = vmatpush3.bf16.msra.mxu0 %v9191_v4  ;;  %v9243_v4 = vpack.c.bf16 %v443_v60, %v442_v59  ;;  %v533_v59 = vld [vmem:[#allocation5 + $0xb08] sm:$0xff]  ;;  %v518_v60 = vld [vmem:[#allocation5 + $0xa90] sm:$0xff]  ;;  %v527_v49 = vld [vmem:[#allocation5 + $0xad8] sm:$0xff] }
  0xb4   :  { %9194 = vmatprep.subr.bf16.mxu0 %v9193_v6  ;;  %v9245_v6 = vpack.c.bf16 %v461_v1, %v460_v0  ;;  %v68_v0 = vld [vmem:[#allocation2 + $0x80] sm:$0xff] }
  0xb5   :  { %9224 = vmatpush3.bf16.msra.mxu1 %v9223_v5  ;;  %v9275_v5 = vpack.c.bf16 %v475_v63, %v474_v61  ;;  %v519_v61 = vld [vmem:[#allocation5 + $0xa98] sm:$0xff] }
  0xb6   :  { %9226 = vmatprep.subr.bf16.mxu1 %v9225_v10  ;;  %v9277_v10 = vpack.c.bf16 %v493_v3, %v492_v2  ;;  %v551_v63 = vld [vmem:[#allocation5 + $0xb98] sm:$0xff]  ;;  %v70_v2 = vld [vmem:[#allocation2 + $0x90] sm:$0xff] }
  0xb7   :  { %9196 = vmatpush3.bf16.msra.mxu0 %v9195_v16  ;;  %v9247_v16 = vpack.c.bf16 %v445_v8, %v444_v7  ;;  %v534_v7 = vld [vmem:[#allocation5 + $0xb10] sm:$0xff] }
  0xb8   :  { %9230 = vmatprep.subr.bf16.mxu0 %v9229_v18  ;;  %v9249_v18 = vpack.c.bf16 %v463_v13, %v462_v12  ;;  %v552_v12 = vld [vmem:[#allocation5 + $0xba0] sm:$0xff]  ;;  %v553_v13 = vld [vmem:[#allocation5 + $0xba8] sm:$0xff] }
  0xb9   :  { %9228 = vmatpush3.bf16.msra.mxu1 %v9227_v17  ;;  %v9279_v17 = vpack.c.bf16 %v477_v11, %v476_v9  ;;  %v535_v9 = vld [vmem:[#allocation5 + $0xb18] sm:$0xff]  ;;  %v521_v11 = vld [vmem:[#allocation5 + $0xaa8] sm:$0xff] }
  0xba   :  { %9262 = vmatprep.subr.bf16.mxu1 %v9261_v22  ;;  %2720 = vmatmul.mubr.f32.vlgmr.msra.gmra.mrb[6].mxu0 %v64_v28  ;;  %v9281_v22 = vpack.c.bf16 %v495_v15, %v494_v14  ;;  %v9251_v28 = vpack.c.bf16 %v447_v20, %v446_v19  ;;  %v73_v14 = vld [vmem:[#allocation2 + $0xa8] sm:$0xff]  ;;  %v504_v19 = vld [vmem:[#allocation5 + $0xa20] sm:$0xff] }
  0xbb   :  { %9232 = vmatpush3.bf16.msra.mxu0 %v9231_v29  ;;  %2859 = vmatprep.mubr.f32.mxu0 %v69_v42  ;;  %v9283_v29 = vpack.c.bf16 %v479_v23, %v478_v21  ;;  %v505_v20 = vld [vmem:[#allocation5 + $0xa28] sm:$0xff]  ;;  %v536_v21 = vld [vmem:[#allocation5 + $0xb20] sm:$0xff] }
  0xbc   :  { %2790 = vmatmul.mubr.f32.vlgmr.msra.gmra.mrb[6].mxu1 %v66_v30  ;;  %9234 = vmatprep.subr.bf16.mxu0 %v9233_v32  ;;  %v9253_v30 = vpack.c.bf16 %v465_v25, %v464_v24  ;;  %v449_v32 = vld [vmem:[#allocation5 + $0x868] sm:$0xff]  ;;  %v522_v24 = vld [vmem:[#allocation5 + $0xab0] sm:$0xff]  ;;  %v523_v25 = vld [vmem:[#allocation5 + $0xab8] sm:$0xff] }
  0xbd   :  { %9264 = vmatpush3.bf16.msra.mxu1 %v9263_v31  ;;  %2929 = vmatprep.mubr.f32.mxu1 %v71_v44  ;;  %v448_v31 = vld [vmem:[#allocation5 + $0x860] sm:$0xff]  ;;  %v451_v44 = vld [vmem:[#allocation5 + $0x878] sm:$0xff]  ;;  %v537_v23 = vld [vmem:[#allocation5 + $0xb28] sm:$0xff] }
  0xbe   :  { %9266 = vmatprep.subr.bf16.mxu1 %v9265_v36  ;;  %v466_v36 = vld [vmem:[#allocation5 + $0x8f0] sm:$0xff]  ;;  %v9255_v40 = vpack.c.bf16 %v449_v32, %v448_v31  ;;  %v507_v32 = vld [vmem:[#allocation5 + $0xa38] sm:$0xff] }
  0xbf   :  { %9236 = vmatpush3.bf16.msra.mxu0 %v9235_v43  ;;  %v9257_v42 = vpack.c.bf16 %v467_v37, %v466_v36  ;;  %v450_v43 = vld [vmem:[#allocation5 + $0x870] sm:$0xff]  ;;  %v524_v36 = vld [vmem:[#allocation5 + $0xac0] sm:$0xff]  ;;  %v525_v37 = vld [vmem:[#allocation5 + $0xac8] sm:$0xff] }
  0xc0   :  { %9238 = vmatprep.subr.bf16.mxu0 %v9237_v46  ;;  %v9289_v46 = vpack.c.bf16 %v499_v39, %v498_v38  ;;  %v9259_v52 = vpack.c.bf16 %v451_v44, %v450_v43  ;;  %v506_v31 = vld [vmem:[#allocation5 + $0xa30] sm:$0xff]  ;;  %v556_v38 = vld [vmem:[#allocation5 + $0xbc0] sm:$0xff]  ;;  %v557_v39 = vld [vmem:[#allocation5 + $0xbc8] sm:$0xff] }
  0xc1   :  { %9268 = vmatpush3.bf16.msra.mxu1 %v9267_v45  ;;  %v482_v45 = vld [vmem:[#allocation5 + $0x970] sm:$0xff]  ;;  %v508_v43 = vld [vmem:[#allocation5 + $0xa40] sm:$0xff]  ;;  %v509_v44 = vld [vmem:[#allocation5 + $0xa48] sm:$0xff] }
  0xc2   :  { %9270 = vmatprep.subr.bf16.mxu1 %v9269_v50  ;;  %v548_v50 = vld [vmem:[#allocation5 + $0xb80] sm:$0xff]  ;;  %v9291_v53 = vpack.c.bf16 %v483_v47, %v482_v45  ;;  %v541_v47 = vld [vmem:[#allocation5 + $0xb48] sm:$0xff] }
  0xc3   :  { %9240 = vmatpush3.bf16.msra.mxu0 %v9239_v56  ;;  %v501_v56 = vld [vmem:[#allocation5 + $0xa08] sm:$0xff]  ;;  %v540_v45 = vld [vmem:[#allocation5 + $0xb40] sm:$0xff] }
  0xc4   :  { %9242 = vmatprep.subr.bf16.mxu0 %v9241_v58  ;;  %v9325_v58 = vpack.c.bf16 %v549_v51, %v548_v50  ;;  %v9295_v1 = vpack.c.bf16 %v501_v56, %v500_v55  ;;  %v558_v50 = vld [vmem:[#allocation5 + $0xbd0] sm:$0xff]  ;;  %v559_v51 = vld [vmem:[#allocation5 + $0xbd8] sm:$0xff] }
  0xc5   :  { %9272 = vmatpush3.bf16.msra.mxu1 %v9271_v57  ;;  %v532_v57 = vld [vmem:[#allocation5 + $0xb00] sm:$0xff]  ;;  %v510_v55 = vld [vmem:[#allocation5 + $0xa50] sm:$0xff]  ;;  %v511_v56 = vld [vmem:[#allocation5 + $0xa58] sm:$0xff] }
  0xc6   :  { %9274 = vmatprep.subr.bf16.mxu1 %v9273_v62  ;;  %v550_v62 = vld [vmem:[#allocation5 + $0xb90] sm:$0xff]  ;;  %v9327_v3 = vpack.c.bf16 %v533_v59, %v532_v57  ;;  %v543_v59 = vld [vmem:[#allocation5 + $0xb58] sm:$0xff] }
  0xc7   :  { %9244 = vmatpush3.bf16.msra.mxu0 %v9243_v4  ;;  %v9297_v4 = vpack.c.bf16 %v519_v61, %v518_v60  ;;  %v9329_v8 = vpack.c.bf16 %v551_v63, %v550_v62  ;;  %v542_v57 = vld [vmem:[#allocation5 + $0xb50] sm:$0xff]  ;;  %v528_v60 = vld [vmem:[#allocation5 + $0xae0] sm:$0xff]  ;;  %v529_v61 = vld [vmem:[#allocation5 + $0xae8] sm:$0xff] }
  0xc8   :  { %9246 = vmatprep.subr.bf16.mxu0 %v9245_v6  ;;  %v503_v6 = vld [vmem:[#allocation5 + $0xa18] sm:$0xff]  ;;  %v560_v62 = vld [vmem:[#allocation5 + $0xbe0] sm:$0xff]  ;;  %v561_v63 = vld [vmem:[#allocation5 + $0xbe8] sm:$0xff] }
  0xc9   :  { %9276 = vmatpush3.bf16.msra.mxu1 %v9275_v5  ;;  %v502_v5 = vld [vmem:[#allocation5 + $0xa10] sm:$0xff] }
  0xca   :  { %9278 = vmatprep.subr.bf16.mxu1 %v9277_v10  ;;  %v520_v10 = vld [vmem:[#allocation5 + $0xaa0] sm:$0xff]  ;;  %v9299_v15 = vpack.c.bf16 %v503_v6, %v502_v5  ;;  %v9349_v6 = vpack.c.bf16 %v561_v63, %v560_v62  ;;  %v618_v62 = vld [vmem:[#allocation5 + $0xdb0] sm:$0xff]  ;;  %v619_v63 = vld [vmem:[#allocation5 + $0xdb8] sm:$0xff] }
  0xcb   :  { %9248 = vmatpush3.bf16.msra.mxu0 %v9247_v16  ;;  %v75_v16 = vld [vmem:[#allocation2 + $0xb8] sm:$0xff]  ;;  %v544_v5 = vld [vmem:[#allocation5 + $0xb60] sm:$0xff] }
  0xcc   :  { %9250 = vmatprep.subr.bf16.mxu0 %v9249_v18  ;;  %v9301_v18 = vpack.c.bf16 %v521_v11, %v520_v10  ;;  %v562_v10 = vld [vmem:[#allocation5 + $0xbf0] sm:$0xff]  ;;  %v563_v11 = vld [vmem:[#allocation5 + $0xbf8] sm:$0xff] }
  0xcd   :  { %9280 = vmatpush3.bf16.msra.mxu1 %v9279_v17  ;;  %v9331_v17 = vpack.c.bf16 %v535_v9, %v534_v7  ;;  %v545_v7 = vld [vmem:[#allocation5 + $0xb68] sm:$0xff]  ;;  %v531_v9 = vld [vmem:[#allocation5 + $0xaf8] sm:$0xff] }
  0xce   :  { %9282 = vmatprep.subr.bf16.mxu1 %v9281_v22  ;;  %v9333_v22 = vpack.c.bf16 %v553_v13, %v552_v12  ;;  %v9351_v13 = vpack.c.bf16 %v545_v7, %v544_v5  ;;  %v602_v5 = vld [vmem:[#allocation5 + $0xd30] sm:$0xff]  ;;  %v603_v7 = vld [vmem:[#allocation5 + $0xd38] sm:$0xff] }
  0xcf   :  { %9252 = vmatpush3.bf16.msra.mxu0 %v9251_v28  ;;  %v9303_v28 = vpack.c.bf16 %v505_v20, %v504_v19  ;;  %v547_v19 = vld [vmem:[#allocation5 + $0xb78] sm:$0xff]  ;;  %v580_v20 = vld [vmem:[#allocation5 + $0xc80] sm:$0xff] }
  0xd0   :  { %9254 = vmatprep.subr.bf16.mxu0 %v9253_v30  ;;  %v9305_v30 = vpack.c.bf16 %v523_v25, %v522_v24 }
  0xd1   :  { %9284 = vmatpush3.bf16.msra.mxu1 %v9283_v29  ;;  %v9335_v29 = vpack.c.bf16 %v537_v23, %v536_v21  ;;  %v581_v21 = vld [vmem:[#allocation5 + $0xc88] sm:$0xff] }
  0xd2   :  { %9286 = vmatprep.subr.bf16.mxu1 %v9285_v34  ;;  %v9337_v34 = vpack.c.bf16 %v555_v27, %v554_v26  ;;  %v613_v23 = vld [vmem:[#allocation5 + $0xd88] sm:$0xff]  ;;  %v9357_v26 = vpack.c.bf16 %v581_v21, %v580_v20  ;;  %v564_v27 = vld [vmem:[#allocation5 + $0xc00] sm:$0xff]  ;;  %v590_v20 = vld [vmem:[#allocation5 + $0xcd0] sm:$0xff] }
  0xd3   :  { %9256 = vmatpush3.bf16.msra.mxu0 %v9255_v40  ;;  %v9307_v40 = vpack.c.bf16 %v507_v32, %v506_v31  ;;  %v597_v31 = vld [vmem:[#allocation5 + $0xd08] sm:$0xff]  ;;  %v582_v32 = vld [vmem:[#allocation5 + $0xc90] sm:$0xff]  ;;  %v591_v21 = vld [vmem:[#allocation5 + $0xcd8] sm:$0xff] }
  0xd4   :  { %9258 = vmatprep.subr.bf16.mxu0 %v9257_v42  ;;  %v9309_v42 = vpack.c.bf16 %v525_v37, %v524_v36  ;;  %v72_v36 = vld [vmem:[#allocation2 + $0xa0] sm:$0xff] }
  0xd5   :  { %9288 = vmatpush3.bf16.msra.mxu1 %v9287_v41  ;;  %v9339_v41 = vpack.c.bf16 %v539_v35, %v538_v33  ;;  %v583_v33 = vld [vmem:[#allocation5 + $0xc98] sm:$0xff] }
  0xd6   :  { %9290 = vmatprep.subr.bf16.mxu1 %v9289_v46  ;;  %v9341_v46 = vpack.c.bf16 %v557_v39, %v556_v38  ;;  %v615_v35 = vld [vmem:[#allocation5 + $0xd98] sm:$0xff]  ;;  %v74_v38 = vld [vmem:[#allocation2 + $0xb0] sm:$0xff] }
  0xd7   :  { %9260 = vmatpush3.bf16.msra.mxu0 %v9259_v52  ;;  %v9311_v52 = vpack.c.bf16 %v509_v44, %v508_v43  ;;  %v598_v43 = vld [vmem:[#allocation5 + $0xd10] sm:$0xff] }
  0xd8   :  { %9294 = vmatprep.subr.bf16.mxu0 %v9293_v54  ;;  %v9313_v54 = vpack.c.bf16 %v527_v49, %v526_v48  ;;  %v616_v48 = vld [vmem:[#allocation5 + $0xda0] sm:$0xff]  ;;  %v617_v49 = vld [vmem:[#allocation5 + $0xda8] sm:$0xff] }
  0xd9   :  { %9292 = vmatpush3.bf16.msra.mxu1 %v9291_v53  ;;  %v9343_v53 = vpack.c.bf16 %v541_v47, %v540_v45  ;;  %v599_v45 = vld [vmem:[#allocation5 + $0xd18] sm:$0xff]  ;;  %v585_v47 = vld [vmem:[#allocation5 + $0xca8] sm:$0xff] }
  0xda   :  { %9326 = vmatprep.subr.bf16.mxu1 %v9325_v58  ;;  %2860 = vmatmul.mubr.f32.vlgmr.msra.gmra.mrb[8].mxu0 %v68_v0  ;;  %v9345_v58 = vpack.c.bf16 %v559_v51, %v558_v50  ;;  %v9315_v0 = vpack.c.bf16 %v511_v56, %v510_v55  ;;  %v77_v50 = vld [vmem:[#allocation2 + $0xc8] sm:$0xff]  ;;  %v568_v55 = vld [vmem:[#allocation5 + $0xc20] sm:$0xff] }
  0xdb   :  { %9296 = vmatpush3.bf16.msra.mxu0 %v9295_v1  ;;  %2999 = vmatprep.mubr.f32.mxu0 %v73_v14  ;;  %v9347_v1 = vpack.c.bf16 %v543_v59, %v542_v57  ;;  %v569_v56 = vld [vmem:[#allocation5 + $0xc28] sm:$0xff]  ;;  %v600_v57 = vld [vmem:[#allocation5 + $0xd20] sm:$0xff] }
  0xdc   :  { %2930 = vmatmul.mubr.f32.vlgmr.msra.gmra.mrb[8].mxu1 %v70_v2  ;;  %9298 = vmatprep.subr.bf16.mxu0 %v9297_v4  ;;  %v9317_v2 = vpack.c.bf16 %v529_v61, %v528_v60  ;;  %v513_v4 = vld [vmem:[#allocation5 + $0xa68] sm:$0xff]  ;;  %v586_v60 = vld [vmem:[#allocation5 + $0xcb0] sm:$0xff]  ;;  %v587_v61 = vld [vmem:[#allocation5 + $0xcb8] sm:$0xff] }
  0xdd   :  { %9328 = vmatpush3.bf16.msra.mxu1 %v9327_v3  ;;  %3069 = vmatprep.mubr.f32.mxu1 %v75_v16  ;;  %v512_v3 = vld [vmem:[#allocation5 + $0xa60] sm:$0xff]  ;;  %v515_v16 = vld [vmem:[#allocation5 + $0xa78] sm:$0xff]  ;;  %v601_v59 = vld [vmem:[#allocation5 + $0xd28] sm:$0xff] }
  0xde   :  { %9330 = vmatprep.subr.bf16.mxu1 %v9329_v8  ;;  %v530_v8 = vld [vmem:[#allocation5 + $0xaf0] sm:$0xff]  ;;  %v9319_v12 = vpack.c.bf16 %v513_v4, %v512_v3  ;;  %v571_v4 = vld [vmem:[#allocation5 + $0xc38] sm:$0xff] }
  0xdf   :  { %9300 = vmatpush3.bf16.msra.mxu0 %v9299_v15  ;;  %v9321_v14 = vpack.c.bf16 %v531_v9, %v530_v8  ;;  %v514_v15 = vld [vmem:[#allocation5 + $0xa70] sm:$0xff]  ;;  %v588_v8 = vld [vmem:[#allocation5 + $0xcc0] sm:$0xff]  ;;  %v589_v9 = vld [vmem:[#allocation5 + $0xcc8] sm:$0xff] }
  0xe0   :  { %9302 = vmatprep.subr.bf16.mxu0 %v9301_v18  ;;  %v9353_v18 = vpack.c.bf16 %v563_v11, %v562_v10  ;;  %v9323_v24 = vpack.c.bf16 %v515_v16, %v514_v15  ;;  %v570_v3 = vld [vmem:[#allocation5 + $0xc30] sm:$0xff]  ;;  %v620_v10 = vld [vmem:[#allocation5 + $0xdc0] sm:$0xff]  ;;  %v621_v11 = vld [vmem:[#allocation5 + $0xdc8] sm:$0xff] }
  0xe1   :  { %9332 = vmatpush3.bf16.msra.mxu1 %v9331_v17  ;;  %v546_v17 = vld [vmem:[#allocation5 + $0xb70] sm:$0xff]  ;;  %v572_v15 = vld [vmem:[#allocation5 + $0xc40] sm:$0xff]  ;;  %v573_v16 = vld [vmem:[#allocation5 + $0xc48] sm:$0xff] }
  0xe2   :  { %9334 = vmatprep.subr.bf16.mxu1 %v9333_v22  ;;  %v612_v22 = vld [vmem:[#allocation5 + $0xd80] sm:$0xff]  ;;  %v9355_v25 = vpack.c.bf16 %v547_v19, %v546_v17  ;;  %v605_v19 = vld [vmem:[#allocation5 + $0xd48] sm:$0xff] }
  0xe3   :  { %9304 = vmatpush3.bf16.msra.mxu0 %v9303_v28  ;;  %v565_v28 = vld [vmem:[#allocation5 + $0xc08] sm:$0xff]  ;;  %v604_v17 = vld [vmem:[#allocation5 + $0xd40] sm:$0xff] }
  0xe4   :  { %9306 = vmatprep.subr.bf16.mxu0 %v9305_v30  ;;  %v9389_v30 = vpack.c.bf16 %v613_v23, %v612_v22  ;;  %v9359_v37 = vpack.c.bf16 %v565_v28, %v564_v27  ;;  %v622_v22 = vld [vmem:[#allocation5 + $0xdd0] sm:$0xff]  ;;  %v623_v23 = vld [vmem:[#allocation5 + $0xdd8] sm:$0xff] }
  0xe5   :  { %9336 = vmatpush3.bf16.msra.mxu1 %v9335_v29  ;;  %v596_v29 = vld [vmem:[#allocation5 + $0xd00] sm:$0xff]  ;;  %v574_v27 = vld [vmem:[#allocation5 + $0xc50] sm:$0xff]  ;;  %v575_v28 = vld [vmem:[#allocation5 + $0xc58] sm:$0xff] }
  0xe6   :  { %9338 = vmatprep.subr.bf16.mxu1 %v9337_v34  ;;  %v614_v34 = vld [vmem:[#allocation5 + $0xd90] sm:$0xff]  ;;  %v9391_v39 = vpack.c.bf16 %v597_v31, %v596_v29  ;;  %v607_v31 = vld [vmem:[#allocation5 + $0xd58] sm:$0xff] }
  0xe7   :  { %9308 = vmatpush3.bf16.msra.mxu0 %v9307_v40  ;;  %v9361_v40 = vpack.c.bf16 %v583_v33, %v582_v32  ;;  %v9393_v44 = vpack.c.bf16 %v615_v35, %v614_v34  ;;  %v606_v29 = vld [vmem:[#allocation5 + $0xd50] sm:$0xff]  ;;  %v592_v32 = vld [vmem:[#allocation5 + $0xce0] sm:$0xff]  ;;  %v593_v33 = vld [vmem:[#allocation5 + $0xce8] sm:$0xff] }
  0xe8   :  { %9310 = vmatprep.subr.bf16.mxu0 %v9309_v42  ;;  %v567_v42 = vld [vmem:[#allocation5 + $0xc18] sm:$0xff]  ;;  %v624_v34 = vld [vmem:[#allocation5 + $0xde0] sm:$0xff]  ;;  %v625_v35 = vld [vmem:[#allocation5 + $0xde8] sm:$0xff] }
  0xe9   :  { %9340 = vmatpush3.bf16.msra.mxu1 %v9339_v41  ;;  %v566_v41 = vld [vmem:[#allocation5 + $0xc10] sm:$0xff] }
  0xea   :  { %9342 = vmatprep.subr.bf16.mxu1 %v9341_v46  ;;  %v584_v46 = vld [vmem:[#allocation5 + $0xca0] sm:$0xff]  ;;  %v9363_v51 = vpack.c.bf16 %v567_v42, %v566_v41  ;;  %v9413_v42 = vpack.c.bf16 %v625_v35, %v624_v34  ;;  %v682_v34 = vld [vmem:[#allocation5 + $0xfb0] sm:$0xff]  ;;  %v683_v35 = vld [vmem:[#allocation5 + $0xfb8] sm:$0xff] }
  0xeb   :  { %9312 = vmatpush3.bf16.msra.mxu0 %v9311_v52  ;;  %v79_v52 = vld [vmem:[#allocation2 + $0xd8] sm:$0xff]  ;;  %v608_v41 = vld [vmem:[#allocation5 + $0xd60] sm:$0xff] }
  0xec   :  { %9314 = vmatprep.subr.bf16.mxu0 %v9313_v54  ;;  %v9365_v54 = vpack.c.bf16 %v585_v47, %v584_v46  ;;  %v626_v46 = vld [vmem:[#allocation5 + $0xdf0] sm:$0xff]  ;;  %v627_v47 = vld [vmem:[#allocation5 + $0xdf8] sm:$0xff] }
  0xed   :  { %9344 = vmatpush3.bf16.msra.mxu1 %v9343_v53  ;;  %v9395_v53 = vpack.c.bf16 %v599_v45, %v598_v43  ;;  %v609_v43 = vld [vmem:[#allocation5 + $0xd68] sm:$0xff]  ;;  %v595_v45 = vld [vmem:[#allocation5 + $0xcf8] sm:$0xff] }
  0xee   :  { %9346 = vmatprep.subr.bf16.mxu1 %v9345_v58  ;;  %v9397_v58 = vpack.c.bf16 %v617_v49, %v616_v48  ;;  %v9415_v49 = vpack.c.bf16 %v609_v43, %v608_v41  ;;  %v666_v41 = vld [vmem:[#allocation5 + $0xf30] sm:$0xff]  ;;  %v667_v43 = vld [vmem:[#allocation5 + $0xf38] sm:$0xff] }
  0xef   :  { %9316 = vmatpush3.bf16.msra.mxu0 %v9315_v0  ;;  %v9367_v0 = vpack.c.bf16 %v569_v56, %v568_v55  ;;  %v611_v55 = vld [vmem:[#allocation5 + $0xd78] sm:$0xff]  ;;  %v644_v56 = vld [vmem:[#allocation5 + $0xe80] sm:$0xff] }
  0xf0   :  { %9318 = vmatprep.subr.bf16.mxu0 %v9317_v2  ;;  %v9369_v2 = vpack.c.bf16 %v587_v61, %v586_v60 }
  0xf1   :  { %9348 = vmatpush3.bf16.msra.mxu1 %v9347_v1  ;;  %v9399_v1 = vpack.c.bf16 %v601_v59, %v600_v57  ;;  %v645_v57 = vld [vmem:[#allocation5 + $0xe88] sm:$0xff] }
  0xf2   :  { %9350 = vmatprep.subr.bf16.mxu1 %v9349_v6  ;;  %v9401_v6 = vpack.c.bf16 %v619_v63, %v618_v62  ;;  %v677_v59 = vld [vmem:[#allocation5 + $0xf88] sm:$0xff]  ;;  %v9421_v62 = vpack.c.bf16 %v645_v57, %v644_v56  ;;  %v628_v63 = vld [vmem:[#allocation5 + $0xe00] sm:$0xff]  ;;  %v654_v56 = vld [vmem:[#allocation5 + $0xed0] sm:$0xff] }
  0xf3   :  { %9320 = vmatpush3.bf16.msra.mxu0 %v9319_v12  ;;  %v9371_v12 = vpack.c.bf16 %v571_v4, %v570_v3  ;;  %v661_v3 = vld [vmem:[#allocation5 + $0xf08] sm:$0xff]  ;;  %v646_v4 = vld [vmem:[#allocation5 + $0xe90] sm:$0xff]  ;;  %v655_v57 = vld [vmem:[#allocation5 + $0xed8] sm:$0xff] }
  0xf4   :  { %9322 = vmatprep.subr.bf16.mxu0 %v9321_v14  ;;  %v9373_v14 = vpack.c.bf16 %v589_v9, %v588_v8  ;;  %v76_v8 = vld [vmem:[#allocation2 + $0xc0] sm:$0xff] }
  0xf5   :  { %9352 = vmatpush3.bf16.msra.mxu1 %v9351_v13  ;;  %v9403_v13 = vpack.c.bf16 %v603_v7, %v602_v5  ;;  %v647_v5 = vld [vmem:[#allocation5 + $0xe98] sm:$0xff] }
  0xf6   :  { %9354 = vmatprep.subr.bf16.mxu1 %v9353_v18  ;;  %v9405_v18 = vpack.c.bf16 %v621_v11, %v620_v10  ;;  %v679_v7 = vld [vmem:[#allocation5 + $0xf98] sm:$0xff]  ;;  %v78_v10 = vld [vmem:[#allocation2 + $0xd0] sm:$0xff] }
  0xf7   :  { %9324 = vmatpush3.bf16.msra.mxu0 %v9323_v24  ;;  %v9375_v24 = vpack.c.bf16 %v573_v16, %v572_v15  ;;  %v662_v15 = vld [vmem:[#allocation5 + $0xf10] sm:$0xff] }
  0xf8   :  { %9358 = vmatprep.subr.bf16.mxu0 %v9357_v26  ;;  %v9377_v26 = vpack.c.bf16 %v591_v21, %v590_v20  ;;  %v680_v20 = vld [vmem:[#allocation5 + $0xfa0] sm:$0xff]  ;;  %v681_v21 = vld [vmem:[#allocation5 + $0xfa8] sm:$0xff] }
  0xf9   :  { %9356 = vmatpush3.bf16.msra.mxu1 %v9355_v25  ;;  %v9407_v25 = vpack.c.bf16 %v605_v19, %v604_v17  ;;  %v663_v17 = vld [vmem:[#allocation5 + $0xf18] sm:$0xff]  ;;  %v649_v19 = vld [vmem:[#allocation5 + $0xea8] sm:$0xff] }
  0xfa   :  { %9390 = vmatprep.subr.bf16.mxu1 %v9389_v30  ;;  %3000 = vmatmul.mubr.f32.vlgmr.msra.gmra.mrb[10].mxu0 %v72_v36  ;;  %v9409_v30 = vpack.c.bf16 %v623_v23, %v622_v22  ;;  %v9379_v36 = vpack.c.bf16 %v575_v28, %v574_v27  ;;  %v81_v22 = vld [vmem:[#allocation2 + $0xe8] sm:$0xff]  ;;  %v632_v27 = vld [vmem:[#allocation5 + $0xe20] sm:$0xff] }
  0xfb   :  { %9360 = vmatpush3.bf16.msra.mxu0 %v9359_v37  ;;  %3139 = vmatprep.mubr.f32.mxu0 %v77_v50  ;;  %v9411_v37 = vpack.c.bf16 %v607_v31, %v606_v29  ;;  %v633_v28 = vld [vmem:[#allocation5 + $0xe28] sm:$0xff]  ;;  %v664_v29 = vld [vmem:[#allocation5 + $0xf20] sm:$0xff] }
  0xfc   :  { %3070 = vmatmul.mubr.f32.vlgmr.msra.gmra.mrb[10].mxu1 %v74_v38  ;;  %9362 = vmatprep.subr.bf16.mxu0 %v9361_v40  ;;  %v9381_v38 = vpack.c.bf16 %v593_v33, %v592_v32  ;;  %v577_v40 = vld [vmem:[#allocation5 + $0xc68] sm:$0xff]  ;;  %v650_v32 = vld [vmem:[#allocation5 + $0xeb0] sm:$0xff]  ;;  %v651_v33 = vld [vmem:[#allocation5 + $0xeb8] sm:$0xff] }
  0xfd   :  { %9392 = vmatpush3.bf16.msra.mxu1 %v9391_v39  ;;  %3209 = vmatprep.mubr.f32.mxu1 %v79_v52  ;;  %v576_v39 = vld [vmem:[#allocation5 + $0xc60] sm:$0xff]  ;;  %v579_v52 = vld [vmem:[#allocation5 + $0xc78] sm:$0xff]  ;;  %v665_v31 = vld [vmem:[#allocation5 + $0xf28] sm:$0xff] }
  0xfe   :  { %9394 = vmatprep.subr.bf16.mxu1 %v9393_v44  ;;  %v594_v44 = vld [vmem:[#allocation5 + $0xcf0] sm:$0xff]  ;;  %v9383_v48 = vpack.c.bf16 %v577_v40, %v576_v39  ;;  %v635_v40 = vld [vmem:[#allocation5 + $0xe38] sm:$0xff] }
  0xff   :  { %9364 = vmatpush3.bf16.msra.mxu0 %v9363_v51  ;;  %v9385_v50 = vpack.c.bf16 %v595_v45, %v594_v44  ;;  %v578_v51 = vld [vmem:[#allocation5 + $0xc70] sm:$0xff]  ;;  %v652_v44 = vld [vmem:[#allocation5 + $0xec0] sm:$0xff]  ;;  %v653_v45 = vld [vmem:[#allocation5 + $0xec8] sm:$0xff] }
 0x100   :  { %9366 = vmatprep.subr.bf16.mxu0 %v9365_v54  ;;  %v9417_v54 = vpack.c.bf16 %v627_v47, %v626_v46  ;;  %v9387_v60 = vpack.c.bf16 %v579_v52, %v578_v51  ;;  %v634_v39 = vld [vmem:[#allocation5 + $0xe30] sm:$0xff]  ;;  %v684_v46 = vld [vmem:[#allocation5 + $0xfc0] sm:$0xff]  ;;  %v685_v47 = vld [vmem:[#allocation5 + $0xfc8] sm:$0xff] }
 0x101   :  { %9396 = vmatpush3.bf16.msra.mxu1 %v9395_v53  ;;  %v610_v53 = vld [vmem:[#allocation5 + $0xd70] sm:$0xff]  ;;  %v636_v51 = vld [vmem:[#allocation5 + $0xe40] sm:$0xff]  ;;  %v637_v52 = vld [vmem:[#allocation5 + $0xe48] sm:$0xff] }
 0x102   :  { %9398 = vmatprep.subr.bf16.mxu1 %v9397_v58  ;;  %v676_v58 = vld [vmem:[#allocation5 + $0xf80] sm:$0xff]  ;;  %v9419_v61 = vpack.c.bf16 %v611_v55, %v610_v53  ;;  %v669_v55 = vld [vmem:[#allocation5 + $0xf48] sm:$0xff] }
 0x103   :  { %9368 = vmatpush3.bf16.msra.mxu0 %v9367_v0  ;;  %v629_v0 = vld [vmem:[#allocation5 + $0xe08] sm:$0xff]  ;;  %v668_v53 = vld [vmem:[#allocation5 + $0xf40] sm:$0xff] }
 0x104   :  { %9370 = vmatprep.subr.bf16.mxu0 %v9369_v2  ;;  %v9453_v2 = vpack.c.bf16 %v677_v59, %v676_v58  ;;  %v9423_v9 = vpack.c.bf16 %v629_v0, %v628_v63  ;;  %v686_v58 = vld [vmem:[#allocation5 + $0xfd0] sm:$0xff]  ;;  %v687_v59 = vld [vmem:[#allocation5 + $0xfd8] sm:$0xff] }
 0x105   :  { %9400 = vmatpush3.bf16.msra.mxu1 %v9399_v1  ;;  %v660_v1 = vld [vmem:[#allocation5 + $0xf00] sm:$0xff]  ;;  %v638_v63 = vld [vmem:[#allocation5 + $0xe50] sm:$0xff]  ;;  %v639_v0 = vld [vmem:[#allocation5 + $0xe58] sm:$0xff] }
 0x106   :  { %9402 = vmatprep.subr.bf16.mxu1 %v9401_v6  ;;  %v678_v6 = vld [vmem:[#allocation5 + $0xf90] sm:$0xff]  ;;  %v9455_v11 = vpack.c.bf16 %v661_v3, %v660_v1  ;;  %v671_v3 = vld [vmem:[#allocation5 + $0xf58] sm:$0xff] }
 0x107   :  { %9372 = vmatpush3.bf16.msra.mxu0 %v9371_v12  ;;  %v9425_v12 = vpack.c.bf16 %v647_v5, %v646_v4  ;;  %v9457_v16 = vpack.c.bf16 %v679_v7, %v678_v6  ;;  %v670_v1 = vld [vmem:[#allocation5 + $0xf50] sm:$0xff]  ;;  %v656_v4 = vld [vmem:[#allocation5 + $0xee0] sm:$0xff]  ;;  %v657_v5 = vld [vmem:[#allocation5 + $0xee8] sm:$0xff] }
 0x108   :  { %9374 = vmatprep.subr.bf16.mxu0 %v9373_v14  ;;  %v631_v14 = vld [vmem:[#allocation5 + $0xe18] sm:$0xff]  ;;  %v688_v6 = vld [vmem:[#allocation5 + $0xfe0] sm:$0xff]  ;;  %v689_v7 = vld [vmem:[#allocation5 + $0xfe8] sm:$0xff] }
 0x109   :  { %9404 = vmatpush3.bf16.msra.mxu1 %v9403_v13  ;;  %v630_v13 = vld [vmem:[#allocation5 + $0xe10] sm:$0xff] }
 0x10a   :  { %9406 = vmatprep.subr.bf16.mxu1 %v9405_v18  ;;  %v648_v18 = vld [vmem:[#allocation5 + $0xea0] sm:$0xff]  ;;  %v9427_v23 = vpack.c.bf16 %v631_v14, %v630_v13 }
 0x10b   :  { %9376 = vmatpush3.bf16.msra.mxu0 %v9375_v24  ;;  %v83_v24 = vld [vmem:[#allocation2 + $0xf8] sm:$0xff]  ;;  %v672_v13 = vld [vmem:[#allocation5 + $0xf60] sm:$0xff] }
 0x10c   :  { %9378 = vmatprep.subr.bf16.mxu0 %v9377_v26  ;;  %v9429_v26 = vpack.c.bf16 %v649_v19, %v648_v18  ;;  %v659_v18 = vld [vmem:[#allocation5 + $0xef8] sm:$0xff]  ;;  %v6732_v19 = vld [vmem:[#allocation7] ss:$0 sm:$0xff] }
 0x10d   :  { %9408 = vmatpush3.bf16.msra.mxu1 %v9407_v25  ;;  %v9459_v25 = vpack.c.bf16 %v663_v17, %v662_v15  ;;  %v9477_v15 = vpack.c.bf16 %v689_v7, %v688_v6  ;;  %v658_v17 = vld [vmem:[#allocation5 + $0xef0] sm:$0xff] }
 0x10e   :  { %9410 = vmatprep.subr.bf16.mxu1 %v9409_v30  ;;  %v9461_v30 = vpack.c.bf16 %v681_v21, %v680_v20 }
 0x10f   :  { %9380 = vmatpush3.bf16.msra.mxu0 %v9379_v36  ;;  %v9431_v36 = vpack.c.bf16 %v633_v28, %v632_v27 }
 0x110   :  { %9382 = vmatprep.subr.bf16.mxu0 %v9381_v38  ;;  %v9433_v38 = vpack.c.bf16 %v651_v33, %v650_v32  ;;  %v674_v32 = vld [vmem:[#allocation5 + $0xf70] sm:$0xff] }
 0x111   :  { %9412 = vmatpush3.bf16.msra.mxu1 %v9411_v37  ;;  %v9463_v37 = vpack.c.bf16 %v665_v31, %v664_v29  ;;  %v9449_v29 = vpack.c.bf16 %v659_v18, %v658_v17  ;;  %v643_v31 = vld [vmem:[#allocation5 + $0xe78] sm:$0xff] }
 0x112   :  { %9414 = vmatprep.subr.bf16.mxu1 %v9413_v42  ;;  %v9465_v42 = vpack.c.bf16 %v683_v35, %v682_v34  ;;  %v675_v35 = vld [vmem:[#allocation5 + $0xf78] sm:$0xff] }
 0x113   :  { %9384 = vmatpush3.bf16.msra.mxu0 %v9383_v48  ;;  %v9435_v48 = vpack.c.bf16 %v635_v40, %v634_v39  ;;  %v741_v39 = vld [vmem:[#allocation5 + $0x1188] sm:$0xff] }
 0x114   :  { %9386 = vmatprep.subr.bf16.mxu0 %v9385_v50  ;;  %v9437_v50 = vpack.c.bf16 %v653_v45, %v652_v44  ;;  %v692_v44 = vld [vmem:[#allocation5 + $0x1000] sm:$0xff]  ;;  %v693_v45 = vld [vmem:[#allocation5 + $0x1008] sm:$0xff] }
 0x115   :  { %9416 = vmatpush3.bf16.msra.mxu1 %v9415_v49  ;;  %v9467_v49 = vpack.c.bf16 %v667_v43, %v666_v41 }
 0x116   :  { %9418 = vmatprep.subr.bf16.mxu1 %v9417_v54  ;;  %v9469_v54 = vpack.c.bf16 %v685_v47, %v684_v46  ;;  %v724_v46 = vld [vmem:[#allocation5 + $0x1100] sm:$0xff] }
 0x117   :  { %9388 = vmatpush3.bf16.msra.mxu0 %v9387_v60  ;;  %v9439_v60 = vpack.c.bf16 %v637_v52, %v636_v51  ;;  %v742_v51 = vld [vmem:[#allocation5 + $0x1190] sm:$0xff]  ;;  %v743_v52 = vld [vmem:[#allocation5 + $0x1198] sm:$0xff] }
 0x118   :  { %9422 = vmatprep.subr.bf16.mxu0 %v9421_v62  ;;  %v9441_v62 = vpack.c.bf16 %v655_v57, %v654_v56 }
 0x119   :  { %9420 = vmatpush3.bf16.msra.mxu1 %v9419_v61  ;;  %v9471_v61 = vpack.c.bf16 %v669_v55, %v668_v53  ;;  %v80_v53 = vld [vmem:[#allocation2 + $0xe0] sm:$0xff]  ;;  %v82_v55 = vld [vmem:[#allocation2 + $0xf0] sm:$0xff] }
 0x11a   :  { %9454 = vmatprep.subr.bf16.mxu1 %v9453_v2  ;;  %3140 = vmatmul.mubr.f32.vlgmr.msra.gmra.mrb[12].mxu0 %v76_v8  ;;  %v9473_v2 = vpack.c.bf16 %v687_v59, %v686_v58  ;;  %v9443_v8 = vpack.c.bf16 %v639_v0, %v638_v63  ;;  %v694_v58 = vld [vmem:[#allocation5 + $0x1010] sm:$0xff]  ;;  %v695_v59 = vld [vmem:[#allocation5 + $0x1018] sm:$0xff]  ;;  %v712_v63 = vld [vmem:[#allocation5 + $0x10a0] sm:$0xff] }
 0x11b   :  { %9424 = vmatpush3.bf16.msra.mxu0 %v9423_v9  ;;  %3279 = vmatprep.mubr.f32.mxu0 %v81_v22  ;;  %v9475_v9 = vpack.c.bf16 %v671_v3, %v670_v1  ;;  %v690_v22 = vld [vmem:[#allocation5 + $0xff0] sm:$0xff]  ;;  %v713_v0 = vld [vmem:[#allocation5 + $0x10a8] sm:$0xff]  ;;  %v744_v1 = vld [vmem:[#allocation5 + $0x11a0] sm:$0xff] }
 0x11c   :  { %3210 = vmatmul.mubr.f32.vlgmr.msra.gmra.mrb[12].mxu1 %v78_v10  ;;  %9426 = vmatprep.subr.bf16.mxu0 %v9425_v12  ;;  %v9445_v10 = vpack.c.bf16 %v657_v5, %v656_v4  ;;  %v641_v12 = vld [vmem:[#allocation5 + $0xe68] sm:$0xff]  ;;  %v9491_v4 = vpack.c.bf16 %v695_v59, %v694_v58  ;;  %v87_v5 = vld [vmem:[#allocation2 + $0x118] sm:$0xff]  ;;  %v9493_v7 = vpack.c.bf16 %v713_v0, %v712_v63  ;;  %v736_v59 = vld [vmem:[#allocation5 + $0x1160] sm:$0xff] }
 0x11d   :  { %9456 = vmatpush3.bf16.msra.mxu1 %v9455_v11  ;;  %3349 = vmatprep.mubr.f32.mxu1 %v83_v24  ;;  %v640_v11 = vld [vmem:[#allocation5 + $0xe60] sm:$0xff]  ;;  %v85_v3 = vld [vmem:[#allocation2 + $0x108] sm:$0xff]  ;;  %v722_v63 = vld [vmem:[#allocation5 + $0x10f0] sm:$0xff] }
 0x11e   :  { %9458 = vmatprep.subr.bf16.mxu1 %v9457_v16  ;;  %v673_v16 = vld [vmem:[#allocation5 + $0xf68] sm:$0xff]  ;;  %v723_v0 = vld [vmem:[#allocation5 + $0x10f8] sm:$0xff] }
 0x11f   :  { %9428 = vmatpush3.bf16.msra.mxu0 %v9427_v23  ;;  %v691_v23 = vld [vmem:[#allocation5 + $0xff8] sm:$0xff]  ;;  %v9479_v28 = vpack.c.bf16 %v673_v16, %v672_v13  ;;  %v714_v13 = vld [vmem:[#allocation5 + $0x10b0] sm:$0xff]  ;;  %v705_v58 = vld [vmem:[#allocation5 + $0x1068] sm:$0xff] }
 0x120   :  { %9430 = vmatprep.subr.bf16.mxu0 %v9429_v26  ;;  %v9447_v26 = vpack.c.bf16 %v641_v12, %v640_v11  ;;  %v9481_v34 = vpack.c.bf16 %v691_v23, %v690_v22  ;;  %v729_v12 = vld [vmem:[#allocation5 + $0x1128] sm:$0xff]  ;;  %v747_v16 = vld [vmem:[#allocation5 + $0x11b8] sm:$0xff]  ;;  %v730_v22 = vld [vmem:[#allocation5 + $0x1130] sm:$0xff] }
 0x121   :  { %9460 = vmatpush3.bf16.msra.mxu1 %v9459_v25 }
 0x122   :  { %9462 = vmatprep.subr.bf16.mxu1 %v9461_v30  ;;  %v642_v30 = vld [vmem:[#allocation5 + $0xe70] sm:$0xff] }
 0x123   :  { %9432 = vmatpush3.bf16.msra.mxu0 %v9431_v36  ;;  %v708_v36 = vld [vmem:[#allocation5 + $0x1080] sm:$0xff]  ;;  %v9451_v41 = vpack.c.bf16 %v643_v31, %v642_v30 }
 0x124   :  { %9434 = vmatprep.subr.bf16.mxu0 %v9433_v38  ;;  %v740_v38 = vld [vmem:[#allocation5 + $0x1180] sm:$0xff] }
 0x125   :  { %9464 = vmatpush3.bf16.msra.mxu1 %v9463_v37  ;;  %v709_v37 = vld [vmem:[#allocation5 + $0x1088] sm:$0xff]  ;;  %v9517_v47 = vpack.c.bf16 %v741_v39, %v740_v38  ;;  %v719_v38 = vld [vmem:[#allocation5 + $0x10d8] sm:$0xff]  ;;  %v750_v39 = vld [vmem:[#allocation5 + $0x11d0] sm:$0xff] }
 0x126   :  { %9466 = vmatprep.subr.bf16.mxu1 %v9465_v42  ;;  %v9483_v42 = vpack.c.bf16 %v675_v35, %v674_v32  ;;  %v9485_v43 = vpack.c.bf16 %v709_v37, %v708_v36  ;;  %v700_v32 = vld [vmem:[#allocation5 + $0x1040] sm:$0xff]  ;;  %v733_v36 = vld [vmem:[#allocation5 + $0x1148] sm:$0xff]  ;;  %v718_v37 = vld [vmem:[#allocation5 + $0x10d0] sm:$0xff] }
 0x127   :  { %9436 = vmatpush3.bf16.msra.mxu0 %v9435_v48  ;;  %v725_v48 = vld [vmem:[#allocation5 + $0x1108] sm:$0xff] }
 0x128   :  { %9438 = vmatprep.subr.bf16.mxu0 %v9437_v50  ;;  %v711_v50 = vld [vmem:[#allocation5 + $0x1098] sm:$0xff]  ;;  %v9519_v56 = vpack.c.bf16 %v725_v48, %v724_v46 }
 0x129   :  { %9468 = vmatpush3.bf16.msra.mxu1 %v9467_v49  ;;  %v710_v49 = vld [vmem:[#allocation5 + $0x1090] sm:$0xff]  ;;  %v703_v46 = vld [vmem:[#allocation5 + $0x1058] sm:$0xff] }
 0x12a   :  { %9470 = vmatprep.subr.bf16.mxu1 %v9469_v54  ;;  %v9487_v54 = vpack.c.bf16 %v693_v45, %v692_v44  ;;  %v9489_v57 = vpack.c.bf16 %v711_v50, %v710_v49  ;;  %v9505_v44 = vpack.c.bf16 %v719_v38, %v718_v37  ;;  %v702_v45 = vld [vmem:[#allocation5 + $0x1050] sm:$0xff]  ;;  %v735_v49 = vld [vmem:[#allocation5 + $0x1158] sm:$0xff]  ;;  %v720_v50 = vld [vmem:[#allocation5 + $0x10e0] sm:$0xff] }
 0x12b   :  { %9440 = vmatpush3.bf16.msra.mxu0 %v9439_v60  ;;  %v726_v60 = vld [vmem:[#allocation5 + $0x1110] sm:$0xff] }
 0x12c   :  { %9442 = vmatprep.subr.bf16.mxu0 %v9441_v62  ;;  %v727_v62 = vld [vmem:[#allocation5 + $0x1118] sm:$0xff]  ;;  %v758_v38 = vld [vmem:[#allocation5 + $0x1210] sm:$0xff] }
 0x12d   :  { %9472 = vmatpush3.bf16.msra.mxu1 %v9471_v61  ;;  %v6765_v14 = vpop.f32.mrb[0].mxu0  ;;  %v9521_v61 = vpack.c.bf16 %v743_v52, %v742_v51  ;;  %v9523_v6 = vpack.c.bf16 %v727_v62, %v726_v60  ;;  %v721_v51 = vld [vmem:[#allocation5 + $0x10e8] sm:$0xff]  ;;  %v752_v52 = vld [vmem:[#allocation5 + $0x11e0] sm:$0xff] }
 0x12e   :  { %9474 = vmatprep.subr.bf16.mxu1 %v9473_v2  ;;  %v6766_v20 = vpop.f32.mrb[1].mxu0  ;;  %v745_v2 = vld [vmem:[#allocation5 + $0x11a8] sm:$0xff] }
 0x12f   :  { %v6800_v21 = vpop.f32.mrb[0].mxu1  ;;  %v6767_v24 = vadd.f32 %v6766_v20, %v6765_v14  ;;  %9444 = vmatpush3.bf16.msra.mxu0 %v9443_v8  ;;  %v696_v8 = vld [vmem:[#allocation5 + $0x1020] sm:$0xff]  ;;  %v9525_v11 = vpack.c.bf16 %v745_v2, %v744_v1  ;;  %v715_v14 = vld [vmem:[#allocation5 + $0x10b8] sm:$0xff]  ;;  %v698_v20 = vld [vmem:[#allocation5 + $0x1030] sm:$0xff] }
 0x130   :  { %v6801_v25 = vpop.f32.mrb[1].mxu1  ;;  %9446 = vmatprep.subr.bf16.mxu0 %v9445_v10  ;;  %v728_v10 = vld [vmem:[#allocation5 + $0x1120] sm:$0xff]  ;;  %v737_v62 = vld [vmem:[#allocation5 + $0x1168] sm:$0xff] }
 0x131   :  { %v6802_v27 = vadd.f32 %v6801_v25, %v6800_v21  ;;  %9476 = vmatpush3.bf16.msra.mxu1 %v9475_v9  ;;  %v2302_v33 = vadd.f32 %v6767_v24, %v6732_v19  ;;  %v697_v9 = vld [vmem:[#allocation5 + $0x1028] sm:$0xff]  ;;  %v9527_v18 = vpack.c.bf16 %v729_v12, %v728_v10  ;;  %v9497_v19 = vpack.c.bf16 %v715_v14, %v714_v13  ;;  %v699_v21 = vld [vmem:[#allocation5 + $0x1038] sm:$0xff]  ;;  %v716_v25 = vld [vmem:[#allocation5 + $0x10c0] sm:$0xff] }
 0x132   :  { %9478 = vmatprep.subr.bf16.mxu1 %v9477_v15  ;;  %v746_v15 = vld [vmem:[#allocation5 + $0x11b0] sm:$0xff]  ;;  %v9495_v17 = vpack.c.bf16 %v697_v9, %v696_v8  ;;  %v731_v24 = vld [vmem:[#allocation5 + $0x1138] sm:$0xff]  ;;  %v9543_v9 = vpack.c.bf16 %v737_v62, %v736_v59  ;;  %v9513_v10 = vpack.c.bf16 %v723_v0, %v722_v63 }
 0x133   :  { %v11183_v40 = vadd.f32 %v6802_v27, %v2302_v33  ;;  %9448 = vmatpush3.bf16.msra.mxu0 %v9447_v26  ;;  %v9529_v23 = vpack.c.bf16 %v747_v16, %v746_v15  ;;  %v717_v26 = vld [vmem:[#allocation5 + $0x10c8] sm:$0xff]  ;;  %v748_v27 = vld [vmem:[#allocation5 + $0x11c0] sm:$0xff]  ;;  %v9531_v30 = vpack.c.bf16 %v731_v24, %v730_v22  ;;  %v707_v12 = vld [vmem:[#allocation5 + $0x1078] sm:$0xff] }
 0x134   :  { %9450 = vmatprep.subr.bf16.mxu0 %v9449_v29  ;;  %v9499_v29 = vpack.c.bf16 %v699_v21, %v698_v20  ;;  %v9501_v31 = vpack.c.bf16 %v717_v26, %v716_v25  ;;  %v701_v33 = vld [vmem:[#allocation5 + $0x1048] sm:$0xff]  ;;  %v738_v13 = vld [vmem:[#allocation5 + $0x1170] sm:$0xff]  ;;  %v739_v16 = vld [vmem:[#allocation5 + $0x1178] sm:$0xff] }
 0x135   :  { %9480 = vmatpush3.bf16.msra.mxu1 %v9479_v28  ;;  %v749_v28 = vld [vmem:[#allocation5 + $0x11c8] sm:$0xff]  ;;  %v756_v25 = vld [vmem:[#allocation5 + $0x1200] sm:$0xff]  ;;  %v779_v59 = vld [vmem:[#allocation5 + $0x12b8] sm:$0xff] }
 0x136   :  { %9482 = vmatprep.subr.bf16.mxu1 %v9481_v34  ;;  %v732_v34 = vld [vmem:[#allocation5 + $0x1140] sm:$0xff]  ;;  %v9533_v35 = vpack.c.bf16 %v749_v28, %v748_v27  ;;  %v805_v20 = vld [vmem:[#allocation5 + $0x1388] sm:$0xff] }
 0x137   :  { %9452 = vmatpush3.bf16.msra.mxu0 %v9451_v41  ;;  %v751_v41 = vld [vmem:[#allocation5 + $0x11d8] sm:$0xff]  ;;  %v757_v26 = vld [vmem:[#allocation5 + $0x1208] sm:$0xff]  ;;  %v788_v27 = vld [vmem:[#allocation5 + $0x1300] sm:$0xff] }
 0x138   :  { %9486 = vmatprep.subr.bf16.mxu0 %v9485_v43  ;;  %v9535_v43 = vpack.c.bf16 %v733_v36, %v732_v34  ;;  %v9537_v48 = vpack.c.bf16 %v751_v41, %v750_v39  ;;  %v789_v28 = vld [vmem:[#allocation5 + $0x1308] sm:$0xff]  ;;  %v9551_v34 = vpack.c.bf16 %v757_v26, %v756_v25  ;;  %v759_v39 = vld [vmem:[#allocation5 + $0x1218] sm:$0xff]  ;;  %v790_v41 = vld [vmem:[#allocation5 + $0x1310] sm:$0xff] }
 0x139   :  { %9484 = vmatpush3.bf16.msra.mxu1 %v9483_v42  ;;  %v9503_v42 = vpack.c.bf16 %v701_v33, %v700_v32  ;;  %v807_v32 = vld [vmem:[#allocation5 + $0x1398] sm:$0xff]  ;;  %v84_v33 = vld [vmem:[#allocation2 + $0x100] sm:$0xff]  ;;  %v9583_v36 = vpack.c.bf16 %v789_v28, %v788_v27  ;;  %v766_v26 = vld [vmem:[#allocation5 + $0x1250] sm:$0xff] }
 0x13a   :  { %9518 = vmatprep.subr.bf16.mxu1 %v9517_v47  ;;  %3280 = vmatmul.mubr.f32.vlgmr.msra.gmra.mrb[14].mxu0 %v80_v53  ;;  %v734_v47 = vld [vmem:[#allocation5 + $0x1150] sm:$0xff]  ;;  %v753_v53 = vld [vmem:[#allocation5 + $0x11e8] sm:$0xff]  ;;  %v767_v27 = vld [vmem:[#allocation5 + $0x1258] sm:$0xff] }
 0x13b   :  { %9488 = vmatpush3.bf16.msra.mxu0 %v9487_v54  ;;  %3419 = vmatprep.mubr.f32.mxu0 %v85_v3  ;;  %v9507_v54 = vpack.c.bf16 %v703_v46, %v702_v45  ;;  %v754_v3 = vld [vmem:[#allocation5 + $0x11f0] sm:$0xff]  ;;  %v777_v45 = vld [vmem:[#allocation5 + $0x12a8] sm:$0xff]  ;;  %v808_v46 = vld [vmem:[#allocation5 + $0x13a0] sm:$0xff] }
 0x13c   :  { %3350 = vmatmul.mubr.f32.vlgmr.msra.gmra.mrb[14].mxu1 %v82_v55  ;;  %9490 = vmatprep.subr.bf16.mxu0 %v9489_v57  ;;  %v9539_v55 = vpack.c.bf16 %v735_v49, %v734_v47  ;;  %v704_v57 = vld [vmem:[#allocation5 + $0x1060] sm:$0xff]  ;;  %v809_v47 = vld [vmem:[#allocation5 + $0x13a8] sm:$0xff]  ;;  %v9555_v49 = vpack.c.bf16 %v759_v39, %v758_v38 }
 0x13d   :  { %9520 = vmatpush3.bf16.msra.mxu1 %v9519_v56  ;;  %3489 = vmatprep.mubr.f32.mxu1 %v87_v5  ;;  %v9509_v56 = vpack.c.bf16 %v721_v51, %v720_v50  ;;  %v91_v50 = vld [vmem:[#allocation2 + $0x138] sm:$0xff]  ;;  %v769_v38 = vld [vmem:[#allocation5 + $0x1268] sm:$0xff]  ;;  %v800_v39 = vld [vmem:[#allocation5 + $0x1360] sm:$0xff] }
 0x13e   :  { %9522 = vmatprep.subr.bf16.mxu1 %v9521_v61  ;;  %v9541_v61 = vpack.c.bf16 %v753_v53, %v752_v52  ;;  %v760_v53 = vld [vmem:[#allocation5 + $0x1220] sm:$0xff] }
 0x13f   :  { %9492 = vmatpush3.bf16.msra.mxu0 %v9491_v4  ;;  %v755_v4 = vld [vmem:[#allocation5 + $0x11f8] sm:$0xff] }
 0x140   :  { %9494 = vmatprep.subr.bf16.mxu0 %v9493_v7  ;;  %v9511_v7 = vpack.c.bf16 %v705_v58, %v704_v57  ;;  %v9545_v15 = vpack.c.bf16 %v755_v4, %v754_v3  ;;  %v793_v57 = vld [vmem:[#allocation5 + $0x1328] sm:$0xff]  ;;  %v778_v58 = vld [vmem:[#allocation5 + $0x12b0] sm:$0xff] }
 0x141   :  { %9524 = vmatpush3.bf16.msra.mxu1 %v9523_v6  ;;  %v9561_v0 = vpack.c.bf16 %v779_v59, %v778_v58  ;;  %v794_v3 = vld [vmem:[#allocation5 + $0x1330] sm:$0xff] }
 0x142   :  { %9526 = vmatprep.subr.bf16.mxu1 %v9525_v11  ;;  %v706_v11 = vld [vmem:[#allocation5 + $0x1070] sm:$0xff] }
 0x143   :  { %9496 = vmatpush3.bf16.msra.mxu0 %v9495_v17  ;;  %v772_v17 = vld [vmem:[#allocation5 + $0x1280] sm:$0xff]  ;;  %v9515_v22 = vpack.c.bf16 %v707_v12, %v706_v11  ;;  %v802_v58 = vld [vmem:[#allocation5 + $0x1370] sm:$0xff] }
 0x144   :  { %9498 = vmatprep.subr.bf16.mxu0 %v9497_v19  ;;  %v804_v19 = vld [vmem:[#allocation5 + $0x1380] sm:$0xff] }
 0x145   :  { %9528 = vmatpush3.bf16.msra.mxu1 %v9527_v18  ;;  %v773_v18 = vld [vmem:[#allocation5 + $0x1288] sm:$0xff] }
 0x146   :  { %9530 = vmatprep.subr.bf16.mxu1 %v9529_v23  ;;  %v9547_v23 = vpack.c.bf16 %v739_v16, %v738_v13  ;;  %v9549_v24 = vpack.c.bf16 %v773_v18, %v772_v17  ;;  %v764_v13 = vld [vmem:[#allocation5 + $0x1240] sm:$0xff]  ;;  %v797_v17 = vld [vmem:[#allocation5 + $0x1348] sm:$0xff]  ;;  %v782_v18 = vld [vmem:[#allocation5 + $0x12d0] sm:$0xff] }
 0x147   :  { %9500 = vmatpush3.bf16.msra.mxu0 %v9499_v29  ;;  %v774_v29 = vld [vmem:[#allocation5 + $0x1290] sm:$0xff] }
 0x148   :  { %9502 = vmatprep.subr.bf16.mxu0 %v9501_v31  ;;  %v806_v31 = vld [vmem:[#allocation5 + $0x1390] sm:$0xff] }
 0x149   :  { %9532 = vmatpush3.bf16.msra.mxu1 %v9531_v30  ;;  %v775_v30 = vld [vmem:[#allocation5 + $0x1298] sm:$0xff] }
 0x14a   :  { %9534 = vmatprep.subr.bf16.mxu1 %v9533_v35  ;;  %v86_v35 = vld [vmem:[#allocation2 + $0x110] sm:$0xff]  ;;  %v9553_v37 = vpack.c.bf16 %v775_v30, %v774_v29  ;;  %v799_v29 = vld [vmem:[#allocation5 + $0x1358] sm:$0xff]  ;;  %v784_v30 = vld [vmem:[#allocation5 + $0x12e0] sm:$0xff] }
 0x14b   :  { %9504 = vmatpush3.bf16.msra.mxu0 %v9503_v42  ;;  %v9585_v42 = vpack.c.bf16 %v807_v32, %v806_v31  ;;  %v785_v31 = vld [vmem:[#allocation5 + $0x12e8] sm:$0xff]  ;;  %v816_v32 = vld [vmem:[#allocation5 + $0x13e0] sm:$0xff] }
 0x14c   :  { %9506 = vmatprep.subr.bf16.mxu0 %v9505_v44  ;;  %v776_v44 = vld [vmem:[#allocation5 + $0x12a0] sm:$0xff] }
 0x14d   :  { %9536 = vmatpush3.bf16.msra.mxu1 %v9535_v43  ;;  %v6835_v60 = vpop.f32.mrb[2].mxu0  ;;  %v791_v43 = vld [vmem:[#allocation5 + $0x1318] sm:$0xff]  ;;  %v9557_v52 = vpack.c.bf16 %v777_v45, %v776_v44  ;;  %v786_v44 = vld [vmem:[#allocation5 + $0x12f0] sm:$0xff] }
 0x14e   :  { %9538 = vmatprep.subr.bf16.mxu1 %v9537_v48  ;;  %v6836_v1 = vpop.f32.mrb[3].mxu0  ;;  %v89_v48 = vld [vmem:[#allocation2 + $0x128] sm:$0xff]  ;;  %v9587_v51 = vpack.c.bf16 %v791_v43, %v790_v41  ;;  %v787_v45 = vld [vmem:[#allocation5 + $0x12f8] sm:$0xff] }
 0x14f   :  { %v6870_v2 = vpop.f32.mrb[2].mxu1  ;;  %v6837_v5 = vadd.f32 %v6836_v1, %v6835_v60  ;;  %9508 = vmatpush3.bf16.msra.mxu0 %v9507_v54  ;;  %v761_v54 = vld [vmem:[#allocation5 + $0x1228] sm:$0xff]  ;;  %v810_v60 = vld [vmem:[#allocation5 + $0x13b0] sm:$0xff] }
 0x150   :  { %v6871_v6 = vpop.f32.mrb[3].mxu1  ;;  %9510 = vmatprep.subr.bf16.mxu0 %v9509_v56  ;;  %v9589_v56 = vpack.c.bf16 %v809_v47, %v808_v46  ;;  %v9559_v62 = vpack.c.bf16 %v761_v54, %v760_v53  ;;  %v762_v1 = vld [vmem:[#allocation5 + $0x1230] sm:$0xff]  ;;  %v801_v43 = vld [vmem:[#allocation5 + $0x1368] sm:$0xff] }
 0x151   :  { %v6872_v8 = vadd.f32 %v6871_v6, %v6870_v2  ;;  %9540 = vmatpush3.bf16.msra.mxu1 %v9539_v55  ;;  %v2442_v14 = vadd.f32 %v6837_v5, %v11183_v40  ;;  %v9581_v40 = vpack.c.bf16 %v805_v20, %v804_v19  ;;  %v792_v55 = vld [vmem:[#allocation5 + $0x1320] sm:$0xff]  ;;  %v763_v2 = vld [vmem:[#allocation5 + $0x1238] sm:$0xff]  ;;  %v814_v20 = vld [vmem:[#allocation5 + $0x13d0] sm:$0xff]  ;;  %v9607_v54 = vpack.c.bf16 %v801_v43, %v800_v39 }
 0x152   :  { %9542 = vmatprep.subr.bf16.mxu1 %v9541_v61  ;;  %v811_v61 = vld [vmem:[#allocation5 + $0x13b8] sm:$0xff]  ;;  %v9591_v63 = vpack.c.bf16 %v793_v57, %v792_v55  ;;  %v780_v6 = vld [vmem:[#allocation5 + $0x12c0] sm:$0xff]  ;;  %v9577_v55 = vpack.c.bf16 %v787_v45, %v786_v44 }
 0x153   :  { %v11186_v21 = vadd.f32 %v6872_v8, %v2442_v14  ;;  %9512 = vmatpush3.bf16.msra.mxu0 %v9511_v7  ;;  %v9593_v4 = vpack.c.bf16 %v811_v61, %v810_v60  ;;  %v795_v5 = vld [vmem:[#allocation5 + $0x1338] sm:$0xff]  ;;  %v781_v7 = vld [vmem:[#allocation5 + $0x12c8] sm:$0xff]  ;;  %v812_v8 = vld [vmem:[#allocation5 + $0x13c0] sm:$0xff] }
 0x154   :  { %9514 = vmatprep.subr.bf16.mxu0 %v9513_v10  ;;  %v9563_v10 = vpack.c.bf16 %v763_v2, %v762_v1  ;;  %v9595_v11 = vpack.c.bf16 %v795_v5, %v794_v3  ;;  %v9565_v12 = vpack.c.bf16 %v781_v7, %v780_v6  ;;  %v765_v14 = vld [vmem:[#allocation5 + $0x1248] sm:$0xff]  ;;  %v783_v19 = vld [vmem:[#allocation5 + $0x12d8] sm:$0xff]  ;;  %v820_v6 = vld [vmem:[#allocation5 + $0x1400] sm:$0xff] }
 0x155   :  { %9544 = vmatpush3.bf16.msra.mxu1 %v9543_v9  ;;  %v813_v9 = vld [vmem:[#allocation5 + $0x13c8] sm:$0xff]  ;;  %v9569_v25 = vpack.c.bf16 %v783_v19, %v782_v18  ;;  %v771_v57 = vld [vmem:[#allocation5 + $0x1278] sm:$0xff]  ;;  %v822_v19 = vld [vmem:[#allocation5 + $0x1410] sm:$0xff] }
 0x156   :  { %9546 = vmatprep.subr.bf16.mxu1 %v9545_v15  ;;  %v796_v15 = vld [vmem:[#allocation5 + $0x1340] sm:$0xff]  ;;  %v9597_v16 = vpack.c.bf16 %v813_v9, %v812_v8  ;;  %v803_v61 = vld [vmem:[#allocation5 + $0x1378] sm:$0xff]  ;;  %v869_v1 = vld [vmem:[#allocation5 + $0x1588] sm:$0xff] }
 0x157   :  { %9516 = vmatpush3.bf16.msra.mxu0 %v9515_v22  ;;  %v815_v22 = vld [vmem:[#allocation5 + $0x13d8] sm:$0xff]  ;;  %v821_v7 = vld [vmem:[#allocation5 + $0x1408] sm:$0xff]  ;;  %v852_v8 = vld [vmem:[#allocation5 + $0x1500] sm:$0xff] }
 0x158   :  { %9550 = vmatprep.subr.bf16.mxu0 %v9549_v24  ;;  %v9599_v24 = vpack.c.bf16 %v797_v17, %v796_v15  ;;  %v9601_v28 = vpack.c.bf16 %v815_v22, %v814_v20  ;;  %v853_v9 = vld [vmem:[#allocation5 + $0x1508] sm:$0xff]  ;;  %v9615_v15 = vpack.c.bf16 %v821_v7, %v820_v6  ;;  %v823_v20 = vld [vmem:[#allocation5 + $0x1418] sm:$0xff]  ;;  %v854_v22 = vld [vmem:[#allocation5 + $0x1510] sm:$0xff] }
 0x159   :  { %9548 = vmatpush3.bf16.msra.mxu1 %v9547_v23  ;;  %v9567_v23 = vpack.c.bf16 %v765_v14, %v764_v13  ;;  %v871_v13 = vld [vmem:[#allocation5 + $0x1598] sm:$0xff]  ;;  %v88_v14 = vld [vmem:[#allocation2 + $0x120] sm:$0xff]  ;;  %v9647_v17 = vpack.c.bf16 %v853_v9, %v852_v8  ;;  %v830_v7 = vld [vmem:[#allocation5 + $0x1450] sm:$0xff] }
 0x15a   :  { %9582 = vmatprep.subr.bf16.mxu1 %v9581_v40  ;;  %3420 = vmatmul.mubr.f32.vlgmr.msra.gmra.mrb[16].mxu0 %v84_v33  ;;  %v798_v40 = vld [vmem:[#allocation5 + $0x1350] sm:$0xff]  ;;  %v817_v33 = vld [vmem:[#allocation5 + $0x13e8] sm:$0xff]  ;;  %v843_v39 = vld [vmem:[#allocation5 + $0x14b8] sm:$0xff] }
 0x15b   :  { %9552 = vmatpush3.bf16.msra.mxu0 %v9551_v34  ;;  %3559 = vmatprep.mubr.f32.mxu0 %v89_v48  ;;  %v9571_v34 = vpack.c.bf16 %v767_v27, %v766_v26  ;;  %v818_v48 = vld [vmem:[#allocation5 + $0x13f0] sm:$0xff]  ;;  %v841_v26 = vld [vmem:[#allocation5 + $0x14a8] sm:$0xff]  ;;  %v872_v27 = vld [vmem:[#allocation5 + $0x15a0] sm:$0xff] }
 0x15c   :  { %3490 = vmatmul.mubr.f32.vlgmr.msra.gmra.mrb[16].mxu1 %v86_v35  ;;  %9554 = vmatprep.subr.bf16.mxu0 %v9553_v37  ;;  %v9603_v35 = vpack.c.bf16 %v799_v29, %v798_v40  ;;  %v768_v37 = vld [vmem:[#allocation5 + $0x1260] sm:$0xff]  ;;  %v873_v40 = vld [vmem:[#allocation5 + $0x15a8] sm:$0xff]  ;;  %v9619_v29 = vpack.c.bf16 %v823_v20, %v822_v19  ;;  %v831_v8 = vld [vmem:[#allocation5 + $0x1458] sm:$0xff] }
 0x15d   :  { %9584 = vmatpush3.bf16.msra.mxu1 %v9583_v36  ;;  %3629 = vmatprep.mubr.f32.mxu1 %v91_v50  ;;  %v9573_v36 = vpack.c.bf16 %v785_v31, %v784_v30  ;;  %v95_v30 = vld [vmem:[#allocation2 + $0x158] sm:$0xff]  ;;  %v833_v19 = vld [vmem:[#allocation5 + $0x1468] sm:$0xff]  ;;  %v864_v20 = vld [vmem:[#allocation5 + $0x1560] sm:$0xff] }
 0x15e   :  { %9586 = vmatprep.subr.bf16.mxu1 %v9585_v42  ;;  %v9605_v42 = vpack.c.bf16 %v817_v33, %v816_v32  ;;  %v824_v33 = vld [vmem:[#allocation5 + $0x1420] sm:$0xff] }
 0x15f   :  { %9556 = vmatpush3.bf16.msra.mxu0 %v9555_v49  ;;  %v819_v49 = vld [vmem:[#allocation5 + $0x13f8] sm:$0xff] }
 0x160   :  { %9558 = vmatprep.subr.bf16.mxu0 %v9557_v52  ;;  %v9575_v52 = vpack.c.bf16 %v769_v38, %v768_v37  ;;  %v9609_v60 = vpack.c.bf16 %v819_v49, %v818_v48  ;;  %v857_v37 = vld [vmem:[#allocation5 + $0x1528] sm:$0xff]  ;;  %v842_v38 = vld [vmem:[#allocation5 + $0x14b0] sm:$0xff] }
 0x161   :  { %9588 = vmatpush3.bf16.msra.mxu1 %v9587_v51  ;;  %v9625_v45 = vpack.c.bf16 %v843_v39, %v842_v38  ;;  %v858_v48 = vld [vmem:[#allocation5 + $0x1530] sm:$0xff] }
 0x162   :  { %9590 = vmatprep.subr.bf16.mxu1 %v9589_v56  ;;  %v770_v56 = vld [vmem:[#allocation5 + $0x1270] sm:$0xff] }
 0x163   :  { %9560 = vmatpush3.bf16.msra.mxu0 %v9559_v62  ;;  %v836_v62 = vld [vmem:[#allocation5 + $0x1480] sm:$0xff]  ;;  %v9579_v3 = vpack.c.bf16 %v771_v57, %v770_v56  ;;  %v866_v38 = vld [vmem:[#allocation5 + $0x1570] sm:$0xff] }
 0x164   :  { %9562 = vmatprep.subr.bf16.mxu0 %v9561_v0  ;;  %v868_v0 = vld [vmem:[#allocation5 + $0x1580] sm:$0xff] }
 0x165   :  { %9592 = vmatpush3.bf16.msra.mxu1 %v9591_v63  ;;  %v837_v63 = vld [vmem:[#allocation5 + $0x1488] sm:$0xff] }
 0x166   :  { %9594 = vmatprep.subr.bf16.mxu1 %v9593_v4  ;;  %v9611_v4 = vpack.c.bf16 %v803_v61, %v802_v58  ;;  %v9613_v5 = vpack.c.bf16 %v837_v63, %v836_v62  ;;  %v828_v58 = vld [vmem:[#allocation5 + $0x1440] sm:$0xff]  ;;  %v861_v62 = vld [vmem:[#allocation5 + $0x1548] sm:$0xff]  ;;  %v846_v63 = vld [vmem:[#allocation5 + $0x14d0] sm:$0xff] }
 0x167   :  { %9564 = vmatpush3.bf16.msra.mxu0 %v9563_v10  ;;  %v838_v10 = vld [vmem:[#allocation5 + $0x1490] sm:$0xff] }
 0x168   :  { %9566 = vmatprep.subr.bf16.mxu0 %v9565_v12  ;;  %v870_v12 = vld [vmem:[#allocation5 + $0x1590] sm:$0xff] }
 0x169   :  { %9596 = vmatpush3.bf16.msra.mxu1 %v9595_v11  ;;  %v839_v11 = vld [vmem:[#allocation5 + $0x1498] sm:$0xff] }
 0x16a   :  { %9598 = vmatprep.subr.bf16.mxu1 %v9597_v16  ;;  %v90_v16 = vld [vmem:[#allocation2 + $0x130] sm:$0xff]  ;;  %v9617_v18 = vpack.c.bf16 %v839_v11, %v838_v10  ;;  %v863_v10 = vld [vmem:[#allocation5 + $0x1558] sm:$0xff]  ;;  %v848_v11 = vld [vmem:[#allocation5 + $0x14e0] sm:$0xff] }
 0x16b   :  { %9568 = vmatpush3.bf16.msra.mxu0 %v9567_v23  ;;  %v9649_v23 = vpack.c.bf16 %v871_v13, %v870_v12  ;;  %v849_v12 = vld [vmem:[#allocation5 + $0x14e8] sm:$0xff]  ;;  %v880_v13 = vld [vmem:[#allocation5 + $0x15e0] sm:$0xff] }
 0x16c   :  { %9570 = vmatprep.subr.bf16.mxu0 %v9569_v25  ;;  %v840_v25 = vld [vmem:[#allocation5 + $0x14a0] sm:$0xff] }
 0x16d   :  { %9600 = vmatpush3.bf16.msra.mxu1 %v9599_v24  ;;  %v6905_v41 = vpop.f32.mrb[4].mxu0  ;;  %v855_v24 = vld [vmem:[#allocation5 + $0x1518] sm:$0xff]  ;;  %v9621_v32 = vpack.c.bf16 %v841_v26, %v840_v25  ;;  %v850_v25 = vld [vmem:[#allocation5 + $0x14f0] sm:$0xff] }
 0x16e   :  { %9602 = vmatprep.subr.bf16.mxu1 %v9601_v28  ;;  %v6906_v46 = vpop.f32.mrb[5].mxu0  ;;  %v93_v28 = vld [vmem:[#allocation2 + $0x148] sm:$0xff]  ;;  %v9651_v31 = vpack.c.bf16 %v855_v24, %v854_v22  ;;  %v851_v26 = vld [vmem:[#allocation5 + $0x14f8] sm:$0xff] }
 0x16f   :  { %v6940_v47 = vpop.f32.mrb[4].mxu1  ;;  %v6907_v50 = vadd.f32 %v6906_v46, %v6905_v41  ;;  %9572 = vmatpush3.bf16.msra.mxu0 %v9571_v34  ;;  %v825_v34 = vld [vmem:[#allocation5 + $0x1428] sm:$0xff]  ;;  %v874_v41 = vld [vmem:[#allocation5 + $0x15b0] sm:$0xff] }
 0x170   :  { %v6941_v51 = vpop.f32.mrb[5].mxu1  ;;  %9574 = vmatprep.subr.bf16.mxu0 %v9573_v36  ;;  %v9653_v36 = vpack.c.bf16 %v873_v40, %v872_v27  ;;  %v9623_v43 = vpack.c.bf16 %v825_v34, %v824_v33  ;;  %v826_v46 = vld [vmem:[#allocation5 + $0x1430] sm:$0xff]  ;;  %v865_v24 = vld [vmem:[#allocation5 + $0x1568] sm:$0xff] }
 0x171   :  { %v6942_v53 = vadd.f32 %v6941_v51, %v6940_v47  ;;  %9604 = vmatpush3.bf16.msra.mxu1 %v9603_v35  ;;  %v2582_v59 = vadd.f32 %v6907_v50, %v11186_v21  ;;  %v9645_v21 = vpack.c.bf16 %v869_v1, %v868_v0  ;;  %v856_v35 = vld [vmem:[#allocation5 + $0x1520] sm:$0xff]  ;;  %v827_v47 = vld [vmem:[#allocation5 + $0x1438] sm:$0xff]  ;;  %v878_v1 = vld [vmem:[#allocation5 + $0x15d0] sm:$0xff]  ;;  %v9671_v34 = vpack.c.bf16 %v865_v24, %v864_v20 }
 0x172   :  { %9606 = vmatprep.subr.bf16.mxu1 %v9605_v42  ;;  %v875_v42 = vld [vmem:[#allocation5 + $0x15b8] sm:$0xff]  ;;  %v9655_v44 = vpack.c.bf16 %v857_v37, %v856_v35  ;;  %v844_v51 = vld [vmem:[#allocation5 + $0x14c0] sm:$0xff]  ;;  %v9641_v35 = vpack.c.bf16 %v851_v26, %v850_v25 }
 0x173   :  { %v11189_v2 = vadd.f32 %v6942_v53, %v2582_v59  ;;  %9576 = vmatpush3.bf16.msra.mxu0 %v9575_v52  ;;  %v9657_v49 = vpack.c.bf16 %v875_v42, %v874_v41  ;;  %v859_v50 = vld [vmem:[#allocation5 + $0x1538] sm:$0xff]  ;;  %v845_v52 = vld [vmem:[#allocation5 + $0x14c8] sm:$0xff]  ;;  %v876_v53 = vld [vmem:[#allocation5 + $0x15c0] sm:$0xff] }
 0x174   :  { %9578 = vmatprep.subr.bf16.mxu0 %v9577_v55  ;;  %v9627_v55 = vpack.c.bf16 %v827_v47, %v826_v46  ;;  %v9659_v56 = vpack.c.bf16 %v859_v50, %v858_v48  ;;  %v9629_v57 = vpack.c.bf16 %v845_v52, %v844_v51  ;;  %v829_v59 = vld [vmem:[#allocation5 + $0x1448] sm:$0xff]  ;;  %v847_v0 = vld [vmem:[#allocation5 + $0x14d8] sm:$0xff]  ;;  %v884_v51 = vld [vmem:[#allocation5 + $0x1600] sm:$0xff] }
 0x175   :  { %9608 = vmatpush3.bf16.msra.mxu1 %v9607_v54  ;;  %v877_v54 = vld [vmem:[#allocation5 + $0x15c8] sm:$0xff]  ;;  %v9633_v6 = vpack.c.bf16 %v847_v0, %v846_v63  ;;  %v835_v37 = vld [vmem:[#allocation5 + $0x1478] sm:$0xff]  ;;  %v886_v0 = vld [vmem:[#allocation5 + $0x1610] sm:$0xff] }
 0x176   :  { %9610 = vmatprep.subr.bf16.mxu1 %v9609_v60  ;;  %v860_v60 = vld [vmem:[#allocation5 + $0x1540] sm:$0xff]  ;;  %v9661_v61 = vpack.c.bf16 %v877_v54, %v876_v53  ;;  %v867_v42 = vld [vmem:[#allocation5 + $0x1578] sm:$0xff]  ;;  %v933_v46 = vld [vmem:[#allocation5 + $0x1788] sm:$0xff] }
 0x177   :  { %9580 = vmatpush3.bf16.msra.mxu0 %v9579_v3  ;;  %v879_v3 = vld [vmem:[#allocation5 + $0x15d8] sm:$0xff]  ;;  %v885_v52 = vld [vmem:[#allocation5 + $0x1608] sm:$0xff]  ;;  %v916_v53 = vld [vmem:[#allocation5 + $0x1700] sm:$0xff] }
 0x178   :  { %9614 = vmatprep.subr.bf16.mxu0 %v9613_v5  ;;  %v9663_v5 = vpack.c.bf16 %v861_v62, %v860_v60  ;;  %v9665_v9 = vpack.c.bf16 %v879_v3, %v878_v1  ;;  %v917_v54 = vld [vmem:[#allocation5 + $0x1708] sm:$0xff]  ;;  %v9679_v60 = vpack.c.bf16 %v885_v52, %v884_v51  ;;  %v887_v1 = vld [vmem:[#allocation5 + $0x1618] sm:$0xff]  ;;  %v918_v3 = vld [vmem:[#allocation5 + $0x1710] sm:$0xff] }
 0x179   :  { %9612 = vmatpush3.bf16.msra.mxu1 %v9611_v4  ;;  %v9631_v4 = vpack.c.bf16 %v829_v59, %v828_v58  ;;  %v935_v58 = vld [vmem:[#allocation5 + $0x1798] sm:$0xff]  ;;  %v92_v59 = vld [vmem:[#allocation2 + $0x140] sm:$0xff]  ;;  %v9711_v62 = vpack.c.bf16 %v917_v54, %v916_v53  ;;  %v894_v52 = vld [vmem:[#allocation5 + $0x1650] sm:$0xff] }
 0x17a   :  { %9646 = vmatprep.subr.bf16.mxu1 %v9645_v21  ;;  %3560 = vmatmul.mubr.f32.vlgmr.msra.gmra.mrb[18].mxu0 %v88_v14  ;;  %v862_v21 = vld [vmem:[#allocation5 + $0x1550] sm:$0xff]  ;;  %v881_v14 = vld [vmem:[#allocation5 + $0x15e8] sm:$0xff]  ;;  %v907_v20 = vld [vmem:[#allocation5 + $0x16b8] sm:$0xff] }
 0x17b   :  { %9616 = vmatpush3.bf16.msra.mxu0 %v9615_v15  ;;  %3699 = vmatprep.mubr.f32.mxu0 %v93_v28  ;;  %v9635_v15 = vpack.c.bf16 %v831_v8, %v830_v7  ;;  %v882_v28 = vld [vmem:[#allocation5 + $0x15f0] sm:$0xff]  ;;  %v905_v7 = vld [vmem:[#allocation5 + $0x16a8] sm:$0xff]  ;;  %v936_v8 = vld [vmem:[#allocation5 + $0x17a0] sm:$0xff] }
 0x17c   :  { %3630 = vmatmul.mubr.f32.vlgmr.msra.gmra.mrb[18].mxu1 %v90_v16  ;;  %9618 = vmatprep.subr.bf16.mxu0 %v9617_v18  ;;  %v9667_v16 = vpack.c.bf16 %v863_v10, %v862_v21  ;;  %v832_v18 = vld [vmem:[#allocation5 + $0x1460] sm:$0xff]  ;;  %v937_v21 = vld [vmem:[#allocation5 + $0x17a8] sm:$0xff]  ;;  %v9683_v10 = vpack.c.bf16 %v887_v1, %v886_v0  ;;  %v895_v53 = vld [vmem:[#allocation5 + $0x1658] sm:$0xff] }
 0x17d   :  { %9648 = vmatpush3.bf16.msra.mxu1 %v9647_v17  ;;  %3769 = vmatprep.mubr.f32.mxu1 %v95_v30  ;;  %v9637_v17 = vpack.c.bf16 %v849_v12, %v848_v11  ;;  %v99_v11 = vld [vmem:[#allocation2 + $0x178] sm:$0xff]  ;;  %v897_v0 = vld [vmem:[#allocation5 + $0x1668] sm:$0xff]  ;;  %v928_v1 = vld [vmem:[#allocation5 + $0x1760] sm:$0xff] }
 0x17e   :  { %9650 = vmatprep.subr.bf16.mxu1 %v9649_v23  ;;  %v9669_v23 = vpack.c.bf16 %v881_v14, %v880_v13  ;;  %v888_v14 = vld [vmem:[#allocation5 + $0x1620] sm:$0xff] }
 0x17f   :  { %9620 = vmatpush3.bf16.msra.mxu0 %v9619_v29  ;;  %v883_v29 = vld [vmem:[#allocation5 + $0x15f8] sm:$0xff] }
 0x180   :  { %9622 = vmatprep.subr.bf16.mxu0 %v9621_v32  ;;  %v9639_v32 = vpack.c.bf16 %v833_v19, %v832_v18  ;;  %v9673_v41 = vpack.c.bf16 %v883_v29, %v882_v28  ;;  %v921_v18 = vld [vmem:[#allocation5 + $0x1728] sm:$0xff]  ;;  %v906_v19 = vld [vmem:[#allocation5 + $0x16b0] sm:$0xff] }
 0x181   :  { %9652 = vmatpush3.bf16.msra.mxu1 %v9651_v31  ;;  %v9689_v26 = vpack.c.bf16 %v907_v20, %v906_v19  ;;  %v922_v28 = vld [vmem:[#allocation5 + $0x1730] sm:$0xff] }
 0x182   :  { %9654 = vmatprep.subr.bf16.mxu1 %v9653_v36  ;;  %v834_v36 = vld [vmem:[#allocation5 + $0x1470] sm:$0xff] }
 0x183   :  { %9624 = vmatpush3.bf16.msra.mxu0 %v9623_v43  ;;  %v900_v43 = vld [vmem:[#allocation5 + $0x1680] sm:$0xff]  ;;  %v9643_v48 = vpack.c.bf16 %v835_v37, %v834_v36  ;;  %v930_v19 = vld [vmem:[#allocation5 + $0x1770] sm:$0xff] }
 0x184   :  { %9626 = vmatprep.subr.bf16.mxu0 %v9625_v45  ;;  %v932_v45 = vld [vmem:[#allocation5 + $0x1780] sm:$0xff] }
 0x185   :  { %9656 = vmatpush3.bf16.msra.mxu1 %v9655_v44  ;;  %v901_v44 = vld [vmem:[#allocation5 + $0x1688] sm:$0xff] }
 0x186   :  { %9658 = vmatprep.subr.bf16.mxu1 %v9657_v49  ;;  %v9675_v49 = vpack.c.bf16 %v867_v42, %v866_v38  ;;  %v9677_v50 = vpack.c.bf16 %v901_v44, %v900_v43  ;;  %v892_v38 = vld [vmem:[#allocation5 + $0x1640] sm:$0xff]  ;;  %v925_v43 = vld [vmem:[#allocation5 + $0x1748] sm:$0xff]  ;;  %v910_v44 = vld [vmem:[#allocation5 + $0x16d0] sm:$0xff] }
 0x187   :  { %9628 = vmatpush3.bf16.msra.mxu0 %v9627_v55  ;;  %v902_v55 = vld [vmem:[#allocation5 + $0x1690] sm:$0xff] }
 0x188   :  { %9630 = vmatprep.subr.bf16.mxu0 %v9629_v57  ;;  %v934_v57 = vld [vmem:[#allocation5 + $0x1790] sm:$0xff] }
 0x189   :  { %9660 = vmatpush3.bf16.msra.mxu1 %v9659_v56  ;;  %v903_v56 = vld [vmem:[#allocation5 + $0x1698] sm:$0xff] }
 0x18a   :  { %9662 = vmatprep.subr.bf16.mxu1 %v9661_v61  ;;  %v94_v61 = vld [vmem:[#allocation2 + $0x150] sm:$0xff]  ;;  %v9681_v63 = vpack.c.bf16 %v903_v56, %v902_v55  ;;  %v927_v55 = vld [vmem:[#allocation5 + $0x1758] sm:$0xff]  ;;  %v912_v56 = vld [vmem:[#allocation5 + $0x16e0] sm:$0xff] }
 0x18b   :  { %9632 = vmatpush3.bf16.msra.mxu0 %v9631_v4  ;;  %v9713_v4 = vpack.c.bf16 %v935_v58, %v934_v57  ;;  %v913_v57 = vld [vmem:[#allocation5 + $0x16e8] sm:$0xff]  ;;  %v944_v58 = vld [vmem:[#allocation5 + $0x17e0] sm:$0xff] }
 0x18c   :  { %9634 = vmatprep.subr.bf16.mxu0 %v9633_v6  ;;  %v904_v6 = vld [vmem:[#allocation5 + $0x16a0] sm:$0xff] }
 0x18d   :  { %9664 = vmatpush3.bf16.msra.mxu1 %v9663_v5  ;;  %v6975_v22 = vpop.f32.mrb[6].mxu0  ;;  %v919_v5 = vld [vmem:[#allocation5 + $0x1718] sm:$0xff]  ;;  %v9685_v13 = vpack.c.bf16 %v905_v7, %v904_v6  ;;  %v914_v6 = vld [vmem:[#allocation5 + $0x16f0] sm:$0xff] }
 0x18e   :  { %9666 = vmatprep.subr.bf16.mxu1 %v9665_v9  ;;  %v6976_v27 = vpop.f32.mrb[7].mxu0  ;;  %v97_v9 = vld [vmem:[#allocation2 + $0x168] sm:$0xff]  ;;  %v9715_v12 = vpack.c.bf16 %v919_v5, %v918_v3  ;;  %v915_v7 = vld [vmem:[#allocation5 + $0x16f8] sm:$0xff] }
 0x18f   :  { %v7010_v40 = vpop.f32.mrb[6].mxu1  ;;  %v6977_v30 = vadd.f32 %v6976_v27, %v6975_v22  ;;  %9636 = vmatpush3.bf16.msra.mxu0 %v9635_v15  ;;  %v889_v15 = vld [vmem:[#allocation5 + $0x1628] sm:$0xff]  ;;  %v938_v22 = vld [vmem:[#allocation5 + $0x17b0] sm:$0xff] }
 0x190   :  { %v7011_v31 = vpop.f32.mrb[7].mxu1  ;;  %9638 = vmatprep.subr.bf16.mxu0 %v9637_v17  ;;  %v9717_v17 = vpack.c.bf16 %v937_v21, %v936_v8  ;;  %v9687_v24 = vpack.c.bf16 %v889_v15, %v888_v14  ;;  %v890_v27 = vld [vmem:[#allocation5 + $0x1630] sm:$0xff]  ;;  %v929_v5 = vld [vmem:[#allocation5 + $0x1768] sm:$0xff] }
 0x191   :  { %v7012_v33 = vadd.f32 %v7011_v31, %v7010_v40  ;;  %9668 = vmatpush3.bf16.msra.mxu1 %v9667_v16  ;;  %v2722_v39 = vadd.f32 %v6977_v30, %v11189_v2  ;;  %v9709_v2 = vpack.c.bf16 %v933_v46, %v932_v45  ;;  %v920_v16 = vld [vmem:[#allocation5 + $0x1720] sm:$0xff]  ;;  %v891_v40 = vld [vmem:[#allocation5 + $0x1638] sm:$0xff]  ;;  %v942_v46 = vld [vmem:[#allocation5 + $0x17d0] sm:$0xff]  ;;  %v9735_v15 = vpack.c.bf16 %v929_v5, %v928_v1 }
 0x192   :  { %9670 = vmatprep.subr.bf16.mxu1 %v9669_v23  ;;  %v939_v23 = vld [vmem:[#allocation5 + $0x17b8] sm:$0xff]  ;;  %v9719_v25 = vpack.c.bf16 %v921_v18, %v920_v16  ;;  %v908_v31 = vld [vmem:[#allocation5 + $0x16c0] sm:$0xff]  ;;  %v9705_v16 = vpack.c.bf16 %v915_v7, %v914_v6 }
 0x193   :  { %v11192_v47 = vadd.f32 %v7012_v33, %v2722_v39  ;;  %9640 = vmatpush3.bf16.msra.mxu0 %v9639_v32  ;;  %v9721_v29 = vpack.c.bf16 %v939_v23, %v938_v22  ;;  %v923_v30 = vld [vmem:[#allocation5 + $0x1738] sm:$0xff]  ;;  %v909_v32 = vld [vmem:[#allocation5 + $0x16c8] sm:$0xff]  ;;  %v940_v33 = vld [vmem:[#allocation5 + $0x17c0] sm:$0xff] }
 0x194   :  { %9642 = vmatprep.subr.bf16.mxu0 %v9641_v35  ;;  %v9691_v35 = vpack.c.bf16 %v891_v40, %v890_v27  ;;  %v9723_v36 = vpack.c.bf16 %v923_v30, %v922_v28  ;;  %v9693_v37 = vpack.c.bf16 %v909_v32, %v908_v31  ;;  %v893_v39 = vld [vmem:[#allocation5 + $0x1648] sm:$0xff]  ;;  %v911_v45 = vld [vmem:[#allocation5 + $0x16d8] sm:$0xff]  ;;  %v948_v31 = vld [vmem:[#allocation5 + $0x1800] sm:$0xff] }
 0x195   :  { %9672 = vmatpush3.bf16.msra.mxu1 %v9671_v34  ;;  %v941_v34 = vld [vmem:[#allocation5 + $0x17c8] sm:$0xff]  ;;  %v9697_v51 = vpack.c.bf16 %v911_v45, %v910_v44  ;;  %v899_v18 = vld [vmem:[#allocation5 + $0x1678] sm:$0xff]  ;;  %v950_v45 = vld [vmem:[#allocation5 + $0x1810] sm:$0xff] }
 0x196   :  { %9674 = vmatprep.subr.bf16.mxu1 %v9673_v41  ;;  %v924_v41 = vld [vmem:[#allocation5 + $0x1740] sm:$0xff]  ;;  %v9725_v42 = vpack.c.bf16 %v941_v34, %v940_v33  ;;  %v931_v23 = vld [vmem:[#allocation5 + $0x1778] sm:$0xff]  ;;  %v997_v27 = vld [vmem:[#allocation5 + $0x1988] sm:$0xff] }
 0x197   :  { %9644 = vmatpush3.bf16.msra.mxu0 %v9643_v48  ;;  %v943_v48 = vld [vmem:[#allocation5 + $0x17d8] sm:$0xff]  ;;  %v949_v32 = vld [vmem:[#allocation5 + $0x1808] sm:$0xff]  ;;  %v980_v33 = vld [vmem:[#allocation5 + $0x1900] sm:$0xff] }
 0x198   :  { %9678 = vmatprep.subr.bf16.mxu0 %v9677_v50  ;;  %v9727_v50 = vpack.c.bf16 %v925_v43, %v924_v41  ;;  %v9729_v54 = vpack.c.bf16 %v943_v48, %v942_v46  ;;  %v981_v34 = vld [vmem:[#allocation5 + $0x1908] sm:$0xff]  ;;  %v9743_v41 = vpack.c.bf16 %v949_v32, %v948_v31  ;;  %v951_v46 = vld [vmem:[#allocation5 + $0x1818] sm:$0xff]  ;;  %v982_v48 = vld [vmem:[#allocation5 + $0x1910] sm:$0xff] }
 0x199   :  { %9676 = vmatpush3.bf16.msra.mxu1 %v9675_v49  ;;  %v9695_v49 = vpack.c.bf16 %v893_v39, %v892_v38  ;;  %v999_v38 = vld [vmem:[#allocation5 + $0x1998] sm:$0xff]  ;;  %v96_v39 = vld [vmem:[#allocation2 + $0x160] sm:$0xff]  ;;  %v9775_v43 = vpack.c.bf16 %v981_v34, %v980_v33  ;;  %v958_v32 = vld [vmem:[#allocation5 + $0x1850] sm:$0xff] }
 0x19a   :  { %9710 = vmatprep.subr.bf16.mxu1 %v9709_v2  ;;  %3700 = vmatmul.mubr.f32.vlgmr.msra.gmra.mrb[20].mxu0 %v92_v59  ;;  %v926_v2 = vld [vmem:[#allocation5 + $0x1750] sm:$0xff]  ;;  %v945_v59 = vld [vmem:[#allocation5 + $0x17e8] sm:$0xff]  ;;  %v971_v1 = vld [vmem:[#allocation5 + $0x18b8] sm:$0xff] }
 0x19b   :  { %9680 = vmatpush3.bf16.msra.mxu0 %v9679_v60  ;;  %3839 = vmatprep.mubr.f32.mxu0 %v97_v9  ;;  %v9699_v60 = vpack.c.bf16 %v895_v53, %v894_v52  ;;  %v946_v9 = vld [vmem:[#allocation5 + $0x17f0] sm:$0xff]  ;;  %v969_v52 = vld [vmem:[#allocation5 + $0x18a8] sm:$0xff]  ;;  %v1000_v53 = vld [vmem:[#allocation5 + $0x19a0] sm:$0xff] }
 0x19c   :  { %3770 = vmatmul.mubr.f32.vlgmr.msra.gmra.mrb[20].mxu1 %v94_v61  ;;  %9682 = vmatprep.subr.bf16.mxu0 %v9681_v63  ;;  %v9731_v61 = vpack.c.bf16 %v927_v55, %v926_v2  ;;  %v896_v63 = vld [vmem:[#allocation5 + $0x1660] sm:$0xff]  ;;  %v1001_v2 = vld [vmem:[#allocation5 + $0x19a8] sm:$0xff]  ;;  %v9747_v55 = vpack.c.bf16 %v951_v46, %v950_v45  ;;  %v959_v33 = vld [vmem:[#allocation5 + $0x1858] sm:$0xff] }
 0x19d   :  { %9712 = vmatpush3.bf16.msra.mxu1 %v9711_v62  ;;  %3909 = vmatprep.mubr.f32.mxu1 %v99_v11  ;;  %v9701_v62 = vpack.c.bf16 %v913_v57, %v912_v56  ;;  %v103_v56 = vld [vmem:[#allocation2 + $0x198] sm:$0xff]  ;;  %v961_v45 = vld [vmem:[#allocation5 + $0x1868] sm:$0xff]  ;;  %v992_v46 = vld [vmem:[#allocation5 + $0x1960] sm:$0xff] }
 0x19e   :  { %9714 = vmatprep.subr.bf16.mxu1 %v9713_v4  ;;  %v9733_v4 = vpack.c.bf16 %v945_v59, %v944_v58  ;;  %v952_v59 = vld [vmem:[#allocation5 + $0x1820] sm:$0xff] }
 0x19f   :  { %9684 = vmatpush3.bf16.msra.mxu0 %v9683_v10  ;;  %v947_v10 = vld [vmem:[#allocation5 + $0x17f8] sm:$0xff] }
 0x1a0   :  { %9686 = vmatprep.subr.bf16.mxu0 %v9685_v13  ;;  %v9703_v13 = vpack.c.bf16 %v897_v0, %v896_v63  ;;  %v9737_v22 = vpack.c.bf16 %v947_v10, %v946_v9  ;;  %v985_v63 = vld [vmem:[#allocation5 + $0x1928] sm:$0xff]  ;;  %v970_v0 = vld [vmem:[#allocation5 + $0x18b0] sm:$0xff] }
 0x1a1   :  { %9716 = vmatpush3.bf16.msra.mxu1 %v9715_v12  ;;  %v9753_v7 = vpack.c.bf16 %v971_v1, %v970_v0  ;;  %v986_v9 = vld [vmem:[#allocation5 + $0x1930] sm:$0xff] }
 0x1a2   :  { %9718 = vmatprep.subr.bf16.mxu1 %v9717_v17  ;;  %v898_v17 = vld [vmem:[#allocation5 + $0x1670] sm:$0xff] }
 0x1a3   :  { %9688 = vmatpush3.bf16.msra.mxu0 %v9687_v24  ;;  %v964_v24 = vld [vmem:[#allocation5 + $0x1880] sm:$0xff]  ;;  %v9707_v28 = vpack.c.bf16 %v899_v18, %v898_v17  ;;  %v994_v0 = vld [vmem:[#allocation5 + $0x1970] sm:$0xff] }
 0x1a4   :  { %9690 = vmatprep.subr.bf16.mxu0 %v9689_v26  ;;  %v996_v26 = vld [vmem:[#allocation5 + $0x1980] sm:$0xff] }
 0x1a5   :  { %9720 = vmatpush3.bf16.msra.mxu1 %v9719_v25  ;;  %v965_v25 = vld [vmem:[#allocation5 + $0x1888] sm:$0xff] }
 0x1a6   :  { %9722 = vmatprep.subr.bf16.mxu1 %v9721_v29  ;;  %v9739_v29 = vpack.c.bf16 %v931_v23, %v930_v19  ;;  %v9741_v30 = vpack.c.bf16 %v965_v25, %v964_v24  ;;  %v956_v19 = vld [vmem:[#allocation5 + $0x1840] sm:$0xff]  ;;  %v989_v24 = vld [vmem:[#allocation5 + $0x1948] sm:$0xff]  ;;  %v974_v25 = vld [vmem:[#allocation5 + $0x18d0] sm:$0xff] }
 0x1a7   :  { %9692 = vmatpush3.bf16.msra.mxu0 %v9691_v35  ;;  %v966_v35 = vld [vmem:[#allocation5 + $0x1890] sm:$0xff] }
 0x1a8   :  { %9694 = vmatprep.subr.bf16.mxu0 %v9693_v37  ;;  %v998_v37 = vld [vmem:[#allocation5 + $0x1990] sm:$0xff] }
 0x1a9   :  { %9724 = vmatpush3.bf16.msra.mxu1 %v9723_v36  ;;  %v967_v36 = vld [vmem:[#allocation5 + $0x1898] sm:$0xff] }
 0x1aa   :  { %9726 = vmatprep.subr.bf16.mxu1 %v9725_v42  ;;  %v98_v42 = vld [vmem:[#allocation2 + $0x170] sm:$0xff]  ;;  %v9745_v44 = vpack.c.bf16 %v967_v36, %v966_v35  ;;  %v991_v35 = vld [vmem:[#allocation5 + $0x1958] sm:$0xff]  ;;  %v976_v36 = vld [vmem:[#allocation5 + $0x18e0] sm:$0xff] }
 0x1ab   :  { %9696 = vmatpush3.bf16.msra.mxu0 %v9695_v49  ;;  %v9777_v49 = vpack.c.bf16 %v999_v38, %v998_v37  ;;  %v977_v37 = vld [vmem:[#allocation5 + $0x18e8] sm:$0xff]  ;;  %v1008_v38 = vld [vmem:[#allocation5 + $0x19e0] sm:$0xff] }
 0x1ac   :  { %9698 = vmatprep.subr.bf16.mxu0 %v9697_v51  ;;  %v968_v51 = vld [vmem:[#allocation5 + $0x18a0] sm:$0xff] }
 0x1ad   :  { %9728 = vmatpush3.bf16.msra.mxu1 %v9727_v50  ;;  %v7045_v3 = vpop.f32.mrb[8].mxu0  ;;  %v983_v50 = vld [vmem:[#allocation5 + $0x1918] sm:$0xff]  ;;  %v9749_v58 = vpack.c.bf16 %v969_v52, %v968_v51  ;;  %v978_v51 = vld [vmem:[#allocation5 + $0x18f0] sm:$0xff] }
 0x1ae   :  { %9730 = vmatprep.subr.bf16.mxu1 %v9729_v54  ;;  %v7046_v8 = vpop.f32.mrb[9].mxu0  ;;  %v101_v54 = vld [vmem:[#allocation2 + $0x188] sm:$0xff]  ;;  %v9779_v57 = vpack.c.bf16 %v983_v50, %v982_v48  ;;  %v979_v52 = vld [vmem:[#allocation5 + $0x18f8] sm:$0xff] }
 0x1af   :  { %v7080_v21 = vpop.f32.mrb[8].mxu1  ;;  %v7047_v11 = vadd.f32 %v7046_v8, %v7045_v3  ;;  %9700 = vmatpush3.bf16.msra.mxu0 %v9699_v60  ;;  %v953_v60 = vld [vmem:[#allocation5 + $0x1828] sm:$0xff]  ;;  %v1002_v3 = vld [vmem:[#allocation5 + $0x19b0] sm:$0xff] }
 0x1b0   :  { %v7081_v12 = vpop.f32.mrb[9].mxu1  ;;  %9702 = vmatprep.subr.bf16.mxu0 %v9701_v62  ;;  %v9781_v62 = vpack.c.bf16 %v1001_v2, %v1000_v53  ;;  %v9751_v5 = vpack.c.bf16 %v953_v60, %v952_v59  ;;  %v954_v8 = vld [vmem:[#allocation5 + $0x1830] sm:$0xff]  ;;  %v993_v50 = vld [vmem:[#allocation5 + $0x1968] sm:$0xff] }
 0x1b1   :  { %v7082_v14 = vadd.f32 %v7081_v12, %v7080_v21  ;;  %9732 = vmatpush3.bf16.msra.mxu1 %v9731_v61  ;;  %v2862_v20 = vadd.f32 %v7047_v11, %v11192_v47  ;;  %v9773_v47 = vpack.c.bf16 %v997_v27, %v996_v26  ;;  %v984_v61 = vld [vmem:[#allocation5 + $0x1920] sm:$0xff]  ;;  %v955_v21 = vld [vmem:[#allocation5 + $0x1838] sm:$0xff]  ;;  %v1006_v27 = vld [vmem:[#allocation5 + $0x19d0] sm:$0xff]  ;;  %v9799_v60 = vpack.c.bf16 %v993_v50, %v992_v46 }
 0x1b2   :  { %9734 = vmatprep.subr.bf16.mxu1 %v9733_v4  ;;  %v1003_v4 = vld [vmem:[#allocation5 + $0x19b8] sm:$0xff]  ;;  %v9783_v6 = vpack.c.bf16 %v985_v63, %v984_v61  ;;  %v972_v12 = vld [vmem:[#allocation5 + $0x18c0] sm:$0xff]  ;;  %v9769_v61 = vpack.c.bf16 %v979_v52, %v978_v51 }
 0x1b3   :  { %v11195_v40 = vadd.f32 %v7082_v14, %v2862_v20  ;;  %9704 = vmatpush3.bf16.msra.mxu0 %v9703_v13  ;;  %v9785_v10 = vpack.c.bf16 %v1003_v4, %v1002_v3  ;;  %v987_v11 = vld [vmem:[#allocation5 + $0x1938] sm:$0xff]  ;;  %v973_v13 = vld [vmem:[#allocation5 + $0x18c8] sm:$0xff]  ;;  %v1004_v14 = vld [vmem:[#allocation5 + $0x19c0] sm:$0xff] }
 0x1b4   :  { %9706 = vmatprep.subr.bf16.mxu0 %v9705_v16  ;;  %v9755_v16 = vpack.c.bf16 %v955_v21, %v954_v8  ;;  %v9787_v17 = vpack.c.bf16 %v987_v11, %v986_v9  ;;  %v9757_v18 = vpack.c.bf16 %v973_v13, %v972_v12  ;;  %v957_v20 = vld [vmem:[#allocation5 + $0x1848] sm:$0xff]  ;;  %v975_v26 = vld [vmem:[#allocation5 + $0x18d8] sm:$0xff]  ;;  %v1012_v12 = vld [vmem:[#allocation5 + $0x1a00] sm:$0xff] }
 0x1b5   :  { %9736 = vmatpush3.bf16.msra.mxu1 %v9735_v15  ;;  %v1005_v15 = vld [vmem:[#allocation5 + $0x19c8] sm:$0xff]  ;;  %v9761_v31 = vpack.c.bf16 %v975_v26, %v974_v25  ;;  %v963_v63 = vld [vmem:[#allocation5 + $0x1878] sm:$0xff]  ;;  %v1014_v26 = vld [vmem:[#allocation5 + $0x1a10] sm:$0xff] }
 0x1b6   :  { %9738 = vmatprep.subr.bf16.mxu1 %v9737_v22  ;;  %v988_v22 = vld [vmem:[#allocation5 + $0x1940] sm:$0xff]  ;;  %v9789_v23 = vpack.c.bf16 %v1005_v15, %v1004_v14  ;;  %v995_v4 = vld [vmem:[#allocation5 + $0x1978] sm:$0xff]  ;;  %v1061_v8 = vld [vmem:[#allocation5 + $0x1b88] sm:$0xff] }
 0x1b7   :  { %9708 = vmatpush3.bf16.msra.mxu0 %v9707_v28  ;;  %v1007_v28 = vld [vmem:[#allocation5 + $0x19d8] sm:$0xff]  ;;  %v1013_v13 = vld [vmem:[#allocation5 + $0x1a08] sm:$0xff]  ;;  %v1044_v14 = vld [vmem:[#allocation5 + $0x1b00] sm:$0xff] }
 0x1b8   :  { %9742 = vmatprep.subr.bf16.mxu0 %v9741_v30  ;;  %v9791_v30 = vpack.c.bf16 %v989_v24, %v988_v22  ;;  %v9793_v34 = vpack.c.bf16 %v1007_v28, %v1006_v27  ;;  %v1045_v15 = vld [vmem:[#allocation5 + $0x1b08] sm:$0xff]  ;;  %v9807_v22 = vpack.c.bf16 %v1013_v13, %v1012_v12  ;;  %v1015_v27 = vld [vmem:[#allocation5 + $0x1a18] sm:$0xff]  ;;  %v1046_v28 = vld [vmem:[#allocation5 + $0x1b10] sm:$0xff] }
 0x1b9   :  { %9740 = vmatpush3.bf16.msra.mxu1 %v9739_v29  ;;  %v9759_v29 = vpack.c.bf16 %v957_v20, %v956_v19  ;;  %v1063_v19 = vld [vmem:[#allocation5 + $0x1b98] sm:$0xff]  ;;  %v100_v20 = vld [vmem:[#allocation2 + $0x180] sm:$0xff]  ;;  %v9839_v24 = vpack.c.bf16 %v1045_v15, %v1044_v14  ;;  %v1022_v13 = vld [vmem:[#allocation5 + $0x1a50] sm:$0xff] }
 0x1ba   :  { %9774 = vmatprep.subr.bf16.mxu1 %v9773_v47  ;;  %3840 = vmatmul.mubr.f32.vlgmr.msra.gmra.mrb[22].mxu0 %v96_v39  ;;  %v990_v47 = vld [vmem:[#allocation5 + $0x1950] sm:$0xff]  ;;  %v1009_v39 = vld [vmem:[#allocation5 + $0x19e8] sm:$0xff]  ;;  %v1035_v46 = vld [vmem:[#allocation5 + $0x1ab8] sm:$0xff] }
 0x1bb   :  { %9744 = vmatpush3.bf16.msra.mxu0 %v9743_v41  ;;  %3979 = vmatprep.mubr.f32.mxu0 %v101_v54  ;;  %v9763_v41 = vpack.c.bf16 %v959_v33, %v958_v32  ;;  %v1010_v54 = vld [vmem:[#allocation5 + $0x19f0] sm:$0xff]  ;;  %v1033_v32 = vld [vmem:[#allocation5 + $0x1aa8] sm:$0xff]  ;;  %v1064_v33 = vld [vmem:[#allocation5 + $0x1ba0] sm:$0xff] }
 0x1bc   :  { %3910 = vmatmul.mubr.f32.vlgmr.msra.gmra.mrb[22].mxu1 %v98_v42  ;;  %9746 = vmatprep.subr.bf16.mxu0 %v9745_v44  ;;  %v9795_v42 = vpack.c.bf16 %v991_v35, %v990_v47  ;;  %v960_v44 = vld [vmem:[#allocation5 + $0x1860] sm:$0xff]  ;;  %v1065_v47 = vld [vmem:[#allocation5 + $0x1ba8] sm:$0xff]  ;;  %v9811_v35 = vpack.c.bf16 %v1015_v27, %v1014_v26  ;;  %v1023_v14 = vld [vmem:[#allocation5 + $0x1a58] sm:$0xff] }
 0x1bd   :  { %9776 = vmatpush3.bf16.msra.mxu1 %v9775_v43  ;;  %4049 = vmatprep.mubr.f32.mxu1 %v103_v56  ;;  %v9765_v43 = vpack.c.bf16 %v977_v37, %v976_v36  ;;  %v107_v36 = vld [vmem:[#allocation2 + $0x1b8] sm:$0xff]  ;;  %v1025_v26 = vld [vmem:[#allocation5 + $0x1a68] sm:$0xff]  ;;  %v1056_v27 = vld [vmem:[#allocation5 + $0x1b60] sm:$0xff] }
 0x1be   :  { %9778 = vmatprep.subr.bf16.mxu1 %v9777_v49  ;;  %v9797_v49 = vpack.c.bf16 %v1009_v39, %v1008_v38  ;;  %v1016_v39 = vld [vmem:[#allocation5 + $0x1a20] sm:$0xff] }
 0x1bf   :  { %9748 = vmatpush3.bf16.msra.mxu0 %v9747_v55  ;;  %v1011_v55 = vld [vmem:[#allocation5 + $0x19f8] sm:$0xff] }
 0x1c0   :  { %9750 = vmatprep.subr.bf16.mxu0 %v9749_v58  ;;  %v9767_v58 = vpack.c.bf16 %v961_v45, %v960_v44  ;;  %v9801_v3 = vpack.c.bf16 %v1011_v55, %v1010_v54  ;;  %v1049_v44 = vld [vmem:[#allocation5 + $0x1b28] sm:$0xff]  ;;  %v1034_v45 = vld [vmem:[#allocation5 + $0x1ab0] sm:$0xff] }
 0x1c1   :  { %9780 = vmatpush3.bf16.msra.mxu1 %v9779_v57  ;;  %v9817_v52 = vpack.c.bf16 %v1035_v46, %v1034_v45  ;;  %v1050_v54 = vld [vmem:[#allocation5 + $0x1b30] sm:$0xff] }
 0x1c2   :  { %9782 = vmatprep.subr.bf16.mxu1 %v9781_v62  ;;  %v962_v62 = vld [vmem:[#allocation5 + $0x1870] sm:$0xff] }
 0x1c3   :  { %9752 = vmatpush3.bf16.msra.mxu0 %v9751_v5  ;;  %v1028_v5 = vld [vmem:[#allocation5 + $0x1a80] sm:$0xff]  ;;  %v9771_v9 = vpack.c.bf16 %v963_v63, %v962_v62  ;;  %v1058_v45 = vld [vmem:[#allocation5 + $0x1b70] sm:$0xff] }
 0x1c4   :  { %9754 = vmatprep.subr.bf16.mxu0 %v9753_v7  ;;  %v1060_v7 = vld [vmem:[#allocation5 + $0x1b80] sm:$0xff] }
 0x1c5   :  { %9784 = vmatpush3.bf16.msra.mxu1 %v9783_v6  ;;  %v1029_v6 = vld [vmem:[#allocation5 + $0x1a88] sm:$0xff] }
 0x1c6   :  { %9786 = vmatprep.subr.bf16.mxu1 %v9785_v10  ;;  %v9803_v10 = vpack.c.bf16 %v995_v4, %v994_v0  ;;  %v9805_v11 = vpack.c.bf16 %v1029_v6, %v1028_v5  ;;  %v1020_v0 = vld [vmem:[#allocation5 + $0x1a40] sm:$0xff]  ;;  %v1053_v5 = vld [vmem:[#allocation5 + $0x1b48] sm:$0xff]  ;;  %v1038_v6 = vld [vmem:[#allocation5 + $0x1ad0] sm:$0xff] }
 0x1c7   :  { %9756 = vmatpush3.bf16.msra.mxu0 %v9755_v16  ;;  %v1030_v16 = vld [vmem:[#allocation5 + $0x1a90] sm:$0xff] }
 0x1c8   :  { %9758 = vmatprep.subr.bf16.mxu0 %v9757_v18  ;;  %v1062_v18 = vld [vmem:[#allocation5 + $0x1b90] sm:$0xff] }
 0x1c9   :  { %9788 = vmatpush3.bf16.msra.mxu1 %v9787_v17  ;;  %v1031_v17 = vld [vmem:[#allocation5 + $0x1a98] sm:$0xff] }
 0x1ca   :  { %9790 = vmatprep.subr.bf16.mxu1 %v9789_v23  ;;  %v102_v23 = vld [vmem:[#allocation2 + $0x190] sm:$0xff]  ;;  %v9809_v25 = vpack.c.bf16 %v1031_v17, %v1030_v16  ;;  %v1055_v16 = vld [vmem:[#allocation5 + $0x1b58] sm:$0xff]  ;;  %v1040_v17 = vld [vmem:[#allocation5 + $0x1ae0] sm:$0xff] }
 0x1cb   :  { %9760 = vmatpush3.bf16.msra.mxu0 %v9759_v29  ;;  %v9841_v29 = vpack.c.bf16 %v1063_v19, %v1062_v18  ;;  %v1041_v18 = vld [vmem:[#allocation5 + $0x1ae8] sm:$0xff]  ;;  %v1072_v19 = vld [vmem:[#allocation5 + $0x1be0] sm:$0xff] }
 0x1cc   :  { %9762 = vmatprep.subr.bf16.mxu0 %v9761_v31  ;;  %v1032_v31 = vld [vmem:[#allocation5 + $0x1aa0] sm:$0xff] }
 0x1cd   :  { %9792 = vmatpush3.bf16.msra.mxu1 %v9791_v30  ;;  %v7115_v48 = vpop.f32.mrb[10].mxu0  ;;  %v1047_v30 = vld [vmem:[#allocation5 + $0x1b18] sm:$0xff]  ;;  %v9813_v38 = vpack.c.bf16 %v1033_v32, %v1032_v31  ;;  %v1042_v31 = vld [vmem:[#allocation5 + $0x1af0] sm:$0xff] }
 0x1ce   :  { %9794 = vmatprep.subr.bf16.mxu1 %v9793_v34  ;;  %v7116_v53 = vpop.f32.mrb[11].mxu0  ;;  %v105_v34 = vld [vmem:[#allocation2 + $0x1a8] sm:$0xff]  ;;  %v9843_v37 = vpack.c.bf16 %v1047_v30, %v1046_v28  ;;  %v1043_v32 = vld [vmem:[#allocation5 + $0x1af8] sm:$0xff] }
 0x1cf   :  { %v7150_v2 = vpop.f32.mrb[10].mxu1  ;;  %v7117_v56 = vadd.f32 %v7116_v53, %v7115_v48  ;;  %9764 = vmatpush3.bf16.msra.mxu0 %v9763_v41  ;;  %v1017_v41 = vld [vmem:[#allocation5 + $0x1a28] sm:$0xff]  ;;  %v1066_v48 = vld [vmem:[#allocation5 + $0x1bb0] sm:$0xff] }
 0x1d0   :  { %v7151_v57 = vpop.f32.mrb[11].mxu1  ;;  %9766 = vmatprep.subr.bf16.mxu0 %v9765_v43  ;;  %v9845_v43 = vpack.c.bf16 %v1065_v47, %v1064_v33  ;;  %v9815_v50 = vpack.c.bf16 %v1017_v41, %v1016_v39  ;;  %v1018_v53 = vld [vmem:[#allocation5 + $0x1a30] sm:$0xff]  ;;  %v1057_v30 = vld [vmem:[#allocation5 + $0x1b68] sm:$0xff] }
 0x1d1   :  { %v7152_v59 = vadd.f32 %v7151_v57, %v7150_v2  ;;  %9796 = vmatpush3.bf16.msra.mxu1 %v9795_v42  ;;  %v3002_v1 = vadd.f32 %v7117_v56, %v11195_v40  ;;  %v9837_v40 = vpack.c.bf16 %v1061_v8, %v1060_v7  ;;  %v1048_v42 = vld [vmem:[#allocation5 + $0x1b20] sm:$0xff]  ;;  %v1019_v2 = vld [vmem:[#allocation5 + $0x1a38] sm:$0xff]  ;;  %v1070_v8 = vld [vmem:[#allocation5 + $0x1bd0] sm:$0xff]  ;;  %v9863_v41 = vpack.c.bf16 %v1057_v30, %v1056_v27 }
 0x1d2   :  { %9798 = vmatprep.subr.bf16.mxu1 %v9797_v49  ;;  %v1067_v49 = vld [vmem:[#allocation5 + $0x1bb8] sm:$0xff]  ;;  %v9847_v51 = vpack.c.bf16 %v1049_v44, %v1048_v42  ;;  %v1036_v57 = vld [vmem:[#allocation5 + $0x1ac0] sm:$0xff]  ;;  %v9833_v42 = vpack.c.bf16 %v1043_v32, %v1042_v31 }
 0x1d3   :  { %v11198_v21 = vadd.f32 %v7152_v59, %v3002_v1  ;;  %9768 = vmatpush3.bf16.msra.mxu0 %v9767_v58  ;;  %v9849_v55 = vpack.c.bf16 %v1067_v49, %v1066_v48  ;;  %v1051_v56 = vld [vmem:[#allocation5 + $0x1b38] sm:$0xff]  ;;  %v1037_v58 = vld [vmem:[#allocation5 + $0x1ac8] sm:$0xff]  ;;  %v1068_v59 = vld [vmem:[#allocation5 + $0x1bc0] sm:$0xff] }
 0x1d4   :  { %9770 = vmatprep.subr.bf16.mxu0 %v9769_v61  ;;  %v9819_v61 = vpack.c.bf16 %v1019_v2, %v1018_v53  ;;  %v9851_v62 = vpack.c.bf16 %v1051_v56, %v1050_v54  ;;  %v9821_v63 = vpack.c.bf16 %v1037_v58, %v1036_v57  ;;  %v1021_v1 = vld [vmem:[#allocation5 + $0x1a48] sm:$0xff]  ;;  %v1039_v7 = vld [vmem:[#allocation5 + $0x1ad8] sm:$0xff]  ;;  %v1076_v57 = vld [vmem:[#allocation5 + $0x1c00] sm:$0xff] }
 0x1d5   :  { %9800 = vmatpush3.bf16.msra.mxu1 %v9799_v60  ;;  %v1069_v60 = vld [vmem:[#allocation5 + $0x1bc8] sm:$0xff]  ;;  %v9825_v12 = vpack.c.bf16 %v1039_v7, %v1038_v6  ;;  %v1027_v44 = vld [vmem:[#allocation5 + $0x1a78] sm:$0xff]  ;;  %v1078_v7 = vld [vmem:[#allocation5 + $0x1c10] sm:$0xff] }
 0x1d6   :  { %9802 = vmatprep.subr.bf16.mxu1 %v9801_v3  ;;  %v1052_v3 = vld [vmem:[#allocation5 + $0x1b40] sm:$0xff]  ;;  %v9853_v4 = vpack.c.bf16 %v1069_v60, %v1068_v59  ;;  %v1059_v49 = vld [vmem:[#allocation5 + $0x1b78] sm:$0xff]  ;;  %v1125_v53 = vld [vmem:[#allocation5 + $0x1d88] sm:$0xff] }
 0x1d7   :  { %9772 = vmatpush3.bf16.msra.mxu0 %v9771_v9  ;;  %v1071_v9 = vld [vmem:[#allocation5 + $0x1bd8] sm:$0xff]  ;;  %v1077_v58 = vld [vmem:[#allocation5 + $0x1c08] sm:$0xff]  ;;  %v1108_v59 = vld [vmem:[#allocation5 + $0x1d00] sm:$0xff] }
 0x1d8   :  { %9806 = vmatprep.subr.bf16.mxu0 %v9805_v11  ;;  %v9855_v11 = vpack.c.bf16 %v1053_v5, %v1052_v3  ;;  %v9857_v15 = vpack.c.bf16 %v1071_v9, %v1070_v8  ;;  %v1109_v60 = vld [vmem:[#allocation5 + $0x1d08] sm:$0xff]  ;;  %v9871_v3 = vpack.c.bf16 %v1077_v58, %v1076_v57  ;;  %v1079_v8 = vld [vmem:[#allocation5 + $0x1c18] sm:$0xff]  ;;  %v1110_v9 = vld [vmem:[#allocation5 + $0x1d10] sm:$0xff] }
 0x1d9   :  { %9804 = vmatpush3.bf16.msra.mxu1 %v9803_v10  ;;  %v9823_v10 = vpack.c.bf16 %v1021_v1, %v1020_v0  ;;  %v1127_v0 = vld [vmem:[#allocation5 + $0x1d98] sm:$0xff]  ;;  %v104_v1 = vld [vmem:[#allocation2 + $0x1a0] sm:$0xff]  ;;  %v9903_v5 = vpack.c.bf16 %v1109_v60, %v1108_v59  ;;  %v1086_v58 = vld [vmem:[#allocation5 + $0x1c50] sm:$0xff] }
 0x1da   :  { %9838 = vmatprep.subr.bf16.mxu1 %v9837_v40  ;;  %3980 = vmatmul.mubr.f32.vlgmr.msra.gmra.mrb[24].mxu0 %v100_v20  ;;  %v1054_v40 = vld [vmem:[#allocation5 + $0x1b50] sm:$0xff]  ;;  %v1073_v20 = vld [vmem:[#allocation5 + $0x1be8] sm:$0xff]  ;;  %v1099_v27 = vld [vmem:[#allocation5 + $0x1cb8] sm:$0xff] }
 0x1db   :  { %9808 = vmatpush3.bf16.msra.mxu0 %v9807_v22  ;;  %4119 = vmatprep.mubr.f32.mxu0 %v105_v34  ;;  %v9827_v22 = vpack.c.bf16 %v1023_v14, %v1022_v13  ;;  %v1074_v34 = vld [vmem:[#allocation5 + $0x1bf0] sm:$0xff]  ;;  %v1097_v13 = vld [vmem:[#allocation5 + $0x1ca8] sm:$0xff]  ;;  %v1128_v14 = vld [vmem:[#allocation5 + $0x1da0] sm:$0xff] }
 0x1dc   :  { %4050 = vmatmul.mubr.f32.vlgmr.msra.gmra.mrb[24].mxu1 %v102_v23  ;;  %9810 = vmatprep.subr.bf16.mxu0 %v9809_v25  ;;  %v9859_v23 = vpack.c.bf16 %v1055_v16, %v1054_v40  ;;  %v1024_v25 = vld [vmem:[#allocation5 + $0x1a60] sm:$0xff]  ;;  %v1129_v40 = vld [vmem:[#allocation5 + $0x1da8] sm:$0xff]  ;;  %v9875_v16 = vpack.c.bf16 %v1079_v8, %v1078_v7  ;;  %v1087_v59 = vld [vmem:[#allocation5 + $0x1c58] sm:$0xff] }
 0x1dd   :  { %9840 = vmatpush3.bf16.msra.mxu1 %v9839_v24  ;;  %4189 = vmatprep.mubr.f32.mxu1 %v107_v36  ;;  %v9829_v24 = vpack.c.bf16 %v1041_v18, %v1040_v17  ;;  %v111_v17 = vld [vmem:[#allocation2 + $0x1d8] sm:$0xff]  ;;  %v1089_v7 = vld [vmem:[#allocation5 + $0x1c68] sm:$0xff]  ;;  %v1120_v8 = vld [vmem:[#allocation5 + $0x1d60] sm:$0xff] }
 0x1de   :  { %9842 = vmatprep.subr.bf16.mxu1 %v9841_v29  ;;  %v9861_v29 = vpack.c.bf16 %v1073_v20, %v1072_v19  ;;  %v1080_v20 = vld [vmem:[#allocation5 + $0x1c20] sm:$0xff] }
 0x1df   :  { %9812 = vmatpush3.bf16.msra.mxu0 %v9811_v35  ;;  %v1075_v35 = vld [vmem:[#allocation5 + $0x1bf8] sm:$0xff] }
 0x1e0   :  { %9814 = vmatprep.subr.bf16.mxu0 %v9813_v38  ;;  %v9831_v38 = vpack.c.bf16 %v1025_v26, %v1024_v25  ;;  %v9865_v48 = vpack.c.bf16 %v1075_v35, %v1074_v34  ;;  %v1113_v25 = vld [vmem:[#allocation5 + $0x1d28] sm:$0xff]  ;;  %v1098_v26 = vld [vmem:[#allocation5 + $0x1cb0] sm:$0xff] }
 0x1e1   :  { %9844 = vmatpush3.bf16.msra.mxu1 %v9843_v37  ;;  %v9881_v32 = vpack.c.bf16 %v1099_v27, %v1098_v26  ;;  %v1114_v34 = vld [vmem:[#allocation5 + $0x1d30] sm:$0xff] }
 0x1e2   :  { %9846 = vmatprep.subr.bf16.mxu1 %v9845_v43  ;;  %v1026_v43 = vld [vmem:[#allocation5 + $0x1a70] sm:$0xff] }
 0x1e3   :  { %9816 = vmatpush3.bf16.msra.mxu0 %v9815_v50  ;;  %v1092_v50 = vld [vmem:[#allocation5 + $0x1c80] sm:$0xff]  ;;  %v9835_v54 = vpack.c.bf16 %v1027_v44, %v1026_v43  ;;  %v1122_v26 = vld [vmem:[#allocation5 + $0x1d70] sm:$0xff] }
 0x1e4   :  { %9818 = vmatprep.subr.bf16.mxu0 %v9817_v52  ;;  %v1124_v52 = vld [vmem:[#allocation5 + $0x1d80] sm:$0xff] }
 0x1e5   :  { %9848 = vmatpush3.bf16.msra.mxu1 %v9847_v51  ;;  %v1093_v51 = vld [vmem:[#allocation5 + $0x1c88] sm:$0xff] }
 0x1e6   :  { %9850 = vmatprep.subr.bf16.mxu1 %v9849_v55  ;;  %v9867_v55 = vpack.c.bf16 %v1059_v49, %v1058_v45  ;;  %v9869_v56 = vpack.c.bf16 %v1093_v51, %v1092_v50  ;;  %v1084_v45 = vld [vmem:[#allocation5 + $0x1c40] sm:$0xff]  ;;  %v1117_v50 = vld [vmem:[#allocation5 + $0x1d48] sm:$0xff]  ;;  %v1102_v51 = vld [vmem:[#allocation5 + $0x1cd0] sm:$0xff] }
 0x1e7   :  { %9820 = vmatpush3.bf16.msra.mxu0 %v9819_v61  ;;  %v1094_v61 = vld [vmem:[#allocation5 + $0x1c90] sm:$0xff] }
 0x1e8   :  { %9822 = vmatprep.subr.bf16.mxu0 %v9821_v63  ;;  %v1126_v63 = vld [vmem:[#allocation5 + $0x1d90] sm:$0xff] }
 0x1e9   :  { %9852 = vmatpush3.bf16.msra.mxu1 %v9851_v62  ;;  %v1095_v62 = vld [vmem:[#allocation5 + $0x1c98] sm:$0xff] }
 0x1ea   :  { %9854 = vmatprep.subr.bf16.mxu1 %v9853_v4  ;;  %v106_v4 = vld [vmem:[#allocation2 + $0x1b0] sm:$0xff]  ;;  %v9873_v6 = vpack.c.bf16 %v1095_v62, %v1094_v61  ;;  %v1119_v61 = vld [vmem:[#allocation5 + $0x1d58] sm:$0xff]  ;;  %v1104_v62 = vld [vmem:[#allocation5 + $0x1ce0] sm:$0xff] }
 0x1eb   :  { %9824 = vmatpush3.bf16.msra.mxu0 %v9823_v10  ;;  %v9905_v10 = vpack.c.bf16 %v1127_v0, %v1126_v63  ;;  %v1105_v63 = vld [vmem:[#allocation5 + $0x1ce8] sm:$0xff]  ;;  %v1136_v0 = vld [vmem:[#allocation5 + $0x1de0] sm:$0xff] }
 0x1ec   :  { %9826 = vmatprep.subr.bf16.mxu0 %v9825_v12  ;;  %v1096_v12 = vld [vmem:[#allocation5 + $0x1ca0] sm:$0xff] }
 0x1ed   :  { %9856 = vmatpush3.bf16.msra.mxu1 %v9855_v11  ;;  %v7185_v28 = vpop.f32.mrb[12].mxu0  ;;  %v1111_v11 = vld [vmem:[#allocation5 + $0x1d18] sm:$0xff]  ;;  %v9877_v19 = vpack.c.bf16 %v1097_v13, %v1096_v12  ;;  %v1106_v12 = vld [vmem:[#allocation5 + $0x1cf0] sm:$0xff] }
 0x1ee   :  { %9858 = vmatprep.subr.bf16.mxu1 %v9857_v15  ;;  %v7186_v33 = vpop.f32.mrb[13].mxu0  ;;  %v109_v15 = vld [vmem:[#allocation2 + $0x1c8] sm:$0xff]  ;;  %v9907_v18 = vpack.c.bf16 %v1111_v11, %v1110_v9  ;;  %v1107_v13 = vld [vmem:[#allocation5 + $0x1cf8] sm:$0xff] }
 0x1ef   :  { %v7220_v47 = vpop.f32.mrb[12].mxu1  ;;  %v7187_v36 = vadd.f32 %v7186_v33, %v7185_v28  ;;  %9828 = vmatpush3.bf16.msra.mxu0 %v9827_v22  ;;  %v1081_v22 = vld [vmem:[#allocation5 + $0x1c28] sm:$0xff]  ;;  %v1130_v28 = vld [vmem:[#allocation5 + $0x1db0] sm:$0xff] }
 0x1f0   :  { %v7221_v37 = vpop.f32.mrb[13].mxu1  ;;  %9830 = vmatprep.subr.bf16.mxu0 %v9829_v24  ;;  %v9909_v24 = vpack.c.bf16 %v1129_v40, %v1128_v14  ;;  %v9879_v30 = vpack.c.bf16 %v1081_v22, %v1080_v20  ;;  %v1082_v33 = vld [vmem:[#allocation5 + $0x1c30] sm:$0xff]  ;;  %v1121_v11 = vld [vmem:[#allocation5 + $0x1d68] sm:$0xff] }
 0x1f1   :  { %v7222_v39 = vadd.f32 %v7221_v37, %v7220_v47  ;;  %9860 = vmatpush3.bf16.msra.mxu1 %v9859_v23  ;;  %v3142_v46 = vadd.f32 %v7187_v36, %v11198_v21  ;;  %v9901_v21 = vpack.c.bf16 %v1125_v53, %v1124_v52  ;;  %v1112_v23 = vld [vmem:[#allocation5 + $0x1d20] sm:$0xff]  ;;  %v1083_v47 = vld [vmem:[#allocation5 + $0x1c38] sm:$0xff]  ;;  %v1134_v53 = vld [vmem:[#allocation5 + $0x1dd0] sm:$0xff]  ;;  %v9927_v22 = vpack.c.bf16 %v1121_v11, %v1120_v8 }
 0x1f2   :  { %9862 = vmatprep.subr.bf16.mxu1 %v9861_v29  ;;  %v1131_v29 = vld [vmem:[#allocation5 + $0x1db8] sm:$0xff]  ;;  %v9911_v31 = vpack.c.bf16 %v1113_v25, %v1112_v23  ;;  %v1100_v37 = vld [vmem:[#allocation5 + $0x1cc0] sm:$0xff]  ;;  %v9897_v23 = vpack.c.bf16 %v1107_v13, %v1106_v12 }
 0x1f3   :  { %v11201_v2 = vadd.f32 %v7222_v39, %v3142_v46  ;;  %9832 = vmatpush3.bf16.msra.mxu0 %v9831_v38  ;;  %v9913_v35 = vpack.c.bf16 %v1131_v29, %v1130_v28  ;;  %v1115_v36 = vld [vmem:[#allocation5 + $0x1d38] sm:$0xff]  ;;  %v1101_v38 = vld [vmem:[#allocation5 + $0x1cc8] sm:$0xff]  ;;  %v1132_v39 = vld [vmem:[#allocation5 + $0x1dc0] sm:$0xff] }
 0x1f4   :  { %9834 = vmatprep.subr.bf16.mxu0 %v9833_v42  ;;  %v9883_v42 = vpack.c.bf16 %v1083_v47, %v1082_v33  ;;  %v9915_v43 = vpack.c.bf16 %v1115_v36, %v1114_v34  ;;  %v9885_v44 = vpack.c.bf16 %v1101_v38, %v1100_v37  ;;  %v1085_v46 = vld [vmem:[#allocation5 + $0x1c48] sm:$0xff]  ;;  %v1103_v52 = vld [vmem:[#allocation5 + $0x1cd8] sm:$0xff]  ;;  %v1140_v37 = vld [vmem:[#allocation5 + $0x1e00] sm:$0xff] }
 0x1f5   :  { %9864 = vmatpush3.bf16.msra.mxu1 %v9863_v41  ;;  %v1133_v41 = vld [vmem:[#allocation5 + $0x1dc8] sm:$0xff]  ;;  %v9889_v57 = vpack.c.bf16 %v1103_v52, %v1102_v51  ;;  %v1091_v25 = vld [vmem:[#allocation5 + $0x1c78] sm:$0xff]  ;;  %v1142_v52 = vld [vmem:[#allocation5 + $0x1e10] sm:$0xff] }
 0x1f6   :  { %9866 = vmatprep.subr.bf16.mxu1 %v9865_v48  ;;  %v1116_v48 = vld [vmem:[#allocation5 + $0x1d40] sm:$0xff]  ;;  %v9917_v49 = vpack.c.bf16 %v1133_v41, %v1132_v39  ;;  %v1123_v29 = vld [vmem:[#allocation5 + $0x1d78] sm:$0xff]  ;;  %v1189_v33 = vld [vmem:[#allocation5 + $0x1f88] sm:$0xff] }
 0x1f7   :  { %9836 = vmatpush3.bf16.msra.mxu0 %v9835_v54  ;;  %v1135_v54 = vld [vmem:[#allocation5 + $0x1dd8] sm:$0xff]  ;;  %v1141_v38 = vld [vmem:[#allocation5 + $0x1e08] sm:$0xff]  ;;  %v1172_v39 = vld [vmem:[#allocation5 + $0x1f00] sm:$0xff] }
 0x1f8   :  { %9870 = vmatprep.subr.bf16.mxu0 %v9869_v56  ;;  %v9919_v56 = vpack.c.bf16 %v1117_v50, %v1116_v48  ;;  %v9921_v60 = vpack.c.bf16 %v1135_v54, %v1134_v53  ;;  %v1173_v41 = vld [vmem:[#allocation5 + $0x1f08] sm:$0xff]  ;;  %v9935_v48 = vpack.c.bf16 %v1141_v38, %v1140_v37  ;;  %v1143_v53 = vld [vmem:[#allocation5 + $0x1e18] sm:$0xff]  ;;  %v1174_v54 = vld [vmem:[#allocation5 + $0x1f10] sm:$0xff] }
 0x1f9   :  { %9868 = vmatpush3.bf16.msra.mxu1 %v9867_v55  ;;  %v9887_v55 = vpack.c.bf16 %v1085_v46, %v1084_v45  ;;  %v1191_v45 = vld [vmem:[#allocation5 + $0x1f98] sm:$0xff]  ;;  %v108_v46 = vld [vmem:[#allocation2 + $0x1c0] sm:$0xff]  ;;  %v9967_v50 = vpack.c.bf16 %v1173_v41, %v1172_v39  ;;  %v1150_v38 = vld [vmem:[#allocation5 + $0x1e50] sm:$0xff] }
 0x1fa   :  { %9902 = vmatprep.subr.bf16.mxu1 %v9901_v21  ;;  %4120 = vmatmul.mubr.f32.vlgmr.msra.gmra.mrb[26].mxu0 %v104_v1  ;;  %v1118_v21 = vld [vmem:[#allocation5 + $0x1d50] sm:$0xff]  ;;  %v1137_v1 = vld [vmem:[#allocation5 + $0x1de8] sm:$0xff]  ;;  %v1163_v8 = vld [vmem:[#allocation5 + $0x1eb8] sm:$0xff] }
 0x1fb   :  { %9872 = vmatpush3.bf16.msra.mxu0 %v9871_v3  ;;  %4259 = vmatprep.mubr.f32.mxu0 %v109_v15  ;;  %v9891_v3 = vpack.c.bf16 %v1087_v59, %v1086_v58  ;;  %v1138_v15 = vld [vmem:[#allocation5 + $0x1df0] sm:$0xff]  ;;  %v1161_v58 = vld [vmem:[#allocation5 + $0x1ea8] sm:$0xff]  ;;  %v1192_v59 = vld [vmem:[#allocation5 + $0x1fa0] sm:$0xff] }
 0x1fc   :  { %4190 = vmatmul.mubr.f32.vlgmr.msra.gmra.mrb[26].mxu1 %v106_v4  ;;  %9874 = vmatprep.subr.bf16.mxu0 %v9873_v6  ;;  %v9923_v4 = vpack.c.bf16 %v1119_v61, %v1118_v21  ;;  %v1088_v6 = vld [vmem:[#allocation5 + $0x1c60] sm:$0xff]  ;;  %v1193_v21 = vld [vmem:[#allocation5 + $0x1fa8] sm:$0xff]  ;;  %v9939_v61 = vpack.c.bf16 %v1143_v53, %v1142_v52  ;;  %v1151_v39 = vld [vmem:[#allocation5 + $0x1e58] sm:$0xff] }
 0x1fd   :  { %9904 = vmatpush3.bf16.msra.mxu1 %v9903_v5  ;;  %4329 = vmatprep.mubr.f32.mxu1 %v111_v17  ;;  %v9893_v5 = vpack.c.bf16 %v1105_v63, %v1104_v62  ;;  %v115_v62 = vld [vmem:[#allocation2 + $0x1f8] sm:$0xff]  ;;  %v1153_v52 = vld [vmem:[#allocation5 + $0x1e68] sm:$0xff]  ;;  %v1184_v53 = vld [vmem:[#allocation5 + $0x1f60] sm:$0xff] }
 0x1fe   :  { %9906 = vmatprep.subr.bf16.mxu1 %v9905_v10  ;;  %v9925_v10 = vpack.c.bf16 %v1137_v1, %v1136_v0  ;;  %v1144_v1 = vld [vmem:[#allocation5 + $0x1e20] sm:$0xff] }
 0x1ff   :  { %9876 = vmatpush3.bf16.msra.mxu0 %v9875_v16  ;;  %v1139_v16 = vld [vmem:[#allocation5 + $0x1df8] sm:$0xff] }
 0x200   :  { %9878 = vmatprep.subr.bf16.mxu0 %v9877_v19  ;;  %v9895_v19 = vpack.c.bf16 %v1089_v7, %v1088_v6  ;;  %v9929_v28 = vpack.c.bf16 %v1139_v16, %v1138_v15  ;;  %v1177_v6 = vld [vmem:[#allocation5 + $0x1f28] sm:$0xff]  ;;  %v1162_v7 = vld [vmem:[#allocation5 + $0x1eb0] sm:$0xff] }
 0x201   :  { %9908 = vmatpush3.bf16.msra.mxu1 %v9907_v18  ;;  %v9945_v13 = vpack.c.bf16 %v1163_v8, %v1162_v7  ;;  %v1178_v15 = vld [vmem:[#allocation5 + $0x1f30] sm:$0xff] }
 0x202   :  { %9910 = vmatprep.subr.bf16.mxu1 %v9909_v24  ;;  %v1090_v24 = vld [vmem:[#allocation5 + $0x1c70] sm:$0xff] }
 0x203   :  { %9880 = vmatpush3.bf16.msra.mxu0 %v9879_v30  ;;  %v1156_v30 = vld [vmem:[#allocation5 + $0x1e80] sm:$0xff]  ;;  %v9899_v34 = vpack.c.bf16 %v1091_v25, %v1090_v24  ;;  %v1186_v7 = vld [vmem:[#allocation5 + $0x1f70] sm:$0xff] }
 0x204   :  { %9882 = vmatprep.subr.bf16.mxu0 %v9881_v32  ;;  %v1188_v32 = vld [vmem:[#allocation5 + $0x1f80] sm:$0xff] }
 0x205   :  { %9912 = vmatpush3.bf16.msra.mxu1 %v9911_v31  ;;  %v1157_v31 = vld [vmem:[#allocation5 + $0x1e88] sm:$0xff] }
 0x206   :  { %9914 = vmatprep.subr.bf16.mxu1 %v9913_v35  ;;  %v9931_v35 = vpack.c.bf16 %v1123_v29, %v1122_v26  ;;  %v9933_v36 = vpack.c.bf16 %v1157_v31, %v1156_v30  ;;  %v1148_v26 = vld [vmem:[#allocation5 + $0x1e40] sm:$0xff]  ;;  %v1181_v30 = vld [vmem:[#allocation5 + $0x1f48] sm:$0xff]  ;;  %v1166_v31 = vld [vmem:[#allocation5 + $0x1ed0] sm:$0xff] }
 0x207   :  { %9884 = vmatpush3.bf16.msra.mxu0 %v9883_v42  ;;  %v1158_v42 = vld [vmem:[#allocation5 + $0x1e90] sm:$0xff] }
 0x208   :  { %9886 = vmatprep.subr.bf16.mxu0 %v9885_v44  ;;  %v1190_v44 = vld [vmem:[#allocation5 + $0x1f90] sm:$0xff] }
 0x209   :  { %9916 = vmatpush3.bf16.msra.mxu1 %v9915_v43  ;;  %v1159_v43 = vld [vmem:[#allocation5 + $0x1e98] sm:$0xff] }
 0x20a   :  { %9918 = vmatprep.subr.bf16.mxu1 %v9917_v49  ;;  %v110_v49 = vld [vmem:[#allocation2 + $0x1d0] sm:$0xff]  ;;  %v9937_v51 = vpack.c.bf16 %v1159_v43, %v1158_v42  ;;  %v1183_v42 = vld [vmem:[#allocation5 + $0x1f58] sm:$0xff]  ;;  %v1168_v43 = vld [vmem:[#allocation5 + $0x1ee0] sm:$0xff] }
 0x20b   :  { %9888 = vmatpush3.bf16.msra.mxu0 %v9887_v55  ;;  %v9969_v55 = vpack.c.bf16 %v1191_v45, %v1190_v44  ;;  %v1169_v44 = vld [vmem:[#allocation5 + $0x1ee8] sm:$0xff]  ;;  %v1200_v45 = vld [vmem:[#allocation5 + $0x1fe0] sm:$0xff] }
 0x20c   :  { %9890 = vmatprep.subr.bf16.mxu0 %v9889_v57  ;;  %v1160_v57 = vld [vmem:[#allocation5 + $0x1ea0] sm:$0xff] }
 0x20d   :  { %9920 = vmatpush3.bf16.msra.mxu1 %v9919_v56  ;;  %v7255_v9 = vpop.f32.mrb[14].mxu0  ;;  %v1175_v56 = vld [vmem:[#allocation5 + $0x1f18] sm:$0xff]  ;;  %v9941_v0 = vpack.c.bf16 %v1161_v58, %v1160_v57  ;;  %v1170_v57 = vld [vmem:[#allocation5 + $0x1ef0] sm:$0xff] }
 0x20e   :  { %9922 = vmatprep.subr.bf16.mxu1 %v9921_v60  ;;  %v7256_v14 = vpop.f32.mrb[15].mxu0  ;;  %v113_v60 = vld [vmem:[#allocation2 + $0x1e8] sm:$0xff]  ;;  %v9971_v63 = vpack.c.bf16 %v1175_v56, %v1174_v54  ;;  %v1171_v58 = vld [vmem:[#allocation5 + $0x1ef8] sm:$0xff] }
 0x20f   :  { %v7290_v40 = vpop.f32.mrb[14].mxu1  ;;  %v7257_v17 = vadd.f32 %v7256_v14, %v7255_v9  ;;  %9892 = vmatpush3.bf16.msra.mxu0 %v9891_v3  ;;  %v1145_v3 = vld [vmem:[#allocation5 + $0x1e28] sm:$0xff]  ;;  %v1194_v9 = vld [vmem:[#allocation5 + $0x1fb0] sm:$0xff] }
 0x210   :  { %v7291_v18 = vpop.f32.mrb[15].mxu1  ;;  %9894 = vmatprep.subr.bf16.mxu0 %v9893_v5  ;;  %v9973_v5 = vpack.c.bf16 %v1193_v21, %v1192_v59  ;;  %v9943_v11 = vpack.c.bf16 %v1145_v3, %v1144_v1  ;;  %v1146_v14 = vld [vmem:[#allocation5 + $0x1e30] sm:$0xff]  ;;  %v1185_v56 = vld [vmem:[#allocation5 + $0x1f68] sm:$0xff] }
 0x211   :  { %v7292_v20 = vadd.f32 %v7291_v18, %v7290_v40  ;;  %9924 = vmatpush3.bf16.msra.mxu1 %v9923_v4  ;;  %v3282_v27 = vadd.f32 %v7257_v17, %v11201_v2  ;;  %v9965_v2 = vpack.c.bf16 %v1189_v33, %v1188_v32  ;;  %v1176_v4 = vld [vmem:[#allocation5 + $0x1f20] sm:$0xff]  ;;  %v1147_v40 = vld [vmem:[#allocation5 + $0x1e38] sm:$0xff]  ;;  %v1198_v33 = vld [vmem:[#allocation5 + $0x1fd0] sm:$0xff]  ;;  %v9991_v3 = vpack.c.bf16 %v1185_v56, %v1184_v53 }
 0x212   :  { %9926 = vmatprep.subr.bf16.mxu1 %v9925_v10  ;;  %v1195_v10 = vld [vmem:[#allocation5 + $0x1fb8] sm:$0xff]  ;;  %v9975_v12 = vpack.c.bf16 %v1177_v6, %v1176_v4  ;;  %v1164_v18 = vld [vmem:[#allocation5 + $0x1ec0] sm:$0xff]  ;;  %v9961_v4 = vpack.c.bf16 %v1171_v58, %v1170_v57 }
 0x213   :  { %v11204_v47 = vadd.f32 %v7292_v20, %v3282_v27  ;;  %9896 = vmatpush3.bf16.msra.mxu0 %v9895_v19  ;;  %v9977_v16 = vpack.c.bf16 %v1195_v10, %v1194_v9  ;;  %v1179_v17 = vld [vmem:[#allocation5 + $0x1f38] sm:$0xff]  ;;  %v1165_v19 = vld [vmem:[#allocation5 + $0x1ec8] sm:$0xff]  ;;  %v1196_v20 = vld [vmem:[#allocation5 + $0x1fc0] sm:$0xff] }
 0x214   :  { %9898 = vmatprep.subr.bf16.mxu0 %v9897_v23  ;;  %v9947_v23 = vpack.c.bf16 %v1147_v40, %v1146_v14  ;;  %v9979_v24 = vpack.c.bf16 %v1179_v17, %v1178_v15  ;;  %v9949_v25 = vpack.c.bf16 %v1165_v19, %v1164_v18  ;;  %v1149_v27 = vld [vmem:[#allocation5 + $0x1e48] sm:$0xff]  ;;  %v1167_v32 = vld [vmem:[#allocation5 + $0x1ed8] sm:$0xff]  ;;  %v1204_v18 = vld [vmem:[#allocation5 + $0x2000] sm:$0xff] }
 0x215   :  { %9928 = vmatpush3.bf16.msra.mxu1 %v9927_v22  ;;  %v1197_v22 = vld [vmem:[#allocation5 + $0x1fc8] sm:$0xff]  ;;  %v9953_v37 = vpack.c.bf16 %v1167_v32, %v1166_v31  ;;  %v1155_v6 = vld [vmem:[#allocation5 + $0x1e78] sm:$0xff]  ;;  %v1206_v32 = vld [vmem:[#allocation5 + $0x2010] sm:$0xff] }
 0x216   :  { %9930 = vmatprep.subr.bf16.mxu1 %v9929_v28  ;;  %v1180_v28 = vld [vmem:[#allocation5 + $0x1f40] sm:$0xff]  ;;  %v9981_v29 = vpack.c.bf16 %v1197_v22, %v1196_v20  ;;  %v1187_v10 = vld [vmem:[#allocation5 + $0x1f78] sm:$0xff]  ;;  %v1253_v14 = vld [vmem:[#allocation5 + $0x2188] sm:$0xff] }
 0x217   :  { %9900 = vmatpush3.bf16.msra.mxu0 %v9899_v34  ;;  %v1199_v34 = vld [vmem:[#allocation5 + $0x1fd8] sm:$0xff]  ;;  %v1205_v19 = vld [vmem:[#allocation5 + $0x2008] sm:$0xff]  ;;  %v1236_v20 = vld [vmem:[#allocation5 + $0x2100] sm:$0xff] }
 0x218   :  { %9934 = vmatprep.subr.bf16.mxu0 %v9933_v36  ;;  %v9983_v36 = vpack.c.bf16 %v1181_v30, %v1180_v28  ;;  %v9985_v41 = vpack.c.bf16 %v1199_v34, %v1198_v33  ;;  %v1237_v22 = vld [vmem:[#allocation5 + $0x2108] sm:$0xff]  ;;  %v9999_v28 = vpack.c.bf16 %v1205_v19, %v1204_v18  ;;  %v1207_v33 = vld [vmem:[#allocation5 + $0x2018] sm:$0xff]  ;;  %v1238_v34 = vld [vmem:[#allocation5 + $0x2110] sm:$0xff] }
 0x219   :  { %9932 = vmatpush3.bf16.msra.mxu1 %v9931_v35  ;;  %v9951_v35 = vpack.c.bf16 %v1149_v27, %v1148_v26  ;;  %v1255_v26 = vld [vmem:[#allocation5 + $0x2198] sm:$0xff]  ;;  %v112_v27 = vld [vmem:[#allocation2 + $0x1e0] sm:$0xff]  ;;  %v10031_v30 = vpack.c.bf16 %v1237_v22, %v1236_v20  ;;  %v1214_v19 = vld [vmem:[#allocation5 + $0x2050] sm:$0xff] }
 0x21a   :  { %9966 = vmatprep.subr.bf16.mxu1 %v9965_v2  ;;  %4260 = vmatmul.mubr.f32.vlgmr.msra.gmra.mrb[28].mxu0 %v108_v46  ;;  %v1182_v2 = vld [vmem:[#allocation5 + $0x1f50] sm:$0xff]  ;;  %v1201_v46 = vld [vmem:[#allocation5 + $0x1fe8] sm:$0xff]  ;;  %v1227_v53 = vld [vmem:[#allocation5 + $0x20b8] sm:$0xff] }
 0x21b   :  { %9936 = vmatpush3.bf16.msra.mxu0 %v9935_v48  ;;  %4399 = vmatprep.mubr.f32.mxu0 %v113_v60  ;;  %v9955_v48 = vpack.c.bf16 %v1151_v39, %v1150_v38  ;;  %v1202_v60 = vld [vmem:[#allocation5 + $0x1ff0] sm:$0xff]  ;;  %v1225_v38 = vld [vmem:[#allocation5 + $0x20a8] sm:$0xff]  ;;  %v1256_v39 = vld [vmem:[#allocation5 + $0x21a0] sm:$0xff] }
 0x21c   :  { %4330 = vmatmul.mubr.f32.vlgmr.msra.gmra.mrb[28].mxu1 %v110_v49  ;;  %9938 = vmatprep.subr.bf16.mxu0 %v9937_v51  ;;  %v9987_v49 = vpack.c.bf16 %v1183_v42, %v1182_v2  ;;  %v1152_v51 = vld [vmem:[#allocation5 + $0x1e60] sm:$0xff]  ;;  %v1257_v2 = vld [vmem:[#allocation5 + $0x21a8] sm:$0xff]  ;;  %v10003_v42 = vpack.c.bf16 %v1207_v33, %v1206_v32  ;;  %v1215_v20 = vld [vmem:[#allocation5 + $0x2058] sm:$0xff] }
 0x21d   :  { %9968 = vmatpush3.bf16.msra.mxu1 %v9967_v50  ;;  %4469 = vmatprep.mubr.f32.mxu1 %v115_v62  ;;  %v9957_v50 = vpack.c.bf16 %v1169_v44, %v1168_v43  ;;  %v119_v43 = vld [vmem:[#allocation2 + $0x218] sm:$0xff]  ;;  %v1217_v32 = vld [vmem:[#allocation5 + $0x2068] sm:$0xff]  ;;  %v1248_v33 = vld [vmem:[#allocation5 + $0x2160] sm:$0xff] }
 0x21e   :  { %9970 = vmatprep.subr.bf16.mxu1 %v9969_v55  ;;  %v9989_v55 = vpack.c.bf16 %v1201_v46, %v1200_v45  ;;  %v1208_v46 = vld [vmem:[#allocation5 + $0x2020] sm:$0xff] }
 0x21f   :  { %9940 = vmatpush3.bf16.msra.mxu0 %v9939_v61  ;;  %v1203_v61 = vld [vmem:[#allocation5 + $0x1ff8] sm:$0xff] }
 0x220   :  { %9942 = vmatprep.subr.bf16.mxu0 %v9941_v0  ;;  %v9959_v0 = vpack.c.bf16 %v1153_v52, %v1152_v51  ;;  %v9993_v9 = vpack.c.bf16 %v1203_v61, %v1202_v60  ;;  %v1241_v51 = vld [vmem:[#allocation5 + $0x2128] sm:$0xff]  ;;  %v1226_v52 = vld [vmem:[#allocation5 + $0x20b0] sm:$0xff] }
 0x221   :  { %9972 = vmatpush3.bf16.msra.mxu1 %v9971_v63  ;;  %v10009_v58 = vpack.c.bf16 %v1227_v53, %v1226_v52  ;;  %v1242_v60 = vld [vmem:[#allocation5 + $0x2130] sm:$0xff] }
 0x222   :  { %9974 = vmatprep.subr.bf16.mxu1 %v9973_v5  ;;  %v1154_v5 = vld [vmem:[#allocation5 + $0x1e70] sm:$0xff] }
 0x223   :  { %9944 = vmatpush3.bf16.msra.mxu0 %v9943_v11  ;;  %v1220_v11 = vld [vmem:[#allocation5 + $0x2080] sm:$0xff]  ;;  %v9963_v15 = vpack.c.bf16 %v1155_v6, %v1154_v5  ;;  %v1250_v52 = vld [vmem:[#allocation5 + $0x2170] sm:$0xff] }
 0x224   :  { %9946 = vmatprep.subr.bf16.mxu0 %v9945_v13  ;;  %v1252_v13 = vld [vmem:[#allocation5 + $0x2180] sm:$0xff] }
 0x225   :  { %9976 = vmatpush3.bf16.msra.mxu1 %v9975_v12  ;;  %v1221_v12 = vld [vmem:[#allocation5 + $0x2088] sm:$0xff] }
 0x226   :  { %9978 = vmatprep.subr.bf16.mxu1 %v9977_v16  ;;  %v9995_v16 = vpack.c.bf16 %v1187_v10, %v1186_v7  ;;  %v9997_v17 = vpack.c.bf16 %v1221_v12, %v1220_v11  ;;  %v1212_v7 = vld [vmem:[#allocation5 + $0x2040] sm:$0xff]  ;;  %v1245_v11 = vld [vmem:[#allocation5 + $0x2148] sm:$0xff]  ;;  %v1230_v12 = vld [vmem:[#allocation5 + $0x20d0] sm:$0xff] }
 0x227   :  { %9948 = vmatpush3.bf16.msra.mxu0 %v9947_v23  ;;  %v1222_v23 = vld [vmem:[#allocation5 + $0x2090] sm:$0xff] }
 0x228   :  { %9950 = vmatprep.subr.bf16.mxu0 %v9949_v25  ;;  %v1254_v25 = vld [vmem:[#allocation5 + $0x2190] sm:$0xff] }
 0x229   :  { %9980 = vmatpush3.bf16.msra.mxu1 %v9979_v24  ;;  %v1223_v24 = vld [vmem:[#allocation5 + $0x2098] sm:$0xff] }
 0x22a   :  { %9982 = vmatprep.subr.bf16.mxu1 %v9981_v29  ;;  %v114_v29 = vld [vmem:[#allocation2 + $0x1f0] sm:$0xff]  ;;  %v10001_v31 = vpack.c.bf16 %v1223_v24, %v1222_v23  ;;  %v1247_v23 = vld [vmem:[#allocation5 + $0x2158] sm:$0xff]  ;;  %v1232_v24 = vld [vmem:[#allocation5 + $0x20e0] sm:$0xff] }
 0x22b   :  { %9952 = vmatpush3.bf16.msra.mxu0 %v9951_v35  ;;  %v10033_v35 = vpack.c.bf16 %v1255_v26, %v1254_v25  ;;  %v1233_v25 = vld [vmem:[#allocation5 + $0x20e8] sm:$0xff]  ;;  %v1264_v26 = vld [vmem:[#allocation5 + $0x21e0] sm:$0xff] }
 0x22c   :  { %9954 = vmatprep.subr.bf16.mxu0 %v9953_v37  ;;  %v1224_v37 = vld [vmem:[#allocation5 + $0x20a0] sm:$0xff] }
 0x22d   :  { %9984 = vmatpush3.bf16.msra.mxu1 %v9983_v36  ;;  %v7325_v54 = vpop.f32.mrb[16].mxu0  ;;  %v1239_v36 = vld [vmem:[#allocation5 + $0x2118] sm:$0xff]  ;;  %v10005_v45 = vpack.c.bf16 %v1225_v38, %v1224_v37  ;;  %v1234_v37 = vld [vmem:[#allocation5 + $0x20f0] sm:$0xff] }
 0x22e   :  { %9986 = vmatprep.subr.bf16.mxu1 %v9985_v41  ;;  %v7326_v59 = vpop.f32.mrb[17].mxu0  ;;  %v117_v41 = vld [vmem:[#allocation2 + $0x208] sm:$0xff]  ;;  %v10035_v44 = vpack.c.bf16 %v1239_v36, %v1238_v34  ;;  %v1235_v38 = vld [vmem:[#allocation5 + $0x20f8] sm:$0xff] }
 0x22f   :  { %v7360_v21 = vpop.f32.mrb[16].mxu1  ;;  %v7327_v62 = vadd.f32 %v7326_v59, %v7325_v54  ;;  %9956 = vmatpush3.bf16.msra.mxu0 %v9955_v48  ;;  %v1209_v48 = vld [vmem:[#allocation5 + $0x2028] sm:$0xff]  ;;  %v1258_v54 = vld [vmem:[#allocation5 + $0x21b0] sm:$0xff] }
 0x230   :  { %v7361_v63 = vpop.f32.mrb[17].mxu1  ;;  %9958 = vmatprep.subr.bf16.mxu0 %v9957_v50  ;;  %v10037_v50 = vpack.c.bf16 %v1257_v2, %v1256_v39  ;;  %v10007_v56 = vpack.c.bf16 %v1209_v48, %v1208_v46  ;;  %v1210_v59 = vld [vmem:[#allocation5 + $0x2030] sm:$0xff]  ;;  %v1249_v36 = vld [vmem:[#allocation5 + $0x2168] sm:$0xff] }
 0x231   :  { %v7362_v1 = vadd.f32 %v7361_v63, %v7360_v21  ;;  %9988 = vmatpush3.bf16.msra.mxu1 %v9987_v49  ;;  %v3422_v8 = vadd.f32 %v7327_v62, %v11204_v47  ;;  %v10029_v47 = vpack.c.bf16 %v1253_v14, %v1252_v13  ;;  %v1240_v49 = vld [vmem:[#allocation5 + $0x2120] sm:$0xff]  ;;  %v1211_v21 = vld [vmem:[#allocation5 + $0x2038] sm:$0xff]  ;;  %v1262_v14 = vld [vmem:[#allocation5 + $0x21d0] sm:$0xff]  ;;  %v10055_v48 = vpack.c.bf16 %v1249_v36, %v1248_v33 }
 0x232   :  { %9990 = vmatprep.subr.bf16.mxu1 %v9989_v55  ;;  %v1259_v55 = vld [vmem:[#allocation5 + $0x21b8] sm:$0xff]  ;;  %v10039_v57 = vpack.c.bf16 %v1241_v51, %v1240_v49  ;;  %v1228_v63 = vld [vmem:[#allocation5 + $0x20c0] sm:$0xff]  ;;  %v10025_v49 = vpack.c.bf16 %v1235_v38, %v1234_v37 }
 0x233   :  { %v11207_v40 = vadd.f32 %v7362_v1, %v3422_v8  ;;  %9960 = vmatpush3.bf16.msra.mxu0 %v9959_v0  ;;  %v10041_v61 = vpack.c.bf16 %v1259_v55, %v1258_v54  ;;  %v1243_v62 = vld [vmem:[#allocation5 + $0x2138] sm:$0xff]  ;;  %v1229_v0 = vld [vmem:[#allocation5 + $0x20c8] sm:$0xff]  ;;  %v1260_v1 = vld [vmem:[#allocation5 + $0x21c0] sm:$0xff] }
 0x234   :  { %9962 = vmatprep.subr.bf16.mxu0 %v9961_v4  ;;  %v10011_v4 = vpack.c.bf16 %v1211_v21, %v1210_v59  ;;  %v10043_v5 = vpack.c.bf16 %v1243_v62, %v1242_v60  ;;  %v10013_v6 = vpack.c.bf16 %v1229_v0, %v1228_v63  ;;  %v1213_v8 = vld [vmem:[#allocation5 + $0x2048] sm:$0xff]  ;;  %v1231_v13 = vld [vmem:[#allocation5 + $0x20d8] sm:$0xff]  ;;  %v1268_v63 = vld [vmem:[#allocation5 + $0x2200] sm:$0xff] }
 0x235   :  { %9992 = vmatpush3.bf16.msra.mxu1 %v9991_v3  ;;  %v1261_v3 = vld [vmem:[#allocation5 + $0x21c8] sm:$0xff]  ;;  %v10017_v18 = vpack.c.bf16 %v1231_v13, %v1230_v12  ;;  %v1219_v51 = vld [vmem:[#allocation5 + $0x2078] sm:$0xff]  ;;  %v1270_v13 = vld [vmem:[#allocation5 + $0x2210] sm:$0xff] }
 0x236   :  { %9994 = vmatprep.subr.bf16.mxu1 %v9993_v9  ;;  %v1244_v9 = vld [vmem:[#allocation5 + $0x2140] sm:$0xff]  ;;  %v10045_v10 = vpack.c.bf16 %v1261_v3, %v1260_v1  ;;  %v1251_v55 = vld [vmem:[#allocation5 + $0x2178] sm:$0xff]  ;;  %v1317_v59 = vld [vmem:[#allocation5 + $0x2388] sm:$0xff] }
 0x237   :  { %9964 = vmatpush3.bf16.msra.mxu0 %v9963_v15  ;;  %v1263_v15 = vld [vmem:[#allocation5 + $0x21d8] sm:$0xff]  ;;  %v1269_v0 = vld [vmem:[#allocation5 + $0x2208] sm:$0xff]  ;;  %v1300_v1 = vld [vmem:[#allocation5 + $0x2300] sm:$0xff] }
 0x238   :  { %9998 = vmatprep.subr.bf16.mxu0 %v9997_v17  ;;  %v10047_v17 = vpack.c.bf16 %v1245_v11, %v1244_v9  ;;  %v10049_v22 = vpack.c.bf16 %v1263_v15, %v1262_v14  ;;  %v1301_v3 = vld [vmem:[#allocation5 + $0x2308] sm:$0xff]  ;;  %v10063_v9 = vpack.c.bf16 %v1269_v0, %v1268_v63  ;;  %v1271_v14 = vld [vmem:[#allocation5 + $0x2218] sm:$0xff]  ;;  %v1302_v15 = vld [vmem:[#allocation5 + $0x2310] sm:$0xff] }
 0x239   :  { %9996 = vmatpush3.bf16.msra.mxu1 %v9995_v16  ;;  %v10015_v16 = vpack.c.bf16 %v1213_v8, %v1212_v7  ;;  %v1319_v7 = vld [vmem:[#allocation5 + $0x2398] sm:$0xff]  ;;  %v116_v8 = vld [vmem:[#allocation2 + $0x200] sm:$0xff]  ;;  %v10095_v11 = vpack.c.bf16 %v1301_v3, %v1300_v1  ;;  %v1278_v0 = vld [vmem:[#allocation5 + $0x2250] sm:$0xff] }
 0x23a   :  { %10030 = vmatprep.subr.bf16.mxu1 %v10029_v47  ;;  %4400 = vmatmul.mubr.f32.vlgmr.msra.gmra.mrb[30].mxu0 %v112_v27  ;;  %v1246_v47 = vld [vmem:[#allocation5 + $0x2150] sm:$0xff]  ;;  %v1265_v27 = vld [vmem:[#allocation5 + $0x21e8] sm:$0xff]  ;;  %v1291_v33 = vld [vmem:[#allocation5 + $0x22b8] sm:$0xff] }
 0x23b   :  { %10000 = vmatpush3.bf16.msra.mxu0 %v9999_v28  ;;  %4539 = vmatprep.mubr.f32.mxu0 %v117_v41  ;;  %v10019_v28 = vpack.c.bf16 %v1215_v20, %v1214_v19  ;;  %v1266_v41 = vld [vmem:[#allocation5 + $0x21f0] sm:$0xff]  ;;  %v1289_v19 = vld [vmem:[#allocation5 + $0x22a8] sm:$0xff]  ;;  %v1320_v20 = vld [vmem:[#allocation5 + $0x23a0] sm:$0xff] }
 0x23c   :  { %4470 = vmatmul.mubr.f32.vlgmr.msra.gmra.mrb[30].mxu1 %v114_v29  ;;  %10002 = vmatprep.subr.bf16.mxu0 %v10001_v31  ;;  %v10051_v29 = vpack.c.bf16 %v1247_v23, %v1246_v47  ;;  %v1216_v31 = vld [vmem:[#allocation5 + $0x2060] sm:$0xff]  ;;  %v1321_v47 = vld [vmem:[#allocation5 + $0x23a8] sm:$0xff]  ;;  %v10067_v23 = vpack.c.bf16 %v1271_v14, %v1270_v13  ;;  %v1279_v1 = vld [vmem:[#allocation5 + $0x2258] sm:$0xff] }
 0x23d   :  { %10032 = vmatpush3.bf16.msra.mxu1 %v10031_v30  ;;  %4609 = vmatprep.mubr.f32.mxu1 %v119_v43  ;;  %v10021_v30 = vpack.c.bf16 %v1233_v25, %v1232_v24  ;;  %v123_v24 = vld [vmem:[#allocation2 + $0x238] sm:$0xff]  ;;  %v1281_v13 = vld [vmem:[#allocation5 + $0x2268] sm:$0xff]  ;;  %v1312_v14 = vld [vmem:[#allocation5 + $0x2360] sm:$0xff] }
 0x23e   :  { %10034 = vmatprep.subr.bf16.mxu1 %v10033_v35  ;;  %v10053_v35 = vpack.c.bf16 %v1265_v27, %v1264_v26  ;;  %v1272_v27 = vld [vmem:[#allocation5 + $0x2220] sm:$0xff] }
 0x23f   :  { %10004 = vmatpush3.bf16.msra.mxu0 %v10003_v42  ;;  %v1267_v42 = vld [vmem:[#allocation5 + $0x21f8] sm:$0xff] }
 0x240   :  { %10006 = vmatprep.subr.bf16.mxu0 %v10005_v45  ;;  %v10023_v45 = vpack.c.bf16 %v1217_v32, %v1216_v31  ;;  %v10057_v54 = vpack.c.bf16 %v1267_v42, %v1266_v41  ;;  %v1305_v31 = vld [vmem:[#allocation5 + $0x2328] sm:$0xff]  ;;  %v1290_v32 = vld [vmem:[#allocation5 + $0x22b0] sm:$0xff] }
 0x241   :  { %10036 = vmatpush3.bf16.msra.mxu1 %v10035_v44  ;;  %v10073_v38 = vpack.c.bf16 %v1291_v33, %v1290_v32  ;;  %v1306_v41 = vld [vmem:[#allocation5 + $0x2330] sm:$0xff] }
 0x242   :  { %10038 = vmatprep.subr.bf16.mxu1 %v10037_v50  ;;  %v1218_v50 = vld [vmem:[#allocation5 + $0x2070] sm:$0xff] }
 0x243   :  { %10008 = vmatpush3.bf16.msra.mxu0 %v10007_v56  ;;  %v1284_v56 = vld [vmem:[#allocation5 + $0x2280] sm:$0xff]  ;;  %v10027_v60 = vpack.c.bf16 %v1219_v51, %v1218_v50  ;;  %v1314_v32 = vld [vmem:[#allocation5 + $0x2370] sm:$0xff] }
 0x244   :  { %10010 = vmatprep.subr.bf16.mxu0 %v10009_v58  ;;  %v1316_v58 = vld [vmem:[#allocation5 + $0x2380] sm:$0xff] }
 0x245   :  { %10040 = vmatpush3.bf16.msra.mxu1 %v10039_v57  ;;  %v1285_v57 = vld [vmem:[#allocation5 + $0x2288] sm:$0xff] }
 0x246   :  { %10042 = vmatprep.subr.bf16.mxu1 %v10041_v61  ;;  %v10059_v61 = vpack.c.bf16 %v1251_v55, %v1250_v52  ;;  %v10061_v62 = vpack.c.bf16 %v1285_v57, %v1284_v56  ;;  %v1276_v52 = vld [vmem:[#allocation5 + $0x2240] sm:$0xff]  ;;  %v1309_v56 = vld [vmem:[#allocation5 + $0x2348] sm:$0xff]  ;;  %v1294_v57 = vld [vmem:[#allocation5 + $0x22d0] sm:$0xff] }
 0x247   :  { %10012 = vmatpush3.bf16.msra.mxu0 %v10011_v4  ;;  %v1286_v4 = vld [vmem:[#allocation5 + $0x2290] sm:$0xff] }
 0x248   :  { %10014 = vmatprep.subr.bf16.mxu0 %v10013_v6  ;;  %v1318_v6 = vld [vmem:[#allocation5 + $0x2390] sm:$0xff] }
 0x249   :  { %10044 = vmatpush3.bf16.msra.mxu1 %v10043_v5  ;;  %v1287_v5 = vld [vmem:[#allocation5 + $0x2298] sm:$0xff] }
 0x24a   :  { %10046 = vmatprep.subr.bf16.mxu1 %v10045_v10  ;;  %v118_v10 = vld [vmem:[#allocation2 + $0x210] sm:$0xff]  ;;  %v10065_v12 = vpack.c.bf16 %v1287_v5, %v1286_v4  ;;  %v1311_v4 = vld [vmem:[#allocation5 + $0x2358] sm:$0xff]  ;;  %v1296_v5 = vld [vmem:[#allocation5 + $0x22e0] sm:$0xff] }
 0x24b   :  { %10016 = vmatpush3.bf16.msra.mxu0 %v10015_v16  ;;  %v10097_v16 = vpack.c.bf16 %v1319_v7, %v1318_v6  ;;  %v1297_v6 = vld [vmem:[#allocation5 + $0x22e8] sm:$0xff]  ;;  %v1328_v7 = vld [vmem:[#allocation5 + $0x23e0] sm:$0xff] }
 0x24c   :  { %10018 = vmatprep.subr.bf16.mxu0 %v10017_v18  ;;  %v1288_v18 = vld [vmem:[#allocation5 + $0x22a0] sm:$0xff] }
 0x24d   :  { %10048 = vmatpush3.bf16.msra.mxu1 %v10047_v17  ;;  %v7395_v34 = vpop.f32.mrb[18].mxu0  ;;  %v1303_v17 = vld [vmem:[#allocation5 + $0x2318] sm:$0xff]  ;;  %v10069_v26 = vpack.c.bf16 %v1289_v19, %v1288_v18  ;;  %v1298_v18 = vld [vmem:[#allocation5 + $0x22f0] sm:$0xff] }
 0x24e   :  { %10050 = vmatprep.subr.bf16.mxu1 %v10049_v22  ;;  %v7396_v39 = vpop.f32.mrb[19].mxu0  ;;  %v121_v22 = vld [vmem:[#allocation2 + $0x228] sm:$0xff]  ;;  %v10099_v25 = vpack.c.bf16 %v1303_v17, %v1302_v15  ;;  %v1299_v19 = vld [vmem:[#allocation5 + $0x22f8] sm:$0xff] }
 0x24f   :  { %v7430_v2 = vpop.f32.mrb[18].mxu1  ;;  %v7397_v43 = vadd.f32 %v7396_v39, %v7395_v34  ;;  %10020 = vmatpush3.bf16.msra.mxu0 %v10019_v28  ;;  %v1273_v28 = vld [vmem:[#allocation5 + $0x2228] sm:$0xff]  ;;  %v1322_v34 = vld [vmem:[#allocation5 + $0x23b0] sm:$0xff] }
 0x250   :  { %v7431_v44 = vpop.f32.mrb[19].mxu1  ;;  %10022 = vmatprep.subr.bf16.mxu0 %v10021_v30  ;;  %v10101_v30 = vpack.c.bf16 %v1321_v47, %v1320_v20  ;;  %v10071_v36 = vpack.c.bf16 %v1273_v28, %v1272_v27  ;;  %v1274_v39 = vld [vmem:[#allocation5 + $0x2230] sm:$0xff]  ;;  %v1313_v17 = vld [vmem:[#allocation5 + $0x2368] sm:$0xff] }
 0x251   :  { %v7432_v46 = vadd.f32 %v7431_v44, %v7430_v2  ;;  %10052 = vmatpush3.bf16.msra.mxu1 %v10051_v29  ;;  %v3562_v53 = vadd.f32 %v7397_v43, %v11207_v40  ;;  %v10093_v40 = vpack.c.bf16 %v1317_v59, %v1316_v58  ;;  %v1304_v29 = vld [vmem:[#allocation5 + $0x2320] sm:$0xff]  ;;  %v1275_v2 = vld [vmem:[#allocation5 + $0x2238] sm:$0xff]  ;;  %v1326_v59 = vld [vmem:[#allocation5 + $0x23d0] sm:$0xff]  ;;  %v10119_v28 = vpack.c.bf16 %v1313_v17, %v1312_v14 }
 0x252   :  { %10054 = vmatprep.subr.bf16.mxu1 %v10053_v35  ;;  %v1323_v35 = vld [vmem:[#allocation5 + $0x23b8] sm:$0xff]  ;;  %v10103_v37 = vpack.c.bf16 %v1305_v31, %v1304_v29  ;;  %v1292_v44 = vld [vmem:[#allocation5 + $0x22c0] sm:$0xff]  ;;  %v10089_v29 = vpack.c.bf16 %v1299_v19, %v1298_v18 }
 0x253   :  { %v11210_v21 = vadd.f32 %v7432_v46, %v3562_v53  ;;  %10024 = vmatpush3.bf16.msra.mxu0 %v10023_v45  ;;  %v10105_v42 = vpack.c.bf16 %v1323_v35, %v1322_v34  ;;  %v1307_v43 = vld [vmem:[#allocation5 + $0x2338] sm:$0xff]  ;;  %v1293_v45 = vld [vmem:[#allocation5 + $0x22c8] sm:$0xff]  ;;  %v1324_v46 = vld [vmem:[#allocation5 + $0x23c0] sm:$0xff] }
 0x254   :  { %10026 = vmatprep.subr.bf16.mxu0 %v10025_v49  ;;  %v10075_v49 = vpack.c.bf16 %v1275_v2, %v1274_v39  ;;  %v10107_v50 = vpack.c.bf16 %v1307_v43, %v1306_v41  ;;  %v10077_v51 = vpack.c.bf16 %v1293_v45, %v1292_v44  ;;  %v1277_v53 = vld [vmem:[#allocation5 + $0x2248] sm:$0xff]  ;;  %v1295_v58 = vld [vmem:[#allocation5 + $0x22d8] sm:$0xff]  ;;  %v1332_v44 = vld [vmem:[#allocation5 + $0x2400] sm:$0xff] }
 0x255   :  { %10056 = vmatpush3.bf16.msra.mxu1 %v10055_v48  ;;  %v1325_v48 = vld [vmem:[#allocation5 + $0x23c8] sm:$0xff]  ;;  %v10081_v63 = vpack.c.bf16 %v1295_v58, %v1294_v57  ;;  %v1283_v31 = vld [vmem:[#allocation5 + $0x2278] sm:$0xff]  ;;  %v1334_v58 = vld [vmem:[#allocation5 + $0x2410] sm:$0xff] }
 0x256   :  { %10058 = vmatprep.subr.bf16.mxu1 %v10057_v54  ;;  %v1308_v54 = vld [vmem:[#allocation5 + $0x2340] sm:$0xff]  ;;  %v10109_v55 = vpack.c.bf16 %v1325_v48, %v1324_v46  ;;  %v1315_v35 = vld [vmem:[#allocation5 + $0x2378] sm:$0xff]  ;;  %v1381_v39 = vld [vmem:[#allocation5 + $0x2588] sm:$0xff] }
 0x257   :  { %10028 = vmatpush3.bf16.msra.mxu0 %v10027_v60  ;;  %v1327_v60 = vld [vmem:[#allocation5 + $0x23d8] sm:$0xff]  ;;  %v1333_v45 = vld [vmem:[#allocation5 + $0x2408] sm:$0xff]  ;;  %v1364_v46 = vld [vmem:[#allocation5 + $0x2500] sm:$0xff] }
 0x258   :  { %10062 = vmatprep.subr.bf16.mxu0 %v10061_v62  ;;  %v10111_v62 = vpack.c.bf16 %v1309_v56, %v1308_v54  ;;  %v10113_v3 = vpack.c.bf16 %v1327_v60, %v1326_v59  ;;  %v1365_v48 = vld [vmem:[#allocation5 + $0x2508] sm:$0xff]  ;;  %v10127_v54 = vpack.c.bf16 %v1333_v45, %v1332_v44  ;;  %v1335_v59 = vld [vmem:[#allocation5 + $0x2418] sm:$0xff]  ;;  %v1366_v60 = vld [vmem:[#allocation5 + $0x2510] sm:$0xff] }
 0x259   :  { %10060 = vmatpush3.bf16.msra.mxu1 %v10059_v61  ;;  %v10079_v61 = vpack.c.bf16 %v1277_v53, %v1276_v52  ;;  %v1383_v52 = vld [vmem:[#allocation5 + $0x2598] sm:$0xff]  ;;  %v120_v53 = vld [vmem:[#allocation2 + $0x220] sm:$0xff]  ;;  %v10159_v56 = vpack.c.bf16 %v1365_v48, %v1364_v46  ;;  %v1342_v45 = vld [vmem:[#allocation5 + $0x2450] sm:$0xff] }
 0x25a   :  { %10094 = vmatprep.subr.bf16.mxu1 %v10093_v40  ;;  %4540 = vmatmul.mubr.f32.vlgmr.msra.gmra.mrb[32].mxu0 %v116_v8  ;;  %v1310_v40 = vld [vmem:[#allocation5 + $0x2350] sm:$0xff]  ;;  %v1329_v8 = vld [vmem:[#allocation5 + $0x23e8] sm:$0xff]  ;;  %v1355_v14 = vld [vmem:[#allocation5 + $0x24b8] sm:$0xff] }
 0x25b   :  { %10064 = vmatpush3.bf16.msra.mxu0 %v10063_v9  ;;  %4679 = vmatprep.mubr.f32.mxu0 %v121_v22  ;;  %v10083_v9 = vpack.c.bf16 %v1279_v1, %v1278_v0  ;;  %v1330_v22 = vld [vmem:[#allocation5 + $0x23f0] sm:$0xff]  ;;  %v1353_v0 = vld [vmem:[#allocation5 + $0x24a8] sm:$0xff]  ;;  %v1384_v1 = vld [vmem:[#allocation5 + $0x25a0] sm:$0xff] }
 0x25c   :  { %4610 = vmatmul.mubr.f32.vlgmr.msra.gmra.mrb[32].mxu1 %v118_v10  ;;  %10066 = vmatprep.subr.bf16.mxu0 %v10065_v12  ;;  %v10115_v10 = vpack.c.bf16 %v1311_v4, %v1310_v40  ;;  %v1280_v12 = vld [vmem:[#allocation5 + $0x2260] sm:$0xff]  ;;  %v1385_v40 = vld [vmem:[#allocation5 + $0x25a8] sm:$0xff]  ;;  %v10131_v4 = vpack.c.bf16 %v1335_v59, %v1334_v58  ;;  %v1343_v46 = vld [vmem:[#allocation5 + $0x2458] sm:$0xff] }
 0x25d   :  { %10096 = vmatpush3.bf16.msra.mxu1 %v10095_v11  ;;  %4749 = vmatprep.mubr.f32.mxu1 %v123_v24  ;;  %v10085_v11 = vpack.c.bf16 %v1297_v6, %v1296_v5  ;;  %v127_v5 = vld [vmem:[#allocation2 + $0x258] sm:$0xff]  ;;  %v1345_v58 = vld [vmem:[#allocation5 + $0x2468] sm:$0xff]  ;;  %v1376_v59 = vld [vmem:[#allocation5 + $0x2560] sm:$0xff] }
 0x25e   :  { %10098 = vmatprep.subr.bf16.mxu1 %v10097_v16  ;;  %v10117_v16 = vpack.c.bf16 %v1329_v8, %v1328_v7  ;;  %v1336_v8 = vld [vmem:[#allocation5 + $0x2420] sm:$0xff] }
 0x25f   :  { %10068 = vmatpush3.bf16.msra.mxu0 %v10067_v23  ;;  %v1331_v23 = vld [vmem:[#allocation5 + $0x23f8] sm:$0xff] }
 0x260   :  { %10070 = vmatprep.subr.bf16.mxu0 %v10069_v26  ;;  %v10087_v26 = vpack.c.bf16 %v1281_v13, %v1280_v12  ;;  %v10121_v34 = vpack.c.bf16 %v1331_v23, %v1330_v22  ;;  %v1369_v12 = vld [vmem:[#allocation5 + $0x2528] sm:$0xff]  ;;  %v1354_v13 = vld [vmem:[#allocation5 + $0x24b0] sm:$0xff] }
 0x261   :  { %10100 = vmatpush3.bf16.msra.mxu1 %v10099_v25  ;;  %v10137_v19 = vpack.c.bf16 %v1355_v14, %v1354_v13  ;;  %v1370_v22 = vld [vmem:[#allocation5 + $0x2530] sm:$0xff] }
 0x262   :  { %10102 = vmatprep.subr.bf16.mxu1 %v10101_v30  ;;  %v1282_v30 = vld [vmem:[#allocation5 + $0x2270] sm:$0xff] }
 0x263   :  { %10072 = vmatpush3.bf16.msra.mxu0 %v10071_v36  ;;  %v1348_v36 = vld [vmem:[#allocation5 + $0x2480] sm:$0xff]  ;;  %v10091_v41 = vpack.c.bf16 %v1283_v31, %v1282_v30  ;;  %v1378_v13 = vld [vmem:[#allocation5 + $0x2570] sm:$0xff] }
 0x264   :  { %10074 = vmatprep.subr.bf16.mxu0 %v10073_v38  ;;  %v1380_v38 = vld [vmem:[#allocation5 + $0x2580] sm:$0xff] }
 0x265   :  { %10104 = vmatpush3.bf16.msra.mxu1 %v10103_v37  ;;  %v1349_v37 = vld [vmem:[#allocation5 + $0x2488] sm:$0xff] }
 0x266   :  { %10106 = vmatprep.subr.bf16.mxu1 %v10105_v42  ;;  %v10123_v42 = vpack.c.bf16 %v1315_v35, %v1314_v32  ;;  %v10125_v43 = vpack.c.bf16 %v1349_v37, %v1348_v36  ;;  %v1340_v32 = vld [vmem:[#allocation5 + $0x2440] sm:$0xff]  ;;  %v1373_v36 = vld [vmem:[#allocation5 + $0x2548] sm:$0xff]  ;;  %v1358_v37 = vld [vmem:[#allocation5 + $0x24d0] sm:$0xff] }
 0x267   :  { %10076 = vmatpush3.bf16.msra.mxu0 %v10075_v49  ;;  %v1350_v49 = vld [vmem:[#allocation5 + $0x2490] sm:$0xff] }
 0x268   :  { %10078 = vmatprep.subr.bf16.mxu0 %v10077_v51  ;;  %v1382_v51 = vld [vmem:[#allocation5 + $0x2590] sm:$0xff] }
 0x269   :  { %10108 = vmatpush3.bf16.msra.mxu1 %v10107_v50  ;;  %v1351_v50 = vld [vmem:[#allocation5 + $0x2498] sm:$0xff] }
 0x26a   :  { %10110 = vmatprep.subr.bf16.mxu1 %v10109_v55  ;;  %v122_v55 = vld [vmem:[#allocation2 + $0x230] sm:$0xff]  ;;  %v10129_v57 = vpack.c.bf16 %v1351_v50, %v1350_v49  ;;  %v1375_v49 = vld [vmem:[#allocation5 + $0x2558] sm:$0xff]  ;;  %v1360_v50 = vld [vmem:[#allocation5 + $0x24e0] sm:$0xff] }
 0x26b   :  { %10080 = vmatpush3.bf16.msra.mxu0 %v10079_v61  ;;  %v10161_v61 = vpack.c.bf16 %v1383_v52, %v1382_v51  ;;  %v1361_v51 = vld [vmem:[#allocation5 + $0x24e8] sm:$0xff]  ;;  %v1392_v52 = vld [vmem:[#allocation5 + $0x25e0] sm:$0xff] }
 0x26c   :  { %10082 = vmatprep.subr.bf16.mxu0 %v10081_v63  ;;  %v1352_v63 = vld [vmem:[#allocation5 + $0x24a0] sm:$0xff] }
 0x26d   :  { %10112 = vmatpush3.bf16.msra.mxu1 %v10111_v62  ;;  %v7465_v15 = vpop.f32.mrb[20].mxu0  ;;  %v1367_v62 = vld [vmem:[#allocation5 + $0x2518] sm:$0xff]  ;;  %v10133_v7 = vpack.c.bf16 %v1353_v0, %v1352_v63  ;;  %v1362_v63 = vld [vmem:[#allocation5 + $0x24f0] sm:$0xff] }
 0x26e   :  { %10114 = vmatprep.subr.bf16.mxu1 %v10113_v3  ;;  %v7466_v20 = vpop.f32.mrb[21].mxu0  ;;  %v125_v3 = vld [vmem:[#allocation2 + $0x248] sm:$0xff]  ;;  %v10163_v6 = vpack.c.bf16 %v1367_v62, %v1366_v60  ;;  %v1363_v0 = vld [vmem:[#allocation5 + $0x24f8] sm:$0xff] }
 0x26f   :  { %v7500_v47 = vpop.f32.mrb[20].mxu1  ;;  %v7467_v24 = vadd.f32 %v7466_v20, %v7465_v15  ;;  %10084 = vmatpush3.bf16.msra.mxu0 %v10083_v9  ;;  %v1337_v9 = vld [vmem:[#allocation5 + $0x2428] sm:$0xff]  ;;  %v1386_v15 = vld [vmem:[#allocation5 + $0x25b0] sm:$0xff] }
 0x270   :  { %v7501_v25 = vpop.f32.mrb[21].mxu1  ;;  %10086 = vmatprep.subr.bf16.mxu0 %v10085_v11  ;;  %v10165_v11 = vpack.c.bf16 %v1385_v40, %v1384_v1  ;;  %v10135_v17 = vpack.c.bf16 %v1337_v9, %v1336_v8  ;;  %v1338_v20 = vld [vmem:[#allocation5 + $0x2430] sm:$0xff]  ;;  %v1377_v62 = vld [vmem:[#allocation5 + $0x2568] sm:$0xff] }
 0x271   :  { %v7502_v27 = vadd.f32 %v7501_v25, %v7500_v47  ;;  %10116 = vmatpush3.bf16.msra.mxu1 %v10115_v10  ;;  %v3702_v33 = vadd.f32 %v7467_v24, %v11210_v21  ;;  %v10157_v21 = vpack.c.bf16 %v1381_v39, %v1380_v38  ;;  %v1368_v10 = vld [vmem:[#allocation5 + $0x2520] sm:$0xff]  ;;  %v1339_v47 = vld [vmem:[#allocation5 + $0x2438] sm:$0xff]  ;;  %v1390_v39 = vld [vmem:[#allocation5 + $0x25d0] sm:$0xff]  ;;  %v10183_v9 = vpack.c.bf16 %v1377_v62, %v1376_v59 }
 0x272   :  { %10118 = vmatprep.subr.bf16.mxu1 %v10117_v16  ;;  %v1387_v16 = vld [vmem:[#allocation5 + $0x25b8] sm:$0xff]  ;;  %v10167_v18 = vpack.c.bf16 %v1369_v12, %v1368_v10  ;;  %v1356_v25 = vld [vmem:[#allocation5 + $0x24c0] sm:$0xff]  ;;  %v10153_v10 = vpack.c.bf16 %v1363_v0, %v1362_v63 }
 0x273   :  { %v11213_v2 = vadd.f32 %v7502_v27, %v3702_v33  ;;  %10088 = vmatpush3.bf16.msra.mxu0 %v10087_v26  ;;  %v10169_v23 = vpack.c.bf16 %v1387_v16, %v1386_v15  ;;  %v1371_v24 = vld [vmem:[#allocation5 + $0x2538] sm:$0xff]  ;;  %v1357_v26 = vld [vmem:[#allocation5 + $0x24c8] sm:$0xff]  ;;  %v1388_v27 = vld [vmem:[#allocation5 + $0x25c0] sm:$0xff] }
 0x274   :  { %10090 = vmatprep.subr.bf16.mxu0 %v10089_v29  ;;  %v10139_v29 = vpack.c.bf16 %v1339_v47, %v1338_v20  ;;  %v10171_v30 = vpack.c.bf16 %v1371_v24, %v1370_v22  ;;  %v10141_v31 = vpack.c.bf16 %v1357_v26, %v1356_v25  ;;  %v1341_v33 = vld [vmem:[#allocation5 + $0x2448] sm:$0xff]  ;;  %v1359_v38 = vld [vmem:[#allocation5 + $0x24d8] sm:$0xff]  ;;  %v1396_v25 = vld [vmem:[#allocation5 + $0x2600] sm:$0xff] }
 0x275   :  { %10120 = vmatpush3.bf16.msra.mxu1 %v10119_v28  ;;  %v1389_v28 = vld [vmem:[#allocation5 + $0x25c8] sm:$0xff]  ;;  %v10145_v44 = vpack.c.bf16 %v1359_v38, %v1358_v37  ;;  %v1347_v12 = vld [vmem:[#allocation5 + $0x2478] sm:$0xff]  ;;  %v1398_v38 = vld [vmem:[#allocation5 + $0x2610] sm:$0xff] }
 0x276   :  { %10122 = vmatprep.subr.bf16.mxu1 %v10121_v34  ;;  %v1372_v34 = vld [vmem:[#allocation5 + $0x2540] sm:$0xff]  ;;  %v10173_v35 = vpack.c.bf16 %v1389_v28, %v1388_v27  ;;  %v1379_v16 = vld [vmem:[#allocation5 + $0x2578] sm:$0xff]  ;;  %v1445_v20 = vld [vmem:[#allocation5 + $0x2788] sm:$0xff] }
 0x277   :  { %10092 = vmatpush3.bf16.msra.mxu0 %v10091_v41  ;;  %v1391_v41 = vld [vmem:[#allocation5 + $0x25d8] sm:$0xff]  ;;  %v1397_v26 = vld [vmem:[#allocation5 + $0x2608] sm:$0xff]  ;;  %v1428_v27 = vld [vmem:[#allocation5 + $0x2700] sm:$0xff] }
 0x278   :  { %10126 = vmatprep.subr.bf16.mxu0 %v10125_v43  ;;  %v10175_v43 = vpack.c.bf16 %v1373_v36, %v1372_v34  ;;  %v10177_v48 = vpack.c.bf16 %v1391_v41, %v1390_v39  ;;  %v1429_v28 = vld [vmem:[#allocation5 + $0x2708] sm:$0xff]  ;;  %v10191_v34 = vpack.c.bf16 %v1397_v26, %v1396_v25  ;;  %v1399_v39 = vld [vmem:[#allocation5 + $0x2618] sm:$0xff]  ;;  %v1430_v41 = vld [vmem:[#allocation5 + $0x2710] sm:$0xff] }
 0x279   :  { %10124 = vmatpush3.bf16.msra.mxu1 %v10123_v42  ;;  %v10143_v42 = vpack.c.bf16 %v1341_v33, %v1340_v32  ;;  %v1447_v32 = vld [vmem:[#allocation5 + $0x2798] sm:$0xff]  ;;  %v124_v33 = vld [vmem:[#allocation2 + $0x240] sm:$0xff]  ;;  %v10223_v36 = vpack.c.bf16 %v1429_v28, %v1428_v27  ;;  %v1406_v26 = vld [vmem:[#allocation5 + $0x2650] sm:$0xff] }
 0x27a   :  { %10158 = vmatprep.subr.bf16.mxu1 %v10157_v21  ;;  %4680 = vmatmul.mubr.f32.vlgmr.msra.gmra.mrb[34].mxu0 %v120_v53  ;;  %v1374_v21 = vld [vmem:[#allocation5 + $0x2550] sm:$0xff]  ;;  %v1393_v53 = vld [vmem:[#allocation5 + $0x25e8] sm:$0xff]  ;;  %v1419_v59 = vld [vmem:[#allocation5 + $0x26b8] sm:$0xff] }
 0x27b   :  { %10128 = vmatpush3.bf16.msra.mxu0 %v10127_v54  ;;  %4819 = vmatprep.mubr.f32.mxu0 %v125_v3  ;;  %v10147_v54 = vpack.c.bf16 %v1343_v46, %v1342_v45  ;;  %v1394_v3 = vld [vmem:[#allocation5 + $0x25f0] sm:$0xff]  ;;  %v1417_v45 = vld [vmem:[#allocation5 + $0x26a8] sm:$0xff]  ;;  %v1448_v46 = vld [vmem:[#allocation5 + $0x27a0] sm:$0xff] }
 0x27c   :  { %4750 = vmatmul.mubr.f32.vlgmr.msra.gmra.mrb[34].mxu1 %v122_v55  ;;  %10130 = vmatprep.subr.bf16.mxu0 %v10129_v57  ;;  %v10179_v55 = vpack.c.bf16 %v1375_v49, %v1374_v21  ;;  %v1344_v57 = vld [vmem:[#allocation5 + $0x2460] sm:$0xff]  ;;  %v1449_v21 = vld [vmem:[#allocation5 + $0x27a8] sm:$0xff]  ;;  %v10195_v49 = vpack.c.bf16 %v1399_v39, %v1398_v38  ;;  %v1407_v27 = vld [vmem:[#allocation5 + $0x2658] sm:$0xff] }
 0x27d   :  { %10160 = vmatpush3.bf16.msra.mxu1 %v10159_v56  ;;  %4889 = vmatprep.mubr.f32.mxu1 %v127_v5  ;;  %v10149_v56 = vpack.c.bf16 %v1361_v51, %v1360_v50  ;;  %v131_v50 = vld [vmem:[#allocation2 + $0x278] sm:$0xff]  ;;  %v1409_v38 = vld [vmem:[#allocation5 + $0x2668] sm:$0xff]  ;;  %v1440_v39 = vld [vmem:[#allocation5 + $0x2760] sm:$0xff] }
 0x27e   :  { %10162 = vmatprep.subr.bf16.mxu1 %v10161_v61  ;;  %v10181_v61 = vpack.c.bf16 %v1393_v53, %v1392_v52  ;;  %v1400_v53 = vld [vmem:[#allocation5 + $0x2620] sm:$0xff] }
 0x27f   :  { %10132 = vmatpush3.bf16.msra.mxu0 %v10131_v4  ;;  %v1395_v4 = vld [vmem:[#allocation5 + $0x25f8] sm:$0xff] }
 0x280   :  { %10134 = vmatprep.subr.bf16.mxu0 %v10133_v7  ;;  %v10151_v7 = vpack.c.bf16 %v1345_v58, %v1344_v57  ;;  %v10185_v15 = vpack.c.bf16 %v1395_v4, %v1394_v3  ;;  %v1433_v57 = vld [vmem:[#allocation5 + $0x2728] sm:$0xff]  ;;  %v1418_v58 = vld [vmem:[#allocation5 + $0x26b0] sm:$0xff] }
 0x281   :  { %10164 = vmatpush3.bf16.msra.mxu1 %v10163_v6  ;;  %v10201_v0 = vpack.c.bf16 %v1419_v59, %v1418_v58  ;;  %v1434_v3 = vld [vmem:[#allocation5 + $0x2730] sm:$0xff] }
 0x282   :  { %10166 = vmatprep.subr.bf16.mxu1 %v10165_v11  ;;  %v1346_v11 = vld [vmem:[#allocation5 + $0x2470] sm:$0xff] }
 0x283   :  { %10136 = vmatpush3.bf16.msra.mxu0 %v10135_v17  ;;  %v1412_v17 = vld [vmem:[#allocation5 + $0x2680] sm:$0xff]  ;;  %v10155_v22 = vpack.c.bf16 %v1347_v12, %v1346_v11  ;;  %v1442_v58 = vld [vmem:[#allocation5 + $0x2770] sm:$0xff] }
 0x284   :  { %10138 = vmatprep.subr.bf16.mxu0 %v10137_v19  ;;  %v1444_v19 = vld [vmem:[#allocation5 + $0x2780] sm:$0xff] }
 0x285   :  { %10168 = vmatpush3.bf16.msra.mxu1 %v10167_v18  ;;  %v1413_v18 = vld [vmem:[#allocation5 + $0x2688] sm:$0xff] }
 0x286   :  { %10170 = vmatprep.subr.bf16.mxu1 %v10169_v23  ;;  %v10187_v23 = vpack.c.bf16 %v1379_v16, %v1378_v13  ;;  %v10189_v24 = vpack.c.bf16 %v1413_v18, %v1412_v17  ;;  %v1404_v13 = vld [vmem:[#allocation5 + $0x2640] sm:$0xff]  ;;  %v1437_v17 = vld [vmem:[#allocation5 + $0x2748] sm:$0xff]  ;;  %v1422_v18 = vld [vmem:[#allocation5 + $0x26d0] sm:$0xff] }
 0x287   :  { %10140 = vmatpush3.bf16.msra.mxu0 %v10139_v29  ;;  %v1414_v29 = vld [vmem:[#allocation5 + $0x2690] sm:$0xff] }
 0x288   :  { %10142 = vmatprep.subr.bf16.mxu0 %v10141_v31  ;;  %v1446_v31 = vld [vmem:[#allocation5 + $0x2790] sm:$0xff] }
 0x289   :  { %10172 = vmatpush3.bf16.msra.mxu1 %v10171_v30  ;;  %v1415_v30 = vld [vmem:[#allocation5 + $0x2698] sm:$0xff] }
 0x28a   :  { %10174 = vmatprep.subr.bf16.mxu1 %v10173_v35  ;;  %v126_v35 = vld [vmem:[#allocation2 + $0x250] sm:$0xff]  ;;  %v10193_v37 = vpack.c.bf16 %v1415_v30, %v1414_v29  ;;  %v1439_v29 = vld [vmem:[#allocation5 + $0x2758] sm:$0xff]  ;;  %v1424_v30 = vld [vmem:[#allocation5 + $0x26e0] sm:$0xff] }
 0x28b   :  { %10144 = vmatpush3.bf16.msra.mxu0 %v10143_v42  ;;  %v10225_v42 = vpack.c.bf16 %v1447_v32, %v1446_v31  ;;  %v1425_v31 = vld [vmem:[#allocation5 + $0x26e8] sm:$0xff]  ;;  %v1456_v32 = vld [vmem:[#allocation5 + $0x27e0] sm:$0xff] }
 0x28c   :  { %10146 = vmatprep.subr.bf16.mxu0 %v10145_v44  ;;  %v1416_v44 = vld [vmem:[#allocation5 + $0x26a0] sm:$0xff] }
 0x28d   :  { %10176 = vmatpush3.bf16.msra.mxu1 %v10175_v43  ;;  %v7535_v60 = vpop.f32.mrb[22].mxu0  ;;  %v1431_v43 = vld [vmem:[#allocation5 + $0x2718] sm:$0xff]  ;;  %v10197_v52 = vpack.c.bf16 %v1417_v45, %v1416_v44  ;;  %v1426_v44 = vld [vmem:[#allocation5 + $0x26f0] sm:$0xff] }
 0x28e   :  { %10178 = vmatprep.subr.bf16.mxu1 %v10177_v48  ;;  %v7536_v1 = vpop.f32.mrb[23].mxu0  ;;  %v129_v48 = vld [vmem:[#allocation2 + $0x268] sm:$0xff]  ;;  %v10227_v51 = vpack.c.bf16 %v1431_v43, %v1430_v41  ;;  %v1427_v45 = vld [vmem:[#allocation5 + $0x26f8] sm:$0xff] }
 0x28f   :  { %v7570_v40 = vpop.f32.mrb[22].mxu1  ;;  %v7537_v5 = vadd.f32 %v7536_v1, %v7535_v60  ;;  %10148 = vmatpush3.bf16.msra.mxu0 %v10147_v54  ;;  %v1401_v54 = vld [vmem:[#allocation5 + $0x2628] sm:$0xff]  ;;  %v1450_v60 = vld [vmem:[#allocation5 + $0x27b0] sm:$0xff] }
 0x290   :  { %v7571_v6 = vpop.f32.mrb[23].mxu1  ;;  %10150 = vmatprep.subr.bf16.mxu0 %v10149_v56  ;;  %v10229_v56 = vpack.c.bf16 %v1449_v21, %v1448_v46  ;;  %v10199_v62 = vpack.c.bf16 %v1401_v54, %v1400_v53  ;;  %v1402_v1 = vld [vmem:[#allocation5 + $0x2630] sm:$0xff]  ;;  %v1441_v43 = vld [vmem:[#allocation5 + $0x2768] sm:$0xff] }
 0x291   :  { %v7572_v8 = vadd.f32 %v7571_v6, %v7570_v40  ;;  %10180 = vmatpush3.bf16.msra.mxu1 %v10179_v55  ;;  %v3842_v14 = vadd.f32 %v7537_v5, %v11213_v2  ;;  %v10221_v2 = vpack.c.bf16 %v1445_v20, %v1444_v19  ;;  %v1432_v55 = vld [vmem:[#allocation5 + $0x2720] sm:$0xff]  ;;  %v1403_v40 = vld [vmem:[#allocation5 + $0x2638] sm:$0xff]  ;;  %v1454_v20 = vld [vmem:[#allocation5 + $0x27d0] sm:$0xff]  ;;  %v10247_v54 = vpack.c.bf16 %v1441_v43, %v1440_v39 }
 0x292   :  { %10182 = vmatprep.subr.bf16.mxu1 %v10181_v61  ;;  %v1451_v61 = vld [vmem:[#allocation5 + $0x27b8] sm:$0xff]  ;;  %v10231_v63 = vpack.c.bf16 %v1433_v57, %v1432_v55  ;;  %v1420_v6 = vld [vmem:[#allocation5 + $0x26c0] sm:$0xff]  ;;  %v10217_v55 = vpack.c.bf16 %v1427_v45, %v1426_v44 }
 0x293   :  { %v11216_v47 = vadd.f32 %v7572_v8, %v3842_v14  ;;  %10152 = vmatpush3.bf16.msra.mxu0 %v10151_v7  ;;  %v10233_v4 = vpack.c.bf16 %v1451_v61, %v1450_v60  ;;  %v1435_v5 = vld [vmem:[#allocation5 + $0x2738] sm:$0xff]  ;;  %v1421_v7 = vld [vmem:[#allocation5 + $0x26c8] sm:$0xff]  ;;  %v1452_v8 = vld [vmem:[#allocation5 + $0x27c0] sm:$0xff] }
 0x294   :  { %10154 = vmatprep.subr.bf16.mxu0 %v10153_v10  ;;  %v10203_v10 = vpack.c.bf16 %v1403_v40, %v1402_v1  ;;  %v10235_v11 = vpack.c.bf16 %v1435_v5, %v1434_v3  ;;  %v10205_v12 = vpack.c.bf16 %v1421_v7, %v1420_v6  ;;  %v1405_v14 = vld [vmem:[#allocation5 + $0x2648] sm:$0xff]  ;;  %v1423_v19 = vld [vmem:[#allocation5 + $0x26d8] sm:$0xff]  ;;  %v1460_v6 = vld [vmem:[#allocation5 + $0x2800] sm:$0xff] }
 0x295   :  { %10184 = vmatpush3.bf16.msra.mxu1 %v10183_v9  ;;  %v1453_v9 = vld [vmem:[#allocation5 + $0x27c8] sm:$0xff]  ;;  %v10209_v25 = vpack.c.bf16 %v1423_v19, %v1422_v18  ;;  %v1411_v57 = vld [vmem:[#allocation5 + $0x2678] sm:$0xff]  ;;  %v1462_v19 = vld [vmem:[#allocation5 + $0x2810] sm:$0xff] }
 0x296   :  { %10186 = vmatprep.subr.bf16.mxu1 %v10185_v15  ;;  %v1436_v15 = vld [vmem:[#allocation5 + $0x2740] sm:$0xff]  ;;  %v10237_v16 = vpack.c.bf16 %v1453_v9, %v1452_v8  ;;  %v1443_v61 = vld [vmem:[#allocation5 + $0x2778] sm:$0xff]  ;;  %v1509_v1 = vld [vmem:[#allocation5 + $0x2988] sm:$0xff] }
 0x297   :  { %10156 = vmatpush3.bf16.msra.mxu0 %v10155_v22  ;;  %v1455_v22 = vld [vmem:[#allocation5 + $0x27d8] sm:$0xff]  ;;  %v1461_v7 = vld [vmem:[#allocation5 + $0x2808] sm:$0xff]  ;;  %v1492_v8 = vld [vmem:[#allocation5 + $0x2900] sm:$0xff] }
 0x298   :  { %10190 = vmatprep.subr.bf16.mxu0 %v10189_v24  ;;  %v10239_v24 = vpack.c.bf16 %v1437_v17, %v1436_v15  ;;  %v10241_v28 = vpack.c.bf16 %v1455_v22, %v1454_v20  ;;  %v1493_v9 = vld [vmem:[#allocation5 + $0x2908] sm:$0xff]  ;;  %v10255_v15 = vpack.c.bf16 %v1461_v7, %v1460_v6  ;;  %v1463_v20 = vld [vmem:[#allocation5 + $0x2818] sm:$0xff]  ;;  %v1494_v22 = vld [vmem:[#allocation5 + $0x2910] sm:$0xff] }
 0x299   :  { %10188 = vmatpush3.bf16.msra.mxu1 %v10187_v23  ;;  %v10207_v23 = vpack.c.bf16 %v1405_v14, %v1404_v13  ;;  %v1511_v13 = vld [vmem:[#allocation5 + $0x2998] sm:$0xff]  ;;  %v128_v14 = vld [vmem:[#allocation2 + $0x260] sm:$0xff]  ;;  %v10287_v17 = vpack.c.bf16 %v1493_v9, %v1492_v8  ;;  %v1470_v7 = vld [vmem:[#allocation5 + $0x2850] sm:$0xff] }
 0x29a   :  { %10222 = vmatprep.subr.bf16.mxu1 %v10221_v2  ;;  %4820 = vmatmul.mubr.f32.vlgmr.msra.gmra.mrb[36].mxu0 %v124_v33  ;;  %v1438_v2 = vld [vmem:[#allocation5 + $0x2750] sm:$0xff]  ;;  %v1457_v33 = vld [vmem:[#allocation5 + $0x27e8] sm:$0xff]  ;;  %v1483_v39 = vld [vmem:[#allocation5 + $0x28b8] sm:$0xff] }
 0x29b   :  { %10192 = vmatpush3.bf16.msra.mxu0 %v10191_v34  ;;  %4959 = vmatprep.mubr.f32.mxu0 %v129_v48  ;;  %v10211_v34 = vpack.c.bf16 %v1407_v27, %v1406_v26  ;;  %v1458_v48 = vld [vmem:[#allocation5 + $0x27f0] sm:$0xff]  ;;  %v1481_v26 = vld [vmem:[#allocation5 + $0x28a8] sm:$0xff]  ;;  %v1512_v27 = vld [vmem:[#allocation5 + $0x29a0] sm:$0xff] }
 0x29c   :  { %4890 = vmatmul.mubr.f32.vlgmr.msra.gmra.mrb[36].mxu1 %v126_v35  ;;  %10194 = vmatprep.subr.bf16.mxu0 %v10193_v37  ;;  %v10243_v35 = vpack.c.bf16 %v1439_v29, %v1438_v2  ;;  %v1408_v37 = vld [vmem:[#allocation5 + $0x2660] sm:$0xff]  ;;  %v1513_v2 = vld [vmem:[#allocation5 + $0x29a8] sm:$0xff]  ;;  %v10259_v29 = vpack.c.bf16 %v1463_v20, %v1462_v19  ;;  %v1471_v8 = vld [vmem:[#allocation5 + $0x2858] sm:$0xff] }
 0x29d   :  { %10224 = vmatpush3.bf16.msra.mxu1 %v10223_v36  ;;  %5029 = vmatprep.mubr.f32.mxu1 %v131_v50  ;;  %v10213_v36 = vpack.c.bf16 %v1425_v31, %v1424_v30  ;;  %v135_v30 = vld [vmem:[#allocation2 + $0x298] sm:$0xff]  ;;  %v1473_v19 = vld [vmem:[#allocation5 + $0x2868] sm:$0xff]  ;;  %v1504_v20 = vld [vmem:[#allocation5 + $0x2960] sm:$0xff] }
 0x29e   :  { %10226 = vmatprep.subr.bf16.mxu1 %v10225_v42  ;;  %v10245_v42 = vpack.c.bf16 %v1457_v33, %v1456_v32  ;;  %v1464_v33 = vld [vmem:[#allocation5 + $0x2820] sm:$0xff] }
 0x29f   :  { %10196 = vmatpush3.bf16.msra.mxu0 %v10195_v49  ;;  %v1459_v49 = vld [vmem:[#allocation5 + $0x27f8] sm:$0xff] }
 0x2a0   :  { %10198 = vmatprep.subr.bf16.mxu0 %v10197_v52  ;;  %v10215_v52 = vpack.c.bf16 %v1409_v38, %v1408_v37  ;;  %v10249_v60 = vpack.c.bf16 %v1459_v49, %v1458_v48  ;;  %v1497_v37 = vld [vmem:[#allocation5 + $0x2928] sm:$0xff]  ;;  %v1482_v38 = vld [vmem:[#allocation5 + $0x28b0] sm:$0xff] }
 0x2a1   :  { %10228 = vmatpush3.bf16.msra.mxu1 %v10227_v51  ;;  %v10265_v45 = vpack.c.bf16 %v1483_v39, %v1482_v38  ;;  %v1498_v48 = vld [vmem:[#allocation5 + $0x2930] sm:$0xff] }
 0x2a2   :  { %10230 = vmatprep.subr.bf16.mxu1 %v10229_v56  ;;  %v1410_v56 = vld [vmem:[#allocation5 + $0x2670] sm:$0xff] }
 0x2a3   :  { %10200 = vmatpush3.bf16.msra.mxu0 %v10199_v62  ;;  %v1476_v62 = vld [vmem:[#allocation5 + $0x2880] sm:$0xff]  ;;  %v10219_v3 = vpack.c.bf16 %v1411_v57, %v1410_v56  ;;  %v1506_v38 = vld [vmem:[#allocation5 + $0x2970] sm:$0xff] }
 0x2a4   :  { %10202 = vmatprep.subr.bf16.mxu0 %v10201_v0  ;;  %v1508_v0 = vld [vmem:[#allocation5 + $0x2980] sm:$0xff] }
 0x2a5   :  { %10232 = vmatpush3.bf16.msra.mxu1 %v10231_v63  ;;  %v1477_v63 = vld [vmem:[#allocation5 + $0x2888] sm:$0xff] }
 0x2a6   :  { %10234 = vmatprep.subr.bf16.mxu1 %v10233_v4  ;;  %v10251_v4 = vpack.c.bf16 %v1443_v61, %v1442_v58  ;;  %v10253_v5 = vpack.c.bf16 %v1477_v63, %v1476_v62  ;;  %v1468_v58 = vld [vmem:[#allocation5 + $0x2840] sm:$0xff]  ;;  %v1501_v62 = vld [vmem:[#allocation5 + $0x2948] sm:$0xff]  ;;  %v1486_v63 = vld [vmem:[#allocation5 + $0x28d0] sm:$0xff] }
 0x2a7   :  { %10204 = vmatpush3.bf16.msra.mxu0 %v10203_v10  ;;  %v1478_v10 = vld [vmem:[#allocation5 + $0x2890] sm:$0xff] }
 0x2a8   :  { %10206 = vmatprep.subr.bf16.mxu0 %v10205_v12  ;;  %v1510_v12 = vld [vmem:[#allocation5 + $0x2990] sm:$0xff] }
 0x2a9   :  { %10236 = vmatpush3.bf16.msra.mxu1 %v10235_v11  ;;  %v1479_v11 = vld [vmem:[#allocation5 + $0x2898] sm:$0xff] }
 0x2aa   :  { %10238 = vmatprep.subr.bf16.mxu1 %v10237_v16  ;;  %v130_v16 = vld [vmem:[#allocation2 + $0x270] sm:$0xff]  ;;  %v10257_v18 = vpack.c.bf16 %v1479_v11, %v1478_v10  ;;  %v1503_v10 = vld [vmem:[#allocation5 + $0x2958] sm:$0xff]  ;;  %v1488_v11 = vld [vmem:[#allocation5 + $0x28e0] sm:$0xff] }
 0x2ab   :  { %10208 = vmatpush3.bf16.msra.mxu0 %v10207_v23  ;;  %v10289_v23 = vpack.c.bf16 %v1511_v13, %v1510_v12  ;;  %v1489_v12 = vld [vmem:[#allocation5 + $0x28e8] sm:$0xff]  ;;  %v1520_v13 = vld [vmem:[#allocation5 + $0x29e0] sm:$0xff] }
 0x2ac   :  { %10210 = vmatprep.subr.bf16.mxu0 %v10209_v25  ;;  %v1480_v25 = vld [vmem:[#allocation5 + $0x28a0] sm:$0xff] }
 0x2ad   :  { %10240 = vmatpush3.bf16.msra.mxu1 %v10239_v24  ;;  %v7605_v41 = vpop.f32.mrb[24].mxu0  ;;  %v1495_v24 = vld [vmem:[#allocation5 + $0x2918] sm:$0xff]  ;;  %v10261_v32 = vpack.c.bf16 %v1481_v26, %v1480_v25  ;;  %v1490_v25 = vld [vmem:[#allocation5 + $0x28f0] sm:$0xff] }
 0x2ae   :  { %10242 = vmatprep.subr.bf16.mxu1 %v10241_v28  ;;  %v7606_v46 = vpop.f32.mrb[25].mxu0  ;;  %v133_v28 = vld [vmem:[#allocation2 + $0x288] sm:$0xff]  ;;  %v10291_v31 = vpack.c.bf16 %v1495_v24, %v1494_v22  ;;  %v1491_v26 = vld [vmem:[#allocation5 + $0x28f8] sm:$0xff] }
 0x2af   :  { %v7640_v21 = vpop.f32.mrb[24].mxu1  ;;  %v7607_v50 = vadd.f32 %v7606_v46, %v7605_v41  ;;  %10212 = vmatpush3.bf16.msra.mxu0 %v10211_v34  ;;  %v1465_v34 = vld [vmem:[#allocation5 + $0x2828] sm:$0xff]  ;;  %v1514_v41 = vld [vmem:[#allocation5 + $0x29b0] sm:$0xff] }
 0x2b0   :  { %v7641_v51 = vpop.f32.mrb[25].mxu1  ;;  %10214 = vmatprep.subr.bf16.mxu0 %v10213_v36  ;;  %v10293_v36 = vpack.c.bf16 %v1513_v2, %v1512_v27  ;;  %v10263_v43 = vpack.c.bf16 %v1465_v34, %v1464_v33  ;;  %v1466_v46 = vld [vmem:[#allocation5 + $0x2830] sm:$0xff]  ;;  %v1505_v24 = vld [vmem:[#allocation5 + $0x2968] sm:$0xff] }
 0x2b1   :  { %v7642_v53 = vadd.f32 %v7641_v51, %v7640_v21  ;;  %10244 = vmatpush3.bf16.msra.mxu1 %v10243_v35  ;;  %v3982_v59 = vadd.f32 %v7607_v50, %v11216_v47  ;;  %v10285_v47 = vpack.c.bf16 %v1509_v1, %v1508_v0  ;;  %v1496_v35 = vld [vmem:[#allocation5 + $0x2920] sm:$0xff]  ;;  %v1467_v21 = vld [vmem:[#allocation5 + $0x2838] sm:$0xff]  ;;  %v1518_v1 = vld [vmem:[#allocation5 + $0x29d0] sm:$0xff]  ;;  %v10311_v34 = vpack.c.bf16 %v1505_v24, %v1504_v20 }
 0x2b2   :  { %10246 = vmatprep.subr.bf16.mxu1 %v10245_v42  ;;  %v1515_v42 = vld [vmem:[#allocation5 + $0x29b8] sm:$0xff]  ;;  %v10295_v44 = vpack.c.bf16 %v1497_v37, %v1496_v35  ;;  %v1484_v51 = vld [vmem:[#allocation5 + $0x28c0] sm:$0xff]  ;;  %v10281_v35 = vpack.c.bf16 %v1491_v26, %v1490_v25 }
 0x2b3   :  { %v11219_v40 = vadd.f32 %v7642_v53, %v3982_v59  ;;  %10216 = vmatpush3.bf16.msra.mxu0 %v10215_v52  ;;  %v10297_v49 = vpack.c.bf16 %v1515_v42, %v1514_v41  ;;  %v1499_v50 = vld [vmem:[#allocation5 + $0x2938] sm:$0xff]  ;;  %v1485_v52 = vld [vmem:[#allocation5 + $0x28c8] sm:$0xff]  ;;  %v1516_v53 = vld [vmem:[#allocation5 + $0x29c0] sm:$0xff] }
 0x2b4   :  { %10218 = vmatprep.subr.bf16.mxu0 %v10217_v55  ;;  %v10267_v55 = vpack.c.bf16 %v1467_v21, %v1466_v46  ;;  %v10299_v56 = vpack.c.bf16 %v1499_v50, %v1498_v48  ;;  %v10269_v57 = vpack.c.bf16 %v1485_v52, %v1484_v51  ;;  %v1469_v59 = vld [vmem:[#allocation5 + $0x2848] sm:$0xff]  ;;  %v1487_v0 = vld [vmem:[#allocation5 + $0x28d8] sm:$0xff]  ;;  %v1524_v51 = vld [vmem:[#allocation5 + $0x2a00] sm:$0xff] }
 0x2b5   :  { %10248 = vmatpush3.bf16.msra.mxu1 %v10247_v54  ;;  %v1517_v54 = vld [vmem:[#allocation5 + $0x29c8] sm:$0xff]  ;;  %v10273_v6 = vpack.c.bf16 %v1487_v0, %v1486_v63  ;;  %v1475_v37 = vld [vmem:[#allocation5 + $0x2878] sm:$0xff]  ;;  %v1526_v0 = vld [vmem:[#allocation5 + $0x2a10] sm:$0xff] }
 0x2b6   :  { %10250 = vmatprep.subr.bf16.mxu1 %v10249_v60  ;;  %v1500_v60 = vld [vmem:[#allocation5 + $0x2940] sm:$0xff]  ;;  %v10301_v61 = vpack.c.bf16 %v1517_v54, %v1516_v53  ;;  %v1507_v42 = vld [vmem:[#allocation5 + $0x2978] sm:$0xff]  ;;  %v1573_v46 = vld [vmem:[#allocation5 + $0x2b88] sm:$0xff] }
 0x2b7   :  { %10220 = vmatpush3.bf16.msra.mxu0 %v10219_v3  ;;  %v1519_v3 = vld [vmem:[#allocation5 + $0x29d8] sm:$0xff]  ;;  %v1525_v52 = vld [vmem:[#allocation5 + $0x2a08] sm:$0xff]  ;;  %v1556_v53 = vld [vmem:[#allocation5 + $0x2b00] sm:$0xff] }
 0x2b8   :  { %10254 = vmatprep.subr.bf16.mxu0 %v10253_v5  ;;  %v10303_v5 = vpack.c.bf16 %v1501_v62, %v1500_v60  ;;  %v10305_v9 = vpack.c.bf16 %v1519_v3, %v1518_v1  ;;  %v1557_v54 = vld [vmem:[#allocation5 + $0x2b08] sm:$0xff]  ;;  %v10319_v60 = vpack.c.bf16 %v1525_v52, %v1524_v51  ;;  %v1527_v1 = vld [vmem:[#allocation5 + $0x2a18] sm:$0xff]  ;;  %v1558_v3 = vld [vmem:[#allocation5 + $0x2b10] sm:$0xff] }
 0x2b9   :  { %10252 = vmatpush3.bf16.msra.mxu1 %v10251_v4  ;;  %v10271_v4 = vpack.c.bf16 %v1469_v59, %v1468_v58  ;;  %v1575_v58 = vld [vmem:[#allocation5 + $0x2b98] sm:$0xff]  ;;  %v132_v59 = vld [vmem:[#allocation2 + $0x280] sm:$0xff]  ;;  %v10351_v62 = vpack.c.bf16 %v1557_v54, %v1556_v53  ;;  %v1534_v52 = vld [vmem:[#allocation5 + $0x2a50] sm:$0xff] }
 0x2ba   :  { %10286 = vmatprep.subr.bf16.mxu1 %v10285_v47  ;;  %4960 = vmatmul.mubr.f32.vlgmr.msra.gmra.mrb[38].mxu0 %v128_v14  ;;  %v1502_v47 = vld [vmem:[#allocation5 + $0x2950] sm:$0xff]  ;;  %v1521_v14 = vld [vmem:[#allocation5 + $0x29e8] sm:$0xff]  ;;  %v1547_v20 = vld [vmem:[#allocation5 + $0x2ab8] sm:$0xff] }
 0x2bb   :  { %10256 = vmatpush3.bf16.msra.mxu0 %v10255_v15  ;;  %5099 = vmatprep.mubr.f32.mxu0 %v133_v28  ;;  %v10275_v15 = vpack.c.bf16 %v1471_v8, %v1470_v7  ;;  %v1522_v28 = vld [vmem:[#allocation5 + $0x29f0] sm:$0xff]  ;;  %v1545_v7 = vld [vmem:[#allocation5 + $0x2aa8] sm:$0xff]  ;;  %v1576_v8 = vld [vmem:[#allocation5 + $0x2ba0] sm:$0xff] }
 0x2bc   :  { %5030 = vmatmul.mubr.f32.vlgmr.msra.gmra.mrb[38].mxu1 %v130_v16  ;;  %10258 = vmatprep.subr.bf16.mxu0 %v10257_v18  ;;  %v10307_v16 = vpack.c.bf16 %v1503_v10, %v1502_v47  ;;  %v1472_v18 = vld [vmem:[#allocation5 + $0x2860] sm:$0xff]  ;;  %v1577_v47 = vld [vmem:[#allocation5 + $0x2ba8] sm:$0xff]  ;;  %v10323_v10 = vpack.c.bf16 %v1527_v1, %v1526_v0  ;;  %v1535_v53 = vld [vmem:[#allocation5 + $0x2a58] sm:$0xff] }
 0x2bd   :  { %10288 = vmatpush3.bf16.msra.mxu1 %v10287_v17  ;;  %5169 = vmatprep.mubr.f32.mxu1 %v135_v30  ;;  %v10277_v17 = vpack.c.bf16 %v1489_v12, %v1488_v11  ;;  %v139_v11 = vld [vmem:[#allocation2 + $0x2b8] sm:$0xff]  ;;  %v1537_v0 = vld [vmem:[#allocation5 + $0x2a68] sm:$0xff]  ;;  %v1568_v1 = vld [vmem:[#allocation5 + $0x2b60] sm:$0xff] }
 0x2be   :  { %10290 = vmatprep.subr.bf16.mxu1 %v10289_v23  ;;  %v10309_v23 = vpack.c.bf16 %v1521_v14, %v1520_v13  ;;  %v1528_v14 = vld [vmem:[#allocation5 + $0x2a20] sm:$0xff] }
 0x2bf   :  { %10260 = vmatpush3.bf16.msra.mxu0 %v10259_v29  ;;  %v1523_v29 = vld [vmem:[#allocation5 + $0x29f8] sm:$0xff] }
 0x2c0   :  { %10262 = vmatprep.subr.bf16.mxu0 %v10261_v32  ;;  %v10279_v32 = vpack.c.bf16 %v1473_v19, %v1472_v18  ;;  %v10313_v41 = vpack.c.bf16 %v1523_v29, %v1522_v28  ;;  %v1561_v18 = vld [vmem:[#allocation5 + $0x2b28] sm:$0xff]  ;;  %v1546_v19 = vld [vmem:[#allocation5 + $0x2ab0] sm:$0xff] }
 0x2c1   :  { %10292 = vmatpush3.bf16.msra.mxu1 %v10291_v31  ;;  %v10329_v26 = vpack.c.bf16 %v1547_v20, %v1546_v19  ;;  %v1562_v28 = vld [vmem:[#allocation5 + $0x2b30] sm:$0xff] }
 0x2c2   :  { %10294 = vmatprep.subr.bf16.mxu1 %v10293_v36  ;;  %v1474_v36 = vld [vmem:[#allocation5 + $0x2870] sm:$0xff] }
 0x2c3   :  { %10264 = vmatpush3.bf16.msra.mxu0 %v10263_v43  ;;  %v1540_v43 = vld [vmem:[#allocation5 + $0x2a80] sm:$0xff]  ;;  %v10283_v48 = vpack.c.bf16 %v1475_v37, %v1474_v36  ;;  %v1570_v19 = vld [vmem:[#allocation5 + $0x2b70] sm:$0xff] }
 0x2c4   :  { %10266 = vmatprep.subr.bf16.mxu0 %v10265_v45  ;;  %v1572_v45 = vld [vmem:[#allocation5 + $0x2b80] sm:$0xff] }
 0x2c5   :  { %10296 = vmatpush3.bf16.msra.mxu1 %v10295_v44  ;;  %v1541_v44 = vld [vmem:[#allocation5 + $0x2a88] sm:$0xff] }
 0x2c6   :  { %10298 = vmatprep.subr.bf16.mxu1 %v10297_v49  ;;  %v10315_v49 = vpack.c.bf16 %v1507_v42, %v1506_v38  ;;  %v10317_v50 = vpack.c.bf16 %v1541_v44, %v1540_v43  ;;  %v1532_v38 = vld [vmem:[#allocation5 + $0x2a40] sm:$0xff]  ;;  %v1565_v43 = vld [vmem:[#allocation5 + $0x2b48] sm:$0xff]  ;;  %v1550_v44 = vld [vmem:[#allocation5 + $0x2ad0] sm:$0xff] }
 0x2c7   :  { %10268 = vmatpush3.bf16.msra.mxu0 %v10267_v55  ;;  %v1542_v55 = vld [vmem:[#allocation5 + $0x2a90] sm:$0xff] }
 0x2c8   :  { %10270 = vmatprep.subr.bf16.mxu0 %v10269_v57  ;;  %v1574_v57 = vld [vmem:[#allocation5 + $0x2b90] sm:$0xff] }
 0x2c9   :  { %10300 = vmatpush3.bf16.msra.mxu1 %v10299_v56  ;;  %v1543_v56 = vld [vmem:[#allocation5 + $0x2a98] sm:$0xff] }
 0x2ca   :  { %10302 = vmatprep.subr.bf16.mxu1 %v10301_v61  ;;  %v134_v61 = vld [vmem:[#allocation2 + $0x290] sm:$0xff]  ;;  %v10321_v63 = vpack.c.bf16 %v1543_v56, %v1542_v55  ;;  %v1567_v55 = vld [vmem:[#allocation5 + $0x2b58] sm:$0xff]  ;;  %v1552_v56 = vld [vmem:[#allocation5 + $0x2ae0] sm:$0xff] }
 0x2cb   :  { %10272 = vmatpush3.bf16.msra.mxu0 %v10271_v4  ;;  %v10353_v4 = vpack.c.bf16 %v1575_v58, %v1574_v57  ;;  %v1553_v57 = vld [vmem:[#allocation5 + $0x2ae8] sm:$0xff]  ;;  %v1584_v58 = vld [vmem:[#allocation5 + $0x2be0] sm:$0xff] }
 0x2cc   :  { %10274 = vmatprep.subr.bf16.mxu0 %v10273_v6  ;;  %v1544_v6 = vld [vmem:[#allocation5 + $0x2aa0] sm:$0xff] }
 0x2cd   :  { %10304 = vmatpush3.bf16.msra.mxu1 %v10303_v5  ;;  %v7675_v22 = vpop.f32.mrb[26].mxu0  ;;  %v1559_v5 = vld [vmem:[#allocation5 + $0x2b18] sm:$0xff]  ;;  %v10325_v13 = vpack.c.bf16 %v1545_v7, %v1544_v6  ;;  %v1554_v6 = vld [vmem:[#allocation5 + $0x2af0] sm:$0xff] }
 0x2ce   :  { %10306 = vmatprep.subr.bf16.mxu1 %v10305_v9  ;;  %v7676_v27 = vpop.f32.mrb[27].mxu0  ;;  %v137_v9 = vld [vmem:[#allocation2 + $0x2a8] sm:$0xff]  ;;  %v10355_v12 = vpack.c.bf16 %v1559_v5, %v1558_v3  ;;  %v1555_v7 = vld [vmem:[#allocation5 + $0x2af8] sm:$0xff] }
 0x2cf   :  { %v7710_v2 = vpop.f32.mrb[26].mxu1  ;;  %v7677_v30 = vadd.f32 %v7676_v27, %v7675_v22  ;;  %10276 = vmatpush3.bf16.msra.mxu0 %v10275_v15  ;;  %v1529_v15 = vld [vmem:[#allocation5 + $0x2a28] sm:$0xff]  ;;  %v1578_v22 = vld [vmem:[#allocation5 + $0x2bb0] sm:$0xff] }
 0x2d0   :  { %v7711_v31 = vpop.f32.mrb[27].mxu1  ;;  %10278 = vmatprep.subr.bf16.mxu0 %v10277_v17  ;;  %v10357_v17 = vpack.c.bf16 %v1577_v47, %v1576_v8  ;;  %v10327_v24 = vpack.c.bf16 %v1529_v15, %v1528_v14  ;;  %v1530_v27 = vld [vmem:[#allocation5 + $0x2a30] sm:$0xff]  ;;  %v1569_v5 = vld [vmem:[#allocation5 + $0x2b68] sm:$0xff] }
 0x2d1   :  { %v7712_v33 = vadd.f32 %v7711_v31, %v7710_v2  ;;  %10308 = vmatpush3.bf16.msra.mxu1 %v10307_v16  ;;  %v4122_v39 = vadd.f32 %v7677_v30, %v11219_v40  ;;  %v10349_v40 = vpack.c.bf16 %v1573_v46, %v1572_v45  ;;  %v1560_v16 = vld [vmem:[#allocation5 + $0x2b20] sm:$0xff]  ;;  %v1531_v2 = vld [vmem:[#allocation5 + $0x2a38] sm:$0xff]  ;;  %v1582_v46 = vld [vmem:[#allocation5 + $0x2bd0] sm:$0xff]  ;;  %v10375_v15 = vpack.c.bf16 %v1569_v5, %v1568_v1 }
 0x2d2   :  { %10310 = vmatprep.subr.bf16.mxu1 %v10309_v23  ;;  %v1579_v23 = vld [vmem:[#allocation5 + $0x2bb8] sm:$0xff]  ;;  %v10359_v25 = vpack.c.bf16 %v1561_v18, %v1560_v16  ;;  %v1548_v31 = vld [vmem:[#allocation5 + $0x2ac0] sm:$0xff]  ;;  %v10345_v16 = vpack.c.bf16 %v1555_v7, %v1554_v6 }
 0x2d3   :  { %v11222_v21 = vadd.f32 %v7712_v33, %v4122_v39  ;;  %10280 = vmatpush3.bf16.msra.mxu0 %v10279_v32  ;;  %v10361_v29 = vpack.c.bf16 %v1579_v23, %v1578_v22  ;;  %v1563_v30 = vld [vmem:[#allocation5 + $0x2b38] sm:$0xff]  ;;  %v1549_v32 = vld [vmem:[#allocation5 + $0x2ac8] sm:$0xff]  ;;  %v1580_v33 = vld [vmem:[#allocation5 + $0x2bc0] sm:$0xff] }
 0x2d4   :  { %10282 = vmatprep.subr.bf16.mxu0 %v10281_v35  ;;  %v10331_v35 = vpack.c.bf16 %v1531_v2, %v1530_v27  ;;  %v10363_v36 = vpack.c.bf16 %v1563_v30, %v1562_v28  ;;  %v10333_v37 = vpack.c.bf16 %v1549_v32, %v1548_v31  ;;  %v1533_v39 = vld [vmem:[#allocation5 + $0x2a48] sm:$0xff]  ;;  %v1551_v45 = vld [vmem:[#allocation5 + $0x2ad8] sm:$0xff]  ;;  %v1588_v31 = vld [vmem:[#allocation5 + $0x2c00] sm:$0xff] }
 0x2d5   :  { %10312 = vmatpush3.bf16.msra.mxu1 %v10311_v34  ;;  %v1581_v34 = vld [vmem:[#allocation5 + $0x2bc8] sm:$0xff]  ;;  %v10337_v51 = vpack.c.bf16 %v1551_v45, %v1550_v44  ;;  %v1539_v18 = vld [vmem:[#allocation5 + $0x2a78] sm:$0xff]  ;;  %v1590_v45 = vld [vmem:[#allocation5 + $0x2c10] sm:$0xff] }
 0x2d6   :  { %10314 = vmatprep.subr.bf16.mxu1 %v10313_v41  ;;  %v1564_v41 = vld [vmem:[#allocation5 + $0x2b40] sm:$0xff]  ;;  %v10365_v42 = vpack.c.bf16 %v1581_v34, %v1580_v33  ;;  %v1571_v23 = vld [vmem:[#allocation5 + $0x2b78] sm:$0xff]  ;;  %v1637_v27 = vld [vmem:[#allocation5 + $0x2d88] sm:$0xff] }
 0x2d7   :  { %10284 = vmatpush3.bf16.msra.mxu0 %v10283_v48  ;;  %v1583_v48 = vld [vmem:[#allocation5 + $0x2bd8] sm:$0xff]  ;;  %v1589_v32 = vld [vmem:[#allocation5 + $0x2c08] sm:$0xff]  ;;  %v1620_v33 = vld [vmem:[#allocation5 + $0x2d00] sm:$0xff] }
 0x2d8   :  { %10318 = vmatprep.subr.bf16.mxu0 %v10317_v50  ;;  %v10367_v50 = vpack.c.bf16 %v1565_v43, %v1564_v41  ;;  %v10369_v54 = vpack.c.bf16 %v1583_v48, %v1582_v46  ;;  %v1621_v34 = vld [vmem:[#allocation5 + $0x2d08] sm:$0xff]  ;;  %v10383_v41 = vpack.c.bf16 %v1589_v32, %v1588_v31  ;;  %v1591_v46 = vld [vmem:[#allocation5 + $0x2c18] sm:$0xff]  ;;  %v1622_v48 = vld [vmem:[#allocation5 + $0x2d10] sm:$0xff] }
 0x2d9   :  { %10316 = vmatpush3.bf16.msra.mxu1 %v10315_v49  ;;  %v10335_v49 = vpack.c.bf16 %v1533_v39, %v1532_v38  ;;  %v1639_v38 = vld [vmem:[#allocation5 + $0x2d98] sm:$0xff]  ;;  %v136_v39 = vld [vmem:[#allocation2 + $0x2a0] sm:$0xff]  ;;  %v10415_v43 = vpack.c.bf16 %v1621_v34, %v1620_v33  ;;  %v1598_v32 = vld [vmem:[#allocation5 + $0x2c50] sm:$0xff] }
 0x2da   :  { %10350 = vmatprep.subr.bf16.mxu1 %v10349_v40  ;;  %5100 = vmatmul.mubr.f32.vlgmr.msra.gmra.mrb[40].mxu0 %v132_v59  ;;  %v1566_v40 = vld [vmem:[#allocation5 + $0x2b50] sm:$0xff]  ;;  %v1585_v59 = vld [vmem:[#allocation5 + $0x2be8] sm:$0xff]  ;;  %v1611_v1 = vld [vmem:[#allocation5 + $0x2cb8] sm:$0xff] }
 0x2db   :  { %10320 = vmatpush3.bf16.msra.mxu0 %v10319_v60  ;;  %5239 = vmatprep.mubr.f32.mxu0 %v137_v9  ;;  %v10339_v60 = vpack.c.bf16 %v1535_v53, %v1534_v52  ;;  %v1586_v9 = vld [vmem:[#allocation5 + $0x2bf0] sm:$0xff]  ;;  %v1609_v52 = vld [vmem:[#allocation5 + $0x2ca8] sm:$0xff]  ;;  %v1640_v53 = vld [vmem:[#allocation5 + $0x2da0] sm:$0xff] }
 0x2dc   :  { %5170 = vmatmul.mubr.f32.vlgmr.msra.gmra.mrb[40].mxu1 %v134_v61  ;;  %10322 = vmatprep.subr.bf16.mxu0 %v10321_v63  ;;  %v10371_v61 = vpack.c.bf16 %v1567_v55, %v1566_v40  ;;  %v1536_v63 = vld [vmem:[#allocation5 + $0x2a60] sm:$0xff]  ;;  %v1641_v40 = vld [vmem:[#allocation5 + $0x2da8] sm:$0xff]  ;;  %v10387_v55 = vpack.c.bf16 %v1591_v46, %v1590_v45  ;;  %v1599_v33 = vld [vmem:[#allocation5 + $0x2c58] sm:$0xff] }
 0x2dd   :  { %10352 = vmatpush3.bf16.msra.mxu1 %v10351_v62  ;;  %5309 = vmatprep.mubr.f32.mxu1 %v139_v11  ;;  %v10341_v62 = vpack.c.bf16 %v1553_v57, %v1552_v56  ;;  %v143_v56 = vld [vmem:[#allocation2 + $0x2d8] sm:$0xff]  ;;  %v1601_v45 = vld [vmem:[#allocation5 + $0x2c68] sm:$0xff]  ;;  %v1632_v46 = vld [vmem:[#allocation5 + $0x2d60] sm:$0xff] }
 0x2de   :  { %10354 = vmatprep.subr.bf16.mxu1 %v10353_v4  ;;  %v10373_v4 = vpack.c.bf16 %v1585_v59, %v1584_v58  ;;  %v1592_v59 = vld [vmem:[#allocation5 + $0x2c20] sm:$0xff] }
 0x2df   :  { %10324 = vmatpush3.bf16.msra.mxu0 %v10323_v10  ;;  %v1587_v10 = vld [vmem:[#allocation5 + $0x2bf8] sm:$0xff] }
 0x2e0   :  { %10326 = vmatprep.subr.bf16.mxu0 %v10325_v13  ;;  %v10343_v13 = vpack.c.bf16 %v1537_v0, %v1536_v63  ;;  %v10377_v22 = vpack.c.bf16 %v1587_v10, %v1586_v9  ;;  %v1625_v63 = vld [vmem:[#allocation5 + $0x2d28] sm:$0xff]  ;;  %v1610_v0 = vld [vmem:[#allocation5 + $0x2cb0] sm:$0xff] }
 0x2e1   :  { %10356 = vmatpush3.bf16.msra.mxu1 %v10355_v12  ;;  %v10393_v7 = vpack.c.bf16 %v1611_v1, %v1610_v0  ;;  %v1626_v9 = vld [vmem:[#allocation5 + $0x2d30] sm:$0xff] }
 0x2e2   :  { %10358 = vmatprep.subr.bf16.mxu1 %v10357_v17  ;;  %v1538_v17 = vld [vmem:[#allocation5 + $0x2a70] sm:$0xff] }
 0x2e3   :  { %10328 = vmatpush3.bf16.msra.mxu0 %v10327_v24  ;;  %v1604_v24 = vld [vmem:[#allocation5 + $0x2c80] sm:$0xff]  ;;  %v10347_v28 = vpack.c.bf16 %v1539_v18, %v1538_v17  ;;  %v1634_v0 = vld [vmem:[#allocation5 + $0x2d70] sm:$0xff] }
 0x2e4   :  { %10330 = vmatprep.subr.bf16.mxu0 %v10329_v26  ;;  %v1636_v26 = vld [vmem:[#allocation5 + $0x2d80] sm:$0xff] }
 0x2e5   :  { %10360 = vmatpush3.bf16.msra.mxu1 %v10359_v25  ;;  %v1605_v25 = vld [vmem:[#allocation5 + $0x2c88] sm:$0xff] }
 0x2e6   :  { %10362 = vmatprep.subr.bf16.mxu1 %v10361_v29  ;;  %v10379_v29 = vpack.c.bf16 %v1571_v23, %v1570_v19  ;;  %v10381_v30 = vpack.c.bf16 %v1605_v25, %v1604_v24  ;;  %v1596_v19 = vld [vmem:[#allocation5 + $0x2c40] sm:$0xff]  ;;  %v1629_v24 = vld [vmem:[#allocation5 + $0x2d48] sm:$0xff]  ;;  %v1614_v25 = vld [vmem:[#allocation5 + $0x2cd0] sm:$0xff] }
 0x2e7   :  { %10332 = vmatpush3.bf16.msra.mxu0 %v10331_v35  ;;  %v1606_v35 = vld [vmem:[#allocation5 + $0x2c90] sm:$0xff] }
 0x2e8   :  { %10334 = vmatprep.subr.bf16.mxu0 %v10333_v37  ;;  %v1638_v37 = vld [vmem:[#allocation5 + $0x2d90] sm:$0xff] }
 0x2e9   :  { %10364 = vmatpush3.bf16.msra.mxu1 %v10363_v36  ;;  %v1607_v36 = vld [vmem:[#allocation5 + $0x2c98] sm:$0xff] }
 0x2ea   :  { %10366 = vmatprep.subr.bf16.mxu1 %v10365_v42  ;;  %v138_v42 = vld [vmem:[#allocation2 + $0x2b0] sm:$0xff]  ;;  %v10385_v44 = vpack.c.bf16 %v1607_v36, %v1606_v35  ;;  %v1631_v35 = vld [vmem:[#allocation5 + $0x2d58] sm:$0xff]  ;;  %v1616_v36 = vld [vmem:[#allocation5 + $0x2ce0] sm:$0xff] }
 0x2eb   :  { %10336 = vmatpush3.bf16.msra.mxu0 %v10335_v49  ;;  %v10417_v49 = vpack.c.bf16 %v1639_v38, %v1638_v37  ;;  %v1617_v37 = vld [vmem:[#allocation5 + $0x2ce8] sm:$0xff]  ;;  %v1648_v38 = vld [vmem:[#allocation5 + $0x2de0] sm:$0xff] }
 0x2ec   :  { %10338 = vmatprep.subr.bf16.mxu0 %v10337_v51  ;;  %v1608_v51 = vld [vmem:[#allocation5 + $0x2ca0] sm:$0xff] }
 0x2ed   :  { %10368 = vmatpush3.bf16.msra.mxu1 %v10367_v50  ;;  %v7745_v3 = vpop.f32.mrb[28].mxu0  ;;  %v1623_v50 = vld [vmem:[#allocation5 + $0x2d18] sm:$0xff]  ;;  %v10389_v58 = vpack.c.bf16 %v1609_v52, %v1608_v51  ;;  %v1618_v51 = vld [vmem:[#allocation5 + $0x2cf0] sm:$0xff] }
 0x2ee   :  { %10370 = vmatprep.subr.bf16.mxu1 %v10369_v54  ;;  %v7746_v8 = vpop.f32.mrb[29].mxu0  ;;  %v141_v54 = vld [vmem:[#allocation2 + $0x2c8] sm:$0xff]  ;;  %v10419_v57 = vpack.c.bf16 %v1623_v50, %v1622_v48  ;;  %v1619_v52 = vld [vmem:[#allocation5 + $0x2cf8] sm:$0xff] }
 0x2ef   :  { %v7780_v47 = vpop.f32.mrb[28].mxu1  ;;  %v7747_v11 = vadd.f32 %v7746_v8, %v7745_v3  ;;  %10340 = vmatpush3.bf16.msra.mxu0 %v10339_v60  ;;  %v1593_v60 = vld [vmem:[#allocation5 + $0x2c28] sm:$0xff]  ;;  %v1642_v3 = vld [vmem:[#allocation5 + $0x2db0] sm:$0xff] }
 0x2f0   :  { %v7781_v12 = vpop.f32.mrb[29].mxu1  ;;  %10342 = vmatprep.subr.bf16.mxu0 %v10341_v62  ;;  %v10421_v62 = vpack.c.bf16 %v1641_v40, %v1640_v53  ;;  %v10391_v5 = vpack.c.bf16 %v1593_v60, %v1592_v59  ;;  %v1594_v8 = vld [vmem:[#allocation5 + $0x2c30] sm:$0xff]  ;;  %v1633_v50 = vld [vmem:[#allocation5 + $0x2d68] sm:$0xff] }
 0x2f1   :  { %v7782_v14 = vadd.f32 %v7781_v12, %v7780_v47  ;;  %10372 = vmatpush3.bf16.msra.mxu1 %v10371_v61  ;;  %v4262_v20 = vadd.f32 %v7747_v11, %v11222_v21  ;;  %v10413_v21 = vpack.c.bf16 %v1637_v27, %v1636_v26  ;;  %v1624_v61 = vld [vmem:[#allocation5 + $0x2d20] sm:$0xff]  ;;  %v1595_v47 = vld [vmem:[#allocation5 + $0x2c38] sm:$0xff]  ;;  %v1646_v27 = vld [vmem:[#allocation5 + $0x2dd0] sm:$0xff]  ;;  %v10439_v60 = vpack.c.bf16 %v1633_v50, %v1632_v46 }
 0x2f2   :  { %10374 = vmatprep.subr.bf16.mxu1 %v10373_v4  ;;  %v1643_v4 = vld [vmem:[#allocation5 + $0x2db8] sm:$0xff]  ;;  %v10423_v6 = vpack.c.bf16 %v1625_v63, %v1624_v61  ;;  %v1612_v12 = vld [vmem:[#allocation5 + $0x2cc0] sm:$0xff]  ;;  %v10409_v61 = vpack.c.bf16 %v1619_v52, %v1618_v51 }
 0x2f3   :  { %v11225_v2 = vadd.f32 %v7782_v14, %v4262_v20  ;;  %10344 = vmatpush3.bf16.msra.mxu0 %v10343_v13  ;;  %v10425_v10 = vpack.c.bf16 %v1643_v4, %v1642_v3  ;;  %v1627_v11 = vld [vmem:[#allocation5 + $0x2d38] sm:$0xff]  ;;  %v1613_v13 = vld [vmem:[#allocation5 + $0x2cc8] sm:$0xff]  ;;  %v1644_v14 = vld [vmem:[#allocation5 + $0x2dc0] sm:$0xff] }
 0x2f4   :  { %10346 = vmatprep.subr.bf16.mxu0 %v10345_v16  ;;  %v10395_v16 = vpack.c.bf16 %v1595_v47, %v1594_v8  ;;  %v10427_v17 = vpack.c.bf16 %v1627_v11, %v1626_v9  ;;  %v10397_v18 = vpack.c.bf16 %v1613_v13, %v1612_v12  ;;  %v1597_v20 = vld [vmem:[#allocation5 + $0x2c48] sm:$0xff]  ;;  %v1615_v26 = vld [vmem:[#allocation5 + $0x2cd8] sm:$0xff]  ;;  %v1652_v12 = vld [vmem:[#allocation5 + $0x2e00] sm:$0xff] }
 0x2f5   :  { %10376 = vmatpush3.bf16.msra.mxu1 %v10375_v15  ;;  %v1645_v15 = vld [vmem:[#allocation5 + $0x2dc8] sm:$0xff]  ;;  %v10401_v31 = vpack.c.bf16 %v1615_v26, %v1614_v25  ;;  %v1603_v63 = vld [vmem:[#allocation5 + $0x2c78] sm:$0xff]  ;;  %v1654_v26 = vld [vmem:[#allocation5 + $0x2e10] sm:$0xff] }
 0x2f6   :  { %10378 = vmatprep.subr.bf16.mxu1 %v10377_v22  ;;  %v1628_v22 = vld [vmem:[#allocation5 + $0x2d40] sm:$0xff]  ;;  %v10429_v23 = vpack.c.bf16 %v1645_v15, %v1644_v14  ;;  %v1635_v4 = vld [vmem:[#allocation5 + $0x2d78] sm:$0xff]  ;;  %v1701_v8 = vld [vmem:[#allocation5 + $0x2f88] sm:$0xff] }
 0x2f7   :  { %10348 = vmatpush3.bf16.msra.mxu0 %v10347_v28  ;;  %v1647_v28 = vld [vmem:[#allocation5 + $0x2dd8] sm:$0xff]  ;;  %v1653_v13 = vld [vmem:[#allocation5 + $0x2e08] sm:$0xff]  ;;  %v1684_v14 = vld [vmem:[#allocation5 + $0x2f00] sm:$0xff] }
 0x2f8   :  { %10382 = vmatprep.subr.bf16.mxu0 %v10381_v30  ;;  %v10431_v30 = vpack.c.bf16 %v1629_v24, %v1628_v22  ;;  %v10433_v34 = vpack.c.bf16 %v1647_v28, %v1646_v27  ;;  %v1685_v15 = vld [vmem:[#allocation5 + $0x2f08] sm:$0xff]  ;;  %v10447_v22 = vpack.c.bf16 %v1653_v13, %v1652_v12  ;;  %v1655_v27 = vld [vmem:[#allocation5 + $0x2e18] sm:$0xff]  ;;  %v1686_v28 = vld [vmem:[#allocation5 + $0x2f10] sm:$0xff] }
 0x2f9   :  { %10380 = vmatpush3.bf16.msra.mxu1 %v10379_v29  ;;  %v10399_v29 = vpack.c.bf16 %v1597_v20, %v1596_v19  ;;  %v1703_v19 = vld [vmem:[#allocation5 + $0x2f98] sm:$0xff]  ;;  %v140_v20 = vld [vmem:[#allocation2 + $0x2c0] sm:$0xff]  ;;  %v10479_v24 = vpack.c.bf16 %v1685_v15, %v1684_v14  ;;  %v1662_v13 = vld [vmem:[#allocation5 + $0x2e50] sm:$0xff] }
 0x2fa   :  { %10414 = vmatprep.subr.bf16.mxu1 %v10413_v21  ;;  %5240 = vmatmul.mubr.f32.vlgmr.msra.gmra.mrb[42].mxu0 %v136_v39  ;;  %v1630_v21 = vld [vmem:[#allocation5 + $0x2d50] sm:$0xff]  ;;  %v1649_v39 = vld [vmem:[#allocation5 + $0x2de8] sm:$0xff]  ;;  %v1675_v46 = vld [vmem:[#allocation5 + $0x2eb8] sm:$0xff] }
 0x2fb   :  { %10384 = vmatpush3.bf16.msra.mxu0 %v10383_v41  ;;  %5379 = vmatprep.mubr.f32.mxu0 %v141_v54  ;;  %v10403_v41 = vpack.c.bf16 %v1599_v33, %v1598_v32  ;;  %v1650_v54 = vld [vmem:[#allocation5 + $0x2df0] sm:$0xff]  ;;  %v1673_v32 = vld [vmem:[#allocation5 + $0x2ea8] sm:$0xff]  ;;  %v1704_v33 = vld [vmem:[#allocation5 + $0x2fa0] sm:$0xff] }
 0x2fc   :  { %5310 = vmatmul.mubr.f32.vlgmr.msra.gmra.mrb[42].mxu1 %v138_v42  ;;  %10386 = vmatprep.subr.bf16.mxu0 %v10385_v44  ;;  %v10435_v42 = vpack.c.bf16 %v1631_v35, %v1630_v21  ;;  %v1600_v44 = vld [vmem:[#allocation5 + $0x2c60] sm:$0xff]  ;;  %v1705_v21 = vld [vmem:[#allocation5 + $0x2fa8] sm:$0xff]  ;;  %v10451_v35 = vpack.c.bf16 %v1655_v27, %v1654_v26  ;;  %v1663_v14 = vld [vmem:[#allocation5 + $0x2e58] sm:$0xff] }
 0x2fd   :  { %10416 = vmatpush3.bf16.msra.mxu1 %v10415_v43  ;;  %5449 = vmatprep.mubr.f32.mxu1 %v143_v56  ;;  %v10405_v43 = vpack.c.bf16 %v1617_v37, %v1616_v36  ;;  %v147_v36 = vld [vmem:[#allocation2 + $0x2f8] sm:$0xff]  ;;  %v1665_v26 = vld [vmem:[#allocation5 + $0x2e68] sm:$0xff]  ;;  %v1696_v27 = vld [vmem:[#allocation5 + $0x2f60] sm:$0xff] }
 0x2fe   :  { %10418 = vmatprep.subr.bf16.mxu1 %v10417_v49  ;;  %v10437_v49 = vpack.c.bf16 %v1649_v39, %v1648_v38  ;;  %v1656_v39 = vld [vmem:[#allocation5 + $0x2e20] sm:$0xff] }
 0x2ff   :  { %10388 = vmatpush3.bf16.msra.mxu0 %v10387_v55  ;;  %v1651_v55 = vld [vmem:[#allocation5 + $0x2df8] sm:$0xff] }
 0x300   :  { %10390 = vmatprep.subr.bf16.mxu0 %v10389_v58  ;;  %v10407_v58 = vpack.c.bf16 %v1601_v45, %v1600_v44  ;;  %v10441_v3 = vpack.c.bf16 %v1651_v55, %v1650_v54  ;;  %v1689_v44 = vld [vmem:[#allocation5 + $0x2f28] sm:$0xff]  ;;  %v1674_v45 = vld [vmem:[#allocation5 + $0x2eb0] sm:$0xff] }
 0x301   :  { %10420 = vmatpush3.bf16.msra.mxu1 %v10419_v57  ;;  %v10457_v52 = vpack.c.bf16 %v1675_v46, %v1674_v45  ;;  %v1690_v54 = vld [vmem:[#allocation5 + $0x2f30] sm:$0xff] }
 0x302   :  { %10422 = vmatprep.subr.bf16.mxu1 %v10421_v62  ;;  %v1602_v62 = vld [vmem:[#allocation5 + $0x2c70] sm:$0xff] }
 0x303   :  { %10392 = vmatpush3.bf16.msra.mxu0 %v10391_v5  ;;  %v1668_v5 = vld [vmem:[#allocation5 + $0x2e80] sm:$0xff]  ;;  %v10411_v9 = vpack.c.bf16 %v1603_v63, %v1602_v62  ;;  %v1698_v45 = vld [vmem:[#allocation5 + $0x2f70] sm:$0xff] }
 0x304   :  { %10394 = vmatprep.subr.bf16.mxu0 %v10393_v7  ;;  %v1700_v7 = vld [vmem:[#allocation5 + $0x2f80] sm:$0xff] }
 0x305   :  { %10424 = vmatpush3.bf16.msra.mxu1 %v10423_v6  ;;  %v1669_v6 = vld [vmem:[#allocation5 + $0x2e88] sm:$0xff] }
 0x306   :  { %10426 = vmatprep.subr.bf16.mxu1 %v10425_v10  ;;  %v10443_v10 = vpack.c.bf16 %v1635_v4, %v1634_v0  ;;  %v10445_v11 = vpack.c.bf16 %v1669_v6, %v1668_v5  ;;  %v1660_v0 = vld [vmem:[#allocation5 + $0x2e40] sm:$0xff]  ;;  %v1693_v5 = vld [vmem:[#allocation5 + $0x2f48] sm:$0xff]  ;;  %v1678_v6 = vld [vmem:[#allocation5 + $0x2ed0] sm:$0xff] }
 0x307   :  { %10396 = vmatpush3.bf16.msra.mxu0 %v10395_v16  ;;  %v1670_v16 = vld [vmem:[#allocation5 + $0x2e90] sm:$0xff] }
 0x308   :  { %10398 = vmatprep.subr.bf16.mxu0 %v10397_v18  ;;  %v1702_v18 = vld [vmem:[#allocation5 + $0x2f90] sm:$0xff] }
 0x309   :  { %10428 = vmatpush3.bf16.msra.mxu1 %v10427_v17  ;;  %v1671_v17 = vld [vmem:[#allocation5 + $0x2e98] sm:$0xff] }
 0x30a   :  { %10430 = vmatprep.subr.bf16.mxu1 %v10429_v23  ;;  %v142_v23 = vld [vmem:[#allocation2 + $0x2d0] sm:$0xff]  ;;  %v10449_v25 = vpack.c.bf16 %v1671_v17, %v1670_v16  ;;  %v1695_v16 = vld [vmem:[#allocation5 + $0x2f58] sm:$0xff]  ;;  %v1680_v17 = vld [vmem:[#allocation5 + $0x2ee0] sm:$0xff] }
 0x30b   :  { %10400 = vmatpush3.bf16.msra.mxu0 %v10399_v29  ;;  %v10481_v29 = vpack.c.bf16 %v1703_v19, %v1702_v18  ;;  %v1681_v18 = vld [vmem:[#allocation5 + $0x2ee8] sm:$0xff]  ;;  %v1712_v19 = vld [vmem:[#allocation5 + $0x2fe0] sm:$0xff] }
 0x30c   :  { %10402 = vmatprep.subr.bf16.mxu0 %v10401_v31  ;;  %v1672_v31 = vld [vmem:[#allocation5 + $0x2ea0] sm:$0xff] }
 0x30d   :  { %10432 = vmatpush3.bf16.msra.mxu1 %v10431_v30  ;;  %v7815_v48 = vpop.f32.mrb[30].mxu0  ;;  %v1687_v30 = vld [vmem:[#allocation5 + $0x2f18] sm:$0xff]  ;;  %v10453_v38 = vpack.c.bf16 %v1673_v32, %v1672_v31  ;;  %v1682_v31 = vld [vmem:[#allocation5 + $0x2ef0] sm:$0xff] }
 0x30e   :  { %10434 = vmatprep.subr.bf16.mxu1 %v10433_v34  ;;  %v7816_v53 = vpop.f32.mrb[31].mxu0  ;;  %v145_v34 = vld [vmem:[#allocation2 + $0x2e8] sm:$0xff]  ;;  %v10483_v37 = vpack.c.bf16 %v1687_v30, %v1686_v28  ;;  %v1683_v32 = vld [vmem:[#allocation5 + $0x2ef8] sm:$0xff] }
 0x30f   :  { %v7850_v40 = vpop.f32.mrb[30].mxu1  ;;  %v7817_v56 = vadd.f32 %v7816_v53, %v7815_v48  ;;  %10404 = vmatpush3.bf16.msra.mxu0 %v10403_v41  ;;  %v1657_v41 = vld [vmem:[#allocation5 + $0x2e28] sm:$0xff]  ;;  %v1706_v48 = vld [vmem:[#allocation5 + $0x2fb0] sm:$0xff] }
 0x310   :  { %v7851_v57 = vpop.f32.mrb[31].mxu1  ;;  %10406 = vmatprep.subr.bf16.mxu0 %v10405_v43  ;;  %v10485_v43 = vpack.c.bf16 %v1705_v21, %v1704_v33  ;;  %v10455_v50 = vpack.c.bf16 %v1657_v41, %v1656_v39  ;;  %v1658_v53 = vld [vmem:[#allocation5 + $0x2e30] sm:$0xff]  ;;  %v1697_v30 = vld [vmem:[#allocation5 + $0x2f68] sm:$0xff] }
 0x311   :  { %v7852_v59 = vadd.f32 %v7851_v57, %v7850_v40  ;;  %10436 = vmatpush3.bf16.msra.mxu1 %v10435_v42  ;;  %v4402_v1 = vadd.f32 %v7817_v56, %v11225_v2  ;;  %v10477_v2 = vpack.c.bf16 %v1701_v8, %v1700_v7  ;;  %v1688_v42 = vld [vmem:[#allocation5 + $0x2f20] sm:$0xff]  ;;  %v1659_v40 = vld [vmem:[#allocation5 + $0x2e38] sm:$0xff]  ;;  %v1710_v8 = vld [vmem:[#allocation5 + $0x2fd0] sm:$0xff]  ;;  %v10503_v41 = vpack.c.bf16 %v1697_v30, %v1696_v27 }
 0x312   :  { %10438 = vmatprep.subr.bf16.mxu1 %v10437_v49  ;;  %v1707_v49 = vld [vmem:[#allocation5 + $0x2fb8] sm:$0xff]  ;;  %v10487_v51 = vpack.c.bf16 %v1689_v44, %v1688_v42  ;;  %v1676_v57 = vld [vmem:[#allocation5 + $0x2ec0] sm:$0xff]  ;;  %v10473_v42 = vpack.c.bf16 %v1683_v32, %v1682_v31 }
 0x313   :  { %v11228_v47 = vadd.f32 %v7852_v59, %v4402_v1  ;;  %10408 = vmatpush3.bf16.msra.mxu0 %v10407_v58  ;;  %v10489_v55 = vpack.c.bf16 %v1707_v49, %v1706_v48  ;;  %v1691_v56 = vld [vmem:[#allocation5 + $0x2f38] sm:$0xff]  ;;  %v1677_v58 = vld [vmem:[#allocation5 + $0x2ec8] sm:$0xff]  ;;  %v1708_v59 = vld [vmem:[#allocation5 + $0x2fc0] sm:$0xff] }
 0x314   :  { %10410 = vmatprep.subr.bf16.mxu0 %v10409_v61  ;;  %v10459_v61 = vpack.c.bf16 %v1659_v40, %v1658_v53  ;;  %v10491_v62 = vpack.c.bf16 %v1691_v56, %v1690_v54  ;;  %v10461_v63 = vpack.c.bf16 %v1677_v58, %v1676_v57  ;;  %v1661_v1 = vld [vmem:[#allocation5 + $0x2e48] sm:$0xff]  ;;  %v1679_v7 = vld [vmem:[#allocation5 + $0x2ed8] sm:$0xff]  ;;  %v1716_v57 = vld [vmem:[#allocation5 + $0x3000] sm:$0xff] }
 0x315   :  { %10440 = vmatpush3.bf16.msra.mxu1 %v10439_v60  ;;  %v1709_v60 = vld [vmem:[#allocation5 + $0x2fc8] sm:$0xff]  ;;  %v10465_v12 = vpack.c.bf16 %v1679_v7, %v1678_v6  ;;  %v1667_v44 = vld [vmem:[#allocation5 + $0x2e78] sm:$0xff]  ;;  %v1718_v7 = vld [vmem:[#allocation5 + $0x3010] sm:$0xff] }
 0x316   :  { %10442 = vmatprep.subr.bf16.mxu1 %v10441_v3  ;;  %v1692_v3 = vld [vmem:[#allocation5 + $0x2f40] sm:$0xff]  ;;  %v10493_v4 = vpack.c.bf16 %v1709_v60, %v1708_v59  ;;  %v1699_v49 = vld [vmem:[#allocation5 + $0x2f78] sm:$0xff]  ;;  %v1765_v53 = vld [vmem:[#allocation5 + $0x3188] sm:$0xff] }
 0x317   :  { %10412 = vmatpush3.bf16.msra.mxu0 %v10411_v9  ;;  %v1711_v9 = vld [vmem:[#allocation5 + $0x2fd8] sm:$0xff]  ;;  %v1717_v58 = vld [vmem:[#allocation5 + $0x3008] sm:$0xff]  ;;  %v1748_v59 = vld [vmem:[#allocation5 + $0x3100] sm:$0xff] }
 0x318   :  { %10446 = vmatprep.subr.bf16.mxu0 %v10445_v11  ;;  %v10495_v11 = vpack.c.bf16 %v1693_v5, %v1692_v3  ;;  %v10497_v15 = vpack.c.bf16 %v1711_v9, %v1710_v8  ;;  %v1749_v60 = vld [vmem:[#allocation5 + $0x3108] sm:$0xff]  ;;  %v10511_v3 = vpack.c.bf16 %v1717_v58, %v1716_v57  ;;  %v1719_v8 = vld [vmem:[#allocation5 + $0x3018] sm:$0xff]  ;;  %v1750_v9 = vld [vmem:[#allocation5 + $0x3110] sm:$0xff] }
 0x319   :  { %10444 = vmatpush3.bf16.msra.mxu1 %v10443_v10  ;;  %v10463_v10 = vpack.c.bf16 %v1661_v1, %v1660_v0  ;;  %v1767_v0 = vld [vmem:[#allocation5 + $0x3198] sm:$0xff]  ;;  %v144_v1 = vld [vmem:[#allocation2 + $0x2e0] sm:$0xff]  ;;  %v10543_v5 = vpack.c.bf16 %v1749_v60, %v1748_v59  ;;  %v1726_v58 = vld [vmem:[#allocation5 + $0x3050] sm:$0xff] }
 0x31a   :  { %10478 = vmatprep.subr.bf16.mxu1 %v10477_v2  ;;  %5380 = vmatmul.mubr.f32.vlgmr.msra.gmra.mrb[44].mxu0 %v140_v20  ;;  %v1694_v2 = vld [vmem:[#allocation5 + $0x2f50] sm:$0xff]  ;;  %v1713_v20 = vld [vmem:[#allocation5 + $0x2fe8] sm:$0xff]  ;;  %v1739_v27 = vld [vmem:[#allocation5 + $0x30b8] sm:$0xff] }
 0x31b   :  { %10448 = vmatpush3.bf16.msra.mxu0 %v10447_v22  ;;  %5519 = vmatprep.mubr.f32.mxu0 %v145_v34  ;;  %v10467_v22 = vpack.c.bf16 %v1663_v14, %v1662_v13  ;;  %v1714_v34 = vld [vmem:[#allocation5 + $0x2ff0] sm:$0xff]  ;;  %v1737_v13 = vld [vmem:[#allocation5 + $0x30a8] sm:$0xff]  ;;  %v1768_v14 = vld [vmem:[#allocation5 + $0x31a0] sm:$0xff] }
 0x31c   :  { %5450 = vmatmul.mubr.f32.vlgmr.msra.gmra.mrb[44].mxu1 %v142_v23  ;;  %10450 = vmatprep.subr.bf16.mxu0 %v10449_v25  ;;  %v10499_v23 = vpack.c.bf16 %v1695_v16, %v1694_v2  ;;  %v1664_v25 = vld [vmem:[#allocation5 + $0x2e60] sm:$0xff]  ;;  %v1769_v2 = vld [vmem:[#allocation5 + $0x31a8] sm:$0xff]  ;;  %v10515_v16 = vpack.c.bf16 %v1719_v8, %v1718_v7  ;;  %v1727_v59 = vld [vmem:[#allocation5 + $0x3058] sm:$0xff] }
 0x31d   :  { %10480 = vmatpush3.bf16.msra.mxu1 %v10479_v24  ;;  %5589 = vmatprep.mubr.f32.mxu1 %v147_v36  ;;  %v10469_v24 = vpack.c.bf16 %v1681_v18, %v1680_v17  ;;  %v151_v17 = vld [vmem:[#allocation2 + $0x318] sm:$0xff]  ;;  %v1729_v7 = vld [vmem:[#allocation5 + $0x3068] sm:$0xff]  ;;  %v1760_v8 = vld [vmem:[#allocation5 + $0x3160] sm:$0xff] }
 0x31e   :  { %10482 = vmatprep.subr.bf16.mxu1 %v10481_v29  ;;  %v10501_v29 = vpack.c.bf16 %v1713_v20, %v1712_v19  ;;  %v1720_v20 = vld [vmem:[#allocation5 + $0x3020] sm:$0xff] }
 0x31f   :  { %10452 = vmatpush3.bf16.msra.mxu0 %v10451_v35  ;;  %v1715_v35 = vld [vmem:[#allocation5 + $0x2ff8] sm:$0xff] }
 0x320   :  { %10454 = vmatprep.subr.bf16.mxu0 %v10453_v38  ;;  %v10471_v38 = vpack.c.bf16 %v1665_v26, %v1664_v25  ;;  %v10505_v48 = vpack.c.bf16 %v1715_v35, %v1714_v34  ;;  %v1753_v25 = vld [vmem:[#allocation5 + $0x3128] sm:$0xff]  ;;  %v1738_v26 = vld [vmem:[#allocation5 + $0x30b0] sm:$0xff] }
 0x321   :  { %10484 = vmatpush3.bf16.msra.mxu1 %v10483_v37  ;;  %v10521_v32 = vpack.c.bf16 %v1739_v27, %v1738_v26  ;;  %v1754_v34 = vld [vmem:[#allocation5 + $0x3130] sm:$0xff] }
 0x322   :  { %10486 = vmatprep.subr.bf16.mxu1 %v10485_v43  ;;  %v1666_v43 = vld [vmem:[#allocation5 + $0x2e70] sm:$0xff] }
 0x323   :  { %10456 = vmatpush3.bf16.msra.mxu0 %v10455_v50  ;;  %v1732_v50 = vld [vmem:[#allocation5 + $0x3080] sm:$0xff]  ;;  %v10475_v54 = vpack.c.bf16 %v1667_v44, %v1666_v43  ;;  %v1762_v26 = vld [vmem:[#allocation5 + $0x3170] sm:$0xff] }
 0x324   :  { %10458 = vmatprep.subr.bf16.mxu0 %v10457_v52  ;;  %v1764_v52 = vld [vmem:[#allocation5 + $0x3180] sm:$0xff] }
 0x325   :  { %10488 = vmatpush3.bf16.msra.mxu1 %v10487_v51  ;;  %v1733_v51 = vld [vmem:[#allocation5 + $0x3088] sm:$0xff] }
 0x326   :  { %10490 = vmatprep.subr.bf16.mxu1 %v10489_v55  ;;  %v10507_v55 = vpack.c.bf16 %v1699_v49, %v1698_v45  ;;  %v10509_v56 = vpack.c.bf16 %v1733_v51, %v1732_v50  ;;  %v1724_v45 = vld [vmem:[#allocation5 + $0x3040] sm:$0xff]  ;;  %v1757_v50 = vld [vmem:[#allocation5 + $0x3148] sm:$0xff]  ;;  %v1742_v51 = vld [vmem:[#allocation5 + $0x30d0] sm:$0xff] }
 0x327   :  { %10460 = vmatpush3.bf16.msra.mxu0 %v10459_v61  ;;  %v1734_v61 = vld [vmem:[#allocation5 + $0x3090] sm:$0xff] }
 0x328   :  { %10462 = vmatprep.subr.bf16.mxu0 %v10461_v63  ;;  %v1766_v63 = vld [vmem:[#allocation5 + $0x3190] sm:$0xff] }
 0x329   :  { %10492 = vmatpush3.bf16.msra.mxu1 %v10491_v62  ;;  %v1735_v62 = vld [vmem:[#allocation5 + $0x3098] sm:$0xff] }
 0x32a   :  { %10494 = vmatprep.subr.bf16.mxu1 %v10493_v4  ;;  %v146_v4 = vld [vmem:[#allocation2 + $0x2f0] sm:$0xff]  ;;  %v10513_v6 = vpack.c.bf16 %v1735_v62, %v1734_v61  ;;  %v1759_v61 = vld [vmem:[#allocation5 + $0x3158] sm:$0xff]  ;;  %v1744_v62 = vld [vmem:[#allocation5 + $0x30e0] sm:$0xff] }
 0x32b   :  { %10464 = vmatpush3.bf16.msra.mxu0 %v10463_v10  ;;  %v10545_v10 = vpack.c.bf16 %v1767_v0, %v1766_v63  ;;  %v1745_v63 = vld [vmem:[#allocation5 + $0x30e8] sm:$0xff]  ;;  %v1776_v0 = vld [vmem:[#allocation5 + $0x31e0] sm:$0xff] }
 0x32c   :  { %10466 = vmatprep.subr.bf16.mxu0 %v10465_v12  ;;  %v1736_v12 = vld [vmem:[#allocation5 + $0x30a0] sm:$0xff] }
 0x32d   :  { %10496 = vmatpush3.bf16.msra.mxu1 %v10495_v11  ;;  %v7885_v28 = vpop.f32.mrb[32].mxu0  ;;  %v1751_v11 = vld [vmem:[#allocation5 + $0x3118] sm:$0xff]  ;;  %v10517_v19 = vpack.c.bf16 %v1737_v13, %v1736_v12  ;;  %v1746_v12 = vld [vmem:[#allocation5 + $0x30f0] sm:$0xff] }
 0x32e   :  { %10498 = vmatprep.subr.bf16.mxu1 %v10497_v15  ;;  %v7886_v33 = vpop.f32.mrb[33].mxu0  ;;  %v149_v15 = vld [vmem:[#allocation2 + $0x308] sm:$0xff]  ;;  %v10547_v18 = vpack.c.bf16 %v1751_v11, %v1750_v9  ;;  %v1747_v13 = vld [vmem:[#allocation5 + $0x30f8] sm:$0xff] }
 0x32f   :  { %v7920_v21 = vpop.f32.mrb[32].mxu1  ;;  %v7887_v36 = vadd.f32 %v7886_v33, %v7885_v28  ;;  %10468 = vmatpush3.bf16.msra.mxu0 %v10467_v22  ;;  %v1721_v22 = vld [vmem:[#allocation5 + $0x3028] sm:$0xff]  ;;  %v1770_v28 = vld [vmem:[#allocation5 + $0x31b0] sm:$0xff] }
 0x330   :  { %v7921_v37 = vpop.f32.mrb[33].mxu1  ;;  %10470 = vmatprep.subr.bf16.mxu0 %v10469_v24  ;;  %v10549_v24 = vpack.c.bf16 %v1769_v2, %v1768_v14  ;;  %v10519_v30 = vpack.c.bf16 %v1721_v22, %v1720_v20  ;;  %v1722_v33 = vld [vmem:[#allocation5 + $0x3030] sm:$0xff]  ;;  %v1761_v11 = vld [vmem:[#allocation5 + $0x3168] sm:$0xff] }
 0x331   :  { %v7922_v39 = vadd.f32 %v7921_v37, %v7920_v21  ;;  %10500 = vmatpush3.bf16.msra.mxu1 %v10499_v23  ;;  %v4542_v46 = vadd.f32 %v7887_v36, %v11228_v47  ;;  %v10541_v47 = vpack.c.bf16 %v1765_v53, %v1764_v52  ;;  %v1752_v23 = vld [vmem:[#allocation5 + $0x3120] sm:$0xff]  ;;  %v1723_v21 = vld [vmem:[#allocation5 + $0x3038] sm:$0xff]  ;;  %v1774_v53 = vld [vmem:[#allocation5 + $0x31d0] sm:$0xff]  ;;  %v10567_v22 = vpack.c.bf16 %v1761_v11, %v1760_v8 }
 0x332   :  { %10502 = vmatprep.subr.bf16.mxu1 %v10501_v29  ;;  %v1771_v29 = vld [vmem:[#allocation5 + $0x31b8] sm:$0xff]  ;;  %v10551_v31 = vpack.c.bf16 %v1753_v25, %v1752_v23  ;;  %v1740_v37 = vld [vmem:[#allocation5 + $0x30c0] sm:$0xff]  ;;  %v10537_v23 = vpack.c.bf16 %v1747_v13, %v1746_v12 }
 0x333   :  { %v11231_v40 = vadd.f32 %v7922_v39, %v4542_v46  ;;  %10472 = vmatpush3.bf16.msra.mxu0 %v10471_v38  ;;  %v10553_v35 = vpack.c.bf16 %v1771_v29, %v1770_v28  ;;  %v1755_v36 = vld [vmem:[#allocation5 + $0x3138] sm:$0xff]  ;;  %v1741_v38 = vld [vmem:[#allocation5 + $0x30c8] sm:$0xff]  ;;  %v1772_v39 = vld [vmem:[#allocation5 + $0x31c0] sm:$0xff] }
 0x334   :  { %10474 = vmatprep.subr.bf16.mxu0 %v10473_v42  ;;  %v10523_v42 = vpack.c.bf16 %v1723_v21, %v1722_v33  ;;  %v10555_v43 = vpack.c.bf16 %v1755_v36, %v1754_v34  ;;  %v10525_v44 = vpack.c.bf16 %v1741_v38, %v1740_v37  ;;  %v1725_v46 = vld [vmem:[#allocation5 + $0x3048] sm:$0xff]  ;;  %v1743_v52 = vld [vmem:[#allocation5 + $0x30d8] sm:$0xff]  ;;  %v1780_v37 = vld [vmem:[#allocation5 + $0x3200] sm:$0xff] }
 0x335   :  { %10504 = vmatpush3.bf16.msra.mxu1 %v10503_v41  ;;  %v1773_v41 = vld [vmem:[#allocation5 + $0x31c8] sm:$0xff]  ;;  %v10529_v57 = vpack.c.bf16 %v1743_v52, %v1742_v51  ;;  %v1731_v25 = vld [vmem:[#allocation5 + $0x3078] sm:$0xff]  ;;  %v1782_v52 = vld [vmem:[#allocation5 + $0x3210] sm:$0xff] }
 0x336   :  { %10506 = vmatprep.subr.bf16.mxu1 %v10505_v48  ;;  %v1756_v48 = vld [vmem:[#allocation5 + $0x3140] sm:$0xff]  ;;  %v10557_v49 = vpack.c.bf16 %v1773_v41, %v1772_v39  ;;  %v1763_v29 = vld [vmem:[#allocation5 + $0x3178] sm:$0xff]  ;;  %v1829_v33 = vld [vmem:[#allocation5 + $0x3388] sm:$0xff] }
 0x337   :  { %10476 = vmatpush3.bf16.msra.mxu0 %v10475_v54  ;;  %v1775_v54 = vld [vmem:[#allocation5 + $0x31d8] sm:$0xff]  ;;  %v1781_v38 = vld [vmem:[#allocation5 + $0x3208] sm:$0xff]  ;;  %v1812_v39 = vld [vmem:[#allocation5 + $0x3300] sm:$0xff] }
 0x338   :  { %10510 = vmatprep.subr.bf16.mxu0 %v10509_v56  ;;  %v10559_v56 = vpack.c.bf16 %v1757_v50, %v1756_v48  ;;  %v10561_v60 = vpack.c.bf16 %v1775_v54, %v1774_v53  ;;  %v1813_v41 = vld [vmem:[#allocation5 + $0x3308] sm:$0xff]  ;;  %v10575_v48 = vpack.c.bf16 %v1781_v38, %v1780_v37  ;;  %v1783_v53 = vld [vmem:[#allocation5 + $0x3218] sm:$0xff]  ;;  %v1814_v54 = vld [vmem:[#allocation5 + $0x3310] sm:$0xff] }
 0x339   :  { %10508 = vmatpush3.bf16.msra.mxu1 %v10507_v55  ;;  %v10527_v55 = vpack.c.bf16 %v1725_v46, %v1724_v45  ;;  %v1831_v45 = vld [vmem:[#allocation5 + $0x3398] sm:$0xff]  ;;  %v148_v46 = vld [vmem:[#allocation2 + $0x300] sm:$0xff]  ;;  %v10607_v50 = vpack.c.bf16 %v1813_v41, %v1812_v39  ;;  %v1790_v38 = vld [vmem:[#allocation5 + $0x3250] sm:$0xff] }
 0x33a   :  { %10542 = vmatprep.subr.bf16.mxu1 %v10541_v47  ;;  %5520 = vmatmul.mubr.f32.vlgmr.msra.gmra.mrb[46].mxu0 %v144_v1  ;;  %v1758_v47 = vld [vmem:[#allocation5 + $0x3150] sm:$0xff]  ;;  %v1777_v1 = vld [vmem:[#allocation5 + $0x31e8] sm:$0xff]  ;;  %v1803_v8 = vld [vmem:[#allocation5 + $0x32b8] sm:$0xff] }
 0x33b   :  { %10512 = vmatpush3.bf16.msra.mxu0 %v10511_v3  ;;  %5659 = vmatprep.mubr.f32.mxu0 %v149_v15  ;;  %v10531_v3 = vpack.c.bf16 %v1727_v59, %v1726_v58  ;;  %v1778_v15 = vld [vmem:[#allocation5 + $0x31f0] sm:$0xff]  ;;  %v1801_v58 = vld [vmem:[#allocation5 + $0x32a8] sm:$0xff]  ;;  %v1832_v59 = vld [vmem:[#allocation5 + $0x33a0] sm:$0xff] }
 0x33c   :  { %5590 = vmatmul.mubr.f32.vlgmr.msra.gmra.mrb[46].mxu1 %v146_v4  ;;  %10514 = vmatprep.subr.bf16.mxu0 %v10513_v6  ;;  %v10563_v4 = vpack.c.bf16 %v1759_v61, %v1758_v47  ;;  %v1728_v6 = vld [vmem:[#allocation5 + $0x3060] sm:$0xff]  ;;  %v1833_v47 = vld [vmem:[#allocation5 + $0x33a8] sm:$0xff]  ;;  %v10579_v61 = vpack.c.bf16 %v1783_v53, %v1782_v52  ;;  %v1791_v39 = vld [vmem:[#allocation5 + $0x3258] sm:$0xff] }
 0x33d   :  { %10544 = vmatpush3.bf16.msra.mxu1 %v10543_v5  ;;  %5729 = vmatprep.mubr.f32.mxu1 %v151_v17  ;;  %v10533_v5 = vpack.c.bf16 %v1745_v63, %v1744_v62  ;;  %v155_v62 = vld [vmem:[#allocation2 + $0x338] sm:$0xff]  ;;  %v1793_v52 = vld [vmem:[#allocation5 + $0x3268] sm:$0xff]  ;;  %v1824_v53 = vld [vmem:[#allocation5 + $0x3360] sm:$0xff] }
 0x33e   :  { %10546 = vmatprep.subr.bf16.mxu1 %v10545_v10  ;;  %v10565_v10 = vpack.c.bf16 %v1777_v1, %v1776_v0  ;;  %v1784_v1 = vld [vmem:[#allocation5 + $0x3220] sm:$0xff] }
 0x33f   :  { %10516 = vmatpush3.bf16.msra.mxu0 %v10515_v16  ;;  %v1779_v16 = vld [vmem:[#allocation5 + $0x31f8] sm:$0xff] }
 0x340   :  { %10518 = vmatprep.subr.bf16.mxu0 %v10517_v19  ;;  %v10535_v19 = vpack.c.bf16 %v1729_v7, %v1728_v6  ;;  %v10569_v28 = vpack.c.bf16 %v1779_v16, %v1778_v15  ;;  %v1817_v6 = vld [vmem:[#allocation5 + $0x3328] sm:$0xff]  ;;  %v1802_v7 = vld [vmem:[#allocation5 + $0x32b0] sm:$0xff] }
 0x341   :  { %10548 = vmatpush3.bf16.msra.mxu1 %v10547_v18  ;;  %v10585_v13 = vpack.c.bf16 %v1803_v8, %v1802_v7  ;;  %v1818_v15 = vld [vmem:[#allocation5 + $0x3330] sm:$0xff] }
 0x342   :  { %10550 = vmatprep.subr.bf16.mxu1 %v10549_v24  ;;  %v1730_v24 = vld [vmem:[#allocation5 + $0x3070] sm:$0xff] }
 0x343   :  { %10520 = vmatpush3.bf16.msra.mxu0 %v10519_v30  ;;  %v1796_v30 = vld [vmem:[#allocation5 + $0x3280] sm:$0xff]  ;;  %v10539_v34 = vpack.c.bf16 %v1731_v25, %v1730_v24  ;;  %v1826_v7 = vld [vmem:[#allocation5 + $0x3370] sm:$0xff] }
 0x344   :  { %10522 = vmatprep.subr.bf16.mxu0 %v10521_v32  ;;  %v1828_v32 = vld [vmem:[#allocation5 + $0x3380] sm:$0xff] }
 0x345   :  { %10552 = vmatpush3.bf16.msra.mxu1 %v10551_v31  ;;  %v1797_v31 = vld [vmem:[#allocation5 + $0x3288] sm:$0xff] }
 0x346   :  { %10554 = vmatprep.subr.bf16.mxu1 %v10553_v35  ;;  %v10571_v35 = vpack.c.bf16 %v1763_v29, %v1762_v26  ;;  %v10573_v36 = vpack.c.bf16 %v1797_v31, %v1796_v30  ;;  %v1788_v26 = vld [vmem:[#allocation5 + $0x3240] sm:$0xff]  ;;  %v1821_v30 = vld [vmem:[#allocation5 + $0x3348] sm:$0xff]  ;;  %v1806_v31 = vld [vmem:[#allocation5 + $0x32d0] sm:$0xff] }
 0x347   :  { %10524 = vmatpush3.bf16.msra.mxu0 %v10523_v42  ;;  %v1798_v42 = vld [vmem:[#allocation5 + $0x3290] sm:$0xff] }
 0x348   :  { %10526 = vmatprep.subr.bf16.mxu0 %v10525_v44  ;;  %v1830_v44 = vld [vmem:[#allocation5 + $0x3390] sm:$0xff] }
 0x349   :  { %10556 = vmatpush3.bf16.msra.mxu1 %v10555_v43  ;;  %v1799_v43 = vld [vmem:[#allocation5 + $0x3298] sm:$0xff] }
 0x34a   :  { %10558 = vmatprep.subr.bf16.mxu1 %v10557_v49  ;;  %v150_v49 = vld [vmem:[#allocation2 + $0x310] sm:$0xff]  ;;  %v10577_v51 = vpack.c.bf16 %v1799_v43, %v1798_v42  ;;  %v1823_v42 = vld [vmem:[#allocation5 + $0x3358] sm:$0xff]  ;;  %v1808_v43 = vld [vmem:[#allocation5 + $0x32e0] sm:$0xff] }
 0x34b   :  { %10528 = vmatpush3.bf16.msra.mxu0 %v10527_v55  ;;  %v10609_v55 = vpack.c.bf16 %v1831_v45, %v1830_v44  ;;  %v1809_v44 = vld [vmem:[#allocation5 + $0x32e8] sm:$0xff]  ;;  %v1840_v45 = vld [vmem:[#allocation5 + $0x33e0] sm:$0xff] }
 0x34c   :  { %10530 = vmatprep.subr.bf16.mxu0 %v10529_v57  ;;  %v1800_v57 = vld [vmem:[#allocation5 + $0x32a0] sm:$0xff] }
 0x34d   :  { %10560 = vmatpush3.bf16.msra.mxu1 %v10559_v56  ;;  %v7955_v9 = vpop.f32.mrb[34].mxu0  ;;  %v1815_v56 = vld [vmem:[#allocation5 + $0x3318] sm:$0xff]  ;;  %v10581_v0 = vpack.c.bf16 %v1801_v58, %v1800_v57  ;;  %v1810_v57 = vld [vmem:[#allocation5 + $0x32f0] sm:$0xff] }
 0x34e   :  { %10562 = vmatprep.subr.bf16.mxu1 %v10561_v60  ;;  %v7956_v14 = vpop.f32.mrb[35].mxu0  ;;  %v153_v60 = vld [vmem:[#allocation2 + $0x328] sm:$0xff]  ;;  %v10611_v63 = vpack.c.bf16 %v1815_v56, %v1814_v54  ;;  %v1811_v58 = vld [vmem:[#allocation5 + $0x32f8] sm:$0xff] }
 0x34f   :  { %v7990_v2 = vpop.f32.mrb[34].mxu1  ;;  %v7957_v17 = vadd.f32 %v7956_v14, %v7955_v9  ;;  %10532 = vmatpush3.bf16.msra.mxu0 %v10531_v3  ;;  %v1785_v3 = vld [vmem:[#allocation5 + $0x3228] sm:$0xff]  ;;  %v1834_v9 = vld [vmem:[#allocation5 + $0x33b0] sm:$0xff] }
 0x350   :  { %v7991_v18 = vpop.f32.mrb[35].mxu1  ;;  %10534 = vmatprep.subr.bf16.mxu0 %v10533_v5  ;;  %v10613_v5 = vpack.c.bf16 %v1833_v47, %v1832_v59  ;;  %v10583_v11 = vpack.c.bf16 %v1785_v3, %v1784_v1  ;;  %v1786_v14 = vld [vmem:[#allocation5 + $0x3230] sm:$0xff]  ;;  %v1825_v56 = vld [vmem:[#allocation5 + $0x3368] sm:$0xff] }
 0x351   :  { %v7992_v20 = vadd.f32 %v7991_v18, %v7990_v2  ;;  %10564 = vmatpush3.bf16.msra.mxu1 %v10563_v4  ;;  %v4682_v27 = vadd.f32 %v7957_v17, %v11231_v40  ;;  %v10605_v40 = vpack.c.bf16 %v1829_v33, %v1828_v32  ;;  %v1816_v4 = vld [vmem:[#allocation5 + $0x3320] sm:$0xff]  ;;  %v1787_v2 = vld [vmem:[#allocation5 + $0x3238] sm:$0xff]  ;;  %v1838_v33 = vld [vmem:[#allocation5 + $0x33d0] sm:$0xff]  ;;  %v10631_v3 = vpack.c.bf16 %v1825_v56, %v1824_v53 }
 0x352   :  { %10566 = vmatprep.subr.bf16.mxu1 %v10565_v10  ;;  %v1835_v10 = vld [vmem:[#allocation5 + $0x33b8] sm:$0xff]  ;;  %v10615_v12 = vpack.c.bf16 %v1817_v6, %v1816_v4  ;;  %v1804_v18 = vld [vmem:[#allocation5 + $0x32c0] sm:$0xff]  ;;  %v10601_v4 = vpack.c.bf16 %v1811_v58, %v1810_v57 }
 0x353   :  { %v11234_v21 = vadd.f32 %v7992_v20, %v4682_v27  ;;  %10536 = vmatpush3.bf16.msra.mxu0 %v10535_v19  ;;  %v10617_v16 = vpack.c.bf16 %v1835_v10, %v1834_v9  ;;  %v1819_v17 = vld [vmem:[#allocation5 + $0x3338] sm:$0xff]  ;;  %v1805_v19 = vld [vmem:[#allocation5 + $0x32c8] sm:$0xff]  ;;  %v1836_v20 = vld [vmem:[#allocation5 + $0x33c0] sm:$0xff] }
 0x354   :  { %10538 = vmatprep.subr.bf16.mxu0 %v10537_v23  ;;  %v10587_v23 = vpack.c.bf16 %v1787_v2, %v1786_v14  ;;  %v10619_v24 = vpack.c.bf16 %v1819_v17, %v1818_v15  ;;  %v10589_v25 = vpack.c.bf16 %v1805_v19, %v1804_v18  ;;  %v1789_v27 = vld [vmem:[#allocation5 + $0x3248] sm:$0xff]  ;;  %v1807_v32 = vld [vmem:[#allocation5 + $0x32d8] sm:$0xff]  ;;  %v1844_v18 = vld [vmem:[#allocation5 + $0x3400] sm:$0xff] }
 0x355   :  { %10568 = vmatpush3.bf16.msra.mxu1 %v10567_v22  ;;  %v1837_v22 = vld [vmem:[#allocation5 + $0x33c8] sm:$0xff]  ;;  %v10593_v37 = vpack.c.bf16 %v1807_v32, %v1806_v31  ;;  %v1795_v6 = vld [vmem:[#allocation5 + $0x3278] sm:$0xff]  ;;  %v1846_v32 = vld [vmem:[#allocation5 + $0x3410] sm:$0xff] }
 0x356   :  { %10570 = vmatprep.subr.bf16.mxu1 %v10569_v28  ;;  %v1820_v28 = vld [vmem:[#allocation5 + $0x3340] sm:$0xff]  ;;  %v10621_v29 = vpack.c.bf16 %v1837_v22, %v1836_v20  ;;  %v1827_v10 = vld [vmem:[#allocation5 + $0x3378] sm:$0xff]  ;;  %v1893_v14 = vld [vmem:[#allocation5 + $0x3588] sm:$0xff] }
 0x357   :  { %10540 = vmatpush3.bf16.msra.mxu0 %v10539_v34  ;;  %v1839_v34 = vld [vmem:[#allocation5 + $0x33d8] sm:$0xff]  ;;  %v1845_v19 = vld [vmem:[#allocation5 + $0x3408] sm:$0xff]  ;;  %v1876_v20 = vld [vmem:[#allocation5 + $0x3500] sm:$0xff] }
 0x358   :  { %10574 = vmatprep.subr.bf16.mxu0 %v10573_v36  ;;  %v10623_v36 = vpack.c.bf16 %v1821_v30, %v1820_v28  ;;  %v10625_v41 = vpack.c.bf16 %v1839_v34, %v1838_v33  ;;  %v1877_v22 = vld [vmem:[#allocation5 + $0x3508] sm:$0xff]  ;;  %v10639_v28 = vpack.c.bf16 %v1845_v19, %v1844_v18  ;;  %v1847_v33 = vld [vmem:[#allocation5 + $0x3418] sm:$0xff]  ;;  %v1878_v34 = vld [vmem:[#allocation5 + $0x3510] sm:$0xff] }
 0x359   :  { %10572 = vmatpush3.bf16.msra.mxu1 %v10571_v35  ;;  %v10591_v35 = vpack.c.bf16 %v1789_v27, %v1788_v26  ;;  %v1895_v26 = vld [vmem:[#allocation5 + $0x3598] sm:$0xff]  ;;  %v152_v27 = vld [vmem:[#allocation2 + $0x320] sm:$0xff]  ;;  %v10671_v30 = vpack.c.bf16 %v1877_v22, %v1876_v20  ;;  %v1854_v19 = vld [vmem:[#allocation5 + $0x3450] sm:$0xff] }
 0x35a   :  { %10606 = vmatprep.subr.bf16.mxu1 %v10605_v40  ;;  %5660 = vmatmul.mubr.f32.vlgmr.msra.gmra.mrb[48].mxu0 %v148_v46  ;;  %v1822_v40 = vld [vmem:[#allocation5 + $0x3350] sm:$0xff]  ;;  %v1841_v46 = vld [vmem:[#allocation5 + $0x33e8] sm:$0xff]  ;;  %v1867_v53 = vld [vmem:[#allocation5 + $0x34b8] sm:$0xff] }
 0x35b   :  { %10576 = vmatpush3.bf16.msra.mxu0 %v10575_v48  ;;  %5799 = vmatprep.mubr.f32.mxu0 %v153_v60  ;;  %v10595_v48 = vpack.c.bf16 %v1791_v39, %v1790_v38  ;;  %v1842_v60 = vld [vmem:[#allocation5 + $0x33f0] sm:$0xff]  ;;  %v1865_v38 = vld [vmem:[#allocation5 + $0x34a8] sm:$0xff]  ;;  %v1896_v39 = vld [vmem:[#allocation5 + $0x35a0] sm:$0xff] }
 0x35c   :  { %5730 = vmatmul.mubr.f32.vlgmr.msra.gmra.mrb[48].mxu1 %v150_v49  ;;  %10578 = vmatprep.subr.bf16.mxu0 %v10577_v51  ;;  %v10627_v49 = vpack.c.bf16 %v1823_v42, %v1822_v40  ;;  %v1792_v51 = vld [vmem:[#allocation5 + $0x3260] sm:$0xff]  ;;  %v1897_v40 = vld [vmem:[#allocation5 + $0x35a8] sm:$0xff]  ;;  %v10643_v42 = vpack.c.bf16 %v1847_v33, %v1846_v32  ;;  %v1855_v20 = vld [vmem:[#allocation5 + $0x3458] sm:$0xff] }
 0x35d   :  { %10608 = vmatpush3.bf16.msra.mxu1 %v10607_v50  ;;  %5869 = vmatprep.mubr.f32.mxu1 %v155_v62  ;;  %v10597_v50 = vpack.c.bf16 %v1809_v44, %v1808_v43  ;;  %v159_v43 = vld [vmem:[#allocation2 + $0x358] sm:$0xff]  ;;  %v1857_v32 = vld [vmem:[#allocation5 + $0x3468] sm:$0xff]  ;;  %v1888_v33 = vld [vmem:[#allocation5 + $0x3560] sm:$0xff] }
 0x35e   :  { %10610 = vmatprep.subr.bf16.mxu1 %v10609_v55  ;;  %v10629_v55 = vpack.c.bf16 %v1841_v46, %v1840_v45  ;;  %v1848_v46 = vld [vmem:[#allocation5 + $0x3420] sm:$0xff] }
 0x35f   :  { %10580 = vmatpush3.bf16.msra.mxu0 %v10579_v61  ;;  %v1843_v61 = vld [vmem:[#allocation5 + $0x33f8] sm:$0xff] }
 0x360   :  { %10582 = vmatprep.subr.bf16.mxu0 %v10581_v0  ;;  %v10599_v0 = vpack.c.bf16 %v1793_v52, %v1792_v51  ;;  %v10633_v9 = vpack.c.bf16 %v1843_v61, %v1842_v60  ;;  %v1881_v51 = vld [vmem:[#allocation5 + $0x3528] sm:$0xff]  ;;  %v1866_v52 = vld [vmem:[#allocation5 + $0x34b0] sm:$0xff] }
 0x361   :  { %10612 = vmatpush3.bf16.msra.mxu1 %v10611_v63  ;;  %v10649_v58 = vpack.c.bf16 %v1867_v53, %v1866_v52  ;;  %v1882_v60 = vld [vmem:[#allocation5 + $0x3530] sm:$0xff] }
 0x362   :  { %10614 = vmatprep.subr.bf16.mxu1 %v10613_v5  ;;  %v1794_v5 = vld [vmem:[#allocation5 + $0x3270] sm:$0xff] }
 0x363   :  { %10584 = vmatpush3.bf16.msra.mxu0 %v10583_v11  ;;  %v1860_v11 = vld [vmem:[#allocation5 + $0x3480] sm:$0xff]  ;;  %v10603_v15 = vpack.c.bf16 %v1795_v6, %v1794_v5  ;;  %v1890_v52 = vld [vmem:[#allocation5 + $0x3570] sm:$0xff] }
 0x364   :  { %10586 = vmatprep.subr.bf16.mxu0 %v10585_v13  ;;  %v1892_v13 = vld [vmem:[#allocation5 + $0x3580] sm:$0xff] }
 0x365   :  { %10616 = vmatpush3.bf16.msra.mxu1 %v10615_v12  ;;  %v1861_v12 = vld [vmem:[#allocation5 + $0x3488] sm:$0xff] }
 0x366   :  { %10618 = vmatprep.subr.bf16.mxu1 %v10617_v16  ;;  %v10635_v16 = vpack.c.bf16 %v1827_v10, %v1826_v7  ;;  %v10637_v17 = vpack.c.bf16 %v1861_v12, %v1860_v11  ;;  %v1852_v7 = vld [vmem:[#allocation5 + $0x3440] sm:$0xff]  ;;  %v1885_v11 = vld [vmem:[#allocation5 + $0x3548] sm:$0xff]  ;;  %v1870_v12 = vld [vmem:[#allocation5 + $0x34d0] sm:$0xff] }
 0x367   :  { %10588 = vmatpush3.bf16.msra.mxu0 %v10587_v23  ;;  %v1862_v23 = vld [vmem:[#allocation5 + $0x3490] sm:$0xff] }
 0x368   :  { %10590 = vmatprep.subr.bf16.mxu0 %v10589_v25  ;;  %v1894_v25 = vld [vmem:[#allocation5 + $0x3590] sm:$0xff] }
 0x369   :  { %10620 = vmatpush3.bf16.msra.mxu1 %v10619_v24  ;;  %v1863_v24 = vld [vmem:[#allocation5 + $0x3498] sm:$0xff] }
 0x36a   :  { %10622 = vmatprep.subr.bf16.mxu1 %v10621_v29  ;;  %v154_v29 = vld [vmem:[#allocation2 + $0x330] sm:$0xff]  ;;  %v10641_v31 = vpack.c.bf16 %v1863_v24, %v1862_v23  ;;  %v1887_v23 = vld [vmem:[#allocation5 + $0x3558] sm:$0xff]  ;;  %v1872_v24 = vld [vmem:[#allocation5 + $0x34e0] sm:$0xff] }
 0x36b   :  { %10592 = vmatpush3.bf16.msra.mxu0 %v10591_v35  ;;  %v10673_v35 = vpack.c.bf16 %v1895_v26, %v1894_v25  ;;  %v1873_v25 = vld [vmem:[#allocation5 + $0x34e8] sm:$0xff]  ;;  %v1904_v26 = vld [vmem:[#allocation5 + $0x35e0] sm:$0xff] }
 0x36c   :  { %10594 = vmatprep.subr.bf16.mxu0 %v10593_v37  ;;  %v1864_v37 = vld [vmem:[#allocation5 + $0x34a0] sm:$0xff] }
 0x36d   :  { %10624 = vmatpush3.bf16.msra.mxu1 %v10623_v36  ;;  %v8025_v54 = vpop.f32.mrb[36].mxu0  ;;  %v1879_v36 = vld [vmem:[#allocation5 + $0x3518] sm:$0xff]  ;;  %v10645_v45 = vpack.c.bf16 %v1865_v38, %v1864_v37  ;;  %v1874_v37 = vld [vmem:[#allocation5 + $0x34f0] sm:$0xff] }
 0x36e   :  { %10626 = vmatprep.subr.bf16.mxu1 %v10625_v41  ;;  %v8026_v59 = vpop.f32.mrb[37].mxu0  ;;  %v157_v41 = vld [vmem:[#allocation2 + $0x348] sm:$0xff]  ;;  %v10675_v44 = vpack.c.bf16 %v1879_v36, %v1878_v34  ;;  %v1875_v38 = vld [vmem:[#allocation5 + $0x34f8] sm:$0xff] }
 0x36f   :  { %v8060_v47 = vpop.f32.mrb[36].mxu1  ;;  %v8027_v62 = vadd.f32 %v8026_v59, %v8025_v54  ;;  %10596 = vmatpush3.bf16.msra.mxu0 %v10595_v48  ;;  %v1849_v48 = vld [vmem:[#allocation5 + $0x3428] sm:$0xff]  ;;  %v1898_v54 = vld [vmem:[#allocation5 + $0x35b0] sm:$0xff] }
 0x370   :  { %v8061_v63 = vpop.f32.mrb[37].mxu1  ;;  %10598 = vmatprep.subr.bf16.mxu0 %v10597_v50  ;;  %v10677_v50 = vpack.c.bf16 %v1897_v40, %v1896_v39  ;;  %v10647_v56 = vpack.c.bf16 %v1849_v48, %v1848_v46  ;;  %v1850_v59 = vld [vmem:[#allocation5 + $0x3430] sm:$0xff]  ;;  %v1889_v36 = vld [vmem:[#allocation5 + $0x3568] sm:$0xff] }
 0x371   :  { %v8062_v1 = vadd.f32 %v8061_v63, %v8060_v47  ;;  %10628 = vmatpush3.bf16.msra.mxu1 %v10627_v49  ;;  %v4822_v8 = vadd.f32 %v8027_v62, %v11234_v21  ;;  %v10669_v21 = vpack.c.bf16 %v1893_v14, %v1892_v13  ;;  %v1880_v49 = vld [vmem:[#allocation5 + $0x3520] sm:$0xff]  ;;  %v1851_v47 = vld [vmem:[#allocation5 + $0x3438] sm:$0xff]  ;;  %v1902_v14 = vld [vmem:[#allocation5 + $0x35d0] sm:$0xff]  ;;  %v10695_v48 = vpack.c.bf16 %v1889_v36, %v1888_v33 }
 0x372   :  { %10630 = vmatprep.subr.bf16.mxu1 %v10629_v55  ;;  %v1899_v55 = vld [vmem:[#allocation5 + $0x35b8] sm:$0xff]  ;;  %v10679_v57 = vpack.c.bf16 %v1881_v51, %v1880_v49  ;;  %v1868_v63 = vld [vmem:[#allocation5 + $0x34c0] sm:$0xff]  ;;  %v10665_v49 = vpack.c.bf16 %v1875_v38, %v1874_v37 }
 0x373   :  { %v11237_v2 = vadd.f32 %v8062_v1, %v4822_v8  ;;  %10600 = vmatpush3.bf16.msra.mxu0 %v10599_v0  ;;  %v10681_v61 = vpack.c.bf16 %v1899_v55, %v1898_v54  ;;  %v1883_v62 = vld [vmem:[#allocation5 + $0x3538] sm:$0xff]  ;;  %v1869_v0 = vld [vmem:[#allocation5 + $0x34c8] sm:$0xff]  ;;  %v1900_v1 = vld [vmem:[#allocation5 + $0x35c0] sm:$0xff] }
 0x374   :  { %10602 = vmatprep.subr.bf16.mxu0 %v10601_v4  ;;  %v10651_v4 = vpack.c.bf16 %v1851_v47, %v1850_v59  ;;  %v10683_v5 = vpack.c.bf16 %v1883_v62, %v1882_v60  ;;  %v10653_v6 = vpack.c.bf16 %v1869_v0, %v1868_v63  ;;  %v1853_v8 = vld [vmem:[#allocation5 + $0x3448] sm:$0xff]  ;;  %v1871_v13 = vld [vmem:[#allocation5 + $0x34d8] sm:$0xff]  ;;  %v1908_v63 = vld [vmem:[#allocation5 + $0x3600] sm:$0xff] }
 0x375   :  { %10632 = vmatpush3.bf16.msra.mxu1 %v10631_v3  ;;  %v1901_v3 = vld [vmem:[#allocation5 + $0x35c8] sm:$0xff]  ;;  %v10657_v18 = vpack.c.bf16 %v1871_v13, %v1870_v12  ;;  %v1859_v51 = vld [vmem:[#allocation5 + $0x3478] sm:$0xff]  ;;  %v1910_v13 = vld [vmem:[#allocation5 + $0x3610] sm:$0xff] }
 0x376   :  { %10634 = vmatprep.subr.bf16.mxu1 %v10633_v9  ;;  %v1884_v9 = vld [vmem:[#allocation5 + $0x3540] sm:$0xff]  ;;  %v10685_v10 = vpack.c.bf16 %v1901_v3, %v1900_v1  ;;  %v1891_v55 = vld [vmem:[#allocation5 + $0x3578] sm:$0xff]  ;;  %v1957_v59 = vld [vmem:[#allocation5 + $0x3788] sm:$0xff] }
 0x377   :  { %10604 = vmatpush3.bf16.msra.mxu0 %v10603_v15  ;;  %v1903_v15 = vld [vmem:[#allocation5 + $0x35d8] sm:$0xff]  ;;  %v1909_v0 = vld [vmem:[#allocation5 + $0x3608] sm:$0xff]  ;;  %v1940_v1 = vld [vmem:[#allocation5 + $0x3700] sm:$0xff] }
 0x378   :  { %10638 = vmatprep.subr.bf16.mxu0 %v10637_v17  ;;  %v10687_v17 = vpack.c.bf16 %v1885_v11, %v1884_v9  ;;  %v10689_v22 = vpack.c.bf16 %v1903_v15, %v1902_v14  ;;  %v1941_v3 = vld [vmem:[#allocation5 + $0x3708] sm:$0xff]  ;;  %v10703_v9 = vpack.c.bf16 %v1909_v0, %v1908_v63  ;;  %v1911_v14 = vld [vmem:[#allocation5 + $0x3618] sm:$0xff]  ;;  %v1942_v15 = vld [vmem:[#allocation5 + $0x3710] sm:$0xff] }
 0x379   :  { %10636 = vmatpush3.bf16.msra.mxu1 %v10635_v16  ;;  %v10655_v16 = vpack.c.bf16 %v1853_v8, %v1852_v7  ;;  %v1959_v7 = vld [vmem:[#allocation5 + $0x3798] sm:$0xff]  ;;  %v156_v8 = vld [vmem:[#allocation2 + $0x340] sm:$0xff]  ;;  %v10735_v11 = vpack.c.bf16 %v1941_v3, %v1940_v1  ;;  %v1918_v0 = vld [vmem:[#allocation5 + $0x3650] sm:$0xff] }
 0x37a   :  { %10670 = vmatprep.subr.bf16.mxu1 %v10669_v21  ;;  %5800 = vmatmul.mubr.f32.vlgmr.msra.gmra.mrb[50].mxu0 %v152_v27  ;;  %v1886_v21 = vld [vmem:[#allocation5 + $0x3550] sm:$0xff]  ;;  %v1905_v27 = vld [vmem:[#allocation5 + $0x35e8] sm:$0xff]  ;;  %v1931_v33 = vld [vmem:[#allocation5 + $0x36b8] sm:$0xff] }
 0x37b   :  { %10640 = vmatpush3.bf16.msra.mxu0 %v10639_v28  ;;  %5939 = vmatprep.mubr.f32.mxu0 %v157_v41  ;;  %v10659_v28 = vpack.c.bf16 %v1855_v20, %v1854_v19  ;;  %v1906_v41 = vld [vmem:[#allocation5 + $0x35f0] sm:$0xff]  ;;  %v1929_v19 = vld [vmem:[#allocation5 + $0x36a8] sm:$0xff]  ;;  %v1960_v20 = vld [vmem:[#allocation5 + $0x37a0] sm:$0xff] }
 0x37c   :  { %5870 = vmatmul.mubr.f32.vlgmr.msra.gmra.mrb[50].mxu1 %v154_v29  ;;  %10642 = vmatprep.subr.bf16.mxu0 %v10641_v31  ;;  %v10691_v29 = vpack.c.bf16 %v1887_v23, %v1886_v21  ;;  %v1856_v31 = vld [vmem:[#allocation5 + $0x3460] sm:$0xff]  ;;  %v1961_v21 = vld [vmem:[#allocation5 + $0x37a8] sm:$0xff]  ;;  %v10707_v23 = vpack.c.bf16 %v1911_v14, %v1910_v13  ;;  %v1919_v1 = vld [vmem:[#allocation5 + $0x3658] sm:$0xff] }
 0x37d   :  { %10672 = vmatpush3.bf16.msra.mxu1 %v10671_v30  ;;  %6009 = vmatprep.mubr.f32.mxu1 %v159_v43  ;;  %v10661_v30 = vpack.c.bf16 %v1873_v25, %v1872_v24  ;;  %v163_v24 = vld [vmem:[#allocation2 + $0x378] sm:$0xff]  ;;  %v1921_v13 = vld [vmem:[#allocation5 + $0x3668] sm:$0xff]  ;;  %v1952_v14 = vld [vmem:[#allocation5 + $0x3760] sm:$0xff] }
 0x37e   :  { %10674 = vmatprep.subr.bf16.mxu1 %v10673_v35  ;;  %v10693_v35 = vpack.c.bf16 %v1905_v27, %v1904_v26  ;;  %v1912_v27 = vld [vmem:[#allocation5 + $0x3620] sm:$0xff] }
 0x37f   :  { %10644 = vmatpush3.bf16.msra.mxu0 %v10643_v42  ;;  %v1907_v42 = vld [vmem:[#allocation5 + $0x35f8] sm:$0xff] }
 0x380   :  { %10646 = vmatprep.subr.bf16.mxu0 %v10645_v45  ;;  %v10663_v45 = vpack.c.bf16 %v1857_v32, %v1856_v31  ;;  %v10697_v54 = vpack.c.bf16 %v1907_v42, %v1906_v41  ;;  %v1945_v31 = vld [vmem:[#allocation5 + $0x3728] sm:$0xff]  ;;  %v1930_v32 = vld [vmem:[#allocation5 + $0x36b0] sm:$0xff] }
 0x381   :  { %10676 = vmatpush3.bf16.msra.mxu1 %v10675_v44  ;;  %v10713_v38 = vpack.c.bf16 %v1931_v33, %v1930_v32  ;;  %v1946_v41 = vld [vmem:[#allocation5 + $0x3730] sm:$0xff] }
 0x382   :  { %10678 = vmatprep.subr.bf16.mxu1 %v10677_v50  ;;  %v1858_v50 = vld [vmem:[#allocation5 + $0x3470] sm:$0xff] }
 0x383   :  { %10648 = vmatpush3.bf16.msra.mxu0 %v10647_v56  ;;  %v1924_v56 = vld [vmem:[#allocation5 + $0x3680] sm:$0xff]  ;;  %v10667_v60 = vpack.c.bf16 %v1859_v51, %v1858_v50  ;;  %v1954_v32 = vld [vmem:[#allocation5 + $0x3770] sm:$0xff] }
 0x384   :  { %10650 = vmatprep.subr.bf16.mxu0 %v10649_v58  ;;  %v1956_v58 = vld [vmem:[#allocation5 + $0x3780] sm:$0xff] }
 0x385   :  { %10680 = vmatpush3.bf16.msra.mxu1 %v10679_v57  ;;  %v1925_v57 = vld [vmem:[#allocation5 + $0x3688] sm:$0xff] }
 0x386   :  { %10682 = vmatprep.subr.bf16.mxu1 %v10681_v61  ;;  %v10699_v61 = vpack.c.bf16 %v1891_v55, %v1890_v52  ;;  %v10701_v62 = vpack.c.bf16 %v1925_v57, %v1924_v56  ;;  %v1916_v52 = vld [vmem:[#allocation5 + $0x3640] sm:$0xff]  ;;  %v1949_v56 = vld [vmem:[#allocation5 + $0x3748] sm:$0xff]  ;;  %v1934_v57 = vld [vmem:[#allocation5 + $0x36d0] sm:$0xff] }
 0x387   :  { %10652 = vmatpush3.bf16.msra.mxu0 %v10651_v4  ;;  %v1926_v4 = vld [vmem:[#allocation5 + $0x3690] sm:$0xff] }
 0x388   :  { %10654 = vmatprep.subr.bf16.mxu0 %v10653_v6  ;;  %v1958_v6 = vld [vmem:[#allocation5 + $0x3790] sm:$0xff] }
 0x389   :  { %10684 = vmatpush3.bf16.msra.mxu1 %v10683_v5  ;;  %v1927_v5 = vld [vmem:[#allocation5 + $0x3698] sm:$0xff] }
 0x38a   :  { %10686 = vmatprep.subr.bf16.mxu1 %v10685_v10  ;;  %v158_v10 = vld [vmem:[#allocation2 + $0x350] sm:$0xff]  ;;  %v10705_v12 = vpack.c.bf16 %v1927_v5, %v1926_v4  ;;  %v1951_v4 = vld [vmem:[#allocation5 + $0x3758] sm:$0xff]  ;;  %v1936_v5 = vld [vmem:[#allocation5 + $0x36e0] sm:$0xff] }
 0x38b   :  { %10656 = vmatpush3.bf16.msra.mxu0 %v10655_v16  ;;  %v10737_v16 = vpack.c.bf16 %v1959_v7, %v1958_v6  ;;  %v1937_v6 = vld [vmem:[#allocation5 + $0x36e8] sm:$0xff]  ;;  %v1968_v7 = vld [vmem:[#allocation5 + $0x37e0] sm:$0xff] }
 0x38c   :  { %10658 = vmatprep.subr.bf16.mxu0 %v10657_v18  ;;  %v1928_v18 = vld [vmem:[#allocation5 + $0x36a0] sm:$0xff] }
 0x38d   :  { %10688 = vmatpush3.bf16.msra.mxu1 %v10687_v17  ;;  %v8095_v34 = vpop.f32.mrb[38].mxu0  ;;  %v1943_v17 = vld [vmem:[#allocation5 + $0x3718] sm:$0xff]  ;;  %v10709_v26 = vpack.c.bf16 %v1929_v19, %v1928_v18  ;;  %v1938_v18 = vld [vmem:[#allocation5 + $0x36f0] sm:$0xff] }
 0x38e   :  { %10690 = vmatprep.subr.bf16.mxu1 %v10689_v22  ;;  %v8096_v39 = vpop.f32.mrb[39].mxu0  ;;  %v161_v22 = vld [vmem:[#allocation2 + $0x368] sm:$0xff]  ;;  %v10739_v25 = vpack.c.bf16 %v1943_v17, %v1942_v15  ;;  %v1939_v19 = vld [vmem:[#allocation5 + $0x36f8] sm:$0xff] }
 0x38f   :  { %v8130_v40 = vpop.f32.mrb[38].mxu1  ;;  %v8097_v43 = vadd.f32 %v8096_v39, %v8095_v34  ;;  %10660 = vmatpush3.bf16.msra.mxu0 %v10659_v28  ;;  %v1913_v28 = vld [vmem:[#allocation5 + $0x3628] sm:$0xff]  ;;  %v1962_v34 = vld [vmem:[#allocation5 + $0x37b0] sm:$0xff] }
 0x390   :  { %v8131_v44 = vpop.f32.mrb[39].mxu1  ;;  %10662 = vmatprep.subr.bf16.mxu0 %v10661_v30  ;;  %v10741_v30 = vpack.c.bf16 %v1961_v21, %v1960_v20  ;;  %v10711_v36 = vpack.c.bf16 %v1913_v28, %v1912_v27  ;;  %v1914_v39 = vld [vmem:[#allocation5 + $0x3630] sm:$0xff]  ;;  %v1953_v17 = vld [vmem:[#allocation5 + $0x3768] sm:$0xff] }
 0x391   :  { %v8132_v46 = vadd.f32 %v8131_v44, %v8130_v40  ;;  %10692 = vmatpush3.bf16.msra.mxu1 %v10691_v29  ;;  %v4962_v53 = vadd.f32 %v8097_v43, %v11237_v2  ;;  %v10733_v2 = vpack.c.bf16 %v1957_v59, %v1956_v58  ;;  %v1944_v29 = vld [vmem:[#allocation5 + $0x3720] sm:$0xff]  ;;  %v1915_v40 = vld [vmem:[#allocation5 + $0x3638] sm:$0xff]  ;;  %v1966_v59 = vld [vmem:[#allocation5 + $0x37d0] sm:$0xff]  ;;  %v10759_v28 = vpack.c.bf16 %v1953_v17, %v1952_v14 }
 0x392   :  { %10694 = vmatprep.subr.bf16.mxu1 %v10693_v35  ;;  %v1963_v35 = vld [vmem:[#allocation5 + $0x37b8] sm:$0xff]  ;;  %v10743_v37 = vpack.c.bf16 %v1945_v31, %v1944_v29  ;;  %v1932_v44 = vld [vmem:[#allocation5 + $0x36c0] sm:$0xff]  ;;  %v10729_v29 = vpack.c.bf16 %v1939_v19, %v1938_v18 }
 0x393   :  { %v11240_v47 = vadd.f32 %v8132_v46, %v4962_v53  ;;  %10664 = vmatpush3.bf16.msra.mxu0 %v10663_v45  ;;  %v10745_v42 = vpack.c.bf16 %v1963_v35, %v1962_v34  ;;  %v1947_v43 = vld [vmem:[#allocation5 + $0x3738] sm:$0xff]  ;;  %v1933_v45 = vld [vmem:[#allocation5 + $0x36c8] sm:$0xff]  ;;  %v1964_v46 = vld [vmem:[#allocation5 + $0x37c0] sm:$0xff] }
 0x394   :  { %10666 = vmatprep.subr.bf16.mxu0 %v10665_v49  ;;  %v10715_v49 = vpack.c.bf16 %v1915_v40, %v1914_v39  ;;  %v10747_v50 = vpack.c.bf16 %v1947_v43, %v1946_v41  ;;  %v10717_v51 = vpack.c.bf16 %v1933_v45, %v1932_v44  ;;  %v1917_v53 = vld [vmem:[#allocation5 + $0x3648] sm:$0xff]  ;;  %v1935_v58 = vld [vmem:[#allocation5 + $0x36d8] sm:$0xff]  ;;  %v1972_v44 = vld [vmem:[#allocation5 + $0x3800] sm:$0xff] }
 0x395   :  { %10696 = vmatpush3.bf16.msra.mxu1 %v10695_v48  ;;  %v1965_v48 = vld [vmem:[#allocation5 + $0x37c8] sm:$0xff]  ;;  %v10721_v63 = vpack.c.bf16 %v1935_v58, %v1934_v57  ;;  %v1923_v31 = vld [vmem:[#allocation5 + $0x3678] sm:$0xff]  ;;  %v1974_v58 = vld [vmem:[#allocation5 + $0x3810] sm:$0xff] }
 0x396   :  { %10698 = vmatprep.subr.bf16.mxu1 %v10697_v54  ;;  %v1948_v54 = vld [vmem:[#allocation5 + $0x3740] sm:$0xff]  ;;  %v10749_v55 = vpack.c.bf16 %v1965_v48, %v1964_v46  ;;  %v1955_v35 = vld [vmem:[#allocation5 + $0x3778] sm:$0xff]  ;;  %v2021_v39 = vld [vmem:[#allocation5 + $0x3988] sm:$0xff] }
 0x397   :  { %10668 = vmatpush3.bf16.msra.mxu0 %v10667_v60  ;;  %v1967_v60 = vld [vmem:[#allocation5 + $0x37d8] sm:$0xff]  ;;  %v1973_v45 = vld [vmem:[#allocation5 + $0x3808] sm:$0xff]  ;;  %v2004_v46 = vld [vmem:[#allocation5 + $0x3900] sm:$0xff] }
 0x398   :  { %10702 = vmatprep.subr.bf16.mxu0 %v10701_v62  ;;  %v10751_v62 = vpack.c.bf16 %v1949_v56, %v1948_v54  ;;  %v10753_v3 = vpack.c.bf16 %v1967_v60, %v1966_v59  ;;  %v2005_v48 = vld [vmem:[#allocation5 + $0x3908] sm:$0xff]  ;;  %v10767_v54 = vpack.c.bf16 %v1973_v45, %v1972_v44  ;;  %v1975_v59 = vld [vmem:[#allocation5 + $0x3818] sm:$0xff]  ;;  %v2006_v60 = vld [vmem:[#allocation5 + $0x3910] sm:$0xff] }
 0x399   :  { %10700 = vmatpush3.bf16.msra.mxu1 %v10699_v61  ;;  %v10719_v61 = vpack.c.bf16 %v1917_v53, %v1916_v52  ;;  %v2023_v52 = vld [vmem:[#allocation5 + $0x3998] sm:$0xff]  ;;  %v160_v53 = vld [vmem:[#allocation2 + $0x360] sm:$0xff]  ;;  %v10799_v56 = vpack.c.bf16 %v2005_v48, %v2004_v46  ;;  %v1982_v45 = vld [vmem:[#allocation5 + $0x3850] sm:$0xff] }
 0x39a   :  { %10734 = vmatprep.subr.bf16.mxu1 %v10733_v2  ;;  %5940 = vmatmul.mubr.f32.vlgmr.msra.gmra.mrb[52].mxu0 %v156_v8  ;;  %v1950_v2 = vld [vmem:[#allocation5 + $0x3750] sm:$0xff]  ;;  %v1969_v8 = vld [vmem:[#allocation5 + $0x37e8] sm:$0xff]  ;;  %v1995_v14 = vld [vmem:[#allocation5 + $0x38b8] sm:$0xff] }
 0x39b   :  { %10704 = vmatpush3.bf16.msra.mxu0 %v10703_v9  ;;  %6079 = vmatprep.mubr.f32.mxu0 %v161_v22  ;;  %v10723_v9 = vpack.c.bf16 %v1919_v1, %v1918_v0  ;;  %v1970_v22 = vld [vmem:[#allocation5 + $0x37f0] sm:$0xff]  ;;  %v1993_v0 = vld [vmem:[#allocation5 + $0x38a8] sm:$0xff]  ;;  %v2024_v1 = vld [vmem:[#allocation5 + $0x39a0] sm:$0xff] }
 0x39c   :  { %6010 = vmatmul.mubr.f32.vlgmr.msra.gmra.mrb[52].mxu1 %v158_v10  ;;  %10706 = vmatprep.subr.bf16.mxu0 %v10705_v12  ;;  %v10755_v10 = vpack.c.bf16 %v1951_v4, %v1950_v2  ;;  %v1920_v12 = vld [vmem:[#allocation5 + $0x3660] sm:$0xff]  ;;  %v2025_v2 = vld [vmem:[#allocation5 + $0x39a8] sm:$0xff]  ;;  %v10771_v4 = vpack.c.bf16 %v1975_v59, %v1974_v58  ;;  %v1983_v46 = vld [vmem:[#allocation5 + $0x3858] sm:$0xff] }
 0x39d   :  { %10736 = vmatpush3.bf16.msra.mxu1 %v10735_v11  ;;  %6149 = vmatprep.mubr.f32.mxu1 %v163_v24  ;;  %v10725_v11 = vpack.c.bf16 %v1937_v6, %v1936_v5  ;;  %v167_v5 = vld [vmem:[#allocation2 + $0x398] sm:$0xff]  ;;  %v1985_v58 = vld [vmem:[#allocation5 + $0x3868] sm:$0xff]  ;;  %v2016_v59 = vld [vmem:[#allocation5 + $0x3960] sm:$0xff] }
 0x39e   :  { %10738 = vmatprep.subr.bf16.mxu1 %v10737_v16  ;;  %v10757_v16 = vpack.c.bf16 %v1969_v8, %v1968_v7  ;;  %v1976_v8 = vld [vmem:[#allocation5 + $0x3820] sm:$0xff] }
 0x39f   :  { %10708 = vmatpush3.bf16.msra.mxu0 %v10707_v23  ;;  %v1971_v23 = vld [vmem:[#allocation5 + $0x37f8] sm:$0xff] }
 0x3a0   :  { %10710 = vmatprep.subr.bf16.mxu0 %v10709_v26  ;;  %v10727_v26 = vpack.c.bf16 %v1921_v13, %v1920_v12  ;;  %v10761_v34 = vpack.c.bf16 %v1971_v23, %v1970_v22  ;;  %v2009_v12 = vld [vmem:[#allocation5 + $0x3928] sm:$0xff]  ;;  %v1994_v13 = vld [vmem:[#allocation5 + $0x38b0] sm:$0xff] }
 0x3a1   :  { %10740 = vmatpush3.bf16.msra.mxu1 %v10739_v25  ;;  %v10777_v19 = vpack.c.bf16 %v1995_v14, %v1994_v13  ;;  %v2010_v22 = vld [vmem:[#allocation5 + $0x3930] sm:$0xff] }
 0x3a2   :  { %10742 = vmatprep.subr.bf16.mxu1 %v10741_v30  ;;  %v1922_v30 = vld [vmem:[#allocation5 + $0x3670] sm:$0xff] }
 0x3a3   :  { %10712 = vmatpush3.bf16.msra.mxu0 %v10711_v36  ;;  %v1988_v36 = vld [vmem:[#allocation5 + $0x3880] sm:$0xff]  ;;  %v10731_v41 = vpack.c.bf16 %v1923_v31, %v1922_v30  ;;  %v2018_v13 = vld [vmem:[#allocation5 + $0x3970] sm:$0xff] }
 0x3a4   :  { %10714 = vmatprep.subr.bf16.mxu0 %v10713_v38  ;;  %v2020_v38 = vld [vmem:[#allocation5 + $0x3980] sm:$0xff] }
 0x3a5   :  { %10744 = vmatpush3.bf16.msra.mxu1 %v10743_v37  ;;  %v1989_v37 = vld [vmem:[#allocation5 + $0x3888] sm:$0xff] }
 0x3a6   :  { %10746 = vmatprep.subr.bf16.mxu1 %v10745_v42  ;;  %v10763_v42 = vpack.c.bf16 %v1955_v35, %v1954_v32  ;;  %v10765_v43 = vpack.c.bf16 %v1989_v37, %v1988_v36  ;;  %v1980_v32 = vld [vmem:[#allocation5 + $0x3840] sm:$0xff]  ;;  %v2013_v36 = vld [vmem:[#allocation5 + $0x3948] sm:$0xff]  ;;  %v1998_v37 = vld [vmem:[#allocation5 + $0x38d0] sm:$0xff] }
 0x3a7   :  { %10716 = vmatpush3.bf16.msra.mxu0 %v10715_v49  ;;  %v1990_v49 = vld [vmem:[#allocation5 + $0x3890] sm:$0xff] }
 0x3a8   :  { %10718 = vmatprep.subr.bf16.mxu0 %v10717_v51  ;;  %v2022_v51 = vld [vmem:[#allocation5 + $0x3990] sm:$0xff] }
 0x3a9   :  { %10748 = vmatpush3.bf16.msra.mxu1 %v10747_v50  ;;  %v1991_v50 = vld [vmem:[#allocation5 + $0x3898] sm:$0xff] }
 0x3aa   :  { %10750 = vmatprep.subr.bf16.mxu1 %v10749_v55  ;;  %v162_v55 = vld [vmem:[#allocation2 + $0x370] sm:$0xff]  ;;  %v10769_v57 = vpack.c.bf16 %v1991_v50, %v1990_v49  ;;  %v2015_v49 = vld [vmem:[#allocation5 + $0x3958] sm:$0xff]  ;;  %v2000_v50 = vld [vmem:[#allocation5 + $0x38e0] sm:$0xff] }
 0x3ab   :  { %10720 = vmatpush3.bf16.msra.mxu0 %v10719_v61  ;;  %v10801_v61 = vpack.c.bf16 %v2023_v52, %v2022_v51  ;;  %v2001_v51 = vld [vmem:[#allocation5 + $0x38e8] sm:$0xff]  ;;  %v2032_v52 = vld [vmem:[#allocation5 + $0x39e0] sm:$0xff] }
 0x3ac   :  { %10722 = vmatprep.subr.bf16.mxu0 %v10721_v63  ;;  %v1992_v63 = vld [vmem:[#allocation5 + $0x38a0] sm:$0xff] }
 0x3ad   :  { %10752 = vmatpush3.bf16.msra.mxu1 %v10751_v62  ;;  %v8165_v15 = vpop.f32.mrb[40].mxu0  ;;  %v2007_v62 = vld [vmem:[#allocation5 + $0x3918] sm:$0xff]  ;;  %v10773_v7 = vpack.c.bf16 %v1993_v0, %v1992_v63  ;;  %v2002_v63 = vld [vmem:[#allocation5 + $0x38f0] sm:$0xff] }
 0x3ae   :  { %10754 = vmatprep.subr.bf16.mxu1 %v10753_v3  ;;  %v8166_v20 = vpop.f32.mrb[41].mxu0  ;;  %v165_v3 = vld [vmem:[#allocation2 + $0x388] sm:$0xff]  ;;  %v10803_v6 = vpack.c.bf16 %v2007_v62, %v2006_v60  ;;  %v2003_v0 = vld [vmem:[#allocation5 + $0x38f8] sm:$0xff] }
 0x3af   :  { %v8200_v21 = vpop.f32.mrb[40].mxu1  ;;  %v8167_v24 = vadd.f32 %v8166_v20, %v8165_v15  ;;  %10724 = vmatpush3.bf16.msra.mxu0 %v10723_v9  ;;  %v1977_v9 = vld [vmem:[#allocation5 + $0x3828] sm:$0xff]  ;;  %v2026_v15 = vld [vmem:[#allocation5 + $0x39b0] sm:$0xff] }
 0x3b0   :  { %v8201_v25 = vpop.f32.mrb[41].mxu1  ;;  %10726 = vmatprep.subr.bf16.mxu0 %v10725_v11  ;;  %v10805_v11 = vpack.c.bf16 %v2025_v2, %v2024_v1  ;;  %v10775_v17 = vpack.c.bf16 %v1977_v9, %v1976_v8  ;;  %v1978_v20 = vld [vmem:[#allocation5 + $0x3830] sm:$0xff]  ;;  %v2017_v62 = vld [vmem:[#allocation5 + $0x3968] sm:$0xff] }
 0x3b1   :  { %v8202_v27 = vadd.f32 %v8201_v25, %v8200_v21  ;;  %10756 = vmatpush3.bf16.msra.mxu1 %v10755_v10  ;;  %v5102_v33 = vadd.f32 %v8167_v24, %v11240_v47  ;;  %v10797_v47 = vpack.c.bf16 %v2021_v39, %v2020_v38  ;;  %v2008_v10 = vld [vmem:[#allocation5 + $0x3920] sm:$0xff]  ;;  %v1979_v21 = vld [vmem:[#allocation5 + $0x3838] sm:$0xff]  ;;  %v2030_v39 = vld [vmem:[#allocation5 + $0x39d0] sm:$0xff]  ;;  %v10823_v9 = vpack.c.bf16 %v2017_v62, %v2016_v59 }
 0x3b2   :  { %10758 = vmatprep.subr.bf16.mxu1 %v10757_v16  ;;  %v2027_v16 = vld [vmem:[#allocation5 + $0x39b8] sm:$0xff]  ;;  %v10807_v18 = vpack.c.bf16 %v2009_v12, %v2008_v10  ;;  %v1996_v25 = vld [vmem:[#allocation5 + $0x38c0] sm:$0xff]  ;;  %v10793_v10 = vpack.c.bf16 %v2003_v0, %v2002_v63 }
 0x3b3   :  { %v11243_v40 = vadd.f32 %v8202_v27, %v5102_v33  ;;  %10728 = vmatpush3.bf16.msra.mxu0 %v10727_v26  ;;  %v10809_v23 = vpack.c.bf16 %v2027_v16, %v2026_v15  ;;  %v2011_v24 = vld [vmem:[#allocation5 + $0x3938] sm:$0xff]  ;;  %v1997_v26 = vld [vmem:[#allocation5 + $0x38c8] sm:$0xff]  ;;  %v2028_v27 = vld [vmem:[#allocation5 + $0x39c0] sm:$0xff] }
 0x3b4   :  { %10730 = vmatprep.subr.bf16.mxu0 %v10729_v29  ;;  %v10779_v29 = vpack.c.bf16 %v1979_v21, %v1978_v20  ;;  %v10811_v30 = vpack.c.bf16 %v2011_v24, %v2010_v22  ;;  %v10781_v31 = vpack.c.bf16 %v1997_v26, %v1996_v25  ;;  %v1981_v33 = vld [vmem:[#allocation5 + $0x3848] sm:$0xff]  ;;  %v1999_v38 = vld [vmem:[#allocation5 + $0x38d8] sm:$0xff]  ;;  %v2036_v25 = vld [vmem:[#allocation5 + $0x3a00] sm:$0xff] }
 0x3b5   :  { %10760 = vmatpush3.bf16.msra.mxu1 %v10759_v28  ;;  %v2029_v28 = vld [vmem:[#allocation5 + $0x39c8] sm:$0xff]  ;;  %v10785_v44 = vpack.c.bf16 %v1999_v38, %v1998_v37  ;;  %v1987_v12 = vld [vmem:[#allocation5 + $0x3878] sm:$0xff]  ;;  %v2038_v38 = vld [vmem:[#allocation5 + $0x3a10] sm:$0xff] }
 0x3b6   :  { %10762 = vmatprep.subr.bf16.mxu1 %v10761_v34  ;;  %v2012_v34 = vld [vmem:[#allocation5 + $0x3940] sm:$0xff]  ;;  %v10813_v35 = vpack.c.bf16 %v2029_v28, %v2028_v27  ;;  %v2019_v16 = vld [vmem:[#allocation5 + $0x3978] sm:$0xff]  ;;  %v2085_v20 = vld [vmem:[#allocation5 + $0x3b88] sm:$0xff] }
 0x3b7   :  { %10732 = vmatpush3.bf16.msra.mxu0 %v10731_v41  ;;  %v2031_v41 = vld [vmem:[#allocation5 + $0x39d8] sm:$0xff]  ;;  %v2037_v26 = vld [vmem:[#allocation5 + $0x3a08] sm:$0xff]  ;;  %v2068_v27 = vld [vmem:[#allocation5 + $0x3b00] sm:$0xff] }
 0x3b8   :  { %10766 = vmatprep.subr.bf16.mxu0 %v10765_v43  ;;  %v10815_v43 = vpack.c.bf16 %v2013_v36, %v2012_v34  ;;  %v10817_v48 = vpack.c.bf16 %v2031_v41, %v2030_v39  ;;  %v2069_v28 = vld [vmem:[#allocation5 + $0x3b08] sm:$0xff]  ;;  %v10831_v34 = vpack.c.bf16 %v2037_v26, %v2036_v25  ;;  %v2039_v39 = vld [vmem:[#allocation5 + $0x3a18] sm:$0xff]  ;;  %v2070_v41 = vld [vmem:[#allocation5 + $0x3b10] sm:$0xff] }
 0x3b9   :  { %10764 = vmatpush3.bf16.msra.mxu1 %v10763_v42  ;;  %v10783_v42 = vpack.c.bf16 %v1981_v33, %v1980_v32  ;;  %v2087_v32 = vld [vmem:[#allocation5 + $0x3b98] sm:$0xff]  ;;  %v164_v33 = vld [vmem:[#allocation2 + $0x380] sm:$0xff]  ;;  %v10863_v36 = vpack.c.bf16 %v2069_v28, %v2068_v27  ;;  %v2046_v26 = vld [vmem:[#allocation5 + $0x3a50] sm:$0xff] }
 0x3ba   :  { %10798 = vmatprep.subr.bf16.mxu1 %v10797_v47  ;;  %6080 = vmatmul.mubr.f32.vlgmr.msra.gmra.mrb[54].mxu0 %v160_v53  ;;  %v2014_v47 = vld [vmem:[#allocation5 + $0x3950] sm:$0xff]  ;;  %v2033_v53 = vld [vmem:[#allocation5 + $0x39e8] sm:$0xff]  ;;  %v2059_v59 = vld [vmem:[#allocation5 + $0x3ab8] sm:$0xff] }
 0x3bb   :  { %10768 = vmatpush3.bf16.msra.mxu0 %v10767_v54  ;;  %6219 = vmatprep.mubr.f32.mxu0 %v165_v3  ;;  %v10787_v54 = vpack.c.bf16 %v1983_v46, %v1982_v45  ;;  %v2034_v3 = vld [vmem:[#allocation5 + $0x39f0] sm:$0xff]  ;;  %v2057_v45 = vld [vmem:[#allocation5 + $0x3aa8] sm:$0xff]  ;;  %v2088_v46 = vld [vmem:[#allocation5 + $0x3ba0] sm:$0xff] }
 0x3bc   :  { %6150 = vmatmul.mubr.f32.vlgmr.msra.gmra.mrb[54].mxu1 %v162_v55  ;;  %10770 = vmatprep.subr.bf16.mxu0 %v10769_v57  ;;  %v10819_v55 = vpack.c.bf16 %v2015_v49, %v2014_v47  ;;  %v1984_v57 = vld [vmem:[#allocation5 + $0x3860] sm:$0xff]  ;;  %v2089_v47 = vld [vmem:[#allocation5 + $0x3ba8] sm:$0xff]  ;;  %v10835_v49 = vpack.c.bf16 %v2039_v39, %v2038_v38  ;;  %v2047_v27 = vld [vmem:[#allocation5 + $0x3a58] sm:$0xff] }
 0x3bd   :  { %10800 = vmatpush3.bf16.msra.mxu1 %v10799_v56  ;;  %6289 = vmatprep.mubr.f32.mxu1 %v167_v5  ;;  %v10789_v56 = vpack.c.bf16 %v2001_v51, %v2000_v50  ;;  %v171_v50 = vld [vmem:[#allocation2 + $0x3b8] sm:$0xff]  ;;  %v2049_v38 = vld [vmem:[#allocation5 + $0x3a68] sm:$0xff]  ;;  %v2080_v39 = vld [vmem:[#allocation5 + $0x3b60] sm:$0xff] }
 0x3be   :  { %10802 = vmatprep.subr.bf16.mxu1 %v10801_v61  ;;  %v10821_v61 = vpack.c.bf16 %v2033_v53, %v2032_v52  ;;  %v2040_v53 = vld [vmem:[#allocation5 + $0x3a20] sm:$0xff] }
 0x3bf   :  { %10772 = vmatpush3.bf16.msra.mxu0 %v10771_v4  ;;  %v2035_v4 = vld [vmem:[#allocation5 + $0x39f8] sm:$0xff] }
 0x3c0   :  { %10774 = vmatprep.subr.bf16.mxu0 %v10773_v7  ;;  %v10791_v7 = vpack.c.bf16 %v1985_v58, %v1984_v57  ;;  %v10825_v15 = vpack.c.bf16 %v2035_v4, %v2034_v3  ;;  %v2073_v57 = vld [vmem:[#allocation5 + $0x3b28] sm:$0xff]  ;;  %v2058_v58 = vld [vmem:[#allocation5 + $0x3ab0] sm:$0xff] }
 0x3c1   :  { %10804 = vmatpush3.bf16.msra.mxu1 %v10803_v6  ;;  %v10841_v0 = vpack.c.bf16 %v2059_v59, %v2058_v58  ;;  %v2074_v3 = vld [vmem:[#allocation5 + $0x3b30] sm:$0xff] }
 0x3c2   :  { %10806 = vmatprep.subr.bf16.mxu1 %v10805_v11  ;;  %v1986_v11 = vld [vmem:[#allocation5 + $0x3870] sm:$0xff] }
 0x3c3   :  { %10776 = vmatpush3.bf16.msra.mxu0 %v10775_v17  ;;  %v2052_v17 = vld [vmem:[#allocation5 + $0x3a80] sm:$0xff]  ;;  %v10795_v22 = vpack.c.bf16 %v1987_v12, %v1986_v11  ;;  %v2082_v58 = vld [vmem:[#allocation5 + $0x3b70] sm:$0xff] }
 0x3c4   :  { %10778 = vmatprep.subr.bf16.mxu0 %v10777_v19  ;;  %v2084_v19 = vld [vmem:[#allocation5 + $0x3b80] sm:$0xff] }
 0x3c5   :  { %10808 = vmatpush3.bf16.msra.mxu1 %v10807_v18  ;;  %v2053_v18 = vld [vmem:[#allocation5 + $0x3a88] sm:$0xff] }
 0x3c6   :  { %10810 = vmatprep.subr.bf16.mxu1 %v10809_v23  ;;  %v10827_v23 = vpack.c.bf16 %v2019_v16, %v2018_v13  ;;  %v10829_v24 = vpack.c.bf16 %v2053_v18, %v2052_v17  ;;  %v2044_v13 = vld [vmem:[#allocation5 + $0x3a40] sm:$0xff]  ;;  %v2077_v17 = vld [vmem:[#allocation5 + $0x3b48] sm:$0xff]  ;;  %v2062_v18 = vld [vmem:[#allocation5 + $0x3ad0] sm:$0xff] }
 0x3c7   :  { %10780 = vmatpush3.bf16.msra.mxu0 %v10779_v29  ;;  %v2054_v29 = vld [vmem:[#allocation5 + $0x3a90] sm:$0xff] }
 0x3c8   :  { %10782 = vmatprep.subr.bf16.mxu0 %v10781_v31  ;;  %v2086_v31 = vld [vmem:[#allocation5 + $0x3b90] sm:$0xff] }
 0x3c9   :  { %10812 = vmatpush3.bf16.msra.mxu1 %v10811_v30  ;;  %v2055_v30 = vld [vmem:[#allocation5 + $0x3a98] sm:$0xff] }
 0x3ca   :  { %10814 = vmatprep.subr.bf16.mxu1 %v10813_v35  ;;  %v166_v35 = vld [vmem:[#allocation2 + $0x390] sm:$0xff]  ;;  %v10833_v37 = vpack.c.bf16 %v2055_v30, %v2054_v29  ;;  %v2079_v29 = vld [vmem:[#allocation5 + $0x3b58] sm:$0xff]  ;;  %v2064_v30 = vld [vmem:[#allocation5 + $0x3ae0] sm:$0xff] }
 0x3cb   :  { %10784 = vmatpush3.bf16.msra.mxu0 %v10783_v42  ;;  %v10865_v42 = vpack.c.bf16 %v2087_v32, %v2086_v31  ;;  %v2065_v31 = vld [vmem:[#allocation5 + $0x3ae8] sm:$0xff]  ;;  %v2096_v32 = vld [vmem:[#allocation5 + $0x3be0] sm:$0xff] }
 0x3cc   :  { %10786 = vmatprep.subr.bf16.mxu0 %v10785_v44  ;;  %v2056_v44 = vld [vmem:[#allocation5 + $0x3aa0] sm:$0xff] }
 0x3cd   :  { %10816 = vmatpush3.bf16.msra.mxu1 %v10815_v43  ;;  %v8235_v60 = vpop.f32.mrb[42].mxu0  ;;  %v2071_v43 = vld [vmem:[#allocation5 + $0x3b18] sm:$0xff]  ;;  %v10837_v52 = vpack.c.bf16 %v2057_v45, %v2056_v44  ;;  %v2066_v44 = vld [vmem:[#allocation5 + $0x3af0] sm:$0xff] }
 0x3ce   :  { %10818 = vmatprep.subr.bf16.mxu1 %v10817_v48  ;;  %v8236_v1 = vpop.f32.mrb[43].mxu0  ;;  %v169_v48 = vld [vmem:[#allocation2 + $0x3a8] sm:$0xff]  ;;  %v10867_v51 = vpack.c.bf16 %v2071_v43, %v2070_v41  ;;  %v2067_v45 = vld [vmem:[#allocation5 + $0x3af8] sm:$0xff] }
 0x3cf   :  { %v8270_v2 = vpop.f32.mrb[42].mxu1  ;;  %v8237_v5 = vadd.f32 %v8236_v1, %v8235_v60  ;;  %10788 = vmatpush3.bf16.msra.mxu0 %v10787_v54  ;;  %v2041_v54 = vld [vmem:[#allocation5 + $0x3a28] sm:$0xff]  ;;  %v2090_v60 = vld [vmem:[#allocation5 + $0x3bb0] sm:$0xff] }
 0x3d0   :  { %v8271_v6 = vpop.f32.mrb[43].mxu1  ;;  %10790 = vmatprep.subr.bf16.mxu0 %v10789_v56  ;;  %v10869_v56 = vpack.c.bf16 %v2089_v47, %v2088_v46  ;;  %v10839_v62 = vpack.c.bf16 %v2041_v54, %v2040_v53  ;;  %v2042_v1 = vld [vmem:[#allocation5 + $0x3a30] sm:$0xff]  ;;  %v2081_v43 = vld [vmem:[#allocation5 + $0x3b68] sm:$0xff] }
 0x3d1   :  { %v8272_v8 = vadd.f32 %v8271_v6, %v8270_v2  ;;  %10820 = vmatpush3.bf16.msra.mxu1 %v10819_v55  ;;  %v5242_v14 = vadd.f32 %v8237_v5, %v11243_v40  ;;  %v10861_v40 = vpack.c.bf16 %v2085_v20, %v2084_v19  ;;  %v2072_v55 = vld [vmem:[#allocation5 + $0x3b20] sm:$0xff]  ;;  %v2043_v2 = vld [vmem:[#allocation5 + $0x3a38] sm:$0xff]  ;;  %v2094_v20 = vld [vmem:[#allocation5 + $0x3bd0] sm:$0xff]  ;;  %v10887_v54 = vpack.c.bf16 %v2081_v43, %v2080_v39 }
 0x3d2   :  { %10822 = vmatprep.subr.bf16.mxu1 %v10821_v61  ;;  %v2091_v61 = vld [vmem:[#allocation5 + $0x3bb8] sm:$0xff]  ;;  %v10871_v63 = vpack.c.bf16 %v2073_v57, %v2072_v55  ;;  %v2060_v6 = vld [vmem:[#allocation5 + $0x3ac0] sm:$0xff]  ;;  %v10857_v55 = vpack.c.bf16 %v2067_v45, %v2066_v44 }
 0x3d3   :  { %v11246_v21 = vadd.f32 %v8272_v8, %v5242_v14  ;;  %10792 = vmatpush3.bf16.msra.mxu0 %v10791_v7  ;;  %v10873_v4 = vpack.c.bf16 %v2091_v61, %v2090_v60  ;;  %v2075_v5 = vld [vmem:[#allocation5 + $0x3b38] sm:$0xff]  ;;  %v2061_v7 = vld [vmem:[#allocation5 + $0x3ac8] sm:$0xff]  ;;  %v2092_v8 = vld [vmem:[#allocation5 + $0x3bc0] sm:$0xff] }
 0x3d4   :  { %10794 = vmatprep.subr.bf16.mxu0 %v10793_v10  ;;  %v10843_v10 = vpack.c.bf16 %v2043_v2, %v2042_v1  ;;  %v10875_v11 = vpack.c.bf16 %v2075_v5, %v2074_v3  ;;  %v10845_v12 = vpack.c.bf16 %v2061_v7, %v2060_v6  ;;  %v2045_v14 = vld [vmem:[#allocation5 + $0x3a48] sm:$0xff]  ;;  %v2063_v19 = vld [vmem:[#allocation5 + $0x3ad8] sm:$0xff]  ;;  %v2100_v6 = vld [vmem:[#allocation5 + $0x3c00] sm:$0xff] }
 0x3d5   :  { %10824 = vmatpush3.bf16.msra.mxu1 %v10823_v9  ;;  %v2093_v9 = vld [vmem:[#allocation5 + $0x3bc8] sm:$0xff]  ;;  %v10849_v25 = vpack.c.bf16 %v2063_v19, %v2062_v18  ;;  %v2051_v57 = vld [vmem:[#allocation5 + $0x3a78] sm:$0xff]  ;;  %v2102_v19 = vld [vmem:[#allocation5 + $0x3c10] sm:$0xff] }
 0x3d6   :  { %10826 = vmatprep.subr.bf16.mxu1 %v10825_v15  ;;  %v2076_v15 = vld [vmem:[#allocation5 + $0x3b40] sm:$0xff]  ;;  %v10877_v16 = vpack.c.bf16 %v2093_v9, %v2092_v8  ;;  %v2083_v61 = vld [vmem:[#allocation5 + $0x3b78] sm:$0xff]  ;;  %v2149_v1 = vld [vmem:[#allocation5 + $0x3d88] sm:$0xff] }
 0x3d7   :  { %10796 = vmatpush3.bf16.msra.mxu0 %v10795_v22  ;;  %v2095_v22 = vld [vmem:[#allocation5 + $0x3bd8] sm:$0xff]  ;;  %v2101_v7 = vld [vmem:[#allocation5 + $0x3c08] sm:$0xff]  ;;  %v2132_v8 = vld [vmem:[#allocation5 + $0x3d00] sm:$0xff] }
 0x3d8   :  { %10830 = vmatprep.subr.bf16.mxu0 %v10829_v24  ;;  %v10879_v24 = vpack.c.bf16 %v2077_v17, %v2076_v15  ;;  %v10881_v28 = vpack.c.bf16 %v2095_v22, %v2094_v20  ;;  %v2133_v9 = vld [vmem:[#allocation5 + $0x3d08] sm:$0xff]  ;;  %v10895_v15 = vpack.c.bf16 %v2101_v7, %v2100_v6  ;;  %v2103_v20 = vld [vmem:[#allocation5 + $0x3c18] sm:$0xff]  ;;  %v2134_v22 = vld [vmem:[#allocation5 + $0x3d10] sm:$0xff] }
 0x3d9   :  { %10828 = vmatpush3.bf16.msra.mxu1 %v10827_v23  ;;  %v10847_v23 = vpack.c.bf16 %v2045_v14, %v2044_v13  ;;  %v2151_v13 = vld [vmem:[#allocation5 + $0x3d98] sm:$0xff]  ;;  %v168_v14 = vld [vmem:[#allocation2 + $0x3a0] sm:$0xff]  ;;  %v10927_v17 = vpack.c.bf16 %v2133_v9, %v2132_v8  ;;  %v2110_v7 = vld [vmem:[#allocation5 + $0x3c50] sm:$0xff] }
 0x3da   :  { %10862 = vmatprep.subr.bf16.mxu1 %v10861_v40  ;;  %6220 = vmatmul.mubr.f32.vlgmr.msra.gmra.mrb[56].mxu0 %v164_v33  ;;  %v2078_v40 = vld [vmem:[#allocation5 + $0x3b50] sm:$0xff]  ;;  %v2097_v33 = vld [vmem:[#allocation5 + $0x3be8] sm:$0xff]  ;;  %v2123_v39 = vld [vmem:[#allocation5 + $0x3cb8] sm:$0xff] }
 0x3db   :  { %10832 = vmatpush3.bf16.msra.mxu0 %v10831_v34  ;;  %6359 = vmatprep.mubr.f32.mxu0 %v169_v48  ;;  %v10851_v34 = vpack.c.bf16 %v2047_v27, %v2046_v26  ;;  %v2098_v48 = vld [vmem:[#allocation5 + $0x3bf0] sm:$0xff]  ;;  %v2121_v26 = vld [vmem:[#allocation5 + $0x3ca8] sm:$0xff]  ;;  %v2152_v27 = vld [vmem:[#allocation5 + $0x3da0] sm:$0xff] }
 0x3dc   :  { %6290 = vmatmul.mubr.f32.vlgmr.msra.gmra.mrb[56].mxu1 %v166_v35  ;;  %10834 = vmatprep.subr.bf16.mxu0 %v10833_v37  ;;  %v10883_v35 = vpack.c.bf16 %v2079_v29, %v2078_v40  ;;  %v2048_v37 = vld [vmem:[#allocation5 + $0x3a60] sm:$0xff]  ;;  %v2153_v40 = vld [vmem:[#allocation5 + $0x3da8] sm:$0xff]  ;;  %v10899_v29 = vpack.c.bf16 %v2103_v20, %v2102_v19  ;;  %v2111_v8 = vld [vmem:[#allocation5 + $0x3c58] sm:$0xff] }
 0x3dd   :  { %10864 = vmatpush3.bf16.msra.mxu1 %v10863_v36  ;;  %6429 = vmatprep.mubr.f32.mxu1 %v171_v50  ;;  %v10853_v36 = vpack.c.bf16 %v2065_v31, %v2064_v30  ;;  %v175_v30 = vld [vmem:[#allocation2 + $0x3d8] sm:$0xff]  ;;  %v2113_v19 = vld [vmem:[#allocation5 + $0x3c68] sm:$0xff]  ;;  %v2144_v20 = vld [vmem:[#allocation5 + $0x3d60] sm:$0xff] }
 0x3de   :  { %10866 = vmatprep.subr.bf16.mxu1 %v10865_v42  ;;  %v10885_v42 = vpack.c.bf16 %v2097_v33, %v2096_v32  ;;  %v2104_v33 = vld [vmem:[#allocation5 + $0x3c20] sm:$0xff] }
 0x3df   :  { %10836 = vmatpush3.bf16.msra.mxu0 %v10835_v49  ;;  %v2099_v49 = vld [vmem:[#allocation5 + $0x3bf8] sm:$0xff] }
 0x3e0   :  { %10838 = vmatprep.subr.bf16.mxu0 %v10837_v52  ;;  %v10855_v52 = vpack.c.bf16 %v2049_v38, %v2048_v37  ;;  %v10889_v60 = vpack.c.bf16 %v2099_v49, %v2098_v48  ;;  %v2137_v37 = vld [vmem:[#allocation5 + $0x3d28] sm:$0xff]  ;;  %v2122_v38 = vld [vmem:[#allocation5 + $0x3cb0] sm:$0xff] }
 0x3e1   :  { %10868 = vmatpush3.bf16.msra.mxu1 %v10867_v51  ;;  %v10905_v45 = vpack.c.bf16 %v2123_v39, %v2122_v38  ;;  %v2138_v48 = vld [vmem:[#allocation5 + $0x3d30] sm:$0xff] }
 0x3e2   :  { %10870 = vmatprep.subr.bf16.mxu1 %v10869_v56  ;;  %v2050_v56 = vld [vmem:[#allocation5 + $0x3a70] sm:$0xff] }
 0x3e3   :  { %10840 = vmatpush3.bf16.msra.mxu0 %v10839_v62  ;;  %v2116_v62 = vld [vmem:[#allocation5 + $0x3c80] sm:$0xff]  ;;  %v10859_v3 = vpack.c.bf16 %v2051_v57, %v2050_v56  ;;  %v2146_v38 = vld [vmem:[#allocation5 + $0x3d70] sm:$0xff] }
 0x3e4   :  { %10842 = vmatprep.subr.bf16.mxu0 %v10841_v0  ;;  %v2148_v0 = vld [vmem:[#allocation5 + $0x3d80] sm:$0xff] }
 0x3e5   :  { %10872 = vmatpush3.bf16.msra.mxu1 %v10871_v63  ;;  %v2117_v63 = vld [vmem:[#allocation5 + $0x3c88] sm:$0xff] }
 0x3e6   :  { %10874 = vmatprep.subr.bf16.mxu1 %v10873_v4  ;;  %v10891_v4 = vpack.c.bf16 %v2083_v61, %v2082_v58  ;;  %v10893_v5 = vpack.c.bf16 %v2117_v63, %v2116_v62  ;;  %v2108_v58 = vld [vmem:[#allocation5 + $0x3c40] sm:$0xff]  ;;  %v2141_v62 = vld [vmem:[#allocation5 + $0x3d48] sm:$0xff]  ;;  %v2126_v63 = vld [vmem:[#allocation5 + $0x3cd0] sm:$0xff] }
 0x3e7   :  { %10844 = vmatpush3.bf16.msra.mxu0 %v10843_v10  ;;  %v2118_v10 = vld [vmem:[#allocation5 + $0x3c90] sm:$0xff] }
 0x3e8   :  { %10846 = vmatprep.subr.bf16.mxu0 %v10845_v12  ;;  %v2150_v12 = vld [vmem:[#allocation5 + $0x3d90] sm:$0xff] }
 0x3e9   :  { %10876 = vmatpush3.bf16.msra.mxu1 %v10875_v11  ;;  %v2119_v11 = vld [vmem:[#allocation5 + $0x3c98] sm:$0xff] }
 0x3ea   :  { %10878 = vmatprep.subr.bf16.mxu1 %v10877_v16  ;;  %v170_v16 = vld [vmem:[#allocation2 + $0x3b0] sm:$0xff]  ;;  %v10897_v18 = vpack.c.bf16 %v2119_v11, %v2118_v10  ;;  %v2143_v10 = vld [vmem:[#allocation5 + $0x3d58] sm:$0xff]  ;;  %v2128_v11 = vld [vmem:[#allocation5 + $0x3ce0] sm:$0xff] }
 0x3eb   :  { %10848 = vmatpush3.bf16.msra.mxu0 %v10847_v23  ;;  %v10929_v23 = vpack.c.bf16 %v2151_v13, %v2150_v12  ;;  %v2129_v12 = vld [vmem:[#allocation5 + $0x3ce8] sm:$0xff]  ;;  %v2160_v13 = vld [vmem:[#allocation5 + $0x3de0] sm:$0xff] }
 0x3ec   :  { %10850 = vmatprep.subr.bf16.mxu0 %v10849_v25  ;;  %v2120_v25 = vld [vmem:[#allocation5 + $0x3ca0] sm:$0xff] }
 0x3ed   :  { %10880 = vmatpush3.bf16.msra.mxu1 %v10879_v24  ;;  %v8305_v41 = vpop.f32.mrb[44].mxu0  ;;  %v2135_v24 = vld [vmem:[#allocation5 + $0x3d18] sm:$0xff]  ;;  %v10901_v32 = vpack.c.bf16 %v2121_v26, %v2120_v25  ;;  %v2130_v25 = vld [vmem:[#allocation5 + $0x3cf0] sm:$0xff] }
 0x3ee   :  { %10882 = vmatprep.subr.bf16.mxu1 %v10881_v28  ;;  %v8306_v46 = vpop.f32.mrb[45].mxu0  ;;  %v173_v28 = vld [vmem:[#allocation2 + $0x3c8] sm:$0xff]  ;;  %v10931_v31 = vpack.c.bf16 %v2135_v24, %v2134_v22  ;;  %v2131_v26 = vld [vmem:[#allocation5 + $0x3cf8] sm:$0xff] }
 0x3ef   :  { %v8340_v47 = vpop.f32.mrb[44].mxu1  ;;  %v8307_v50 = vadd.f32 %v8306_v46, %v8305_v41  ;;  %10852 = vmatpush3.bf16.msra.mxu0 %v10851_v34  ;;  %v2105_v34 = vld [vmem:[#allocation5 + $0x3c28] sm:$0xff]  ;;  %v2154_v41 = vld [vmem:[#allocation5 + $0x3db0] sm:$0xff] }
 0x3f0   :  { %v8341_v51 = vpop.f32.mrb[45].mxu1  ;;  %10854 = vmatprep.subr.bf16.mxu0 %v10853_v36  ;;  %v10933_v36 = vpack.c.bf16 %v2153_v40, %v2152_v27  ;;  %v10903_v43 = vpack.c.bf16 %v2105_v34, %v2104_v33  ;;  %v2106_v46 = vld [vmem:[#allocation5 + $0x3c30] sm:$0xff]  ;;  %v2145_v24 = vld [vmem:[#allocation5 + $0x3d68] sm:$0xff] }
 0x3f1   :  { %v8342_v53 = vadd.f32 %v8341_v51, %v8340_v47  ;;  %10884 = vmatpush3.bf16.msra.mxu1 %v10883_v35  ;;  %v5382_v59 = vadd.f32 %v8307_v50, %v11246_v21  ;;  %v10925_v21 = vpack.c.bf16 %v2149_v1, %v2148_v0  ;;  %v2136_v35 = vld [vmem:[#allocation5 + $0x3d20] sm:$0xff]  ;;  %v2107_v47 = vld [vmem:[#allocation5 + $0x3c38] sm:$0xff]  ;;  %v2158_v1 = vld [vmem:[#allocation5 + $0x3dd0] sm:$0xff]  ;;  %v10951_v34 = vpack.c.bf16 %v2145_v24, %v2144_v20 }
 0x3f2   :  { %10886 = vmatprep.subr.bf16.mxu1 %v10885_v42  ;;  %v2155_v42 = vld [vmem:[#allocation5 + $0x3db8] sm:$0xff]  ;;  %v10935_v44 = vpack.c.bf16 %v2137_v37, %v2136_v35  ;;  %v2124_v51 = vld [vmem:[#allocation5 + $0x3cc0] sm:$0xff]  ;;  %v10921_v35 = vpack.c.bf16 %v2131_v26, %v2130_v25 }
 0x3f3   :  { %v11249_v2 = vadd.f32 %v8342_v53, %v5382_v59  ;;  %10856 = vmatpush3.bf16.msra.mxu0 %v10855_v52  ;;  %v10937_v49 = vpack.c.bf16 %v2155_v42, %v2154_v41  ;;  %v2139_v50 = vld [vmem:[#allocation5 + $0x3d38] sm:$0xff]  ;;  %v2125_v52 = vld [vmem:[#allocation5 + $0x3cc8] sm:$0xff]  ;;  %v2156_v53 = vld [vmem:[#allocation5 + $0x3dc0] sm:$0xff] }
 0x3f4   :  { %10858 = vmatprep.subr.bf16.mxu0 %v10857_v55  ;;  %v10907_v55 = vpack.c.bf16 %v2107_v47, %v2106_v46  ;;  %v10939_v56 = vpack.c.bf16 %v2139_v50, %v2138_v48  ;;  %v10909_v57 = vpack.c.bf16 %v2125_v52, %v2124_v51  ;;  %v2109_v59 = vld [vmem:[#allocation5 + $0x3c48] sm:$0xff]  ;;  %v2127_v0 = vld [vmem:[#allocation5 + $0x3cd8] sm:$0xff]  ;;  %v2164_v51 = vld [vmem:[#allocation5 + $0x3e00] sm:$0xff] }
 0x3f5   :  { %10888 = vmatpush3.bf16.msra.mxu1 %v10887_v54  ;;  %v2157_v54 = vld [vmem:[#allocation5 + $0x3dc8] sm:$0xff]  ;;  %v10913_v6 = vpack.c.bf16 %v2127_v0, %v2126_v63  ;;  %v2115_v37 = vld [vmem:[#allocation5 + $0x3c78] sm:$0xff]  ;;  %v2166_v0 = vld [vmem:[#allocation5 + $0x3e10] sm:$0xff] }
 0x3f6   :  { %10890 = vmatprep.subr.bf16.mxu1 %v10889_v60  ;;  %v2140_v60 = vld [vmem:[#allocation5 + $0x3d40] sm:$0xff]  ;;  %v10941_v61 = vpack.c.bf16 %v2157_v54, %v2156_v53  ;;  %v2147_v42 = vld [vmem:[#allocation5 + $0x3d78] sm:$0xff]  ;;  %v2213_v46 = vld [vmem:[#allocation5 + $0x3f88] sm:$0xff] }
 0x3f7   :  { %10860 = vmatpush3.bf16.msra.mxu0 %v10859_v3  ;;  %v2159_v3 = vld [vmem:[#allocation5 + $0x3dd8] sm:$0xff]  ;;  %v2165_v52 = vld [vmem:[#allocation5 + $0x3e08] sm:$0xff]  ;;  %v2196_v53 = vld [vmem:[#allocation5 + $0x3f00] sm:$0xff] }
 0x3f8   :  { %10894 = vmatprep.subr.bf16.mxu0 %v10893_v5  ;;  %v10943_v5 = vpack.c.bf16 %v2141_v62, %v2140_v60  ;;  %v10945_v9 = vpack.c.bf16 %v2159_v3, %v2158_v1  ;;  %v2197_v54 = vld [vmem:[#allocation5 + $0x3f08] sm:$0xff]  ;;  %v10959_v60 = vpack.c.bf16 %v2165_v52, %v2164_v51  ;;  %v2167_v1 = vld [vmem:[#allocation5 + $0x3e18] sm:$0xff]  ;;  %v2198_v3 = vld [vmem:[#allocation5 + $0x3f10] sm:$0xff] }
 0x3f9   :  { %10892 = vmatpush3.bf16.msra.mxu1 %v10891_v4  ;;  %v10911_v4 = vpack.c.bf16 %v2109_v59, %v2108_v58  ;;  %v2215_v58 = vld [vmem:[#allocation5 + $0x3f98] sm:$0xff]  ;;  %v172_v59 = vld [vmem:[#allocation2 + $0x3c0] sm:$0xff]  ;;  %v10991_v62 = vpack.c.bf16 %v2197_v54, %v2196_v53  ;;  %v2174_v52 = vld [vmem:[#allocation5 + $0x3e50] sm:$0xff] }
 0x3fa   :  { %10926 = vmatprep.subr.bf16.mxu1 %v10925_v21  ;;  %6360 = vmatmul.mubr.f32.vlgmr.msra.gmra.mrb[58].mxu0 %v168_v14  ;;  %v2142_v21 = vld [vmem:[#allocation5 + $0x3d50] sm:$0xff]  ;;  %v2161_v14 = vld [vmem:[#allocation5 + $0x3de8] sm:$0xff]  ;;  %v2187_v20 = vld [vmem:[#allocation5 + $0x3eb8] sm:$0xff] }
 0x3fb   :  { %10896 = vmatpush3.bf16.msra.mxu0 %v10895_v15  ;;  %6499 = vmatprep.mubr.f32.mxu0 %v173_v28  ;;  %v10915_v15 = vpack.c.bf16 %v2111_v8, %v2110_v7  ;;  %v2162_v28 = vld [vmem:[#allocation5 + $0x3df0] sm:$0xff]  ;;  %v2185_v7 = vld [vmem:[#allocation5 + $0x3ea8] sm:$0xff]  ;;  %v2216_v8 = vld [vmem:[#allocation5 + $0x3fa0] sm:$0xff] }
 0x3fc   :  { %6430 = vmatmul.mubr.f32.vlgmr.msra.gmra.mrb[58].mxu1 %v170_v16  ;;  %10898 = vmatprep.subr.bf16.mxu0 %v10897_v18  ;;  %v10947_v16 = vpack.c.bf16 %v2143_v10, %v2142_v21  ;;  %v2112_v18 = vld [vmem:[#allocation5 + $0x3c60] sm:$0xff]  ;;  %v2217_v21 = vld [vmem:[#allocation5 + $0x3fa8] sm:$0xff]  ;;  %v10963_v10 = vpack.c.bf16 %v2167_v1, %v2166_v0  ;;  %v2175_v53 = vld [vmem:[#allocation5 + $0x3e58] sm:$0xff] }
 0x3fd   :  { %10928 = vmatpush3.bf16.msra.mxu1 %v10927_v17  ;;  %6569 = vmatprep.mubr.f32.mxu1 %v175_v30  ;;  %v10917_v17 = vpack.c.bf16 %v2129_v12, %v2128_v11  ;;  %v179_v11 = vld [vmem:[#allocation2 + $0x3f8] sm:$0xff]  ;;  %v2177_v0 = vld [vmem:[#allocation5 + $0x3e68] sm:$0xff]  ;;  %v2208_v1 = vld [vmem:[#allocation5 + $0x3f60] sm:$0xff] }
 0x3fe   :  { %10930 = vmatprep.subr.bf16.mxu1 %v10929_v23  ;;  %v10949_v23 = vpack.c.bf16 %v2161_v14, %v2160_v13  ;;  %v2168_v14 = vld [vmem:[#allocation5 + $0x3e20] sm:$0xff] }
 0x3ff   :  { %10900 = vmatpush3.bf16.msra.mxu0 %v10899_v29  ;;  %v2163_v29 = vld [vmem:[#allocation5 + $0x3df8] sm:$0xff] }
 0x400   :  { %10902 = vmatprep.subr.bf16.mxu0 %v10901_v32  ;;  %v10919_v32 = vpack.c.bf16 %v2113_v19, %v2112_v18  ;;  %v10953_v41 = vpack.c.bf16 %v2163_v29, %v2162_v28  ;;  %v2201_v18 = vld [vmem:[#allocation5 + $0x3f28] sm:$0xff]  ;;  %v2186_v19 = vld [vmem:[#allocation5 + $0x3eb0] sm:$0xff] }
 0x401   :  { %10932 = vmatpush3.bf16.msra.mxu1 %v10931_v31  ;;  %v10969_v26 = vpack.c.bf16 %v2187_v20, %v2186_v19  ;;  %v2202_v28 = vld [vmem:[#allocation5 + $0x3f30] sm:$0xff] }
 0x402   :  { %10934 = vmatprep.subr.bf16.mxu1 %v10933_v36  ;;  %v2114_v36 = vld [vmem:[#allocation5 + $0x3c70] sm:$0xff] }
 0x403   :  { %10904 = vmatpush3.bf16.msra.mxu0 %v10903_v43  ;;  %v2180_v43 = vld [vmem:[#allocation5 + $0x3e80] sm:$0xff]  ;;  %v10923_v48 = vpack.c.bf16 %v2115_v37, %v2114_v36 }
 0x404   :  { %10906 = vmatprep.subr.bf16.mxu0 %v10905_v45  ;;  %v2212_v45 = vld [vmem:[#allocation5 + $0x3f80] sm:$0xff] }
 0x405   :  { %10936 = vmatpush3.bf16.msra.mxu1 %v10935_v44  ;;  %v2181_v44 = vld [vmem:[#allocation5 + $0x3e88] sm:$0xff] }
 0x406   :  { %10938 = vmatprep.subr.bf16.mxu1 %v10937_v49  ;;  %v10955_v49 = vpack.c.bf16 %v2147_v42, %v2146_v38  ;;  %v10957_v50 = vpack.c.bf16 %v2181_v44, %v2180_v43  ;;  %v2172_v38 = vld [vmem:[#allocation5 + $0x3e40] sm:$0xff]  ;;  %v2205_v43 = vld [vmem:[#allocation5 + $0x3f48] sm:$0xff]  ;;  %v2190_v44 = vld [vmem:[#allocation5 + $0x3ed0] sm:$0xff] }
 0x407   :  { %10908 = vmatpush3.bf16.msra.mxu0 %v10907_v55  ;;  %v2182_v55 = vld [vmem:[#allocation5 + $0x3e90] sm:$0xff] }
 0x408   :  { %10910 = vmatprep.subr.bf16.mxu0 %v10909_v57  ;;  %v2214_v57 = vld [vmem:[#allocation5 + $0x3f90] sm:$0xff] }
 0x409   :  { %10940 = vmatpush3.bf16.msra.mxu1 %v10939_v56  ;;  %v2183_v56 = vld [vmem:[#allocation5 + $0x3e98] sm:$0xff] }
 0x40a   :  { %10942 = vmatprep.subr.bf16.mxu1 %v10941_v61  ;;  %v174_v61 = vld [vmem:[#allocation2 + $0x3d0] sm:$0xff]  ;;  %v10961_v63 = vpack.c.bf16 %v2183_v56, %v2182_v55  ;;  %v2207_v55 = vld [vmem:[#allocation5 + $0x3f58] sm:$0xff]  ;;  %v2192_v56 = vld [vmem:[#allocation5 + $0x3ee0] sm:$0xff] }
 0x40b   :  { %10912 = vmatpush3.bf16.msra.mxu0 %v10911_v4  ;;  %v10993_v4 = vpack.c.bf16 %v2215_v58, %v2214_v57  ;;  %v2193_v57 = vld [vmem:[#allocation5 + $0x3ee8] sm:$0xff]  ;;  %v2224_v58 = vld [vmem:[#allocation5 + $0x3fe0] sm:$0xff] }
 0x40c   :  { %10914 = vmatprep.subr.bf16.mxu0 %v10913_v6  ;;  %v2184_v6 = vld [vmem:[#allocation5 + $0x3ea0] sm:$0xff] }
 0x40d   :  { %10944 = vmatpush3.bf16.msra.mxu1 %v10943_v5  ;;  %v8375_v22 = vpop.f32.mrb[46].mxu0  ;;  %v2199_v5 = vld [vmem:[#allocation5 + $0x3f18] sm:$0xff]  ;;  %v10965_v13 = vpack.c.bf16 %v2185_v7, %v2184_v6  ;;  %v2194_v6 = vld [vmem:[#allocation5 + $0x3ef0] sm:$0xff] }
 0x40e   :  { %10946 = vmatprep.subr.bf16.mxu1 %v10945_v9  ;;  %v8376_v27 = vpop.f32.mrb[47].mxu0  ;;  %v177_v9 = vld [vmem:[#allocation2 + $0x3e8] sm:$0xff]  ;;  %v10995_v12 = vpack.c.bf16 %v2199_v5, %v2198_v3  ;;  %v2195_v7 = vld [vmem:[#allocation5 + $0x3ef8] sm:$0xff] }
 0x40f   :  { %v8410_v40 = vpop.f32.mrb[46].mxu1  ;;  %v8377_v30 = vadd.f32 %v8376_v27, %v8375_v22  ;;  %10916 = vmatpush3.bf16.msra.mxu0 %v10915_v15  ;;  %v2169_v15 = vld [vmem:[#allocation5 + $0x3e28] sm:$0xff]  ;;  %v2218_v22 = vld [vmem:[#allocation5 + $0x3fb0] sm:$0xff] }
 0x410   :  { %v8411_v31 = vpop.f32.mrb[47].mxu1  ;;  %10918 = vmatprep.subr.bf16.mxu0 %v10917_v17  ;;  %v10997_v17 = vpack.c.bf16 %v2217_v21, %v2216_v8  ;;  %v10967_v24 = vpack.c.bf16 %v2169_v15, %v2168_v14  ;;  %v2170_v27 = vld [vmem:[#allocation5 + $0x3e30] sm:$0xff]  ;;  %v2209_v5 = vld [vmem:[#allocation5 + $0x3f68] sm:$0xff] }
 0x411   :  { %v8412_v33 = vadd.f32 %v8411_v31, %v8410_v40  ;;  %10948 = vmatpush3.bf16.msra.mxu1 %v10947_v16  ;;  %v5522_v39 = vadd.f32 %v8377_v30, %v11249_v2  ;;  %v10989_v2 = vpack.c.bf16 %v2213_v46, %v2212_v45  ;;  %v2200_v16 = vld [vmem:[#allocation5 + $0x3f20] sm:$0xff]  ;;  %v2171_v40 = vld [vmem:[#allocation5 + $0x3e38] sm:$0xff]  ;;  %v2222_v46 = vld [vmem:[#allocation5 + $0x3fd0] sm:$0xff]  ;;  %v11015_v15 = vpack.c.bf16 %v2209_v5, %v2208_v1 }
 0x412   :  { %10950 = vmatprep.subr.bf16.mxu1 %v10949_v23  ;;  %v2219_v23 = vld [vmem:[#allocation5 + $0x3fb8] sm:$0xff]  ;;  %v10999_v25 = vpack.c.bf16 %v2201_v18, %v2200_v16  ;;  %v2188_v31 = vld [vmem:[#allocation5 + $0x3ec0] sm:$0xff]  ;;  %v10985_v16 = vpack.c.bf16 %v2195_v7, %v2194_v6 }
 0x413   :  { %v11252_v47 = vadd.f32 %v8412_v33, %v5522_v39  ;;  %10920 = vmatpush3.bf16.msra.mxu0 %v10919_v32  ;;  %v11001_v29 = vpack.c.bf16 %v2219_v23, %v2218_v22  ;;  %v2203_v30 = vld [vmem:[#allocation5 + $0x3f38] sm:$0xff]  ;;  %v2189_v32 = vld [vmem:[#allocation5 + $0x3ec8] sm:$0xff]  ;;  %v2220_v33 = vld [vmem:[#allocation5 + $0x3fc0] sm:$0xff] }
 0x414   :  { %10922 = vmatprep.subr.bf16.mxu0 %v10921_v35  ;;  %v10971_v35 = vpack.c.bf16 %v2171_v40, %v2170_v27  ;;  %v11003_v36 = vpack.c.bf16 %v2203_v30, %v2202_v28  ;;  %v10973_v37 = vpack.c.bf16 %v2189_v32, %v2188_v31  ;;  %v2173_v39 = vld [vmem:[#allocation5 + $0x3e48] sm:$0xff]  ;;  %v2191_v45 = vld [vmem:[#allocation5 + $0x3ed8] sm:$0xff]  ;;  %v2210_v22 = vld [vmem:[#allocation5 + $0x3f70] sm:$0xff] }
 0x415   :  { %10952 = vmatpush3.bf16.msra.mxu1 %v10951_v34  ;;  %v2221_v34 = vld [vmem:[#allocation5 + $0x3fc8] sm:$0xff]  ;;  %v10977_v51 = vpack.c.bf16 %v2191_v45, %v2190_v44  ;;  %v2179_v18 = vld [vmem:[#allocation5 + $0x3e78] sm:$0xff]  ;;  %v176_v27 = vld [vmem:[#allocation2 + $0x3e0] sm:$0xff] }
 0x416   :  { %10954 = vmatprep.subr.bf16.mxu1 %v10953_v41  ;;  %v2204_v41 = vld [vmem:[#allocation5 + $0x3f40] sm:$0xff]  ;;  %v11005_v42 = vpack.c.bf16 %v2221_v34, %v2220_v33  ;;  %v2211_v23 = vld [vmem:[#allocation5 + $0x3f78] sm:$0xff]  ;;  %v178_v40 = vld [vmem:[#allocation2 + $0x3f0] sm:$0xff] }
 0x417   :  { %10924 = vmatpush3.bf16.msra.mxu0 %v10923_v48  ;;  %v2223_v48 = vld [vmem:[#allocation5 + $0x3fd8] sm:$0xff] }
 0x418   :  { %10958 = vmatprep.subr.bf16.mxu0 %v10957_v50  ;;  %v11007_v50 = vpack.c.bf16 %v2205_v43, %v2204_v41  ;;  %v11009_v54 = vpack.c.bf16 %v2223_v48, %v2222_v46 }
 0x419   :  { %10956 = vmatpush3.bf16.msra.mxu1 %v10955_v49  ;;  %v10975_v49 = vpack.c.bf16 %v2173_v39, %v2172_v38 }
 0x41a   :  { %10990 = vmatprep.subr.bf16.mxu1 %v10989_v2  ;;  %6500 = vmatmul.mubr.f32.vlgmr.msra.gmra.mrb[60].mxu0 %v172_v59  ;;  %v2206_v2 = vld [vmem:[#allocation5 + $0x3f50] sm:$0xff]  ;;  %v2225_v59 = vld [vmem:[#allocation5 + $0x3fe8] sm:$0xff] }
 0x41b   :  { %10960 = vmatpush3.bf16.msra.mxu0 %v10959_v60  ;;  %6639 = vmatprep.mubr.f32.mxu0 %v177_v9  ;;  %v10979_v60 = vpack.c.bf16 %v2175_v53, %v2174_v52  ;;  %v2226_v9 = vld [vmem:[#allocation5 + $0x3ff0] sm:$0xff] }
 0x41c   :  { %6570 = vmatmul.mubr.f32.vlgmr.msra.gmra.mrb[60].mxu1 %v174_v61  ;;  %10962 = vmatprep.subr.bf16.mxu0 %v10961_v63  ;;  %v11011_v61 = vpack.c.bf16 %v2207_v55, %v2206_v2  ;;  %v2176_v63 = vld [vmem:[#allocation5 + $0x3e60] sm:$0xff] }
 0x41d   :  { %10992 = vmatpush3.bf16.msra.mxu1 %v10991_v62  ;;  %6709 = vmatprep.mubr.f32.mxu1 %v179_v11  ;;  %v10981_v62 = vpack.c.bf16 %v2193_v57, %v2192_v56 }
 0x41e   :  { %10994 = vmatprep.subr.bf16.mxu1 %v10993_v4  ;;  %v11013_v4 = vpack.c.bf16 %v2225_v59, %v2224_v58 }
 0x41f   :  { %10964 = vmatpush3.bf16.msra.mxu0 %v10963_v10  ;;  %v2227_v10 = vld [vmem:[#allocation5 + $0x3ff8] sm:$0xff] }
 0x420   :  { %10966 = vmatprep.subr.bf16.mxu0 %v10965_v13  ;;  %v10983_v13 = vpack.c.bf16 %v2177_v0, %v2176_v63  ;;  %v11017_v20 = vpack.c.bf16 %v2227_v10, %v2226_v9 }
 0x421   :  { %10996 = vmatpush3.bf16.msra.mxu1 %v10995_v12 }
 0x422   :  { %10998 = vmatprep.subr.bf16.mxu1 %v10997_v17  ;;  %v2178_v17 = vld [vmem:[#allocation5 + $0x3e70] sm:$0xff] }
 0x423   :  { %10968 = vmatpush3.bf16.msra.mxu0 %v10967_v24 }
 0x424   :  { %10970 = vmatprep.subr.bf16.mxu0 %v10969_v26  ;;  %v11019_v26 = vpack.c.bf16 %v2211_v23, %v2210_v22 }
 0x425   :  { %11000 = vmatpush3.bf16.msra.mxu1 %v10999_v25  ;;  %v10987_v25 = vpack.c.bf16 %v2179_v18, %v2178_v17 }
 0x426   :  { %11002 = vmatprep.subr.bf16.mxu1 %v11001_v29 }
 0x427   :  { %10972 = vmatpush3.bf16.msra.mxu0 %v10971_v35 }
 0x428   :  { %10974 = vmatprep.subr.bf16.mxu0 %v10973_v37 }
 0x429   :  { %11004 = vmatpush3.bf16.msra.mxu1 %v11003_v36 }
 0x42a   :  { %11006 = vmatprep.subr.bf16.mxu1 %v11005_v42 }
 0x42b   :  { %10976 = vmatpush3.bf16.msra.mxu0 %v10975_v49 }
 0x42c   :  { %10978 = vmatprep.subr.bf16.mxu0 %v10977_v51 }
 0x42d   :  { %11008 = vmatpush3.bf16.msra.mxu1 %v11007_v50  ;;  %v8445_v3 = vpop.f32.mrb[48].mxu0 }
 0x42e   :  { %11010 = vmatprep.subr.bf16.mxu1 %v11009_v54  ;;  %v8446_v8 = vpop.f32.mrb[49].mxu0 }
 0x42f   :  { %v8480_v21 = vpop.f32.mrb[48].mxu1  ;;  %v8447_v11 = vadd.f32 %v8446_v8, %v8445_v3  ;;  %10980 = vmatpush3.bf16.msra.mxu0 %v10979_v60 }
 0x430   :  { %v8481_v12 = vpop.f32.mrb[49].mxu1  ;;  %10982 = vmatprep.subr.bf16.mxu0 %v10981_v62 }
 0x431   :  { %v8482_v14 = vadd.f32 %v8481_v12, %v8480_v21  ;;  %11012 = vmatpush3.bf16.msra.mxu1 %v11011_v61  ;;  %v5662_v19 = vadd.f32 %v8447_v11, %v11252_v47 }
 0x432   :  { %11014 = vmatprep.subr.bf16.mxu1 %v11013_v4 }
 0x433   :  { %v5732_v24 = vadd.f32 %v8482_v14, %v5662_v19  ;;  %10984 = vmatpush3.bf16.msra.mxu0 %v10983_v13 }
 0x434   :  { %10986 = vmatprep.subr.bf16.mxu0 %v10985_v16 }
 0x435   :  { %11016 = vmatpush3.bf16.msra.mxu1 %v11015_v15 }
 0x436   :  { %11018 = vmatprep.subr.bf16.mxu1 %v11017_v20 }
 0x437   :  { %10988 = vmatpush3.bf16.msra.mxu0 %v10987_v25 }
 0x439   :  { %11020 = vmatpush3.bf16.msra.mxu1 %v11019_v26 }
 0x43a   :  { %6640 = vmatmul.mubr.f32.vlgmr.msra.gmra.mrb[62].mxu0 %v176_v27 }
 0x43c   :  { %6710 = vmatmul.mubr.f32.vlgmr.msra.gmra.mrb[62].mxu1 %v178_v40 }
 0x44d   :  { %v8515_v28 = vpop.f32.mrb[50].mxu0 }
 0x44e   :  { %v8516_v29 = vpop.f32.mrb[51].mxu0 }
 0x44f   :  { %v8550_v47 = vpop.f32.mrb[50].mxu1  ;;  %v8517_v30 = vadd.f32 %v8516_v29, %v8515_v28 }
 0x450   :  { %v8551_v31 = vpop.f32.mrb[51].mxu1 }
 0x451   :  { %v8552_v32 = vadd.f32 %v8551_v31, %v8550_v47  ;;  %v5802_v33 = vadd.f32 %v8517_v30, %v5732_v24 }
 0x453   :  { %v5872_v34 = vadd.f32 %v8552_v32, %v5802_v33 }
 0x46d   :  { %v8585_v35 = vpop.f32.mrb[52].mxu0 }
 0x46e   :  { %v8586_v36 = vpop.f32.mrb[53].mxu0 }
 0x46f   :  { %v8620_v37 = vpop.f32.mrb[52].mxu1  ;;  %v8587_v38 = vadd.f32 %v8586_v36, %v8585_v35 }
 0x470   :  { %v8621_v39 = vpop.f32.mrb[53].mxu1 }
 0x471   :  { %v8622_v41 = vadd.f32 %v8621_v39, %v8620_v37  ;;  %v5942_v42 = vadd.f32 %v8587_v38, %v5872_v34 }
 0x473   :  { %v6012_v43 = vadd.f32 %v8622_v41, %v5942_v42 }
 0x48d   :  { %v8655_v44 = vpop.f32.mrb[54].mxu0 }
 0x48e   :  { %v8656_v45 = vpop.f32.mrb[55].mxu0 }
 0x48f   :  { %v8690_v46 = vpop.f32.mrb[54].mxu1  ;;  %v8657_v48 = vadd.f32 %v8656_v45, %v8655_v44 }
 0x490   :  { %v8691_v49 = vpop.f32.mrb[55].mxu1 }
 0x491   :  { %v8692_v50 = vadd.f32 %v8691_v49, %v8690_v46  ;;  %v6082_v51 = vadd.f32 %v8657_v48, %v6012_v43 }
 0x493   :  { %v6152_v52 = vadd.f32 %v8692_v50, %v6082_v51 }
 0x4ad   :  { %v8725_v53 = vpop.f32.mrb[56].mxu0 }
 0x4ae   :  { %v8726_v2 = vpop.f32.mrb[57].mxu0 }
 0x4af   :  { %v8760_v54 = vpop.f32.mrb[56].mxu1  ;;  %v8727_v55 = vadd.f32 %v8726_v2, %v8725_v53 }
 0x4b0   :  { %v8761_v56 = vpop.f32.mrb[57].mxu1 }
 0x4b1   :  { %v8762_v57 = vadd.f32 %v8761_v56, %v8760_v54  ;;  %v6222_v58 = vadd.f32 %v8727_v55, %v6152_v52 }
 0x4b3   :  { %v6292_v59 = vadd.f32 %v8762_v57, %v6222_v58 }
 0x4cd   :  { %v8795_v60 = vpop.f32.mrb[58].mxu0 }
 0x4ce   :  { %v8796_v61 = vpop.f32.mrb[59].mxu0 }
 0x4cf   :  { %v8830_v62 = vpop.f32.mrb[58].mxu1  ;;  %v8797_v63 = vadd.f32 %v8796_v61, %v8795_v60 }
 0x4d0   :  { %v8831_v0 = vpop.f32.mrb[59].mxu1 }
 0x4d1   :  { %v8832_v1 = vadd.f32 %v8831_v0, %v8830_v62  ;;  %v6362_v3 = vadd.f32 %v8797_v63, %v6292_v59 }
 0x4d3   :  { %v6432_v4 = vadd.f32 %v8832_v1, %v6362_v3 }
 0x4ed   :  { %v8865_v5 = vpop.f32.mrb[60].mxu0 }
 0x4ee   :  { %v8866_v6 = vpop.f32.mrb[61].mxu0 }
 0x4ef   :  { %v8900_v7 = vpop.f32.mrb[60].mxu1  ;;  %v8867_v8 = vadd.f32 %v8866_v6, %v8865_v5 }
 0x4f0   :  { %v8901_v21 = vpop.f32.mrb[61].mxu1 }
 0x4f1   :  { %v8902_v9 = vadd.f32 %v8901_v21, %v8900_v7  ;;  %v6502_v10 = vadd.f32 %v8867_v8, %v6432_v4 }
 0x4f3   :  { %v6572_v11 = vadd.f32 %v8902_v9, %v6502_v10 }
 0x50d   :  { %v8935_v12 = vpop.f32.mrb[62].mxu0 }
 0x50e   :  { %v8936_v13 = vpop.f32.mrb[63].mxu0 }
 0x50f   :  { %v8970_v14 = vpop.f32.mrb[62].mxu1  ;;  %v8937_v15 = vadd.f32 %v8936_v13, %v8935_v12 }
 0x510   :  { %v8971_v16 = vpop.f32.mrb[63].mxu1 }
 0x511   :  { %v8972_v17 = vadd.f32 %v8971_v16, %v8970_v14  ;;  %v6642_v18 = vadd.f32 %v8937_v15, %v6572_v11 }
 0x513   :  { %v6712_v19 = vadd.f32 %v8972_v17, %v6642_v18 }
 0x515   :  { %6715 = vst [vmem:[#allocation8] sm:$0xff] %v6712_v19 }
 0x516   :  { %11104 = shalt.err (!%p11101_p0)
}
 0x517   :  { %s11105_s26 = scalar_lea.hbm %s11270_s3, 128 }
 0x518   :  { %p11106_p1 = scmp.ne.s32.totalorder %s11270_s3, %s11105_s26  ;;  %p11109_p2 = scmp.lt.u32.totalorder %s11105_s26, %s11270_s3 }
 0x51a   :  { %p11111_p3 = pnand %p11109_p2, %p11106_p1 }
 0x51c   :  { %11114 = shalt.err (!%p11111_p3)
}
 0x51d   :  { %6725 = dma.vmem_to_hbm [thread:$0]  %s6723_s22, 128, %s11270_s3, [#allocation4]  }
 0x51e   :  { %11119 = dma.done.wait [#allocation4], 128  }
 0x51f   :  { %11120 = vsyncadd [#allocation4], 4294967168 }
 0x520   :  { %6729 = vsyncpa [#allocation3], 1 }
 0x521   :  { %6730 = vsyncpa [#allocation6], 1 }
 0x522   :  { %6731 = vsyncpa [#allocation4], 1 }

</bundles_post_ra>
